<compile_context>
chip_gen: v5e
topology: v5e:2x2
jax: 0.10.0
libtpu: 0.0.40
codegen_flags: <defaults>
</compile_context>

<pallas_src>
import functools

import numpy as np
import jax
import jax.numpy as jnp
from jax.experimental import pallas as pl
from jax.experimental.pallas import tpu as pltpu


# ---------------------------------------------------------------------------
# Pallas kernel: split-embedding first layer + MLP + SG post-processing +
# bf16 hi/lo output permutation, all fused.
# ---------------------------------------------------------------------------
def _sg_kernel(num_sgs, num_mus, multires, matmul_dtype, x_ref, *refs):
    o_ref = refs[-1]            # (tile_n, (4+num_mus)*S) output block
    p_ref = refs[-2]            # ((4+num_mus)*S, (4+num_mus)*S) bf16 0/1 permutation
    prefs = refs[:-2]           # parameter refs

    md = matmul_dtype
    xi = x_ref[...]             # (tile_n, 3*(multires+1)) or (tile_n, 3), f32

    # --- first layer: positional embedding fused via split matmuls (no concat) ---
    if multires > 0:
        w0x = prefs[0][...]     # (in_w, D1), rows 3: are zero
        w0s = prefs[1][...]     # (in_w, D1), rows :3 are zero  (sin blocks)
        w0c = prefs[2][...]     # (in_w, D1), rows :3 are zero  (cos blocks)
        b0 = prefs[3][...]
        # sin/cos over all in_w lanes (first 3 are wasted EUP lanes; their weight
        # rows are zero so they contribute nothing) -- avoids any lane slicing.
        h = jnp.dot(xi.astype(md), w0x, preferred_element_type=jnp.float32)
        h = h + jnp.dot(jnp.sin(xi).astype(md), w0s,
                        preferred_element_type=jnp.float32)
        h = h + jnp.dot(jnp.cos(xi).astype(md), w0c,
                        preferred_element_type=jnp.float32)
        rest = prefs[4:]
    else:
        w0 = prefs[0][...]
        b0 = prefs[1][...]
        h = jnp.dot(xi.astype(md), w0, preferred_element_type=jnp.float32)
        rest = prefs[2:]
    h = h + b0

    # --- remaining layers: activations stay in matmul_dtype between layers ---
    n_rest = len(rest) // 2     # hidden layers + head
    if n_rest > 0:
        h = jnp.maximum(h, 0.0).astype(md)          # ReLU after first (hidden) layer
    for li in range(n_rest):
        w = rest[2 * li][...]                        # matmul_dtype
        b = rest[2 * li + 1][...]                    # f32
        h = jnp.dot(h, w, preferred_element_type=jnp.float32) + b
        if li < n_rest - 1:                          # ReLU on hidden layers only
            h = jnp.maximum(h, 0.0).astype(md)

    # h: raw head output, field-major (tile_n, (3+num_mus)*S), f32
    S = num_sgs
    two_pi = jnp.float32(2.0 * np.pi)

    # One sigmoid pass over the contiguous 0:3S lane range (theta, phi, lambda).
    sig = jax.nn.sigmoid(h[:, :3 * S])
    theta = sig[:, 0:S] * two_pi
    phi = sig[:, S:2 * S] * two_pi
    lam = sig[:, 2 * S:3 * S] * 30.0 + 0.1

    sin_phi = jnp.sin(phi)
    lobe_x = jnp.cos(theta) * sin_phi
    lobe_y = jnp.sin(theta) * sin_phi
    lobe_z = jnp.cos(phi)

    parts = [lobe_x, lobe_y, lobe_z, lam]
    if num_mus > 0:
        parts.append(jnp.maximum(h[:, 3 * S:(3 + num_mus) * S], 0.0))
    res_fm = jnp.concatenate(parts, axis=-1)         # (tile_n, (4+num_mus)*S), f32

    # Field-major -> per-SG permutation as two NATIVE bf16 MXU passes (hi/lo split,
    # ~1e-7-relative exact since P is 0/1); replaces the multi-pass f32 matmul.
    p = p_ref[...]                                   # bf16
    hi = res_fm.astype(jnp.bfloat16)
    lo = (res_fm - hi.astype(jnp.float32)).astype(jnp.bfloat16)
    o_ref[...] = (jnp.dot(hi, p, preferred_element_type=jnp.float32)
                  + jnp.dot(lo, p, preferred_element_type=jnp.float32))


# ---------------------------------------------------------------------------
# Glue: parameter permutation / splitting, tiling, pallas_call wrapper.
# ---------------------------------------------------------------------------
def positional_embed(x, multires):
    # matches Embedder: include_input, log-sampled freqs, [sin, cos] per freq
    freqs = 2.0 ** np.linspace(0.0, multires - 1, multires)
    outs = [x]
    for f in freqs:
        outs.append(jnp.sin(x * f))
        outs.append(jnp.cos(x * f))
    return jnp.concatenate(outs, axis=-1)


def _split_first_layer(w1, multires, matmul_dtype):
    """Split W1 (rows ordered [x, sin f0, cos f0, sin f1, cos f1, ...]) into three
    row-padded matrices over the kernel input layout [x, f0*x, f1*x, ...]."""
    d1 = w1.shape[1]
    in_w = 3 * (multires + 1)
    wx = jnp.zeros((in_w, d1), jnp.float32).at[0:3].set(w1[0:3])
    ws = jnp.zeros((in_w, d1), jnp.float32)
    wc = jnp.zeros((in_w, d1), jnp.float32)
    for i in range(multires):
        ws = ws.at[3 + 3 * i:6 + 3 * i].set(w1[3 + 6 * i:6 + 6 * i])
        wc = wc.at[3 + 3 * i:6 + 3 * i].set(w1[6 + 6 * i:9 + 6 * i])
    return (jnp.asarray(wx, matmul_dtype),
            jnp.asarray(ws, matmul_dtype),
            jnp.asarray(wc, matmul_dtype))


def sphere_gaussians_forward(points, params, *, num_lgt_sgs, num_mus, multires,
                             tile_n=2048, matmul_dtype=jnp.bfloat16):
    N = points.shape[0]
    S = num_lgt_sgs
    F_in = 3 + num_mus          # head fields per SG: theta, phi, lambda, mus
    F_out = 4 + num_mus         # output fields per SG: 3 lobes, lambda, mus

    params = list(params)

    # Head columns: per-SG interleaved -> field-major.
    w_out, b_out = params[-1]
    perm = (np.arange(F_in)[:, None] + F_in * np.arange(S)[None, :]).reshape(-1)
    w_out_fm = jnp.asarray(w_out[:, perm], matmul_dtype)
    b_out_fm = jnp.asarray(b_out[:, perm], jnp.float32)

    # Constant 0/1 matrix mapping field-major column g*S+s -> per-SG column s*F_out+g.
    # Stored in bf16 (exactly representable) so the permutation is native MXU passes.
    P = np.zeros((F_out * S, F_out * S), np.float32)
    g_idx = np.repeat(np.arange(F_out), S)
    s_idx = np.tile(np.arange(S), F_out)
    P[np.arange(F_out * S), s_idx * F_out + g_idx] = 1.0
    P = jnp.asarray(P, jnp.bfloat16)

    # --- row-tile selection -------------------------------------------------
    # Big tiles amortize the ~0.35us/grid-step overhead; keep >= 2 steps for small N
    # and keep the grid EVEN where possible so v7x's two TensorCores split evenly.
    t = max(128, int(tile_n))
    while t > 128 and N < 2 * t:
        t //= 2
    g = pl.cdiv(N, t)
    while g > 1 and (g % 2 == 1) and t > 128:
        t //= 2
        g = pl.cdiv(N, t)
    n_pad = g * t - N
    pts = jnp.pad(points, ((0, n_pad), (0, 0))) if n_pad else points
    Np = pts.shape[0]
    grid = (Np // t,)

    # --- kernel input: [x, f0*x, ..., f_{m-1}*x] (exact power-of-2 scaling in XLA) ---
    if multires > 0:
        freqs = 2.0 ** np.linspace(0.0, multires - 1, multires)
        xi = jnp.concatenate([pts] + [pts * float(f) for f in freqs], axis=-1)
    else:
        xi = pts
    in_w = xi.shape[1]

    def row_map(i):
        return (i, 0)

    def const_map(i):
        return (0, 0)

    in_specs = [pl.BlockSpec((t, in_w), row_map)]
    flat_params = []

    def add_const(arr):
        in_specs.append(pl.BlockSpec(arr.shape, const_map))
        flat_params.append(arr)

    # first layer
    w1, b1 = params[0]
    if multires > 0:
        wx, ws, wc = _split_first_layer(jnp.asarray(w1, jnp.float32), multires,
                                        matmul_dtype)
        add_const(wx); add_const(ws); add_const(wc)
        add_const(jnp.asarray(b1, jnp.float32))
    else:
        add_const(jnp.asarray(w1, matmul_dtype))
        add_const(jnp.asarray(b1, jnp.float32))
    # hidden layers 1..L-1
    for (w, b) in params[1:-1]:
        add_const(jnp.asarray(w, matmul_dtype))
        add_const(jnp.asarray(b, jnp.float32))
    # head (field-major)
    add_const(w_out_fm)
    add_const(b_out_fm)
    # permutation matrix
    add_const(P)

    out_cols = F_out * S
    out_spec = pl.BlockSpec((t, out_cols), row_map)

    out = pl.pallas_call(
        functools.partial(_sg_kernel, S, num_mus, multires, matmul_dtype),
        out_shape=jax.ShapeDtypeStruct((Np, out_cols), jnp.float32),
        grid_spec=pltpu.PrefetchScalarGridSpec(
            num_scalar_prefetch=0,
            grid=grid,
            in_specs=in_specs,
            out_specs=out_spec,
        ),
        compiler_params=pltpu.CompilerParams(
            dimension_semantics=("parallel",),
            # raise the scoped-VMEM cap (v5e defaults to 16 MiB) so t=2048+ fits;
            # actual usage at t=2048 is well under this.
            vmem_limit_bytes=64 * 1024 * 1024,
        ),
    )(xi, *flat_params)

    # Output is already per-SG major: reshape is free (no transpose pass).
    return out[:N].reshape(N, S, F_out)


# ---------------------------------------------------------------------------
# Deterministic parameter init (mimics nn.Linear default uniform init).
# ---------------------------------------------------------------------------
def init_params(key, input_dim, dims, out_dim):
    params = []
    d = input_dim
    for dd in list(dims) + [out_dim]:
        key, k1, k2 = jax.random.split(key, 3)
        bound = 1.0 / np.sqrt(d)
        w = jax.random.uniform(k1, (d, dd), jnp.float32, -bound, bound)
        b = jax.random.uniform(k2, (1, dd), jnp.float32, -bound, bound)
        params.append((w, b))
        d = dd
    return params


# ---------------------------------------------------------------------------
# Pure-JAX reference mirroring the PyTorch forward (for verification).
# matmul_dtype lets us build a precision-matched reference for the bf16 path.
# ---------------------------------------------------------------------------
def reference_forward(points, params, *, num_lgt_sgs, num_mus, multires,
                      matmul_dtype=jnp.float32):
    if multires > 0:
        points = positional_embed(points, multires)

    def mm(x, w):
        return jnp.dot(x.astype(matmul_dtype), jnp.asarray(w, matmul_dtype),
                       preferred_element_type=jnp.float32,
                       precision=jax.lax.Precision.HIGHEST)

    h = points
    for (w, b) in params[:-1]:
        h = jnp.maximum(mm(h, w) + b, 0.0)
    w, b = params[-1]
    out = (mm(h, w) + b).reshape(points.shape[0], num_lgt_sgs, 3 + num_mus)

    lgt = jax.nn.sigmoid(out[..., :2])
    theta = lgt[..., :1] * 2 * np.pi
    phi = lgt[..., 1:2] * 2 * np.pi
    lobes = jnp.concatenate([jnp.cos(theta) * jnp.sin(phi),
                             jnp.sin(theta) * jnp.sin(phi),
                             jnp.cos(phi)], axis=-1)
    lam = jax.nn.sigmoid(out[..., 2:3]) * 30.0 + 0.1
    mu = jnp.maximum(out[..., 3:], 0.0)
    return jnp.concatenate([lobes, lam, mu], axis=-1)


if __name__ == "__main__":
    num_lgt_sgs, num_mus = 24, 3
    dims = [128, 128, 128, 128]
    N = 256
    key = jax.random.PRNGKey(0)

    for multires in (0, 4):  # exercise both the plain and embedded input paths
        input_dim = 3 if multires == 0 else 3 + 3 * 2 * multires
        kp, kx = jax.random.split(jax.random.fold_in(key, multires))
        params = init_params(kp, input_dim, dims, num_lgt_sgs * (3 + num_mus))
        points = jax.random.normal(kx, (N, 3), jnp.float32)

        common = dict(num_lgt_sgs=num_lgt_sgs, num_mus=num_mus, multires=multires)

        # 1) f32 matmul path: original module numerics, tight check vs f32 reference.
        out32 = sphere_gaussians_forward(points, params, matmul_dtype=jnp.float32,
                                         **common)
        out32 = jax.block_until_ready(out32)
        assert out32.shape == (N, num_lgt_sgs, 3 + 1 + num_mus)
        ref32 = reference_forward(points, params, matmul_dtype=jnp.float32, **common)
        np.testing.assert_allclose(np.asarray(out32), np.asarray(ref32),
                                   rtol=1e-3, atol=1e-3)

        # 2) default bf16 matmul path (native MXU dtype): check against a
        #    precision-matched reference (bf16 operands, f32 accumulation).
        out16 = sphere_gaussians_forward(points, params, matmul_dtype=jnp.bfloat16,
                                         **common)
        out16 = jax.block_until_ready(out16)
        assert out16.shape == (N, num_lgt_sgs, 3 + 1 + num_mus)
        ref16 = reference_forward(points, params, matmul_dtype=jnp.bfloat16, **common)
        np.testing.assert_allclose(np.asarray(out16), np.asarray(ref16),
                                   rtol=2e-2, atol=2e-2)

    print("KERNEL_OK")
</pallas_src>

<mosaic_0001>
module attributes {stable_mosaic.version = 11 : i64} {
  func.func @_sg_kernel(%arg0: i32, %arg1: memref<128x3xf32, #tpu.memory_space<vmem>>, %arg2: memref<3x128xf32, #tpu.memory_space<vmem>>, %arg3: memref<1x128xf32, #tpu.memory_space<vmem>>, %arg4: memref<128x128xf32, #tpu.memory_space<vmem>>, %arg5: memref<1x128xf32, #tpu.memory_space<vmem>>, %arg6: memref<128x128xf32, #tpu.memory_space<vmem>>, %arg7: memref<1x128xf32, #tpu.memory_space<vmem>>, %arg8: memref<128x128xf32, #tpu.memory_space<vmem>>, %arg9: memref<1x128xf32, #tpu.memory_space<vmem>>, %arg10: memref<128x144xf32, #tpu.memory_space<vmem>>, %arg11: memref<1x144xf32, #tpu.memory_space<vmem>>, %arg12: memref<168x168xbf16, #tpu.memory_space<vmem>>, %arg13: memref<128x168xf32, #tpu.memory_space<vmem>>) attributes {dimension_semantics = [#tpu.dimension_semantics<parallel>], iteration_bounds = array<i64: 2>, scalar_prefetch = 0 : i64, scratch_operands = 0 : i64, tpu.core_type = #tpu.core_type<tc>, window_params = [{transform_indices = @transform_0, window_bounds = array<i64: 128, 3>}, {pipeline_mode = #tpu.pipeline_mode<synchronous>, transform_indices = @transform_1, window_bounds = array<i64: 3, 128>}, {pipeline_mode = #tpu.pipeline_mode<synchronous>, transform_indices = @transform_2, window_bounds = array<i64: 1, 128>}, {pipeline_mode = #tpu.pipeline_mode<synchronous>, transform_indices = @transform_3, window_bounds = array<i64: 128, 128>}, {pipeline_mode = #tpu.pipeline_mode<synchronous>, transform_indices = @transform_4, window_bounds = array<i64: 1, 128>}, {pipeline_mode = #tpu.pipeline_mode<synchronous>, transform_indices = @transform_5, window_bounds = array<i64: 128, 128>}, {pipeline_mode = #tpu.pipeline_mode<synchronous>, transform_indices = @transform_6, window_bounds = array<i64: 1, 128>}, {pipeline_mode = #tpu.pipeline_mode<synchronous>, transform_indices = @transform_7, window_bounds = array<i64: 128, 128>}, {pipeline_mode = #tpu.pipeline_mode<synchronous>, transform_indices = @transform_8, window_bounds = array<i64: 1, 128>}, {pipeline_mode = #tpu.pipeline_mode<synchronous>, transform_indices = @transform_9, window_bounds = array<i64: 128, 144>}, {pipeline_mode = #tpu.pipeline_mode<synchronous>, transform_indices = @transform_10, window_bounds = array<i64: 1, 144>}, {pipeline_mode = #tpu.pipeline_mode<synchronous>, transform_indices = @transform_11, window_bounds = array<i64: 168, 168>}, {transform_indices = @transform_12, window_bounds = array<i64: 128, 168>}]} {
    %c0 = arith.constant 0 : index
    %c0_0 = arith.constant 0 : index
    %0 = vector.load %arg1[%c0, %c0_0] : memref<128x3xf32, #tpu.memory_space<vmem>>, vector<128x3xf32>
    %c0_1 = arith.constant 0 : index
    %c0_2 = arith.constant 0 : index
    %1 = vector.load %arg2[%c0_1, %c0_2] : memref<3x128xf32, #tpu.memory_space<vmem>>, vector<3x128xf32>
    %c0_3 = arith.constant 0 : index
    %c0_4 = arith.constant 0 : index
    %2 = vector.load %arg3[%c0_3, %c0_4] : memref<1x128xf32, #tpu.memory_space<vmem>>, vector<1x128xf32>
    %cst = arith.constant dense<0.000000e+00> : vector<128x128xf32>
    %3 = tpu.matmul %0, %1, %cst {dimension_numbers = #tpu.dot_dimension_numbers<[1], [0], [0], [1], [0, 0, 1, 1], [], []>} : vector<128x3xf32>, vector<3x128xf32>, vector<128x128xf32> -> vector<128x128xf32>
    %4 = vector.broadcast %2 : vector<1x128xf32> to vector<128x128xf32>
    %5 = arith.addf %3, %4 : vector<128x128xf32>
    %cst_5 = arith.constant 0.000000e+00 : f32
    %6 = vector.broadcast %cst_5 : f32 to vector<128x128xf32>
    %7 = arith.maximumf %5, %6 : vector<128x128xf32>
    %c0_6 = arith.constant 0 : index
    %c0_7 = arith.constant 0 : index
    %8 = vector.load %arg4[%c0_6, %c0_7] : memref<128x128xf32, #tpu.memory_space<vmem>>, vector<128x128xf32>
    %c0_8 = arith.constant 0 : index
    %c0_9 = arith.constant 0 : index
    %9 = vector.load %arg5[%c0_8, %c0_9] : memref<1x128xf32, #tpu.memory_space<vmem>>, vector<1x128xf32>
    %cst_10 = arith.constant dense<0.000000e+00> : vector<128x128xf32>
    %10 = tpu.matmul %7, %8, %cst_10 {dimension_numbers = #tpu.dot_dimension_numbers<[1], [0], [0], [1], [0, 0, 1, 1], [], []>} : vector<128x128xf32>, vector<128x128xf32>, vector<128x128xf32> -> vector<128x128xf32>
    %11 = vector.broadcast %9 : vector<1x128xf32> to vector<128x128xf32>
    %12 = arith.addf %10, %11 : vector<128x128xf32>
    %cst_11 = arith.constant 0.000000e+00 : f32
    %13 = vector.broadcast %cst_11 : f32 to vector<128x128xf32>
    %14 = arith.maximumf %12, %13 : vector<128x128xf32>
    %c0_12 = arith.constant 0 : index
    %c0_13 = arith.constant 0 : index
    %15 = vector.load %arg6[%c0_12, %c0_13] : memref<128x128xf32, #tpu.memory_space<vmem>>, vector<128x128xf32>
    %c0_14 = arith.constant 0 : index
    %c0_15 = arith.constant 0 : index
    %16 = vector.load %arg7[%c0_14, %c0_15] : memref<1x128xf32, #tpu.memory_space<vmem>>, vector<1x128xf32>
    %cst_16 = arith.constant dense<0.000000e+00> : vector<128x128xf32>
    %17 = tpu.matmul %14, %15, %cst_16 {dimension_numbers = #tpu.dot_dimension_numbers<[1], [0], [0], [1], [0, 0, 1, 1], [], []>} : vector<128x128xf32>, vector<128x128xf32>, vector<128x128xf32> -> vector<128x128xf32>
    %18 = vector.broadcast %16 : vector<1x128xf32> to vector<128x128xf32>
    %19 = arith.addf %17, %18 : vector<128x128xf32>
    %cst_17 = arith.constant 0.000000e+00 : f32
    %20 = vector.broadcast %cst_17 : f32 to vector<128x128xf32>
    %21 = arith.maximumf %19, %20 : vector<128x128xf32>
    %c0_18 = arith.constant 0 : index
    %c0_19 = arith.constant 0 : index
    %22 = vector.load %arg8[%c0_18, %c0_19] : memref<128x128xf32, #tpu.memory_space<vmem>>, vector<128x128xf32>
    %c0_20 = arith.constant 0 : index
    %c0_21 = arith.constant 0 : index
    %23 = vector.load %arg9[%c0_20, %c0_21] : memref<1x128xf32, #tpu.memory_space<vmem>>, vector<1x128xf32>
    %cst_22 = arith.constant dense<0.000000e+00> : vector<128x128xf32>
    %24 = tpu.matmul %21, %22, %cst_22 {dimension_numbers = #tpu.dot_dimension_numbers<[1], [0], [0], [1], [0, 0, 1, 1], [], []>} : vector<128x128xf32>, vector<128x128xf32>, vector<128x128xf32> -> vector<128x128xf32>
    %25 = vector.broadcast %23 : vector<1x128xf32> to vector<128x128xf32>
    %26 = arith.addf %24, %25 : vector<128x128xf32>
    %cst_23 = arith.constant 0.000000e+00 : f32
    %27 = vector.broadcast %cst_23 : f32 to vector<128x128xf32>
    %28 = arith.maximumf %26, %27 : vector<128x128xf32>
    %c0_24 = arith.constant 0 : index
    %c0_25 = arith.constant 0 : index
    %29 = vector.load %arg10[%c0_24, %c0_25] : memref<128x144xf32, #tpu.memory_space<vmem>>, vector<128x144xf32>
    %c0_26 = arith.constant 0 : index
    %c0_27 = arith.constant 0 : index
    %30 = vector.load %arg11[%c0_26, %c0_27] : memref<1x144xf32, #tpu.memory_space<vmem>>, vector<1x144xf32>
    %cst_28 = arith.constant dense<0.000000e+00> : vector<128x144xf32>
    %31 = tpu.matmul %28, %29, %cst_28 {dimension_numbers = #tpu.dot_dimension_numbers<[1], [0], [0], [1], [0, 0, 1, 1], [], []>} : vector<128x128xf32>, vector<128x144xf32>, vector<128x144xf32> -> vector<128x144xf32>
    %32 = vector.broadcast %30 : vector<1x144xf32> to vector<128x144xf32>
    %33 = arith.addf %31, %32 : vector<128x144xf32>
    %34 = vector.extract_strided_slice %33 {offsets = [0, 0], sizes = [128, 72], strides = [1, 1]} : vector<128x144xf32> to vector<128x72xf32>
    %35 = arith.negf %34 : vector<128x72xf32>
    %36 = math.exp %35 : vector<128x72xf32>
    %cst_29 = arith.constant 1.000000e+00 : f32
    %37 = vector.broadcast %cst_29 : f32 to vector<128x72xf32>
    %38 = arith.addf %37, %36 : vector<128x72xf32>
    %39 = arith.divf %37, %38 : vector<128x72xf32>
    %40 = vector.extract_strided_slice %39 {offsets = [0, 0], sizes = [128, 24], strides = [1, 1]} : vector<128x72xf32> to vector<128x24xf32>
    %cst_30 = arith.constant 6.28318548 : f32
    %41 = vector.broadcast %cst_30 : f32 to vector<128x24xf32>
    %42 = arith.mulf %40, %41 : vector<128x24xf32>
    %43 = vector.extract_strided_slice %39 {offsets = [0, 24], sizes = [128, 24], strides = [1, 1]} : vector<128x72xf32> to vector<128x24xf32>
    %cst_31 = arith.constant 6.28318548 : f32
    %44 = vector.broadcast %cst_31 : f32 to vector<128x24xf32>
    %45 = arith.mulf %43, %44 : vector<128x24xf32>
    %46 = vector.extract_strided_slice %39 {offsets = [0, 48], sizes = [128, 24], strides = [1, 1]} : vector<128x72xf32> to vector<128x24xf32>
    %cst_32 = arith.constant 3.000000e+01 : f32
    %47 = vector.broadcast %cst_32 : f32 to vector<128x24xf32>
    %48 = arith.mulf %46, %47 : vector<128x24xf32>
    %cst_33 = arith.constant 1.000000e-01 : f32
    %49 = vector.broadcast %cst_33 : f32 to vector<128x24xf32>
    %50 = arith.addf %48, %49 : vector<128x24xf32>
    %51 = math.sin %45 : vector<128x24xf32>
    %52 = math.cos %42 : vector<128x24xf32>
    %53 = arith.mulf %52, %51 : vector<128x24xf32>
    %54 = math.sin %42 : vector<128x24xf32>
    %55 = arith.mulf %54, %51 : vector<128x24xf32>
    %56 = math.cos %45 : vector<128x24xf32>
    %57 = vector.extract_strided_slice %33 {offsets = [0, 72], sizes = [128, 72], strides = [1, 1]} : vector<128x144xf32> to vector<128x72xf32>
    %cst_34 = arith.constant 0.000000e+00 : f32
    %58 = vector.broadcast %cst_34 : f32 to vector<128x72xf32>
    %59 = arith.maximumf %57, %58 : vector<128x72xf32>
    %60 = tpu.concatenate %53, %55, %56, %50, %59 in 1 : vector<128x24xf32>, vector<128x24xf32>, vector<128x24xf32>, vector<128x24xf32>, vector<128x72xf32> -> vector<128x168xf32>
    %c0_35 = arith.constant 0 : index
    %c0_36 = arith.constant 0 : index
    %61 = vector.load %arg12[%c0_35, %c0_36] : memref<168x168xbf16, #tpu.memory_space<vmem>>, vector<168x168xbf16>
    %62 = arith.truncf %60 : vector<128x168xf32> to vector<128x168xbf16>
    %63 = arith.extf %62 : vector<128x168xbf16> to vector<128x168xf32>
    %64 = arith.subf %60, %63 : vector<128x168xf32>
    %65 = arith.truncf %64 : vector<128x168xf32> to vector<128x168xbf16>
    %cst_37 = arith.constant dense<0.000000e+00> : vector<128x168xf32>
    %66 = tpu.matmul %62, %61, %cst_37 {dimension_numbers = #tpu.dot_dimension_numbers<[1], [0], [0], [1], [0, 0, 1, 1], [], []>} : vector<128x168xbf16>, vector<168x168xbf16>, vector<128x168xf32> -> vector<128x168xf32>
    %cst_38 = arith.constant dense<0.000000e+00> : vector<128x168xf32>
    %67 = tpu.matmul %65, %61, %cst_38 {dimension_numbers = #tpu.dot_dimension_numbers<[1], [0], [0], [1], [0, 0, 1, 1], [], []>} : vector<128x168xbf16>, vector<168x168xbf16>, vector<128x168xf32> -> vector<128x168xf32>
    %68 = arith.addf %66, %67 : vector<128x168xf32>
    %c0_39 = arith.constant 0 : index
    %c0_40 = arith.constant 0 : index
    %69 = vector.load %arg13[%c0_39, %c0_40] : memref<128x168xf32, #tpu.memory_space<vmem>>, vector<128x168xf32>
    tpu.vector_store %arg13[%c0_39, %c0_40], %68 {strides = array<i32>} : memref<128x168xf32, #tpu.memory_space<vmem>>, vector<128x168xf32>,
    return
  }
  func.func @transform_0(%arg0: i32) -> (i32, i32) {
    %c0_i32 = arith.constant 0 : i32
    %c0_i32_0 = arith.constant 0 : i32
    return %arg0, %c0_i32 : i32, i32
  }
  func.func @transform_1(%arg0: i32) -> (i32, i32) {
    %c0_i32 = arith.constant 0 : i32
    %c0_i32_0 = arith.constant 0 : i32
    %c0_i32_1 = arith.constant 0 : i32
    return %c0_i32, %c0_i32_0 : i32, i32
  }
  func.func @transform_2(%arg0: i32) -> (i32, i32) {
    %c0_i32 = arith.constant 0 : i32
    %c0_i32_0 = arith.constant 0 : i32
    %c0_i32_1 = arith.constant 0 : i32
    return %c0_i32, %c0_i32_0 : i32, i32
  }
  func.func @transform_3(%arg0: i32) -> (i32, i32) {
    %c0_i32 = arith.constant 0 : i32
    %c0_i32_0 = arith.constant 0 : i32
    %c0_i32_1 = arith.constant 0 : i32
    return %c0_i32, %c0_i32_0 : i32, i32
  }
  func.func @transform_4(%arg0: i32) -> (i32, i32) {
    %c0_i32 = arith.constant 0 : i32
    %c0_i32_0 = arith.constant 0 : i32
    %c0_i32_1 = arith.constant 0 : i32
    return %c0_i32, %c0_i32_0 : i32, i32
  }
  func.func @transform_5(%arg0: i32) -> (i32, i32) {
    %c0_i32 = arith.constant 0 : i32
    %c0_i32_0 = arith.constant 0 : i32
    %c0_i32_1 = arith.constant 0 : i32
    return %c0_i32, %c0_i32_0 : i32, i32
  }
  func.func @transform_6(%arg0: i32) -> (i32, i32) {
    %c0_i32 = arith.constant 0 : i32
    %c0_i32_0 = arith.constant 0 : i32
    %c0_i32_1 = arith.constant 0 : i32
    return %c0_i32, %c0_i32_0 : i32, i32
  }
  func.func @transform_7(%arg0: i32) -> (i32, i32) {
    %c0_i32 = arith.constant 0 : i32
    %c0_i32_0 = arith.constant 0 : i32
    %c0_i32_1 = arith.constant 0 : i32
    return %c0_i32, %c0_i32_0 : i32, i32
  }
  func.func @transform_8(%arg0: i32) -> (i32, i32) {
    %c0_i32 = arith.constant 0 : i32
    %c0_i32_0 = arith.constant 0 : i32
    %c0_i32_1 = arith.constant 0 : i32
    return %c0_i32, %c0_i32_0 : i32, i32
  }
  func.func @transform_9(%arg0: i32) -> (i32, i32) {
    %c0_i32 = arith.constant 0 : i32
    %c0_i32_0 = arith.constant 0 : i32
    %c0_i32_1 = arith.constant 0 : i32
    return %c0_i32, %c0_i32_0 : i32, i32
  }
  func.func @transform_10(%arg0: i32) -> (i32, i32) {
    %c0_i32 = arith.constant 0 : i32
    %c0_i32_0 = arith.constant 0 : i32
    %c0_i32_1 = arith.constant 0 : i32
    return %c0_i32, %c0_i32_0 : i32, i32
  }
  func.func @transform_11(%arg0: i32) -> (i32, i32) {
    %c0_i32 = arith.constant 0 : i32
    %c0_i32_0 = arith.constant 0 : i32
    %c0_i32_1 = arith.constant 0 : i32
    return %c0_i32, %c0_i32_0 : i32, i32
  }
  func.func @transform_12(%arg0: i32) -> (i32, i32) {
    %c0_i32 = arith.constant 0 : i32
    %c0_i32_0 = arith.constant 0 : i32
    return %arg0, %c0_i32 : i32, i32
  }
}

</mosaic_0001>

<bundles_post_ra>
// kernel: tpu_custom_call.1
= control target key start
LH: loop header
LB: loop body
LE: loop exit
PB: predicated region body
PF: predicated region fallthrough
CT: control target
= control target key end

     0   :  { %17 = vsyncpa [#allocation3], 0  ;;  %s8252_s21 = smov 0   ;;  %s12353_s0 = inlined_call_operand.vmem [shape: f32[256,3], index: 0, kind: input, shape index: {}]   ;;  %s12354_s1 = inlined_call_operand.vmem [shape: f32[3,128], index: 1, kind: input, shape index: {}]   ;;  %s12355_s2 = inlined_call_operand.vmem [shape: f32[1,128], index: 2, kind: input, shape index: {}]   ;;  %s12356_s3 = inlined_call_operand.vmem [shape: f32[128,128], index: 3, kind: input, shape index: {}]   ;;  %s12357_s4 = inlined_call_operand.vmem [shape: f32[1,128], index: 4, kind: input, shape index: {}]   ;;  %s12358_s5 = inlined_call_operand.vmem [shape: f32[128,128], index: 5, kind: input, shape index: {}]   ;;  %s12359_s6 = inlined_call_operand.vmem [shape: f32[1,128], index: 6, kind: input, shape index: {}]   ;;  %s12360_s7 = inlined_call_operand.hbm [shape: f32[128,128], index: 7, kind: input, shape index: {}]   ;;  %s12361_s8 = inlined_call_operand.vmem [shape: f32[1,128], index: 8, kind: input, shape index: {}]   ;;  %s12362_s9 = inlined_call_operand.vmem [shape: f32[128,144], index: 9, kind: input, shape index: {}]   ;;  %s12363_s10 = inlined_call_operand.vmem [shape: f32[1,144], index: 10, kind: input, shape index: {}]   ;;  %s12364_s11 = inlined_call_operand.vmem [shape: bf16[168,168], index: 11, kind: input, shape index: {}]   ;;  %s12365_s12 = inlined_call_operand.vmem [shape: f32[256,168], index: 12, kind: output, shape index: {}]  }
   0x1 LB: > { %s340_s24 = sshll.u32 %s12360_s7, 4  ;;  %s7735_s25 = sadd.s32 4294967295, %s8173_s21   ;;  %s8173_s21 = sphi %s8252_s21, %s23_s21   ;;  %s341_s24 = int_to_ptr.hbm [resolvable:$true] %s340_s24 }
   0x2   : > { %p7737_p0 = scmp.ge.s32.totalorder %s8173_s21, 1  ;;  %p311_p1 = scmp.lt.s32.totalorder %s8173_s21, 3 }
   0x3   : > { %p8043_p2 = scmp.eq.s32.totalorder %s7735_s25, 0  ;;  %s8175_s26 = smov [#allocation2]  }
   0x4   : > { %p312_p3 = pnand %p7737_p0, %p311_p1  ;;  %s342_s27 = sshll.u32 %s8175_s26, 4  ;;  %s343_s27 = int_to_ptr.vmem [resolvable:$true] %s342_s27 }
   0x5   : > { %s8176_s28 = smov 128   ;;  %s8177_s29 = smov 8  }
   0x6   : > { %p8039_p4 = pneg %p312_p3  ;;  %379 = sbr.rel (%p312_p3) target bundleno = 1988 (0x7c4), region = 68 }
   0x8   : > { %p8040_p5 = pnand %p8043_p2, %p8039_p4 }
   0xa   : > { %8042 = dma.hbm_to_vmem [thread:$0]  (!%p8040_p5), %s341_s24, 2048, %s343_s27, [#allocation3], %s8176_s28, %s8176_s28, %s8177_s29  }
   0xb   : > { %8168 = dma.done.wait (%p8043_p2), [#allocation3], 2048  }
   0xc   : > { %8170 = vsyncadd (%p8043_p2), [#allocation3], 4294965248  ;;  %s7742_s30 = sshll.u32 %s7735_s25, 4  ;;  %vm507_vm0 = vcmask 1042432   ;;  %vm458_vm1 = vcmask 23552   ;;  %v607_v9 = vld [vmem:[%s12356_s3 + $0x78] sm:$0xff] }
   0xd   : > { %p424_p6 = scmp.lt.s32.totalorder %s7742_s30, 31  ;;  %v453_v0 = vld [vmem:[%s12354_s1] sm:$0x7]  ;;  %v606_v10 = vld [vmem:[%s12356_s3 + $0x70] sm:$0xff]  ;;  %612 = vmatpush.msra.mxu1 %v607_v9  ;;  %v605_v11 = vld [vmem:[%s12356_s3 + $0x68] sm:$0xff]  ;;  %s8178_s14 = smov 24  }
   0xe   : > { %7747 = vmatpush.msk.msra.mxu0 %vm507_vm0, %v453_v0  ;;  %8011 = vmatpush.msk.msra.mxu2 %vm507_vm0, %v453_v0  ;;  %v604_v13 = vld [vmem:[%s12356_s3 + $0x60] sm:$0xff]  ;;  %v603_v16 = vld [vmem:[%s12356_s3 + $0x58] sm:$0xff]  ;;  %v602_v17 = vld [vmem:[%s12356_s3 + $0x50] sm:$0xff]  ;;  %s8186_s15 = smov 104  }
   0xf   : > { %s12740_s30 = smov (!%p424_p6, %s7742_s30), 31  ;;  %8012 = vmatpush.msk.msra.mxu3 %vm507_vm0, %v453_v0  ;;  %613 = vmatpush.msra.mxu1 %v606_v10  ;;  %v601_v18 = vld [vmem:[%s12356_s3 + $0x48] sm:$0xff]  ;;  %v600_v20 = vld [vmem:[%s12356_s3 + $0x40] sm:$0xff]  ;;  %v599_v22 = vld [vmem:[%s12356_s3 + $0x38] sm:$0xff] }
  0x10   : > { %s7743_s13 = sshll.u32 %s12740_s30, 3  ;;  %v598_v23 = vld [vmem:[%s12356_s3 + $0x30] sm:$0xff]  ;;  %v597_v24 = vld [vmem:[%s12356_s3 + $0x28] sm:$0xff]  ;;  %v596_v26 = vld [vmem:[%s12356_s3 + $0x20] sm:$0xff] }
  0x11   : > { %s8269_s16 = scalar_lea.vmem %s12353_s0, %s7743_s13  ;;  %614 = vmatpush.msra.mxu1 %v605_v11  ;;  %v595_v28 = vld [vmem:[%s12356_s3 + $0x18] sm:$0xff]  ;;  %v594_v30 = vld [vmem:[%s12356_s3 + $0x10] sm:$0xff]  ;;  %v593_v31 = vld [vmem:[%s12356_s3 + $0x8] sm:$0xff] }
  0x12   : > { %v437_v1 = vld [vmem:[%s8269_s16] sm:$0xff]  ;;  %v438_v2 = vld [vmem:[%s8269_s16 + $0x8] sm:$0xff]  ;;  %v439_v3 = vld [vmem:[%s8269_s16 + $0x10] sm:$0xff] }
  0x13   : > { %7748 = vmatmul.msk.f32.vlgmr.msra.gmra.mxu0 %vm458_vm1, %v437_v1  ;;  %v440_v4 = vld [vmem:[%s8269_s16 + $0x18] sm:$0xff]  ;;  %v441_v5 = vld [vmem:[%s8269_s16 + $0x20] sm:$0xff]  ;;  %v442_v6 = vld [vmem:[%s8269_s16 + $0x28] sm:$0xff]  ;;  %615 = vmatpush.msra.mxu1 %v604_v13 }
  0x14   : > { %v447_v7 = vld [vmem:[%s8269_s16 + $0x50] sm:$0xff]  ;;  %v449_v8 = vld [vmem:[%s8269_s16 + $0x60] sm:$0xff]  ;;  %v448_v14 = vld [vmem:[%s8269_s16 + $0x58] sm:$0xff] }
  0x15   : > { %7758 = vmatmul.msk.f32.vlgmr.msra.gmra.mxu2 %vm458_vm1, %v447_v7  ;;  %7760 = vmatmul.msk.f32.vlgmr.msra.gmra.mxu3 %vm458_vm1, %v449_v8  ;;  %v443_v12 = vld [vmem:[%s8269_s16 + $0x30] sm:$0xff]  ;;  %v450_v15 = vld [vmem:[%s8269_s16 + $0x68] sm:$0xff]  ;;  %v444_v19 = vld [vmem:[%s8269_s16 + $0x38] sm:$0xff] }
  0x16   : > { %616 = vmatpush.msra.mxu1 %v603_v16  ;;  %v451_v21 = vld [vmem:[%s8269_s16 + $0x70] sm:$0xff]  ;;  %v445_v25 = vld [vmem:[%s8269_s16 + $0x40] sm:$0xff]  ;;  %v452_v27 = vld [vmem:[%s8269_s16 + $0x78] sm:$0xff] }
  0x17   : > { %v446_v29 = vld [vmem:[%s8269_s16 + $0x48] sm:$0xff]  ;;  %v592_v32 = vld [vmem:[%s12356_s3] sm:$0xff]  ;;  %v708_v61 = vld [vmem:[%s12358_s5 + $0x78] sm:$0xff] }
  0x18   : > { %617 = vmatpush.msra.mxu1 %v602_v17  ;;  %v8357_v33 = vld [vmem:[%s12355_s2] ss:$0 sm:$0xff]  ;;  %v707_v62 = vld [vmem:[%s12358_s5 + $0x70] sm:$0xff]  ;;  %713 = vmatpush.msrb.mxu2 %v708_v61  ;;  %v706_v63 = vld [vmem:[%s12358_s5 + $0x68] sm:$0xff] }
  0x19   : > { %v703_v7 = vld [vmem:[%s12358_s5 + $0x50] sm:$0xff]  ;;  %v702_v9 = vld [vmem:[%s12358_s5 + $0x48] sm:$0xff]  ;;  %v701_v13 = vld [vmem:[%s12358_s5 + $0x40] sm:$0xff] }
  0x1a   : > { %618 = vmatpush.msra.mxu1 %v601_v18  ;;  %714 = vmatpush.msrb.mxu2 %v707_v62  ;;  %v698_v17 = vld [vmem:[%s12358_s5 + $0x28] sm:$0xff] }
  0x1b   : > { %7749 = vmatmul.msk.f32.gmra.mxu0 %vm458_vm1, %v438_v2 }
  0x1c   : > { %619 = vmatpush.msra.mxu1 %v600_v20  ;;  %715 = vmatpush.msrb.mxu2 %v706_v63  ;;  %v696_v20 = vld [vmem:[%s12358_s5 + $0x18] sm:$0xff] }
  0x1d   : > { %7759 = vmatmul.msk.f32.gmra.mxu2 %vm458_vm1, %v448_v14  ;;  %7761 = vmatmul.msk.f32.gmra.mxu3 %vm458_vm1, %v450_v15  ;;  %v700_v14 = vld [vmem:[%s12358_s5 + $0x38] sm:$0xff]  ;;  %v699_v15 = vld [vmem:[%s12358_s5 + $0x30] sm:$0xff] }
  0x1e   : > { %620 = vmatpush.msra.mxu1 %v599_v22 }
  0x20   : > { %621 = vmatpush.msra.mxu1 %v598_v23  ;;  %v695_v23 = vld [vmem:[%s12358_s5 + $0x10] sm:$0xff] }
  0x22   : > { %622 = vmatpush.msra.mxu1 %v597_v24  ;;  %v694_v24 = vld [vmem:[%s12358_s5 + $0x8] sm:$0xff] }
  0x23   : > { %7750 = vmatmul.msk.f32.gmra.mxu0 %vm458_vm1, %v439_v3 }
  0x24   : > { %623 = vmatpush.msra.mxu1 %v596_v26  ;;  %v693_v26 = vld [vmem:[%s12358_s5] sm:$0xff] }
  0x25   : > { %7762 = vmatmul.msk.f32.gmra.mxu3 %vm458_vm1, %v451_v21 }
  0x26   : > { %624 = vmatpush.msra.mxu1 %v595_v28 }
  0x28   : > { %625 = vmatpush.msra.mxu1 %v594_v30 }
  0x2a   : > { %626 = vmatpush.msra.mxu1 %v593_v31 }
  0x2b   : > { %7751 = vmatmul.msk.f32.gmra.mxu0 %vm458_vm1, %v440_v4 }
  0x2c   : > { %627 = vmatpush.msra.mxu1 %v592_v32 }
  0x2d   : > { %7763 = vmatmul.msk.f32.gmra.mxu3 %vm458_vm1, %v452_v27 }
  0x33   : > { %7752 = vmatmul.msk.f32.gmra.mxu0 %vm458_vm1, %v441_v5  ;;  %v705_v5 = vld [vmem:[%s12358_s5 + $0x60] sm:$0xff] }
  0x34   : > { %716 = vmatpush.msrb.mxu2 %v705_v5  ;;  %v807_v5 = vld [vmem:[#allocation2 + $0x68] sm:$0xff] }
  0x3b   : > { %7753 = vmatmul.msk.f32.gmra.mxu0 %vm458_vm1, %v442_v6  ;;  %v704_v6 = vld [vmem:[%s12358_s5 + $0x58] sm:$0xff] }
  0x3c   : > { %717 = vmatpush.msrb.mxu2 %v704_v6  ;;  %v806_v6 = vld [vmem:[#allocation2 + $0x60] sm:$0xff] }
  0x3e   : > { %718 = vmatpush.msrb.mxu2 %v703_v7 }
  0x40   : > { %719 = vmatpush.msrb.mxu2 %v702_v9  ;;  %v804_v9 = vld [vmem:[#allocation2 + $0x50] sm:$0xff] }
  0x42   : > { %720 = vmatpush.msrb.mxu2 %v701_v13 }
  0x43   : > { %7754 = vmatmul.msk.f32.gmra.mxu0 %vm458_vm1, %v443_v12 }
  0x44   : > { %721 = vmatpush.msrb.mxu2 %v700_v14  ;;  %v802_v14 = vld [vmem:[#allocation2 + $0x40] sm:$0xff] }
  0x46   : > { %722 = vmatpush.msrb.mxu2 %v699_v15  ;;  %v801_v15 = vld [vmem:[#allocation2 + $0x38] sm:$0xff] }
  0x48   : > { %723 = vmatpush.msrb.mxu2 %v698_v17  ;;  %v799_v17 = vld [vmem:[#allocation2 + $0x28] sm:$0xff] }
  0x4b   : > { %7755 = vmatmul.msk.f32.gmra.mxu0 %vm458_vm1, %v444_v19  ;;  %v697_v19 = vld [vmem:[%s12358_s5 + $0x20] sm:$0xff] }
  0x4c   : > { %724 = vmatpush.msrb.mxu2 %v697_v19 }
  0x4e   : > { %725 = vmatpush.msrb.mxu2 %v696_v20  ;;  %v798_v20 = vld [vmem:[#allocation2 + $0x20] sm:$0xff] }
  0x50   : > { %726 = vmatpush.msrb.mxu2 %v695_v23  ;;  %v796_v23 = vld [vmem:[#allocation2 + $0x10] sm:$0xff] }
  0x52   : > { %727 = vmatpush.msrb.mxu2 %v694_v24 }
  0x53   : > { %7756 = vmatmul.msk.f32.gmra.mxu0 %vm458_vm1, %v445_v25 }
  0x54   : > { %728 = vmatpush.msrb.mxu2 %v693_v26  ;;  %v795_v26 = vld [vmem:[#allocation2 + $0x8] sm:$0xff] }
  0x5b   : > { %7757 = vmatmul.msk.f32.gmra.mxu0 %vm458_vm1, %v446_v29 }
  0x90   : > { %v528_v34 = vpop.f32.mrf.mxu0 }
  0x91   : > { %v529_v35 = vadd.f32 %v8357_v33, %v528_v34 }
  0x93   : > { %v576_v36 = vmax.f32 %v529_v35, 0.0  ;;  %v8426_v35 = vld [vmem:[%s12357_s4] ss:$0 sm:$0xff] }
  0x95   : > { %628 = vmatmul.f32.vlgmr.msra.gmra.mxu1 %v576_v36 }
  0x98   : > { %v531_v37 = vpop.f32.mrf.mxu0  ;;  %v558_v1 = vpop.f32.mrf.mxu2 }
  0x99   : > { %v532_v38 = vadd.f32 %v8357_v33, %v531_v37  ;;  %v559_v4 = vadd.f32 %v8357_v33, %v558_v1  ;;  %v564_v11 = vpop.f32.mrf.mxu3  ;;  %v809_v1 = vld [vmem:[#allocation2 + $0x78] sm:$0xff] }
  0x9a   : > { %v565_v18 = vadd.f32 %v8357_v33, %v564_v11  ;;  %814 = vmatpush.msrb.mxu3 %v809_v1  ;;  %v915_v1 = vld [vmem:[%s12362_s9 + $0xa0] sm:$0xff] }
  0x9b   : > { %v577_v39 = vmax.f32 %v532_v38, 0.0  ;;  %v586_v8 = vmax.f32 %v559_v4, 0.0 }
  0x9c   : > { %v588_v22 = vmax.f32 %v565_v18, 0.0 }
  0x9d   : > { %631 = vmatmul.f32.gmra.mxu1 %v577_v39 }
  0xa0   : > { %v534_v40 = vpop.f32.mrf.mxu0  ;;  %v561_v10 = vpop.f32.mrf.mxu2 }
  0xa1   : > { %v535_v41 = vadd.f32 %v8357_v33, %v534_v40  ;;  %v562_v12 = vadd.f32 %v8357_v33, %v561_v10  ;;  %v567_v21 = vpop.f32.mrf.mxu3 }
  0xa2   : > { %v568_v25 = vadd.f32 %v8357_v33, %v567_v21 }
  0xa3   : > { %v578_v42 = vmax.f32 %v535_v41, 0.0  ;;  %v587_v16 = vmax.f32 %v562_v12, 0.0  ;;  %v803_v12 = vld [vmem:[#allocation2 + $0x48] sm:$0xff] }
  0xa4   : > { %v589_v28 = vmax.f32 %v568_v25, 0.0 }
  0xa5   : > { %634 = vmatmul.f32.gmra.mxu1 %v578_v42 }
  0xa8   : > { %v537_v43 = vpop.f32.mrf.mxu0 }
  0xa9   : > { %v538_v44 = vadd.f32 %v8357_v33, %v537_v43  ;;  %v570_v27 = vpop.f32.mrf.mxu3 }
  0xaa   : > { %v571_v29 = vadd.f32 %v8357_v33, %v570_v27 }
  0xab   : > { %v579_v45 = vmax.f32 %v538_v44, 0.0 }
  0xac   : > { %v590_v30 = vmax.f32 %v571_v29, 0.0 }
  0xad   : > { %637 = vmatmul.f32.gmra.mxu1 %v579_v45 }
  0xb0   : > { %v540_v46 = vpop.f32.mrf.mxu0 }
  0xb1   : > { %v541_v47 = vadd.f32 %v8357_v33, %v540_v46  ;;  %v573_v31 = vpop.f32.mrf.mxu3 }
  0xb2   : > { %v574_v32 = vadd.f32 %v8357_v33, %v573_v31 }
  0xb3   : > { %v580_v48 = vmax.f32 %v541_v47, 0.0 }
  0xb4   : > { %v591_v34 = vmax.f32 %v574_v32, 0.0 }
  0xb5   : > { %640 = vmatmul.f32.gmra.mxu1 %v580_v48 }
  0xb8   : > { %v543_v49 = vpop.f32.mrf.mxu0 }
  0xb9   : > { %v544_v50 = vadd.f32 %v8357_v33, %v543_v49 }
  0xbb   : > { %v581_v51 = vmax.f32 %v544_v50, 0.0 }
  0xbd   : > { %643 = vmatmul.f32.gmra.mxu1 %v581_v51 }
  0xc0   : > { %v546_v52 = vpop.f32.mrf.mxu0 }
  0xc1   : > { %v547_v53 = vadd.f32 %v8357_v33, %v546_v52 }
  0xc3   : > { %v582_v54 = vmax.f32 %v547_v53, 0.0 }
  0xc5   : > { %646 = vmatmul.f32.gmra.mxu1 %v582_v54 }
  0xc8   : > { %v549_v55 = vpop.f32.mrf.mxu0 }
  0xc9   : > { %v550_v56 = vadd.f32 %v8357_v33, %v549_v55 }
  0xcb   : > { %v583_v57 = vmax.f32 %v550_v56, 0.0 }
  0xcd   : > { %649 = vmatmul.f32.gmra.mxu1 %v583_v57 }
  0xd0   : > { %v552_v58 = vpop.f32.mrf.mxu0 }
  0xd1   : > { %v553_v59 = vadd.f32 %v8357_v33, %v552_v58 }
  0xd3   : > { %v584_v60 = vmax.f32 %v553_v59, 0.0 }
  0xd5   : > { %652 = vmatmul.f32.gmra.mxu1 %v584_v60 }
  0xd8   : > { %v555_v0 = vpop.f32.mrf.mxu0 }
  0xd9   : > { %v556_v2 = vadd.f32 %v8357_v33, %v555_v0 }
  0xdb   : > { %v585_v3 = vmax.f32 %v556_v2, 0.0  ;;  %v808_v2 = vld [vmem:[#allocation2 + $0x70] sm:$0xff] }
  0xdc   : > { %815 = vmatpush.msrb.mxu3 %v808_v2 }
  0xdd   : > { %655 = vmatmul.f32.gmra.mxu1 %v585_v3 }
  0xde   : > { %816 = vmatpush.msrb.mxu3 %v807_v5  ;;  %v913_v5 = vld [vmem:[%s12362_s9 + $0x90] sm:$0xff] }
  0xe0   : > { %817 = vmatpush.msrb.mxu3 %v806_v6 }
  0xe5   : > { %658 = vmatmul.f32.gmra.mxu1 %v586_v8  ;;  %v805_v8 = vld [vmem:[#allocation2 + $0x58] sm:$0xff] }
  0xe6   : > { %818 = vmatpush.msrb.mxu3 %v805_v8 }
  0xe8   : > { %819 = vmatpush.msrb.mxu3 %v804_v9 }
  0xea   : > { %820 = vmatpush.msrb.mxu3 %v803_v12  ;;  %v909_v12 = vld [vmem:[%s12362_s9 + $0x70] sm:$0xff] }
  0xec   : > { %821 = vmatpush.msrb.mxu3 %v802_v14 }
  0xed   : > { %661 = vmatmul.f32.gmra.mxu1 %v587_v16  ;;  %v800_v16 = vld [vmem:[#allocation2 + $0x30] sm:$0xff] }
  0xee   : > { %822 = vmatpush.msrb.mxu3 %v801_v15  ;;  %v916_v15 = vld [vmem:[%s12362_s9 + $0xa8] sm:$0xff] }
  0xf0   : > { %823 = vmatpush.msrb.mxu3 %v800_v16  ;;  %v907_v16 = vld [vmem:[%s12362_s9 + $0x60] sm:$0xff] }
  0xf2   : > { %824 = vmatpush.msrb.mxu3 %v799_v17 }
  0xf4   : > { %825 = vmatpush.msrb.mxu3 %v798_v20 }
  0xf5   : > { %664 = vmatmul.f32.gmra.mxu1 %v588_v22  ;;  %v797_v22 = vld [vmem:[#allocation2 + $0x18] sm:$0xff] }
  0xf6   : > { %826 = vmatpush.msrb.mxu3 %v797_v22  ;;  %v914_v22 = vld [vmem:[%s12362_s9 + $0x98] sm:$0xff] }
  0xf8   : > { %827 = vmatpush.msrb.mxu3 %v796_v23  ;;  %v903_v23 = vld [vmem:[%s12362_s9 + $0x40] sm:$0xff] }
  0xfa   : > { %828 = vmatpush.msrb.mxu3 %v795_v26  ;;  %v901_v26 = vld [vmem:[%s12362_s9 + $0x30] sm:$0xff] }
  0xfd   : > { %667 = vmatmul.f32.gmra.mxu1 %v589_v28  ;;  %v794_v28 = vld [vmem:[#allocation2] sm:$0xff] }
  0xfe   : > { %829 = vmatpush.msrb.mxu3 %v794_v28 }
 0x105   : > { %670 = vmatmul.f32.gmra.mxu1 %v590_v30 }
 0x10d   : > { %673 = vmatmul.f32.gmra.mxu1 %v591_v34 }
 0x112   : > { %v629_v36 = vpop.f32.mrf.mxu1 }
 0x113   : > { %v630_v37 = vadd.f32 %v8426_v35, %v629_v36 }
 0x115   : > { %v677_v38 = vmax.f32 %v630_v37, 0.0  ;;  %v8447_v37 = vld [vmem:[%s12359_s6] ss:$0 sm:$0xff] }
 0x117   : > { %729 = vmatmul.f32.vlgmr.msrb.gmra.mxu2 %v677_v38 }
 0x11a   : > { %v632_v39 = vpop.f32.mrf.mxu1 }
 0x11b   : > { %v633_v40 = vadd.f32 %v8426_v35, %v632_v39 }
 0x11d   : > { %v678_v41 = vmax.f32 %v633_v40, 0.0 }
 0x11f   : > { %732 = vmatmul.f32.gmra.mxu2 %v678_v41 }
 0x122   : > { %v635_v42 = vpop.f32.mrf.mxu1 }
 0x123   : > { %v636_v33 = vadd.f32 %v8426_v35, %v635_v42 }
 0x125   : > { %v679_v43 = vmax.f32 %v636_v33, 0.0 }
 0x127   : > { %735 = vmatmul.f32.gmra.mxu2 %v679_v43 }
 0x12a   : > { %v638_v44 = vpop.f32.mrf.mxu1 }
 0x12b   : > { %v639_v45 = vadd.f32 %v8426_v35, %v638_v44 }
 0x12d   : > { %v680_v46 = vmax.f32 %v639_v45, 0.0 }
 0x12f   : > { %738 = vmatmul.f32.gmra.mxu2 %v680_v46 }
 0x132   : > { %v641_v47 = vpop.f32.mrf.mxu1 }
 0x133   : > { %v642_v48 = vadd.f32 %v8426_v35, %v641_v47 }
 0x135   : > { %v681_v49 = vmax.f32 %v642_v48, 0.0  ;;  %v925_v48 = vld [vmem:[%s12362_s9 + $0xf0] sm:$0xff] }
 0x136   : > { %933 = vmatpush.msrb.mxu0 %v925_v48 }
 0x137   : > { %741 = vmatmul.f32.gmra.mxu2 %v681_v49 }
 0x13a   : > { %v644_v50 = vpop.f32.mrf.mxu1 }
 0x13b   : > { %v645_v51 = vadd.f32 %v8426_v35, %v644_v50 }
 0x13d   : > { %v682_v52 = vmax.f32 %v645_v51, 0.0 }
 0x13f   : > { %744 = vmatmul.f32.gmra.mxu2 %v682_v52  ;;  %v926_v52 = vld [vmem:[%s12362_s9 + $0xf8] sm:$0xff] }
 0x140   : > { %998 = vmatpush.msrb.mxu1 %v926_v52  ;;  %8013 = vmatpush.msra.mxu3 %v926_v52 }
 0x142   : > { %v647_v53 = vpop.f32.mrf.mxu1 }
 0x143   : > { %v648_v54 = vadd.f32 %v8426_v35, %v647_v53  ;;  %v923_v53 = vld [vmem:[%s12362_s9 + $0xe0] sm:$0xff] }
 0x144   : > { %934 = vmatpush.msrb.mxu0 %v923_v53  ;;  %v8564_v53 = vld [vmem:[%s12361_s8] ss:$0 sm:$0xff] }
 0x145   : > { %v683_v55 = vmax.f32 %v648_v54, 0.0  ;;  %v921_v54 = vld [vmem:[%s12362_s9 + $0xd0] sm:$0xff] }
 0x146   : > { %935 = vmatpush.msrb.mxu0 %v921_v54 }
 0x147   : > { %747 = vmatmul.f32.gmra.mxu2 %v683_v55 }
 0x14a   : > { %v650_v56 = vpop.f32.mrf.mxu1 }
 0x14b   : > { %v651_v57 = vadd.f32 %v8426_v35, %v650_v56 }
 0x14d   : > { %v684_v58 = vmax.f32 %v651_v57, 0.0  ;;  %v924_v57 = vld [vmem:[%s12362_s9 + $0xe8] sm:$0xff] }
 0x14e   : > { %999 = vmatpush.msrb.mxu1 %v924_v57  ;;  %8014 = vmatpush.msra.mxu3 %v924_v57 }
 0x14f   : > { %750 = vmatmul.f32.gmra.mxu2 %v684_v58  ;;  %v919_v58 = vld [vmem:[%s12362_s9 + $0xc0] sm:$0xff] }
 0x150   : > { %936 = vmatpush.msrb.mxu0 %v919_v58 }
 0x152   : > { %v653_v59 = vpop.f32.mrf.mxu1 }
 0x153   : > { %v654_v60 = vadd.f32 %v8426_v35, %v653_v59 }
 0x155   : > { %v685_v61 = vmax.f32 %v654_v60, 0.0 }
 0x157   : > { %753 = vmatmul.f32.gmra.mxu2 %v685_v61 }
 0x15a   : > { %v656_v62 = vpop.f32.mrf.mxu1 }
 0x15b   : > { %v657_v63 = vadd.f32 %v8426_v35, %v656_v62 }
 0x15d   : > { %v686_v0 = vmax.f32 %v657_v63, 0.0  ;;  %v917_v63 = vld [vmem:[%s12362_s9 + $0xb0] sm:$0xff] }
 0x15e   : > { %937 = vmatpush.msrb.mxu0 %v917_v63 }
 0x15f   : > { %756 = vmatmul.f32.gmra.mxu2 %v686_v0  ;;  %v922_v0 = vld [vmem:[%s12362_s9 + $0xd8] sm:$0xff] }
 0x160   : > { %1000 = vmatpush.msrb.mxu1 %v922_v0  ;;  %938 = vmatpush.msrb.mxu0 %v915_v1 }
 0x161   : > { %8015 = vmatpush.msra.mxu3 %v922_v0 }
 0x162   : > { %v659_v3 = vpop.f32.mrf.mxu1  ;;  %939 = vmatpush.msrb.mxu0 %v913_v5 }
 0x163   : > { %v660_v4 = vadd.f32 %v8426_v35, %v659_v3 }
 0x165   : > { %v687_v7 = vmax.f32 %v660_v4, 0.0  ;;  %v920_v4 = vld [vmem:[%s12362_s9 + $0xc8] sm:$0xff] }
 0x166   : > { %1001 = vmatpush.msrb.mxu1 %v920_v4  ;;  %8016 = vmatpush.msra.mxu3 %v920_v4 }
 0x167   : > { %759 = vmatmul.f32.gmra.mxu2 %v687_v7 }
 0x16a   : > { %v662_v10 = vpop.f32.mrf.mxu1 }
 0x16b   : > { %v663_v11 = vadd.f32 %v8426_v35, %v662_v10  ;;  %v911_v10 = vld [vmem:[%s12362_s9 + $0x80] sm:$0xff] }
 0x16c   : > { %940 = vmatpush.msrb.mxu0 %v911_v10 }
 0x16d   : > { %v688_v13 = vmax.f32 %v663_v11, 0.0  ;;  %v918_v11 = vld [vmem:[%s12362_s9 + $0xb8] sm:$0xff] }
 0x16e   : > { %1002 = vmatpush.msrb.mxu1 %v918_v11  ;;  %941 = vmatpush.msrb.mxu0 %v909_v12 }
 0x16f   : > { %762 = vmatmul.f32.gmra.mxu2 %v688_v13  ;;  %8017 = vmatpush.msra.mxu3 %v918_v11 }
 0x170   : > { %1003 = vmatpush.msrb.mxu1 %v916_v15  ;;  %942 = vmatpush.msrb.mxu0 %v907_v16 }
 0x171   : > { %8018 = vmatpush.msra.mxu3 %v916_v15 }
 0x172   : > { %v665_v18 = vpop.f32.mrf.mxu1  ;;  %1004 = vmatpush.msrb.mxu1 %v914_v22 }
 0x173   : > { %v666_v19 = vadd.f32 %v8426_v35, %v665_v18  ;;  %v905_v18 = vld [vmem:[%s12362_s9 + $0x50] sm:$0xff]  ;;  %8019 = vmatpush.msra.mxu3 %v914_v22 }
 0x174   : > { %943 = vmatpush.msrb.mxu0 %v905_v18 }
 0x175   : > { %v689_v21 = vmax.f32 %v666_v19, 0.0 }
 0x176   : > { %944 = vmatpush.msrb.mxu0 %v903_v23 }
 0x177   : > { %765 = vmatmul.f32.gmra.mxu2 %v689_v21 }
 0x178   : > { %945 = vmatpush.msrb.mxu0 %v901_v26 }
 0x17a   : > { %v668_v24 = vpop.f32.mrf.mxu1 }
 0x17b   : > { %v669_v25 = vadd.f32 %v8426_v35, %v668_v24 }
 0x17d   : > { %v690_v27 = vmax.f32 %v669_v25, 0.0 }
 0x17f   : > { %768 = vmatmul.f32.gmra.mxu2 %v690_v27  ;;  %v912_v27 = vld [vmem:[%s12362_s9 + $0x88] sm:$0xff] }
 0x180   : > { %1005 = vmatpush.msrb.mxu1 %v912_v27  ;;  %8020 = vmatpush.msra.mxu3 %v912_v27 }
 0x182   : > { %v671_v29 = vpop.f32.mrf.mxu1 }
 0x183   : > { %v672_v30 = vadd.f32 %v8426_v35, %v671_v29  ;;  %v899_v29 = vld [vmem:[%s12362_s9 + $0x20] sm:$0xff] }
 0x184   : > { %946 = vmatpush.msrb.mxu0 %v899_v29 }
 0x185   : > { %v691_v31 = vmax.f32 %v672_v30, 0.0  ;;  %v910_v30 = vld [vmem:[%s12362_s9 + $0x78] sm:$0xff] }
 0x186   : > { %1006 = vmatpush.msrb.mxu1 %v910_v30  ;;  %8021 = vmatpush.msra.mxu3 %v910_v30 }
 0x187   : > { %771 = vmatmul.f32.gmra.mxu2 %v691_v31  ;;  %v908_v31 = vld [vmem:[%s12362_s9 + $0x68] sm:$0xff] }
 0x188   : > { %1007 = vmatpush.msrb.mxu1 %v908_v31  ;;  %8022 = vmatpush.msra.mxu3 %v908_v31 }
 0x18a   : > { %v674_v32 = vpop.f32.mrf.mxu1 }
 0x18b   : > { %v675_v34 = vadd.f32 %v8426_v35, %v674_v32  ;;  %v897_v32 = vld [vmem:[%s12362_s9 + $0x10] sm:$0xff] }
 0x18c   : > { %947 = vmatpush.msrb.mxu0 %v897_v32 }
 0x18d   : > { %v692_v36 = vmax.f32 %v675_v34, 0.0  ;;  %v906_v34 = vld [vmem:[%s12362_s9 + $0x58] sm:$0xff] }
 0x18e   : > { %1008 = vmatpush.msrb.mxu1 %v906_v34  ;;  %8023 = vmatpush.msra.mxu3 %v906_v34 }
 0x18f   : > { %774 = vmatmul.f32.gmra.mxu2 %v692_v36 }
 0x19a   : > { %v730_v38 = vpop.f32.mrf.mxu2 }
 0x19b   : > { %v731_v39 = vadd.f32 %v8447_v37, %v730_v38 }
 0x19d   : > { %v778_v40 = vmax.f32 %v731_v39, 0.0  ;;  %v904_v39 = vld [vmem:[%s12362_s9 + $0x48] sm:$0xff] }
 0x19e   : > { %1009 = vmatpush.msrb.mxu1 %v904_v39  ;;  %8024 = vmatpush.msra.mxu3 %v904_v39 }
 0x19f   : > { %830 = vmatmul.f32.vlgmr.msrb.gmra.mxu3 %v778_v40 }
 0x1a2   : > { %v733_v41 = vpop.f32.mrf.mxu2 }
 0x1a3   : > { %v734_v42 = vadd.f32 %v8447_v37, %v733_v41  ;;  %v902_v41 = vld [vmem:[%s12362_s9 + $0x38] sm:$0xff] }
 0x1a4   : > { %1010 = vmatpush.msrb.mxu1 %v902_v41  ;;  %8025 = vmatpush.msra.mxu3 %v902_v41 }
 0x1a5   : > { %v779_v33 = vmax.f32 %v734_v42, 0.0  ;;  %v900_v42 = vld [vmem:[%s12362_s9 + $0x28] sm:$0xff] }
 0x1a6   : > { %1011 = vmatpush.msrb.mxu1 %v900_v42  ;;  %8026 = vmatpush.msra.mxu3 %v900_v42 }
 0x1a7   : > { %833 = vmatmul.f32.gmra.mxu3 %v779_v33 }
 0x1aa   : > { %v736_v43 = vpop.f32.mrf.mxu2 }
 0x1ab   : > { %v737_v35 = vadd.f32 %v8447_v37, %v736_v43 }
 0x1ad   : > { %v780_v44 = vmax.f32 %v737_v35, 0.0  ;;  %v898_v35 = vld [vmem:[%s12362_s9 + $0x18] sm:$0xff] }
 0x1ae   : > { %1012 = vmatpush.msrb.mxu1 %v898_v35  ;;  %8027 = vmatpush.msra.mxu3 %v898_v35 }
 0x1af   : > { %836 = vmatmul.f32.gmra.mxu3 %v780_v44 }
 0x1b2   : > { %v739_v45 = vpop.f32.mrf.mxu2 }
 0x1b3   : > { %v740_v46 = vadd.f32 %v8447_v37, %v739_v45  ;;  %v895_v45 = vld [vmem:[%s12362_s9] sm:$0xff] }
 0x1b4   : > { %948 = vmatpush.msrb.mxu0 %v895_v45 }
 0x1b5   : > { %v781_v47 = vmax.f32 %v740_v46, 0.0  ;;  %v896_v46 = vld [vmem:[%s12362_s9 + $0x8] sm:$0xff] }
 0x1b6   : > { %1013 = vmatpush.msrb.mxu1 %v896_v46  ;;  %8028 = vmatpush.msra.mxu3 %v896_v46 }
 0x1b7   : > { %839 = vmatmul.f32.gmra.mxu3 %v781_v47 }
 0x1ba   : > { %v742_v49 = vpop.f32.mrf.mxu2 }
 0x1bb   : > { %v743_v50 = vadd.f32 %v8447_v37, %v742_v49 }
 0x1bd   : > { %v782_v51 = vmax.f32 %v743_v50, 0.0 }
 0x1bf   : > { %842 = vmatmul.f32.gmra.mxu3 %v782_v51 }
 0x1c2   : > { %v745_v55 = vpop.f32.mrf.mxu2 }
 0x1c3   : > { %v746_v56 = vadd.f32 %v8447_v37, %v745_v55 }
 0x1c5   : > { %v783_v59 = vmax.f32 %v746_v56, 0.0 }
 0x1c7   : > { %845 = vmatmul.f32.gmra.mxu3 %v783_v59 }
 0x1ca   : > { %v748_v60 = vpop.f32.mrf.mxu2 }
 0x1cb   : > { %v749_v61 = vadd.f32 %v8447_v37, %v748_v60 }
 0x1cd   : > { %v784_v62 = vmax.f32 %v749_v61, 0.0 }
 0x1cf   : > { %848 = vmatmul.f32.gmra.mxu3 %v784_v62 }
 0x1d2   : > { %v751_v2 = vpop.f32.mrf.mxu2 }
 0x1d3   : > { %v752_v3 = vadd.f32 %v8447_v37, %v751_v2 }
 0x1d5   : > { %v785_v6 = vmax.f32 %v752_v3, 0.0 }
 0x1d7   : > { %851 = vmatmul.f32.gmra.mxu3 %v785_v6 }
 0x1da   : > { %v754_v7 = vpop.f32.mrf.mxu2 }
 0x1db   : > { %v755_v8 = vadd.f32 %v8447_v37, %v754_v7 }
 0x1dd   : > { %v786_v9 = vmax.f32 %v755_v8, 0.0 }
 0x1df   : > { %854 = vmatmul.f32.gmra.mxu3 %v786_v9 }
 0x1e2   : > { %v757_v13 = vpop.f32.mrf.mxu2 }
 0x1e3   : > { %v758_v14 = vadd.f32 %v8447_v37, %v757_v13 }
 0x1e5   : > { %v787_v17 = vmax.f32 %v758_v14, 0.0 }
 0x1e7   : > { %857 = vmatmul.f32.gmra.mxu3 %v787_v17 }
 0x1ea   : > { %v760_v19 = vpop.f32.mrf.mxu2 }
 0x1eb   : > { %v761_v20 = vadd.f32 %v8447_v37, %v760_v19 }
 0x1ed   : > { %v788_v21 = vmax.f32 %v761_v20, 0.0 }
 0x1ef   : > { %860 = vmatmul.f32.gmra.mxu3 %v788_v21 }
 0x1f2   : > { %v763_v24 = vpop.f32.mrf.mxu2 }
 0x1f3   : > { %v764_v25 = vadd.f32 %v8447_v37, %v763_v24 }
 0x1f5   : > { %v789_v28 = vmax.f32 %v764_v25, 0.0 }
 0x1f7   : > { %863 = vmatmul.f32.gmra.mxu3 %v789_v28 }
 0x1fa   : > { %v766_v36 = vpop.f32.mrf.mxu2 }
 0x1fb   : > { %v767_v38 = vadd.f32 %v8447_v37, %v766_v36 }
 0x1fd   : > { %v790_v40 = vmax.f32 %v767_v38, 0.0 }
 0x1ff   : > { %866 = vmatmul.f32.gmra.mxu3 %v790_v40  ;;  %v927_v40 = vld [vmem:[%s12363_s10] sm:$0x3] }
 0x200   : > { %v8585_v41 = vperm.slane %v927_v40, 0  ;;  %v8587_v42 = vperm.slane %v927_v40, 1 }
 0x202   : > { %v769_v33 = vpop.f32.mrf.mxu2  ;;  %12473 = vst [vmem:[#allocation5_spill] sm:$0xff] %v8585_v41 }
 0x203   : > { %v770_v43 = vadd.f32 %v8447_v37, %v769_v33  ;;  %12474 = vst [vmem:[#allocation6_spill] sm:$0xff] %v8587_v42 }
 0x205   : > { %v791_v44 = vmax.f32 %v770_v43, 0.0 }
 0x207   : > { %869 = vmatmul.f32.gmra.mxu3 %v791_v44 }
 0x20a   : > { %v772_v47 = vpop.f32.mrf.mxu2 }
 0x20b   : > { %v773_v48 = vadd.f32 %v8447_v37, %v772_v47 }
 0x20d   : > { %v792_v49 = vmax.f32 %v773_v48, 0.0 }
 0x20f   : > { %872 = vmatmul.f32.gmra.mxu3 %v792_v49 }
 0x212   : > { %v775_v50 = vpop.f32.mrf.mxu2 }
 0x213   : > { %v776_v51 = vadd.f32 %v8447_v37, %v775_v50 }
 0x215   : > { %v793_v52 = vmax.f32 %v776_v51, 0.0 }
 0x217   : > { %875 = vmatmul.f32.gmra.mxu3 %v793_v52 }
 0x222   : > { %v831_v54 = vpop.f32.mrf.mxu3 }
 0x223   : > { %v832_v55 = vadd.f32 %v8564_v53, %v831_v54 }
 0x225   : > { %v879_v56 = vmax.f32 %v832_v55, 0.0 }
 0x227   : > { %949 = vmatmul.f32.vlgmr.msrb.gmra.mxu0 %v879_v56  ;;  %1014 = vmatmul.f32.vlgmr.msrb.gmra.mxu1 %v879_v56 }
 0x22a   : > { %v834_v57 = vpop.f32.mrf.mxu3 }
 0x22b   : > { %v835_v58 = vadd.f32 %v8564_v53, %v834_v57 }
 0x22d   : > { %v880_v59 = vmax.f32 %v835_v58, 0.0 }
 0x22f   : > { %952 = vmatmul.f32.gmra.mxu0 %v880_v59  ;;  %1017 = vmatmul.f32.gmra.mxu1 %v880_v59 }
 0x232   : > { %v837_v37 = vpop.f32.mrf.mxu3 }
 0x233   : > { %v838_v60 = vadd.f32 %v8564_v53, %v837_v37 }
 0x235   : > { %v881_v61 = vmax.f32 %v838_v60, 0.0 }
 0x237   : > { %955 = vmatmul.f32.gmra.mxu0 %v881_v61  ;;  %1020 = vmatmul.f32.gmra.mxu1 %v881_v61 }
 0x23a   : > { %v840_v62 = vpop.f32.mrf.mxu3 }
 0x23b   : > { %v841_v63 = vadd.f32 %v8564_v53, %v840_v62 }
 0x23d   : > { %v882_v0 = vmax.f32 %v841_v63, 0.0 }
 0x23f   : > { %958 = vmatmul.f32.gmra.mxu0 %v882_v0  ;;  %1023 = vmatmul.f32.gmra.mxu1 %v882_v0 }
 0x242   : > { %v843_v1 = vpop.f32.mrf.mxu3 }
 0x243   : > { %v844_v2 = vadd.f32 %v8564_v53, %v843_v1 }
 0x245   : > { %v883_v3 = vmax.f32 %v844_v2, 0.0 }
 0x247   : > { %961 = vmatmul.f32.gmra.mxu0 %v883_v3  ;;  %1026 = vmatmul.f32.gmra.mxu1 %v883_v3 }
 0x24a   : > { %v846_v4 = vpop.f32.mrf.mxu3 }
 0x24b   : > { %v847_v5 = vadd.f32 %v8564_v53, %v846_v4 }
 0x24d   : > { %v884_v6 = vmax.f32 %v847_v5, 0.0 }
 0x24f   : > { %964 = vmatmul.f32.gmra.mxu0 %v884_v6  ;;  %1029 = vmatmul.f32.gmra.mxu1 %v884_v6 }
 0x252   : > { %v849_v7 = vpop.f32.mrf.mxu3 }
 0x253   : > { %v850_v8 = vadd.f32 %v8564_v53, %v849_v7 }
 0x255   : > { %v885_v9 = vmax.f32 %v850_v8, 0.0 }
 0x257   : > { %967 = vmatmul.f32.gmra.mxu0 %v885_v9  ;;  %1032 = vmatmul.f32.gmra.mxu1 %v885_v9 }
 0x25a   : > { %v852_v10 = vpop.f32.mrf.mxu3 }
 0x25b   : > { %v853_v11 = vadd.f32 %v8564_v53, %v852_v10 }
 0x25d   : > { %v886_v12 = vmax.f32 %v853_v11, 0.0 }
 0x25f   : > { %970 = vmatmul.f32.gmra.mxu0 %v886_v12  ;;  %1035 = vmatmul.f32.gmra.mxu1 %v886_v12 }
 0x262   : > { %v855_v13 = vpop.f32.mrf.mxu3 }
 0x263   : > { %v856_v14 = vadd.f32 %v8564_v53, %v855_v13 }
 0x265   : > { %v887_v15 = vmax.f32 %v856_v14, 0.0 }
 0x267   : > { %973 = vmatmul.f32.gmra.mxu0 %v887_v15  ;;  %1038 = vmatmul.f32.gmra.mxu1 %v887_v15 }
 0x26a   : > { %v858_v16 = vpop.f32.mrf.mxu3 }
 0x26b   : > { %v859_v17 = vadd.f32 %v8564_v53, %v858_v16 }
 0x26d   : > { %v888_v18 = vmax.f32 %v859_v17, 0.0 }
 0x26f   : > { %976 = vmatmul.f32.gmra.mxu0 %v888_v18  ;;  %1041 = vmatmul.f32.gmra.mxu1 %v888_v18 }
 0x272   : > { %v861_v19 = vpop.f32.mrf.mxu3 }
 0x273   : > { %v862_v20 = vadd.f32 %v8564_v53, %v861_v19 }
 0x275   : > { %v889_v21 = vmax.f32 %v862_v20, 0.0 }
 0x277   : > { %979 = vmatmul.f32.gmra.mxu0 %v889_v21  ;;  %1044 = vmatmul.f32.gmra.mxu1 %v889_v21 }
 0x27a   : > { %v864_v22 = vpop.f32.mrf.mxu3 }
 0x27b   : > { %v865_v23 = vadd.f32 %v8564_v53, %v864_v22 }
 0x27d   : > { %v890_v24 = vmax.f32 %v865_v23, 0.0 }
 0x27f   : > { %982 = vmatmul.f32.gmra.mxu0 %v890_v24  ;;  %1047 = vmatmul.f32.gmra.mxu1 %v890_v24 }
 0x282   : > { %v867_v25 = vpop.f32.mrf.mxu3 }
 0x283   : > { %v868_v26 = vadd.f32 %v8564_v53, %v867_v25 }
 0x285   : > { %v891_v27 = vmax.f32 %v868_v26, 0.0 }
 0x287   : > { %985 = vmatmul.f32.gmra.mxu0 %v891_v27  ;;  %1050 = vmatmul.f32.gmra.mxu1 %v891_v27 }
 0x28a   : > { %v870_v28 = vpop.f32.mrf.mxu3 }
 0x28b   : > { %v871_v29 = vadd.f32 %v8564_v53, %v870_v28 }
 0x28d   : > { %v892_v30 = vmax.f32 %v871_v29, 0.0 }
 0x28f   : > { %988 = vmatmul.f32.gmra.mxu0 %v892_v30  ;;  %1053 = vmatmul.f32.gmra.mxu1 %v892_v30 }
 0x292   : > { %v873_v31 = vpop.f32.mrf.mxu3 }
 0x293   : > { %v874_v32 = vadd.f32 %v8564_v53, %v873_v31 }
 0x295   : > { %v893_v34 = vmax.f32 %v874_v32, 0.0 }
 0x297   : > { %991 = vmatmul.f32.gmra.mxu0 %v893_v34  ;;  %1056 = vmatmul.f32.gmra.mxu1 %v893_v34 }
 0x29a   : > { %v876_v36 = vpop.f32.mrf.mxu3 }
 0x29b   : > { %v877_v38 = vadd.f32 %v8564_v53, %v876_v36 }
 0x29d   : > { %v894_v39 = vmax.f32 %v877_v38, 0.0 }
 0x29f   : > { %994 = vmatmul.f32.gmra.mxu0 %v894_v39  ;;  %1059 = vmatmul.f32.vlgmr.msra.gmra.mxu3 %v894_v39 }
 0x2a4   : > { %v950_v33 = vpop.f32.mrf.mxu0  ;;  %v1015_v43 = vpop.f32.mrf.mxu1 }
 0x2a5   : > { %v951_v35 = vadd.f32 %v950_v33, %v8585_v41  ;;  %v1016_v44 = vadd.f32 %v1015_v43, %v8587_v42 }
 0x2a7   : > { %v7764_v45 = vmul.f32 -1.442695, %v951_v35  ;;  %v6456_v46 = vmax.f32 %v1016_v44, 0.0  ;;  %v6455_v47 = vmax.f32 %v951_v35, 0.0 }
 0x2a9   : > { %8069 = vpow2.f32 %v7764_v45  ;;  %6713 = vrot.lane.b32.xlu1 %v6456_v46, %s8178_s14  ;;  %6711 = vrot.lane.b32.xlu0 %v6455_v47, %s8178_s14 }
 0x2ac   : > { %v953_v48 = vpop.f32.mrf.mxu0  ;;  %v1018_v49 = vpop.f32.mrf.mxu1 }
 0x2ad   : > { %v954_v50 = vadd.f32 %v953_v48, %v8585_v41  ;;  %v1019_v51 = vadd.f32 %v1018_v49, %v8587_v42 }
 0x2af   : > { %v8070_v52 = vpop.eup %8069  ;;  %v7765_v53 = vmul.f32 -1.442695, %v954_v50  ;;  %v6458_v54 = vmax.f32 %v1019_v51, 0.0  ;;  %v6457_v55 = vmax.f32 %v954_v50, 0.0 }
 0x2b0   : > { %v1111_v56 = vadd.f32 1.0, %v8070_v52 }
 0x2b1   : > { %8071 = vpow2.f32 %v7765_v53  ;;  %6715 = vrot.lane.b32.xlu2 %v6457_v55, %s8178_s14  ;;  %6717 = vrot.lane.b32.xlu0 %v6458_v54, %s8178_s14 }
 0x2b2   : > { %8073 = vrcp.f32 %v1111_v56  ;;  %v1136_v6 = vand.u32 2147483647, %v1111_v56  ;;  %v1138_v7 = vand.u32 2147483648, %v1111_v56  ;;  %vm1132_vm3 = vweird.f32 %v1111_v56 }
 0x2b4   : > { %v956_v57 = vpop.f32.mrf.mxu0  ;;  %v1021_v58 = vpop.f32.mrf.mxu1  ;;  %v1139_v18 = vor.u32 1.1754944e-38, %v1138_v7  ;;  %vm1137_vm5 = vcmp.eq.f32.partialorder %v1136_v6, 8.507059e+37 }
 0x2b5   : > { %v957_v59 = vadd.f32 %v956_v57, %v8585_v41  ;;  %v1022_v37 = vadd.f32 %v1021_v58, %v8587_v42 }
 0x2b7   : > { %v8072_v60 = vpop.eup %8071  ;;  %v7766_v61 = vmul.f32 -1.442695, %v957_v59  ;;  %v6459_v62 = vmax.f32 %v957_v59, 0.0  ;;  %v6460_v63 = vmax.f32 %v1022_v37, 0.0 }
 0x2b8   : > { %v8074_v0 = vpop.eup %8073  ;;  %v1112_v1 = vadd.f32 1.0, %v8072_v60 }
 0x2b9   : > { %8075 = vpow2.f32 %v7766_v61  ;;  %6721 = vrot.lane.b32.xlu1 %v6460_v63, %s8178_s14  ;;  %6719 = vrot.lane.b32.xlu0 %v6459_v62, %s8178_s14  ;;  %v1128_v2 = vmul.f32 %v8074_v0, %v1111_v56  ;;  %vm1133_vm2 = vweird.f32 %v8074_v0 }
 0x2ba   : > { %8077 = vrcp.f32 %v1112_v1  ;;  %vm1134_vm4 = vmor %vm1132_vm3, %vm1133_vm2  ;;  %v1153_v28 = vand.u32 2147483648, %v1112_v1  ;;  %v1151_v30 = vand.u32 2147483647, %v1112_v1  ;;  %vm1147_vm7 = vweird.f32 %v1112_v1 }
 0x2bb   : > { %v1129_v3 = vsub.f32 1.0, %v1128_v2 }
 0x2bc   : > { %v959_v4 = vpop.f32.mrf.mxu0  ;;  %v1024_v5 = vpop.f32.mrf.mxu1  ;;  %v1154_v33 = vor.u32 1.1754944e-38, %v1153_v28  ;;  %vm1152_vm9 = vcmp.eq.f32.partialorder %v1151_v30, 8.507059e+37 }
 0x2bd   : > { %v960_v8 = vadd.f32 %v959_v4, %v8585_v41  ;;  %v1025_v9 = vadd.f32 %v1024_v5, %v8587_v42  ;;  %v1130_v10 = vmul.f32 %v8074_v0, %v1129_v3 }
 0x2bf   : > { %v8076_v11 = vpop.eup %8075  ;;  %v7767_v12 = vmul.f32 -1.442695, %v960_v8  ;;  %v6461_v13 = vmax.f32 %v960_v8, 0.0  ;;  %v6462_v14 = vmax.f32 %v1025_v9, 0.0  ;;  %v1131_v15 = vadd.f32 %v8074_v0, %v1130_v10 }
 0x2c0   : > { %v8078_v16 = vpop.eup %8077  ;;  %v8603_v17 = vadd.f32 1.0, %v8076_v11 }
 0x2c1   : > { %8079 = vpow2.f32 %v7767_v12  ;;  %6723 = vrot.lane.b32.xlu2 %v6461_v13, %s8178_s14  ;;  %6725 = vrot.lane.b32.xlu0 %v6462_v14, %s8178_s14  ;;  %v1135_v19 = vsel %vm1134_vm4, %v8074_v0, %v1131_v15  ;;  %v1143_v20 = vmul.f32 %v8078_v16, %v1112_v1  ;;  %vm1148_vm6 = vweird.f32 %v8078_v16 }
 0x2c2   : > { %8081 = vrcp.f32 %v8603_v17  ;;  %v8608_v21 = vsel %vm1137_vm5, %v1139_v18, %v1135_v19  ;;  %vm1149_vm8 = vmor %vm1147_vm7, %vm1148_vm6  ;;  %v1168_v53 = vand.u32 2147483648, %v8603_v17  ;;  %v1166_v55 = vand.u32 2147483647, %v8603_v17 }
 0x2c3   : > { %v1383_v22 = vmul.f32 30.0, %v8608_v21  ;;  %v1144_v23 = vsub.f32 1.0, %v1143_v20  ;;  %vm1162_vm11 = vweird.f32 %v8603_v17 }
 0x2c4   : > { %v962_v24 = vpop.f32.mrf.mxu0  ;;  %v1027_v25 = vpop.f32.mrf.mxu1  ;;  %v1169_v61 = vor.u32 1.1754944e-38, %v1168_v53  ;;  %vm1167_vm13 = vcmp.eq.f32.partialorder %v1166_v55, 8.507059e+37 }
 0x2c5   : > { %v963_v26 = vadd.f32 %v962_v24, %v8585_v41  ;;  %v1399_v27 = vadd.f32 0.1, %v1383_v22  ;;  %v1145_v29 = vmul.f32 %v8078_v16, %v1144_v23  ;;  %v1028_v36 = vadd.f32 %v1027_v25, %v8587_v42 }
 0x2c7   : > { %v8080_v31 = vpop.eup %8079  ;;  %v7768_v32 = vmul.f32 -1.442695, %v963_v26  ;;  %v6463_v34 = vmax.f32 %v963_v26, 0.0  ;;  %6631 = vrot.lane.b32.xlu1 %v1399_v27, %s8178_s14  ;;  %v1146_v40 = vadd.f32 %v8078_v16, %v1145_v29  ;;  %v6464_v44 = vmax.f32 %v1028_v36, 0.0 }
 0x2c8   : > { %v8082_v38 = vpop.eup %8081  ;;  %v8614_v39 = vadd.f32 1.0, %v8080_v31 }
 0x2c9   : > { %8083 = vpow2.f32 %v7768_v32  ;;  %6727 = vrot.lane.b32.xlu0 %v6463_v34, %s8178_s14  ;;  %v1158_v43 = vmul.f32 %v8082_v38, %v8603_v17  ;;  %v1150_v35 = vsel %vm1149_vm8, %v8078_v16, %v1146_v40  ;;  %vm1163_vm10 = vweird.f32 %v8082_v38 }
 0x2ca   : > { %8085 = vrcp.f32 %v8614_v39  ;;  %v8619_v45 = vsel %vm1152_vm9, %v1154_v33, %v1150_v35  ;;  %vm1164_vm12 = vmor %vm1162_vm11, %vm1163_vm10  ;;  %v1183_v9 = vand.u32 2147483648, %v8614_v39  ;;  %v1181_v13 = vand.u32 2147483647, %v8614_v39 }
 0x2cb   : > { %v1159_v46 = vsub.f32 1.0, %v1158_v43  ;;  %v1384_v49 = vmul.f32 30.0, %v8619_v45  ;;  %vm1177_vm15 = vweird.f32 %v8614_v39 }
 0x2cc   : > { %v965_v47 = vpop.f32.mrf.mxu0  ;;  %v1030_v48 = vpop.f32.mrf.mxu1  ;;  %v1184_v19 = vor.u32 1.1754944e-38, %v1183_v9  ;;  %vm1182_vm1 = vcmp.eq.f32.partialorder %v1181_v13, 8.507059e+37 }
 0x2cd   : > { %v966_v50 = vadd.f32 %v965_v47, %v8585_v41  ;;  %v1031_v51 = vadd.f32 %v1030_v48, %v8587_v42  ;;  %v1160_v52 = vmul.f32 %v8082_v38, %v1159_v46  ;;  %v1400_v54 = vadd.f32 0.1, %v1384_v49 }
 0x2cf   : > { %v8084_v56 = vpop.eup %8083  ;;  %v7769_v57 = vmul.f32 -1.442695, %v966_v50  ;;  %6729 = vrot.lane.b32.xlu1 %v6464_v44, %s8178_s14  ;;  %v6466_v37 = vmax.f32 %v1031_v51, 0.0  ;;  %6633 = vrot.lane.b32.xlu2 %v1400_v54, %s8178_s14  ;;  %v1161_v60 = vadd.f32 %v8082_v38, %v1160_v52  ;;  %v6465_v2 = vmax.f32 %v966_v50, 0.0 }
 0x2d0   : > { %v8086_v58 = vpop.eup %8085  ;;  %v8627_v59 = vadd.f32 1.0, %v8084_v56 }
 0x2d1   : > { %8087 = vpow2.f32 %v7769_v57  ;;  %v1173_v62 = vmul.f32 %v8086_v58, %v8614_v39  ;;  %6733 = vrot.lane.b32.xlu0 %v6466_v37, %s8178_s14  ;;  %v1165_v63 = vsel %vm1164_vm12, %v8082_v38, %v1161_v60  ;;  %vm1178_vm14 = vweird.f32 %v8086_v58 }
 0x2d2   : > { %8089 = vrcp.f32 %v8627_v59  ;;  %v8634_v0 = vsel %vm1167_vm13, %v1169_v61, %v1165_v63  ;;  %vm1179_vm0 = vmor %vm1177_vm15, %vm1178_vm14  ;;  %vm1192_vm2 = vweird.f32 %v8627_v59  ;;  %v1198_v31 = vand.u32 2147483648, %v8627_v59 }
 0x2d3   : > { %v1174_v1 = vsub.f32 1.0, %v1173_v62  ;;  %v1385_v5 = vmul.f32 30.0, %v8634_v0  ;;  %v1196_v38 = vand.u32 2147483647, %v8627_v59 }
 0x2d4   : > { %v968_v3 = vpop.f32.mrf.mxu0  ;;  %v1033_v4 = vpop.f32.mrf.mxu1  ;;  %v1199_v44 = vor.u32 1.1754944e-38, %v1198_v31 }
 0x2d5   : > { %v969_v6 = vadd.f32 %v968_v3, %v8585_v41  ;;  %v1175_v7 = vmul.f32 %v8086_v58, %v1174_v1  ;;  %v1401_v8 = vadd.f32 0.1, %v1385_v5  ;;  %v1034_v16 = vadd.f32 %v1033_v4, %v8587_v42 }
 0x2d6   : > { %vm1197_vm5 = vcmp.eq.f32.partialorder %v1196_v38, 8.507059e+37 }
 0x2d7   : > { %v8088_v10 = vpop.eup %8087  ;;  %v7770_v11 = vmul.f32 -1.442695, %v969_v6  ;;  %v6467_v12 = vmax.f32 %v969_v6, 0.0  ;;  %6731 = vrot.lane.b32.xlu2 %v6465_v2, %s8178_s14  ;;  %6635 = vrot.lane.b32.xlu1 %v1401_v8, %s8178_s14  ;;  %v1176_v17 = vadd.f32 %v8086_v58, %v1175_v7  ;;  %v6468_v23 = vmax.f32 %v1034_v16, 0.0 }
 0x2d8   : > { %v8090_v14 = vpop.eup %8089  ;;  %v8640_v15 = vadd.f32 1.0, %v8088_v10 }
 0x2d9   : > { %8091 = vpow2.f32 %v7770_v11  ;;  %v1188_v18 = vmul.f32 %v8090_v14, %v8627_v59  ;;  %6735 = vrot.lane.b32.xlu0 %v6467_v12, %s8178_s14  ;;  %v1180_v20 = vsel %vm1179_vm0, %v8086_v58, %v1176_v17  ;;  %vm1193_vm3 = vweird.f32 %v8090_v14 }
 0x2da   : > { %8093 = vrcp.f32 %v8640_v15  ;;  %v8649_v26 = vsel %vm1182_vm1, %v1184_v19, %v1180_v20  ;;  %vm1194_vm4 = vmor %vm1192_vm2, %vm1193_vm3  ;;  %vm1207_vm6 = vweird.f32 %v8640_v15  ;;  %v1213_v52 = vand.u32 2147483648, %v8640_v15 }
 0x2db   : > { %v1189_v22 = vsub.f32 1.0, %v1188_v18  ;;  %v1386_v29 = vmul.f32 30.0, %v8649_v26  ;;  %v1211_v56 = vand.u32 2147483647, %v8640_v15 }
 0x2dc   : > { %v971_v24 = vpop.f32.mrf.mxu0  ;;  %v1036_v25 = vpop.f32.mrf.mxu1  ;;  %v1214_v1 = vor.u32 1.1754944e-38, %v1213_v52 }
 0x2dd   : > { %v972_v27 = vadd.f32 %v971_v24, %v8585_v41  ;;  %v1037_v28 = vadd.f32 %v1036_v25, %v8587_v42  ;;  %v1190_v30 = vmul.f32 %v8090_v14, %v1189_v22  ;;  %v1402_v33 = vadd.f32 0.1, %v1386_v29 }
 0x2de   : > { %vm1212_vm9 = vcmp.eq.f32.partialorder %v1211_v56, 8.507059e+37 }
 0x2df   : > { %v8092_v32 = vpop.eup %8091  ;;  %v7771_v34 = vmul.f32 -1.442695, %v972_v27  ;;  %v6470_v36 = vmax.f32 %v1037_v28, 0.0  ;;  %6737 = vrot.lane.b32.xlu1 %v6468_v23, %s8178_s14  ;;  %v1191_v43 = vadd.f32 %v8090_v14, %v1190_v30  ;;  %6637 = vrot.lane.b32.xlu2 %v1402_v33, %s8178_s14  ;;  %v6469_v53 = vmax.f32 %v972_v27, 0.0 }
 0x2e0   : > { %v8094_v39 = vpop.eup %8093  ;;  %v8657_v40 = vadd.f32 1.0, %v8092_v32  ;;  %v8697_v28 = vmul.f32 6.2831855, %v8608_v21 }
 0x2e1   : > { %8095 = vpow2.f32 %v7771_v34  ;;  %v1203_v35 = vmul.f32 %v8094_v39, %v8640_v15  ;;  %6741 = vrot.lane.b32.xlu0 %v6470_v36, %s8178_s14  ;;  %v1195_v46 = vsel %vm1194_vm4, %v8090_v14, %v1191_v43  ;;  %vm1208_vm7 = vweird.f32 %v8094_v39 }
 0x2e2   : > { %8097 = vrcp.f32 %v8657_v40  ;;  %v8666_v49 = vsel %vm1197_vm5, %v1199_v44, %v1195_v46  ;;  %vm1209_vm8 = vmor %vm1207_vm6, %vm1208_vm7  ;;  %vm1222_vm10 = vweird.f32 %v8657_v40  ;;  %v1228_v8 = vand.u32 2147483648, %v8657_v40 }
 0x2e3   : > { %v1204_v47 = vsub.f32 1.0, %v1203_v35  ;;  %v1387_v51 = vmul.f32 30.0, %v8666_v49  ;;  %v1226_v13 = vand.u32 2147483647, %v8657_v40  ;;  %v1418_v33 = vand.u32 2139095040, %v8697_v28 }
 0x2e4   : > { %v974_v48 = vpop.f32.mrf.mxu0  ;;  %v1039_v54 = vpop.f32.mrf.mxu1  ;;  %v1229_v20 = vor.u32 1.1754944e-38, %v1228_v8 }
 0x2e5   : > { %v975_v50 = vadd.f32 %v974_v48, %v8585_v41  ;;  %v1205_v55 = vmul.f32 %v8094_v39, %v1204_v47  ;;  %v1403_v37 = vadd.f32 0.1, %v1387_v51  ;;  %v1040_v63 = vadd.f32 %v1039_v54, %v8587_v42 }
 0x2e6   : > { %vm1227_vm13 = vcmp.eq.f32.partialorder %v1226_v13, 8.507059e+37  ;;  %v1419_v47 = vshrl.u32 %v1418_v33, 23  ;;  %v8709_v48 = vmul.f32 6.2831855, %v8619_v45 }
 0x2e7   : > { %v8096_v57 = vpop.eup %8095  ;;  %v7772_v58 = vmul.f32 -1.442695, %v975_v50  ;;  %v6471_v59 = vmax.f32 %v975_v50, 0.0  ;;  %v1206_v62 = vadd.f32 %v8094_v39, %v1205_v55  ;;  %6639 = vrot.lane.b32.xlu1 %v1403_v37, %s8178_s14  ;;  %6739 = vrot.lane.b32.xlu2 %v6469_v53, %s8178_s14  ;;  %v6472_v9 = vmax.f32 %v1040_v63, 0.0 }
 0x2e8   : > { %v8098_v60 = vpop.eup %8097  ;;  %v8673_v61 = vadd.f32 1.0, %v8096_v57  ;;  %v8712_v55 = vmul.f32 6.2831855, %v8634_v0  ;;  %v1573_v45 = vand.u32 2139095040, %v8709_v48  ;;  %v8720_v63 = vmul.f32 6.2831855, %v8649_v26 }
 0x2e9   : > { %8099 = vpow2.f32 %v7772_v58  ;;  %v1218_v2 = vmul.f32 %v8098_v60, %v8657_v40  ;;  %v1210_v3 = vsel %vm1209_vm8, %v8094_v39, %v1206_v62  ;;  %6743 = vrot.lane.b32.xlu0 %v6471_v59, %s8178_s14  ;;  %vm1223_vm11 = vweird.f32 %v8098_v60 }
 0x2ea   : > { %8101 = vrcp.f32 %v8673_v61  ;;  %v8683_v4 = vsel %vm1212_vm9, %v1214_v1, %v1210_v3  ;;  %vm1224_vm12 = vmor %vm1222_vm10, %vm1223_vm11  ;;  %v1243_v31 = vand.u32 2147483648, %v8673_v61  ;;  %vm1237_vm14 = vweird.f32 %v8673_v61 }
 0x2eb   : > { %v1219_v5 = vsub.f32 1.0, %v1218_v2  ;;  %v1388_v7 = vmul.f32 30.0, %v8683_v4  ;;  %v1241_v34 = vand.u32 2147483647, %v8673_v61  ;;  %v7780_v58 = vadd.s32 4294967169, %v1419_v47 }
 0x2ec   : > { %v977_v6 = vpop.f32.mrf.mxu0  ;;  %v1244_v21 = vor.u32 1.1754944e-38, %v1243_v31  ;;  %v1728_v62 = vand.u32 2139095040, %v8712_v55  ;;  %v1574_v3 = vshrl.u32 %v1573_v45, 23  ;;  %v8729_v13 = vmul.f32 6.2831855, %v8683_v4 }
 0x2ed   : > { %v978_v10 = vadd.f32 %v977_v6, %v8585_v41  ;;  %v1220_v11 = vmul.f32 %v8098_v60, %v1219_v5  ;;  %v1404_v12 = vadd.f32 0.1, %v1388_v7  ;;  %vm1242_vm1 = vcmp.eq.f32.partialorder %v1241_v34, 8.507059e+37 }
 0x2ee   : > { %v1425_v1 = vadd.s32 1, %v7780_v58  ;;  %v1729_v8 = vshrl.u32 %v1728_v62, 23  ;;  %v7783_v26 = vadd.s32 4294967169, %v1574_v3  ;;  %12476 = vst [vmem:[#allocation8_spill] sm:$0xff] %v8729_v13  ;;  %v12373_v58 = vmov 2131351028  }
 0x2ef   : > { %v8100_v14 = vpop.eup %8099  ;;  %v7773_v15 = vmul.f32 -1.442695, %v978_v10  ;;  %v1221_v16 = vadd.f32 %v8098_v60, %v1220_v11  ;;  %6745 = vrot.lane.b32.xlu1 %v6472_v9, %s8178_s14  ;;  %6641 = vrot.lane.b32.xlu2 %v1404_v12, %s8178_s14  ;;  %v6473_v29 = vmax.f32 %v978_v10, 0.0  ;;  %v1883_v9 = vand.u32 2139095040, %v8720_v63 }
 0x2f0   : > { %v8102_v17 = vpop.eup %8101  ;;  %v1119_v18 = vadd.f32 1.0, %v8100_v14  ;;  %vm1426_vm8 = vcmp.gt.s32.totalorder %v1425_v1, 0  ;;  %v8726_v11 = vmul.f32 6.2831855, %v8666_v49  ;;  %v2193_v49 = vand.u32 2139095040, %v8729_v13 }
 0x2f1   : > { %8103 = vpow2.f32 %v7773_v15  ;;  %v1225_v19 = vsel %vm1224_vm12, %v8098_v60, %v1221_v16  ;;  %v1233_v22 = vmul.f32 %v8102_v17, %v8673_v61  ;;  %vm1238_vm15 = vweird.f32 %v8102_v17 }
 0x2f2   : > { %8105 = vrcp.f32 %v1119_v18  ;;  %v8693_v23 = vsel %vm1227_vm13, %v1229_v20, %v1225_v19  ;;  %vm1239_vm0 = vmor %vm1237_vm14, %vm1238_vm15  ;;  %v1258_v51 = vand.u32 2147483648, %v1119_v18  ;;  %vm1252_vm2 = vweird.f32 %v1119_v18  ;;  %12475 = vst [vmem:[#allocation7_spill] sm:$0xff] %v8726_v11 }
 0x2f3   : > { %v1234_v24 = vsub.f32 1.0, %v1233_v22  ;;  %v1389_v25 = vmul.f32 30.0, %v8693_v23  ;;  %v1256_v53 = vand.u32 2147483647, %v1119_v18  ;;  %v1427_v15 = vsel %vm1426_vm8, %v1425_v1, 0 }
 0x2f4   : > { %v1259_v59 = vor.u32 1.1754944e-38, %v1258_v51  ;;  %v7786_v16 = vadd.s32 4294967169, %v1729_v8  ;;  %v1580_v19 = vadd.s32 1, %v7783_v26  ;;  %v2038_v20 = vand.u32 2139095040, %v8726_v11 }
 0x2f5   : > { %v1235_v27 = vmul.f32 %v8102_v17, %v1234_v24  ;;  %v1405_v30 = vadd.f32 0.1, %v1389_v25  ;;  %vm1257_vm5 = vcmp.eq.f32.partialorder %v1256_v53, 8.507059e+37  ;;  %v12366_v22 = vand.u32 2147483647, %v8697_v28 }
 0x2f6   : > { %v1429_v24 = vand.u32 31, %v1427_v15  ;;  %vm1581_vm11 = vcmp.gt.s32.totalorder %v1580_v19, 0  ;;  %v2039_v31 = vshrl.u32 %v2038_v20, 23  ;;  %v12369_v62 = vmov 920167782  }
 0x2f7   : > { %v8104_v32 = vpop.eup %8103  ;;  %6643 = vrot.lane.b32.xlu1 %v1405_v30, %s8178_s14  ;;  %v1236_v39 = vadd.f32 %v8102_v17, %v1235_v27  ;;  %6747 = vrot.lane.b32.xlu2 %v6473_v29, %s8178_s14  ;;  %v1735_v27 = vadd.s32 1, %v7786_v16  ;;  %v980_v29 = vpop.f32.mrf.mxu0  ;;  %v8738_v30 = vmul.f32 6.2831855, %v8693_v23  ;;  %v8742_v34 = vand.u32 8388607, %v12366_v22 }
 0x2f8   : > { %v8106_v36 = vpop.eup %8105  ;;  %v1120_v38 = vadd.f32 1.0, %v8104_v32  ;;  %v1582_v33 = vsel %vm1581_vm11, %v1580_v19, 0  ;;  %v12371_v3 = vmov 2102212464   ;;  %v1438_v26 = vshll.u32 %v12373_v58, %v1429_v24 }
 0x2f9   : > { %v1248_v40 = vmul.f32 %v8106_v36, %v1119_v18  ;;  %v1240_v43 = vsel %vm1239_vm0, %v8102_v17, %v1236_v39  ;;  %vm1253_vm3 = vweird.f32 %v8106_v36  ;;  %v1884_v17 = vshrl.u32 %v1883_v9, 23  ;;  %12477 = vst [vmem:[#allocation9_spill] sm:$0xff] %v8738_v30 }
 0x2fa   : > { %8107 = vrcp.f32 %v1120_v38  ;;  %v8705_v44 = vsel %vm1242_vm1, %v1244_v21, %v1240_v43  ;;  %vm1254_vm4 = vmor %vm1252_vm2, %vm1253_vm3  ;;  %vm1267_vm6 = vweird.f32 %v1120_v38  ;;  %v1273_v7 = vand.u32 2147483648, %v1120_v38 }
 0x2fb   : > { %v1249_v35 = vsub.f32 1.0, %v1248_v40  ;;  %v1390_v46 = vmul.f32 30.0, %v8705_v44  ;;  %v1271_v10 = vand.u32 2147483647, %v1120_v38  ;;  %v7789_v4 = vadd.s32 4294967169, %v1884_v17 }
 0x2fc   : > { %v1274_v14 = vor.u32 1.1754944e-38, %v1273_v7  ;;  %vm1736_vm12 = vcmp.gt.s32.totalorder %v1735_v27, 0  ;;  %v8745_v40 = vadd.f32 %v980_v29, %v8585_v41  ;;  %v2348_v23 = vand.u32 2139095040, %v8738_v30 }
 0x2fd   : > { %v1250_v50 = vmul.f32 %v8106_v36, %v1249_v35  ;;  %v1406_v52 = vadd.f32 0.1, %v1390_v46  ;;  %vm1272_vm10 = vcmp.eq.f32.partialorder %v1271_v10, 8.507059e+37  ;;  %v1890_v39 = vadd.s32 1, %v7789_v4 }
 0x2fe   : > { %12478 = vst [vmem:[#allocation10_spill] sm:$0xff] %v8745_v40  ;;  %v7792_v21 = vadd.s32 4294967169, %v2039_v31  ;;  %v1423_v43 = vor.u32 8388608, %v8742_v34  ;;  %v8750_v35 = vshrl.u32 %v1427_v15, 5  ;;  %v1737_v46 = vsel %vm1736_vm12, %v1735_v27, 0 }
 0x2ff   : > { %v1251_v56 = vadd.f32 %v8106_v36, %v1250_v50  ;;  %6645 = vrot.lane.b32.xlu2 %v1406_v52, %s8178_s14  ;;  %v12377_v50 = vmov 683565275   ;;  %v8755_v52 = vand.u32 31, %v1582_v33  ;;  %vm1891_vm13 = vcmp.gt.s32.totalorder %v1890_v39, 0 }
 0x300   : > { %v8108_v54 = vpop.eup %8107  ;;  %v7774_v53 = vmul.f32 -1.442695, %v8745_v40  ;;  %v8760_v45 = vand.u32 31, %v1737_v46  ;;  %v1441_v8 = vshll.u32 %v12371_v3, %v1429_v24  ;;  %v8774_v15 = vshrl.u32 %v1582_v33, 5 }
 0x301   : > { %v1263_v57 = vmul.f32 %v8108_v54, %v1120_v38  ;;  %v1255_v37 = vsel %vm1254_vm4, %v8106_v36, %v1251_v56  ;;  %vm1268_vm7 = vweird.f32 %v8108_v54  ;;  %v1430_v36 = vsub.s32 32, %v1429_v24 }
 0x302   : > { %v8716_v61 = vsel %vm1257_vm5, %v1259_v59, %v1255_v37  ;;  %vm1269_vm9 = vmor %vm1267_vm6, %vm1268_vm7  ;;  %v2194_v38 = vshrl.u32 %v2193_v49, 23  ;;  %v2045_v37 = vadd.s32 1, %v7792_v21  ;;  %8109 = vpow2.f32 %v7774_v53  ;;  %v983_v49 = vpop.f32.mrf.mxu0 }
 0x303   : > { %v1264_v60 = vsub.f32 1.0, %v1263_v57  ;;  %v1391_v0 = vmul.f32 30.0, %v8716_v61  ;;  %v8753_v51 = vshrl.u32 %v12377_v50, %v1430_v36  ;;  %v2349_v57 = vshrl.u32 %v2348_v23, 23 }
 0x304   : > { %v7795_v47 = vadd.s32 4294967169, %v2194_v38  ;;  %v1436_v59 = vshrl.u32 %v12373_v58, %v1430_v36  ;;  %vm2046_vm14 = vcmp.gt.s32.totalorder %v2045_v37, 0  ;;  %v1444_v17 = vshll.u32 %v12369_v62, %v1429_v24 }
 0x305   : > { %v1265_v2 = vmul.f32 %v8108_v54, %v1264_v60  ;;  %v1407_v5 = vadd.f32 0.1, %v1391_v0  ;;  %v1432_v60 = vshll.u32 %v12377_v50, %v1429_v24  ;;  %v1442_v0 = vshrl.u32 %v12369_v62, %v1430_v36 }
 0x306   : > { %v2200_v1 = vadd.s32 1, %v7795_v47  ;;  %v7798_v9 = vadd.s32 4294967169, %v2349_v57  ;;  %v8778_v19 = vsub.s32 32, %v8755_v52  ;;  %v8780_v20 = vshrl.u32 %v1737_v46, 5 }
 0x307   : > { %v1266_v6 = vadd.f32 %v8108_v54, %v1265_v2  ;;  %6647 = vrot.lane.b32.xlu1 %v1407_v5, %s8178_s14  ;;  %v1439_v5 = vshrl.u32 %v12371_v3, %v1430_v36  ;;  %v1443_v16 = vor.u32 %v1442_v0, %v1441_v8  ;;  %v8783_v27 = vsub.s32 32, %v8760_v45 }
 0x308   : > { %vm2201_vm15 = vcmp.gt.s32.totalorder %v2200_v1, 0  ;;  %vm1447_vm0 = vcmp.lt.s32.totalorder %v8750_v35, 1  ;;  %v2047_v31 = vsel %vm2046_vm14, %v2045_v37, 0  ;;  %vm1450_vm1 = vcmp.lt.s32.totalorder %v8750_v35, 4 }
 0x309   : > { %v1270_v12 = vsel %vm1269_vm9, %v8108_v54, %v1266_v6  ;;  %v12375_v54 = vmov 2475754826   ;;  %v1892_v6 = vsel %vm1891_vm13, %v1890_v39, 0  ;;  %v2202_v38 = vsel %vm2201_vm15, %v2200_v1, 0 }
 0x30a   : > { %v8731_v18 = vsel %vm1272_vm10, %v1274_v14, %v1270_v12  ;;  %v1433_v56 = vshrl.u32 %v12375_v54, %v1430_v36  ;;  %v1435_v2 = vshll.u32 %v12375_v54, %v1429_v24  ;;  %v12367_v12 = vmov 1326507024  }
 0x30b   : > { %v1392_v25 = vmul.f32 30.0, %v8731_v18  ;;  %v1445_v14 = vshrl.u32 %v12367_v12, %v1430_v36  ;;  %v8785_v4 = vshrl.u32 %v1892_v6, 5  ;;  %v8110_v36 = vpop.eup %8109  ;;  %v8794_v39 = vadd.f32 %v983_v49, %v8585_v41 }
 0x30c   : > { %v8767_v7 = vor.u32 %v1433_v56, %v1432_v60  ;;  %v8770_v10 = vor.u32 %v1436_v59, %v1435_v2  ;;  %vm1449_vm2 = vcmp.lt.s32.totalorder %v8750_v35, 3  ;;  %v1456_v33 = vsel %vm1450_vm1, %v1443_v16, 920167782 }
 0x30d   : > { %v1408_v32 = vadd.f32 0.1, %v1392_v25  ;;  %v1440_v25 = vor.u32 %v1439_v5, %v1438_v26  ;;  %v1446_v29 = vor.u32 %v1445_v14, %v1444_v17  ;;  %12479 = vst [vmem:[#allocation11_spill] sm:$0xff] %v8794_v39  ;;  %v8800_v23 = vmul.f32 6.2831855, %v8705_v44 }
 0x30e   : > { %v1455_v24 = vsel %vm1447_vm0, %v8767_v7, %v8770_v10  ;;  %vm1448_vm3 = vcmp.lt.s32.totalorder %v8750_v35, 2  ;;  %v8808_v47 = vand.u32 31, %v1892_v6  ;;  %v8810_v53 = vand.u32 31, %v2047_v31 }
 0x30f   : > { %6649 = vrot.lane.b32.xlu2 %v1408_v32, %s8178_s14  ;;  %v2355_v32 = vadd.s32 1, %v7798_v9  ;;  %12480 = vst [vmem:[#allocation12_spill] sm:$0xff] %v8800_v23  ;;  %v1457_v21 = vsel %vm1449_vm2, %v1440_v25, %v1456_v33  ;;  %v1459_v46 = vsel %vm1447_vm0, %v8770_v10, %v1440_v25  ;;  %v1460_v44 = vsel %vm1450_vm1, %v1446_v29, 1326507024 }
 0x310   : > { %12481 = vst [vmem:[#allocation13_spill] sm:$0xff] %v8810_v53  ;;  %v1458_v56 = vsel %vm1448_vm3, %v1455_v24, %v1457_v21  ;;  %v8816_v57 = vand.u32 31, %v2202_v38  ;;  %v1461_v59 = vsel %vm1449_vm2, %v1443_v16, %v1460_v44  ;;  %v8822_v37 = vshll.u32 %v1423_v43, 8 }
 0x311   : > { %vm2356_vm4 = vcmp.gt.s32.totalorder %v2355_v32, 0  ;;  %v8824_v60 = vadd.f32 1.0, %v8110_v36  ;;  %v7775_v0 = vmul.f32 -1.442695, %v8794_v39  ;;  %v1462_v1 = vsel %vm1448_vm3, %v1459_v46, %v1461_v59 }
 0x312   : > { %12482 = vst [vmem:[#allocation14_spill] sm:$0xff] %v8816_v57  ;;  %v1489_v2 = vshrl.u32 %v1458_v56, 16  ;;  %v2503_v5 = vand.u32 2139095040, %v8800_v23  ;;  %v1464_v6 = vand.u32 65535, %v8822_v37  ;;  %v1466_v8 = vand.u32 65535, %v1462_v1 }
 0x313   : > { %12483 = vst [vmem:[#allocation15_spill] sm:$0xff] %v8824_v60  ;;  %v1467_v9 = vshrl.u32 %v1462_v1, 16  ;;  %v8832_v26 = vsub.s32 32, %v8808_v47  ;;  %v8834_v34 = vshrl.u32 %v2047_v31, 5  ;;  %v2357_v43 = vsel %vm2356_vm4, %v2355_v32, 0 }
 0x314   : > { %v1465_v14 = vshrl.u32 %v8822_v37, 16  ;;  %v8838_v16 = vsub.s32 32, %v8810_v53  ;;  %v8840_v17 = vshrl.u32 %v2202_v38, 5  ;;  %v1488_v29 = vand.u32 65535, %v1458_v56 }
 0x315   : > { %12484 = vst [vmem:[#allocation16_spill] sm:$0xff] %v8834_v34  ;;  %v1469_v49 = vmul.u32 %v1467_v9, %v1464_v6  ;;  %v8843_v24 = vsub.s32 32, %v8816_v57  ;;  %8111 = vpow2.f32 %v7775_v0  ;;  %v1491_v33 = vmul.u32 %v1489_v2, %v1464_v6 }
 0x316   : > { %12485 = vst [vmem:[#allocation17_spill] sm:$0xff] %v8838_v16  ;;  %v1470_v36 = vmul.u32 %v1466_v8, %v1465_v14  ;;  %8113 = vrcp.f32 %v8824_v60  ;;  %v8846_v31 = vshrl.u32 %v2357_v43, 5  ;;  %v8848_v32 = vand.u32 31, %v2357_v43 }
 0x317   : > { %12486 = vst [vmem:[#allocation18_spill] sm:$0xff] %v8840_v17  ;;  %v2504_v21 = vshrl.u32 %v2503_v5, 23  ;;  %v1452_v46 = vsel %vm1450_vm1, %v1440_v25, 2102212464  ;;  %v1468_v38 = vmul.u32 %v1466_v8, %v1464_v6  ;;  %v1472_v44 = vshll.u32 %v1469_v49, 16 }
 0x318   : > { %12487 = vst [vmem:[#allocation19_spill] sm:$0xff] %v8843_v24  ;;  %v1451_v56 = vsel %vm1447_vm0, %v8753_v51, %v8767_v7  ;;  %v1471_v59 = vmul.u32 %v1467_v9, %v1465_v14  ;;  %v1490_v0 = vmul.u32 %v1488_v29, %v1464_v6  ;;  %v1492_v1 = vmul.u32 %v1488_v29, %v1465_v14  ;;  %v986_v51 = vpop.f32.mrf.mxu0 }
 0x319   : > { %12488 = vst [vmem:[#allocation20_spill] sm:$0xff] %v8846_v31  ;;  %v1474_v22 = vshll.u32 %v1470_v36, 16  ;;  %vm1476_vm5 = vc.u32 %v1468_v38, %v1472_v44  ;;  %v1478_v12 = vadd.s32 %v1472_v44, %v1468_v38  ;;  %v1494_v62 = vshll.u32 %v1491_v33, 16 }
 0x31a   : > { %12489 = vst [vmem:[#allocation21_spill] sm:$0xff] %v8848_v32  ;;  %v1453_v5 = vsel %vm1449_vm2, %v8770_v10, %v1452_v46  ;;  %v12380_v43 = vmov 0   ;;  %v1493_v8 = vmul.u32 %v1489_v2, %v1465_v14  ;;  %v12379_v3 = vand.u32 2147483647, %v8709_v48 }
 0x31b   : > { %v1477_v25 = vsel %vm1476_vm5, 1, %v12380_v43  ;;  %v8861_v58 = vpop.eup %8111  ;;  %vm1480_vm6 = vc.u32 %v1478_v12, %v1474_v22  ;;  %vm1498_vm7 = vc.u32 %v1490_v0, %v1494_v62  ;;  %v1500_v6 = vadd.s32 %v1494_v62, %v1490_v0 }
 0x31c   : > { %v1479_v7 = vadd.s32 %v1477_v25, %v1471_v59  ;;  %v8863_v9 = vpop.eup %8113  ;;  %v1288_v29 = vand.u32 2147483648, %v8824_v60  ;;  %v1481_v38 = vsel %vm1480_vm6, 1, %v12380_v43  ;;  %v1496_v10 = vshll.u32 %v1492_v1, 16 }
 0x31d   : > { %v1499_v46 = vsel %vm1498_vm7, 1, %v12380_v43  ;;  %v8868_v44 = vadd.s32 4294967169, %v2504_v21  ;;  %v1473_v2 = vshrl.u32 %v1469_v49, 16  ;;  %v8871_v50 = vadd.f32 %v986_v51, %v8585_v41 }
 0x31e   : > { %v1483_v14 = vadd.s32 %v1481_v38, %v1479_v7  ;;  %v1501_v54 = vadd.s32 %v1499_v46, %v1493_v8  ;;  %v1454_v22 = vsel %vm1448_vm3, %v1451_v56, %v1453_v5  ;;  %v1475_v62 = vshrl.u32 %v1470_v36, 16 }
 0x31f   : > { %12490 = vst [vmem:[#allocation22_spill] sm:$0xff] %v8871_v50  ;;  %vm1502_vm8 = vc.u32 %v1500_v6, %v1496_v10  ;;  %v1495_v59 = vshrl.u32 %v1491_v33, 16  ;;  %v1577_v25 = vand.u32 8388607, %v12379_v3  ;;  %v12491_v49 = vmov 683565275  }
 0x320   : > { %v1484_v12 = vadd.s32 %v1483_v14, %v1473_v2  ;;  %v1503_v0 = vsel %vm1502_vm8, 1, %v12380_v43  ;;  %v1587_v7 = vshll.u32 %v12491_v49, %v8755_v52  ;;  %v12492_v8 = vmov 2475754826  }
 0x321   : > { %v1505_v21 = vadd.s32 %v1503_v0, %v1501_v54  ;;  %v1588_v51 = vshrl.u32 %v12492_v8, %v8778_v19  ;;  %v12493_v38 = vmov 2131351028   ;;  %v1590_v36 = vshll.u32 %v12492_v8, %v8755_v52 }
 0x322   : > { %v1591_v35 = vshrl.u32 %v12493_v38, %v8778_v19  ;;  %v8884_v56 = vadd.s32 %v1484_v12, %v1475_v62  ;;  %v1593_v33 = vshll.u32 %v12493_v38, %v8755_v52  ;;  %v12494_v5 = vmov 2102212464  }
 0x323   : > { %v1594_v54 = vshrl.u32 %v12494_v5, %v8778_v19  ;;  %v1497_v46 = vshrl.u32 %v1492_v1, 16  ;;  %v8892_v2 = vadd.s32 %v1500_v6, %v1496_v10  ;;  %v1506_v14 = vadd.s32 %v1505_v21, %v1495_v59 }
 0x324   : > { %v1589_v0 = vor.u32 %v1588_v51, %v1587_v7  ;;  %v1592_v3 = vor.u32 %v1591_v35, %v1590_v36  ;;  %v1596_v62 = vshll.u32 %v12494_v5, %v8755_v52  ;;  %v12495_v12 = vmov 920167782  }
 0x325   : > { %v1595_v43 = vor.u32 %v1594_v54, %v1593_v33  ;;  %v1597_v39 = vshrl.u32 %v12495_v12, %v8778_v19  ;;  %v8899_v40 = vmul.f32 6.2831855, %v8716_v61  ;;  %v1507_v42 = vadd.s32 %v1506_v14, %v1497_v46 }
 0x326   : > { %v1599_v23 = vshll.u32 %v12495_v12, %v8755_v52  ;;  %v12497_v1 = vmov 1326507024   ;;  %v1508_v10 = vmul.u32 %v8822_v37, %v1454_v22  ;;  %vm1510_vm9 = vc.u32 %v8884_v56, %v8892_v2 }
 0x327   : > { %12496 = vst [vmem:[#allocation23_spill] sm:$0xff] %v8899_v40  ;;  %v1600_v6 = vshrl.u32 %v12497_v1, %v8778_v19  ;;  %v1578_v59 = vor.u32 8388608, %v1577_v25  ;;  %v1598_v21 = vor.u32 %v1597_v39, %v1596_v62  ;;  %v1511_v7 = vadd.s32 1, %v1507_v42 }
 0x328   : > { %vm1602_vm10 = vcmp.lt.s32.totalorder %v8774_v15, 1  ;;  %vm1605_vm11 = vcmp.lt.s32.totalorder %v8774_v15, 4  ;;  %vm1604_vm12 = vcmp.lt.s32.totalorder %v8774_v15, 3  ;;  %vm1603_vm13 = vcmp.lt.s32.totalorder %v8774_v15, 2 }
 0x329   : > { %v1601_v51 = vor.u32 %v1600_v6, %v1599_v23  ;;  %v1610_v61 = vsel %vm1602_vm10, %v1589_v0, %v1592_v3  ;;  %v1611_v52 = vsel %vm1605_vm11, %v1598_v21, 920167782  ;;  %v1614_v37 = vsel %vm1602_vm10, %v1592_v3, %v1595_v43 }
 0x32a   : > { %v1512_v22 = vsel %vm1510_vm9, %v1511_v7, %v1507_v42  ;;  %v1612_v39 = vsel %vm1604_vm12, %v1595_v43, %v1611_v52  ;;  %v8926_v33 = vshll.u32 %v1578_v59, 8  ;;  %v8930_v42 = vsub.s32 32, %v8848_v32 }
 0x32b   : > { %v1615_v23 = vsel %vm1605_vm11, %v1601_v51, 1326507024  ;;  %v1513_v25 = vadd.s32 %v1512_v22, %v1508_v10  ;;  %v1613_v35 = vsel %vm1603_vm13, %v1610_v61, %v1612_v39  ;;  %v8934_v62 = vor.u32 1.1754944e-38, %v1288_v29 }
 0x32c   : > { %v1616_v36 = vsel %vm1604_vm12, %v1598_v21, %v1615_v23  ;;  %12498 = vst [vmem:[#allocation24_spill] sm:$0xff] %v8930_v42  ;;  %v1644_v14 = vshrl.u32 %v1613_v35, 16  ;;  %v7776_v6 = vmul.f32 -1.442695, %v8871_v50  ;;  %v8938_v51 = vadd.f32 1.0, %v8861_v58 }
 0x32d   : > { %v1617_v46 = vsel %vm1603_vm13, %v1614_v37, %v1616_v36  ;;  %12499 = vst [vmem:[#allocation25_spill] sm:$0xff] %v8934_v62  ;;  %v1514_v10 = vadd.s32 536870912, %v1513_v25  ;;  %v1619_v59 = vand.u32 65535, %v8926_v33  ;;  %v1620_v21 = vshrl.u32 %v8926_v33, 16 }
 0x32e   : > { %v1621_v7 = vand.u32 65535, %v1617_v46  ;;  %v1622_v61 = vshrl.u32 %v1617_v46, 16  ;;  %v8943_v52 = vadd.s32 1, %v8868_v44  ;;  %v1643_v29 = vand.u32 65535, %v1613_v35 }
 0x32f   : > { %v1515_v22 = vshrl.u32 %v1514_v10, 30  ;;  %v1607_v39 = vsel %vm1605_vm11, %v1595_v43, 2102212464  ;;  %v8950_v58 = vmul.u32 %v1644_v14, %v1619_v59  ;;  %v8954_v54 = vmul.f32 %v8863_v9, %v8824_v60 }
 0x330   : > { %v1624_v23 = vmul.u32 %v1622_v61, %v1619_v59  ;;  %v8948_v36 = vmul.u32 %v1621_v7, %v1620_v21  ;;  %8115 = vpow2.f32 %v7776_v6  ;;  %v1586_v44 = vshrl.u32 %v12491_v49, %v8778_v19 }
 0x331   : > { %v1516_v46 = vshll.u32 %v1515_v22, 30  ;;  %8117 = vrcp.f32 %v8938_v51  ;;  %v1623_v35 = vmul.u32 %v1621_v7, %v1619_v59  ;;  %v1649_v43 = vshll.u32 %v8950_v58, 16 }
 0x332   : > { %v1627_v10 = vshll.u32 %v1624_v23, 16  ;;  %vm1417_vm14 = vcmp.lt.s32.totalorder %v8697_v28, 0  ;;  %v1606_v50 = vsel %vm1602_vm10, %v1586_v44, %v1589_v0  ;;  %v1608_v6 = vsel %vm1604_vm12, %v1592_v3, %v1607_v39 }
 0x333   : > { %v8961_v37 = vsub.s32 %v1513_v25, %v1516_v46  ;;  %v1647_v62 = vmul.u32 %v1643_v29, %v1620_v21  ;;  %v1629_v60 = vshll.u32 %v8948_v36, 16  ;;  %v1645_v31 = vmul.u32 %v1643_v29, %v1619_v59 }
 0x334   : > { %vm1631_vm15 = vc.u32 %v1623_v35, %v1627_v10  ;;  %v1633_v19 = vadd.s32 %v1627_v10, %v1623_v35  ;;  %v1626_v25 = vmul.u32 %v1622_v61, %v1620_v21  ;;  %v12500_v46 = vmov 0  }
 0x335   : > { %vm1518_vm0 = vcmp.lt.s32.totalorder %v8961_v37, 0  ;;  %v1519_v32 = vsub.s32 0, %v8961_v37  ;;  %v1632_v42 = vsel %vm1631_vm15, 1, %v12500_v46  ;;  %vm1653_vm2 = vc.u32 %v1645_v31, %v1649_v43 }
 0x336   : > { %vm1635_vm1 = vc.u32 %v1633_v19, %v1629_v60  ;;  %v1655_v0 = vadd.s32 %v1649_v43, %v1645_v31  ;;  %v8972_v44 = vpop.eup %8115  ;;  %v8978_v59 = vsel %vm1603_vm13, %v1606_v50, %v1608_v6  ;;  %v1651_v29 = vshll.u32 %v1647_v62, 16 }
 0x337   : > { %v1520_v39 = vsel %vm1518_vm0, %v1519_v32, %v8961_v37  ;;  %v8980_v35 = vpop.eup %8117  ;;  %v1539_v61 = vsub.s32 4, %v1515_v22  ;;  %v1634_v7 = vadd.s32 %v1632_v42, %v1626_v25  ;;  %v1636_v60 = vsel %vm1635_vm1, 1, %v12500_v46 }
 0x338   : > { %12501 = vst [vmem:[#allocation26_spill] sm:$0xff] %v8980_v35  ;;  %v1521_v10 = vclz %v1520_v39  ;;  %v1648_v43 = vmul.u32 %v1644_v14, %v1620_v21  ;;  %v1654_v19 = vsel %vm1653_vm2, 1, %v12500_v46  ;;  %vm1657_vm3 = vc.u32 %v1655_v0, %v1651_v29 }
 0x339   : > { %v1509_v32 = vadd.s32 %v8892_v2, %v8884_v56  ;;  %v1663_v50 = vmul.u32 %v8926_v33, %v8978_v59  ;;  %vm2511_vm4 = vcmp.gt.s32.totalorder %v8943_v52, 0  ;;  %v12502_v42 = vand.u32 2147483647, %v8697_v28 }
 0x33a   : > { %v7781_v15 = vadd.s32 4294967294, %v1521_v10  ;;  %v1628_v14 = vshrl.u32 %v1624_v23, 16  ;;  %v1638_v21 = vadd.s32 %v1636_v60, %v1634_v7  ;;  %v1656_v39 = vadd.s32 %v1654_v19, %v1648_v43 }
 0x33b   : > { %vm8993_vm5 = vcmp.le.f32.partialorder %v12502_v42, 0.7853982  ;;  %v1658_v3 = vsel %vm1657_vm3, 1, %v12500_v46  ;;  %v1540_v56 = vsel %vm1417_vm14, %v1539_v61, %v1515_v22  ;;  %v1630_v2 = vshrl.u32 %v8948_v36, 16 }
 0x33c   : > { %vm7782_vm6 = vcmp.lt.s32.totalorder %v7781_v15, 0  ;;  %v1650_v33 = vshrl.u32 %v8950_v58, 16  ;;  %v1639_v10 = vadd.s32 %v1638_v21, %v1628_v14  ;;  %v1652_v31 = vshrl.u32 %v1647_v62, 16 }
 0x33d   : > { %v1524_v59 = vsel %vm7782_vm6, 0, %v7781_v15  ;;  %v1660_v42 = vadd.s32 %v1658_v3, %v1656_v39  ;;  %v9002_v17 = vadd.s32 %v1655_v0, %v1651_v29  ;;  %v12505_v23 = vand.u32 2147483647, %v8712_v55 }
 0x33e   : > { %v1525_v6 = vsub.s32 32, %v1524_v59  ;;  %v1529_v30 = vsub.s32 4294967266, %v1524_v59  ;;  %v9006_v60 = vadd.s32 %v1639_v10, %v1630_v2  ;;  %v1742_v22 = vshll.u32 %v12491_v49, %v8760_v45 }
 0x33f   : > { %v1732_v7 = vand.u32 8388607, %v12505_v23  ;;  %v1661_v43 = vadd.s32 %v1660_v42, %v1650_v33  ;;  %v1743_v36 = vshrl.u32 %v12492_v8, %v8783_v27  ;;  %v1526_v58 = vshll.u32 %v8961_v37, %v1524_v59 }
 0x340   : > { %v1527_v62 = vshrl.u32 %v1509_v32, %v1525_v6  ;;  %v1530_v3 = vadd.s32 127, %v1529_v30  ;;  %v1746_v0 = vshrl.u32 %v12493_v38, %v8783_v27  ;;  %v1745_v61 = vshll.u32 %v12492_v8, %v8760_v45 }
 0x341   : > { %v1662_v29 = vadd.s32 %v1661_v43, %v1652_v31  ;;  %v1748_v19 = vshll.u32 %v12493_v38, %v8760_v45  ;;  %v1749_v15 = vshrl.u32 %v12494_v5, %v8783_v27  ;;  %vm1665_vm7 = vc.u32 %v9006_v60, %v9002_v17 }
 0x342   : > { %v1528_v14 = vor.u32 %v1527_v62, %v1526_v58  ;;  %v1531_v21 = vshll.u32 %v1530_v3, 23  ;;  %v1751_v30 = vshll.u32 %v12494_v5, %v8760_v45  ;;  %v1752_v31 = vshrl.u32 %v12495_v12, %v8783_v27 }
 0x343   : > { %v1666_v37 = vadd.s32 1, %v1662_v29  ;;  %v1754_v32 = vshll.u32 %v12495_v12, %v8760_v45  ;;  %v1755_v6 = vshrl.u32 %v12497_v1, %v8783_v27  ;;  %v1542_v2 = vsel %vm8993_vm5, 0, %v1540_v56 }
 0x344   : > { %v1532_v39 = vor.u32 4788187, %v1531_v21  ;;  %v1744_v33 = vor.u32 %v1743_v36, %v1742_v22  ;;  %v1747_v59 = vor.u32 %v1746_v0, %v1745_v61  ;;  %v1750_v42 = vor.u32 %v1749_v15, %v1748_v19  ;;  %v989_v15 = vpop.f32.mrf.mxu0 }
 0x345   : > { %v1667_v10 = vsel %vm1665_vm7, %v1666_v37, %v1662_v29  ;;  %v1753_v23 = vor.u32 %v1752_v31, %v1751_v30  ;;  %v1756_v43 = vor.u32 %v1755_v6, %v1754_v32  ;;  %v9036_v58 = vsel %vm2511_vm4, %v8943_v52, 0 }
 0x346   : > { %v1533_v62 = vand.u32 2147483647, %v1532_v39  ;;  %v1535_v45 = vcvt.s32.f32 %v1528_v14  ;;  %v1668_v3 = vadd.s32 %v1667_v10, %v1663_v50  ;;  %v1559_v57 = vadd.s32 3, %v1542_v2 }
 0x347   : > { %v1733_v24 = vor.u32 8388608, %v1732_v7  ;;  %vm1757_vm8 = vcmp.lt.s32.totalorder %v8780_v20, 1  ;;  %vm1760_vm9 = vcmp.lt.s32.totalorder %v8780_v20, 4  ;;  %vm1759_vm10 = vcmp.lt.s32.totalorder %v8780_v20, 3 }
 0x348   : > { %v1536_v56 = vmul.f32 %v1535_v45, %v1533_v62  ;;  %v1669_v22 = vadd.s32 536870912, %v1668_v3  ;;  %v1766_v36 = vsel %vm1760_vm9, %v1753_v23, 920167782  ;;  %v1765_v52 = vsel %vm1757_vm8, %v1744_v33, %v1747_v59 }
 0x349   : > { %v1767_v0 = vsel %vm1759_vm10, %v1750_v42, %v1766_v36  ;;  %v1769_v50 = vsel %vm1757_vm8, %v1747_v59, %v1750_v42  ;;  %v1770_v7 = vsel %vm1760_vm9, %v1756_v43, 1326507024  ;;  %v9052_v29 = vand.u32 31, %v9036_v58 }
 0x34a   : > { %v12506_v61 = vand.u32 2139095040, %v8899_v40  ;;  %v1537_v14 = vxor.u32 2147483648, %v1536_v56  ;;  %v9058_v21 = vshrl.u32 %v1669_v22, 30  ;;  %v12507_v30 = vsub.f32 1.0, %v8954_v54 }
 0x34b   : > { %vm1758_vm11 = vcmp.lt.s32.totalorder %v8780_v20, 2  ;;  %v1771_v31 = vsel %vm1759_vm10, %v1753_v23, %v1770_v7  ;;  %v9068_v32 = vshll.u32 %v1733_v24, 8  ;;  %v9080_v43 = vadd.f32 %v989_v15, %v8585_v41 }
 0x34c   : > { %v9056_v19 = vshrl.u32 %v12506_v61, 23  ;;  %v9063_v37 = vmul.f32 %v8863_v9, %v12507_v30  ;;  %v1538_v6 = vsel %vm1417_vm14, %v1537_v14, %v1536_v56  ;;  %v1671_v39 = vshll.u32 %v9058_v21, 30 }
 0x34d   : > { %v9075_v10 = vsel %vm1758_vm11, %v1765_v52, %v1767_v0  ;;  %v1772_v54 = vsel %vm1758_vm11, %v1769_v50, %v1771_v31  ;;  %12508 = vst [vmem:[#allocation27_spill] sm:$0xff] %v9080_v43  ;;  %v9085_v24 = vsel %vm8993_vm5, %v8697_v28, %v1538_v6  ;;  %v9087_v23 = vand.u32 3, %v1542_v2 }
 0x34e   : > { %v9089_v62 = vand.u32 3, %v1559_v57  ;;  %v1543_v45 = vmul.f32 %v9085_v24, %v9085_v24  ;;  %v9093_v56 = vsub.s32 %v1668_v3, %v1671_v39  ;;  %v1741_v22 = vshrl.u32 %v12491_v49, %v8783_v27 }
 0x34f   : > { %v1777_v36 = vshrl.u32 %v1772_v54, 16  ;;  %v1762_v52 = vsel %vm1760_vm9, %v1750_v42, 2102212464  ;;  %v1774_v25 = vand.u32 65535, %v9068_v32  ;;  %v1776_v0 = vand.u32 65535, %v1772_v54 }
 0x350   : > { %v1544_v50 = vmul.f32 -0.001358992, %v1543_v45  ;;  %v1551_v57 = vmul.f32 -0.00019511016, %v1543_v45  ;;  %vm1673_vm12 = vcmp.lt.s32.totalorder %v9093_v56, 0  ;;  %v1674_v7 = vsub.s32 0, %v9093_v56 }
 0x351   : > { %v1664_v3 = vadd.s32 %v9002_v17, %v9006_v60  ;;  %v1775_v27 = vshrl.u32 %v9068_v32, 16  ;;  %v1779_v61 = vmul.u32 %v1777_v36, %v1774_v25  ;;  %v1798_v15 = vand.u32 65535, %v9075_v10 }
 0x352   : > { %v1545_v42 = vadd.f32 0.041655596, %v1544_v50  ;;  %v1552_v14 = vadd.f32 0.008332121, %v1551_v57  ;;  %v1675_v30 = vsel %vm1673_vm12, %v1674_v7, %v9093_v56  ;;  %v9110_v31 = vsel %vm1757_vm8, %v1741_v22, %v1744_v33 }
 0x353   : > { %v1676_v6 = vclz %v1675_v30  ;;  %v9114_v39 = vsel %vm1759_vm10, %v1747_v59, %v1762_v52  ;;  %v9116_v54 = vmul.u32 %v1776_v0, %v1775_v27  ;;  %v1782_v17 = vshll.u32 %v1779_v61, 16 }
 0x354   : > { %v1546_v60 = vmul.f32 %v1545_v42, %v1543_v45  ;;  %v1553_v2 = vmul.f32 %v1552_v14, %v1543_v45  ;;  %v1778_v40 = vmul.u32 %v1776_v0, %v1774_v25  ;;  %v12509_v50 = vshrl.u32 %v9075_v10, 16 }
 0x355   : > { %v7784_v7 = vadd.s32 4294967294, %v1676_v6  ;;  %v1781_v33 = vmul.u32 %v1777_v36, %v1775_v27  ;;  %v1800_v22 = vmul.u32 %v1798_v15, %v1774_v25  ;;  %vm4044_vm13 = vcmp.eq.s32.totalorder %v9087_v23, 2 }
 0x356   : > { %v9120_v57 = vmul.u32 %v12509_v50, %v1774_v25  ;;  %v1547_v30 = vadd.f32 -0.4999988, %v1546_v60  ;;  %v1554_v13 = vadd.f32 -0.16666654, %v1553_v2  ;;  %vm1565_vm14 = vcmp.eq.s32.totalorder %v9089_v62, 2 }
 0x357   : > { %vm1786_vm15 = vc.u32 %v1778_v40, %v1782_v17  ;;  %v1788_v59 = vadd.s32 %v1782_v17, %v1778_v40  ;;  %vm4041_vm0 = vcmp.eq.s32.totalorder %v9087_v23, 0  ;;  %vm1562_vm1 = vcmp.eq.s32.totalorder %v9089_v62, 0 }
 0x358   : > { %vm7785_vm2 = vcmp.lt.s32.totalorder %v7784_v7, 0  ;;  %v1784_v52 = vshll.u32 %v9116_v54, 16  ;;  %v1787_v0 = vsel %vm1786_vm15, 1, %v12500_v46  ;;  %v1804_v36 = vshll.u32 %v9120_v57, 16 }
 0x359   : > { %v1548_v25 = vmul.f32 %v1547_v30, %v1543_v45  ;;  %v1555_v42 = vmul.f32 %v1554_v13, %v1543_v45  ;;  %vm4040_vm3 = vcmp.lt.s32.totalorder %v9087_v23, 2  ;;  %vm1561_vm4 = vcmp.lt.s32.totalorder %v9089_v62, 2 }
 0x35a   : > { %v1679_v2 = vsel %vm7785_vm2, 0, %v7784_v7  ;;  %v1789_v14 = vadd.s32 %v1787_v0, %v1781_v33  ;;  %vm1558_vm5 = vweird.f32 %v8697_v28  ;;  %v1785_v17 = vshrl.u32 %v9116_v54, 16 }
 0x35b   : > { %v1680_v40 = vsub.s32 32, %v1679_v2  ;;  %v1684_v6 = vsub.s32 4294967266, %v1679_v2  ;;  %vm1790_vm6 = vc.u32 %v1788_v59, %v1784_v52  ;;  %v1549_v60 = vadd.f32 1.0, %v1548_v25 }
 0x35c   : > { %v1556_v50 = vadd.f32 1.0, %v1555_v42  ;;  %vm1572_vm7 = vcmp.lt.s32.totalorder %v8709_v48, 0  ;;  %v1791_v30 = vsel %vm1790_vm6, 1, %v12500_v46  ;;  %v1802_v13 = vmul.u32 %v1798_v15, %v1775_v27 }
 0x35d   : > { %v1681_v45 = vshll.u32 %v9093_v56, %v1679_v2  ;;  %v1682_v41 = vshrl.u32 %v1664_v3, %v1680_v40  ;;  %v1685_v34 = vadd.s32 127, %v1684_v6  ;;  %v1793_v7 = vadd.s32 %v1791_v30, %v1789_v14 }
 0x35e   : > { %v1557_v33 = vmul.f32 %v1556_v50, %v9085_v24  ;;  %v1566_v0 = vxor.u32 2147483648, %v1549_v60  ;;  %v1783_v16 = vshrl.u32 %v1779_v61, 16  ;;  %vm1808_vm8 = vc.u32 %v1800_v22, %v1804_v36 }
 0x35f   : > { %v1683_v53 = vor.u32 %v1682_v41, %v1681_v45  ;;  %v1686_v54 = vshll.u32 %v1685_v34, 23  ;;  %v12510_v59 = vshrl.u32 %v9075_v10, 16  ;;  %v1809_v25 = vsel %vm1808_vm8, 1, %v12500_v46 }
 0x360   : > { %v1563_v42 = vxor.u32 2147483648, %v1557_v33  ;;  %v1794_v35 = vadd.s32 %v1793_v7, %v1783_v16  ;;  %v1806_v15 = vshll.u32 %v1802_v13, 16  ;;  %v1810_v11 = vadd.s32 %v1804_v36, %v1800_v22 }
 0x361   : > { %v1803_v52 = vmul.u32 %v12510_v59, %v1775_v27  ;;  %v4046_v56 = vsel %vm4044_vm13, %v1566_v0, %v1557_v33  ;;  %v1567_v24 = vsel %vm1565_vm14, %v1566_v0, %v1557_v33  ;;  %v1687_v3 = vor.u32 4788187, %v1686_v54 }
 0x362   : > { %v1690_v61 = vcvt.s32.f32 %v1683_v53  ;;  %v4043_v41 = vsel %vm4041_vm0, %v1549_v60, %v1563_v42  ;;  %v1564_v34 = vsel %vm1562_vm1, %v1549_v60, %v1563_v42  ;;  %vm1812_vm9 = vc.u32 %v1810_v11, %v1806_v15 }
 0x363   : > { %v1811_v10 = vadd.s32 %v1809_v25, %v1803_v52  ;;  %v4047_v16 = vsel %vm4040_vm3, %v4043_v41, %v4046_v56  ;;  %v1568_v27 = vsel %vm1561_vm4, %v1564_v34, %v1567_v24  ;;  %v1688_v22 = vand.u32 2147483647, %v1687_v3 }
 0x364   : > { %v1813_v36 = vsel %vm1812_vm9, 1, %v12500_v46  ;;  %v9156_v53 = vsel %vm1558_vm5, nan, %v4047_v16  ;;  %v9160_v2 = vsel %vm1558_vm5, nan, %v1568_v27  ;;  %v1805_v14 = vshrl.u32 %v9120_v57, 16 }
 0x365   : > { %12511 = vst [vmem:[#allocation28_spill] sm:$0xff] %v9156_v53  ;;  %v1815_v40 = vadd.s32 %v1813_v36, %v1811_v10  ;;  %v7804_v23 = vadd.s32 4294967169, %v9056_v19  ;;  %6567 = vrot.lane.b32.xlu2 %v9156_v53, %s8178_s14  ;;  %6375 = vrot.lane.b32.xlu0 %v9160_v2, %s8186_s15  ;;  %v1691_v62 = vmul.f32 %v1690_v61, %v1688_v22  ;;  %v12513_v6 = vsub.s32 4, %v9058_v21 }
 0x366   : > { %12512 = vst [vmem:[#allocation29_spill] sm:$0xff] %v9160_v2  ;;  %v9173_v60 = vadd.s32 %v1794_v35, %v1785_v17  ;;  %v12514_v57 = vand.u32 2147483648, %v8938_v51  ;;  %v9180_v19 = vshrl.u32 %v9036_v58, 5  ;;  %v1807_v30 = vshrl.u32 %v1802_v13, 16 }
 0x367   : > { %v1695_v28 = vsel %vm1572_vm7, %v12513_v6, %v9058_v21  ;;  %v1816_v45 = vadd.s32 %v1815_v40, %v1805_v14  ;;  %v9183_v7 = vsub.s32 32, %v9052_v29  ;;  %v12516_v33 = vand.u32 2147483647, %v8709_v48 }
 0x368   : > { %v9177_v50 = vor.u32 1.1754944e-38, %v12514_v57  ;;  %v1692_v0 = vxor.u32 2147483648, %v1691_v62  ;;  %v9187_v54 = vadd.s32 %v1810_v11, %v1806_v15  ;;  %v9191_v35 = vadd.f32 %v8863_v9, %v9063_v37 }
 0x369   : > { %vm1571_vm10 = vcmp.le.f32.partialorder %v12516_v33, 0.7853982  ;;  %v1764_v58 = vsel %vm1758_vm11, %v9110_v31, %v9114_v39  ;;  %v1817_v17 = vadd.s32 %v1816_v45, %v1807_v30  ;;  %v9197_v13 = vadd.s32 1, %v7804_v23 }
 0x36a   : > { %12515 = vst [vmem:[#allocation30_spill] sm:$0xff] %v9177_v50  ;;  %v1697_v21 = vsel %vm1571_vm10, 0, %v1695_v28  ;;  %v9200_v59 = vmul.f32 -1.442695, %v9080_v43  ;;  %v1693_v11 = vsel %vm1572_vm7, %v1692_v0, %v1691_v62  ;;  %vm1820_vm12 = vc.u32 %v9173_v60, %v9187_v54  ;;  %v12550_v50 = vld [vmem:[#allocation20_spill] sm:$0xff] }
 0x36b   : > { %12517 = vst [vmem:[#allocation31_spill] sm:$0xff] %v9191_v35  ;;  %v9207_v37 = vadd.f32 1.0, %v8972_v44  ;;  %v1696_v52 = vsel %vm1571_vm10, %v8709_v48, %v1693_v11  ;;  %v1821_v25 = vadd.s32 1, %v1817_v17  ;;  %v12414_v20 = vand.u32 2147483647, %v8720_v63 }
 0x36c   : > { %v9212_v31 = vmul.f32 6.2831855, %v8731_v18  ;;  %v1698_v39 = vmul.f32 %v1696_v52, %v1696_v52  ;;  %v1714_v42 = vadd.s32 3, %v1697_v21  ;;  %v1818_v15 = vmul.u32 %v9068_v32, %v1764_v58 }
 0x36d   : > { %v1822_v56 = vsel %vm1820_vm12, %v1821_v25, %v1817_v17  ;;  %v1901_v24 = vshrl.u32 %v12493_v38, %v8832_v26  ;;  %v1904_v44 = vshrl.u32 %v12494_v5, %v8832_v26  ;;  %v1910_v3 = vshrl.u32 %v12497_v1, %v8832_v26 }
 0x36e   : > { %v1699_v61 = vmul.f32 -0.001358992, %v1698_v39  ;;  %v1706_v41 = vmul.f32 -0.00019511016, %v1698_v39  ;;  %v1823_v34 = vadd.s32 %v1822_v56, %v1818_v15  ;;  %v1907_v18 = vshrl.u32 %v12495_v12, %v8832_v26 }
 0x36f   : > { %v1887_v10 = vand.u32 8388607, %v12414_v20  ;;  %v1900_v32 = vshll.u32 %v12492_v8, %v8808_v47  ;;  %v1903_v16 = vshll.u32 %v12493_v38, %v8808_v47  ;;  %v1909_v27 = vshll.u32 %v12495_v12, %v8808_v47 }
 0x370   : > { %v1700_v22 = vadd.f32 0.041655596, %v1699_v61  ;;  %v1707_v36 = vadd.f32 0.008332121, %v1706_v41  ;;  %v1824_v14 = vadd.s32 536870912, %v1823_v34  ;;  %v1906_v40 = vshll.u32 %v12494_v5, %v8808_v47 }
 0x371   : > { %v1898_v23 = vshrl.u32 %v12492_v8, %v8832_v26  ;;  %v9235_v62 = vor.u32 %v1901_v24, %v1900_v32  ;;  %v9237_v6 = vor.u32 %v1904_v44, %v1903_v16  ;;  %v1911_v28 = vor.u32 %v1910_v3, %v1909_v27 }
 0x372   : > { %v1701_v57 = vmul.f32 %v1700_v22, %v1698_v39  ;;  %v1708_v30 = vmul.f32 %v1707_v36, %v1698_v39  ;;  %v9239_v45 = vshrl.u32 %v1824_v14, 30  ;;  %v1908_v33 = vor.u32 %v1907_v18, %v1906_v40 }
 0x373   : > { %v1715_v0 = vand.u32 3, %v1714_v42  ;;  %v1888_v58 = vor.u32 8388608, %v1887_v10  ;;  %v1897_v17 = vshll.u32 %v12491_v49, %v8808_v47  ;;  %vm1912_vm11 = vcmp.lt.s32.totalorder %v8785_v4, 1 }
 0x374   : > { %v1702_v11 = vadd.f32 -0.4999988, %v1701_v57  ;;  %v1709_v25 = vadd.f32 -0.16666654, %v1708_v30  ;;  %v1826_v15 = vshll.u32 %v9239_v45, 30  ;;  %vm1915_vm13 = vcmp.lt.s32.totalorder %v8785_v4, 4 }
 0x375   : > { %v9246_v56 = vor.u32 %v1898_v23, %v1897_v17  ;;  %vm1914_vm14 = vcmp.lt.s32.totalorder %v8785_v4, 3  ;;  %v1924_v42 = vsel %vm1912_vm11, %v9235_v62, %v9237_v6  ;;  %v1925_v47 = vsel %vm1915_vm13, %v1911_v28, 1326507024 }
 0x376   : > { %v1703_v24 = vmul.f32 %v1702_v11, %v1698_v39  ;;  %v1710_v44 = vmul.f32 %v1709_v25, %v1698_v39  ;;  %v9255_v3 = vsub.s32 %v1823_v34, %v1826_v15  ;;  %v1921_v61 = vsel %vm1915_vm13, %v1908_v33, 920167782 }
 0x377   : > { %vm1713_vm15 = vweird.f32 %v8709_v48  ;;  %v9260_v41 = vand.u32 3, %v1697_v21  ;;  %vm1913_vm0 = vcmp.lt.s32.totalorder %v8785_v4, 2  ;;  %v1926_v18 = vsel %vm1914_vm14, %v1908_v33, %v1925_v47 }
 0x378   : > { %v9265_v10 = vadd.f32 1.0, %v1703_v24  ;;  %v1711_v32 = vadd.f32 1.0, %v1710_v44  ;;  %vm1828_vm1 = vcmp.lt.s32.totalorder %v9255_v3, 0  ;;  %v1829_v39 = vsub.s32 0, %v9255_v3 }
 0x379   : > { %vm1727_vm2 = vcmp.lt.s32.totalorder %v8712_v55, 0  ;;  %v1920_v21 = vsel %vm1912_vm11, %v9246_v56, %v9235_v62  ;;  %v1922_v34 = vsel %vm1914_vm14, %v9237_v6, %v1921_v61  ;;  %v1927_v16 = vsel %vm1913_vm0, %v1924_v42, %v1926_v18 }
 0x37a   : > { %v9279_v27 = vshll.u32 %v1888_v58, 8  ;;  %v1712_v22 = vmul.f32 %v1711_v32, %v1696_v52  ;;  %vm1716_vm3 = vcmp.lt.s32.totalorder %v1715_v0, 2  ;;  %v1721_v36 = vxor.u32 2147483648, %v9265_v10 }
 0x37b   : > { %v1830_v14 = vsel %vm1828_vm1, %v1829_v39, %v9255_v3  ;;  %vm1717_vm4 = vcmp.eq.s32.totalorder %v1715_v0, 0  ;;  %vm1720_vm5 = vcmp.eq.s32.totalorder %v1715_v0, 2  ;;  %v1819_v40 = vadd.s32 %v9187_v54, %v9173_v60 }
 0x37c   : > { %v1831_v23 = vclz %v1830_v14  ;;  %v1718_v28 = vxor.u32 2147483648, %v1712_v22  ;;  %v9287_v57 = vshrl.u32 %v12491_v49, %v8832_v26  ;;  %v1923_v30 = vsel %vm1913_vm0, %v1920_v21, %v1922_v34 }
 0x37d   : > { %v1931_v52 = vand.u32 65535, %v1927_v16  ;;  %v1849_v58 = vsub.s32 4, %v9239_v45  ;;  %vm4195_vm6 = vcmp.eq.s32.totalorder %v9260_v41, 0  ;;  %v1930_v17 = vshrl.u32 %v9279_v27, 16 }
 0x37e   : > { %v7787_v33 = vadd.s32 4294967294, %v1831_v23  ;;  %v1719_v11 = vsel %vm1717_vm4, %v9265_v10, %v1718_v28  ;;  %v1722_v60 = vsel %vm1720_vm5, %v1721_v36, %v1712_v22  ;;  %vm4194_vm7 = vcmp.lt.s32.totalorder %v9260_v41, 2 }
 0x37f   : > { %v1929_v54 = vand.u32 65535, %v9279_v27  ;;  %v1932_v26 = vshrl.u32 %v1927_v16, 16  ;;  %v1723_v25 = vsel %vm1716_vm3, %v1719_v11, %v1722_v60  ;;  %v1935_v15 = vmul.u32 %v1931_v52, %v1930_v17 }
 0x380   : > { %vm7788_vm8 = vcmp.lt.s32.totalorder %v7787_v33, 0  ;;  %v1954_v42 = vshrl.u32 %v1923_v30, 16  ;;  %v9300_v47 = vsel %vm1713_vm15, nan, %v1723_v25  ;;  %v1953_v61 = vand.u32 65535, %v1923_v30 }
 0x381   : > { %12518 = vst [vmem:[#allocation32_spill] sm:$0xff] %v9300_v47  ;;  %v1834_v24 = vsel %vm7788_vm8, 0, %v7787_v33  ;;  %v1934_v44 = vmul.u32 %v1932_v26, %v1929_v54  ;;  %6377 = vrot.lane.b32.xlu0 %v9300_v47, %s8186_s15  ;;  %vm4198_vm9 = vcmp.eq.s32.totalorder %v9260_v41, 2  ;;  %v1917_v0 = vsel %vm1915_vm13, %v9237_v6, 2102212464 }
 0x382   : > { %v1835_v18 = vsub.s32 32, %v1834_v24  ;;  %v1839_v32 = vsub.s32 4294967266, %v1834_v24  ;;  %v1850_v39 = vsel %vm1727_vm2, %v1849_v58, %v9239_v45  ;;  %v1933_v21 = vmul.u32 %v1931_v52, %v1929_v54 }
 0x383   : > { %v1936_v34 = vmul.u32 %v1932_v26, %v1930_v17  ;;  %v1937_v16 = vshll.u32 %v1934_v44, 16  ;;  %v12519_v14 = vand.u32 2147483647, %v8712_v55  ;;  %v1836_v30 = vshll.u32 %v9255_v3, %v1834_v24 }
 0x384   : > { %v1837_v33 = vshrl.u32 %v1819_v40, %v1835_v18  ;;  %v1840_v11 = vadd.s32 127, %v1839_v32  ;;  %v1956_v60 = vmul.u32 %v1954_v42, %v1929_v54  ;;  %v1939_v25 = vshll.u32 %v1935_v15, 16 }
 0x385   : > { %vm9313_vm10 = vcmp.le.f32.partialorder %v12519_v14, 0.7853982  ;;  %vm1941_vm12 = vc.u32 %v1933_v21, %v1937_v16  ;;  %v1943_v6 = vadd.s32 %v1937_v16, %v1933_v21  ;;  %v1957_v20 = vmul.u32 %v1953_v61, %v1930_v17 }
 0x386   : > { %v1838_v53 = vor.u32 %v1837_v33, %v1836_v30  ;;  %v1841_v45 = vshll.u32 %v1840_v11, 23  ;;  %v1942_v52 = vsel %vm1941_vm12, 1, %v12500_v46  ;;  %v1959_v58 = vshll.u32 %v1956_v60, 16 }
 0x387   : > { %v4197_v26 = vsel %vm4195_vm6, %v9265_v10, %v1718_v28  ;;  %v4200_v14 = vsel %vm4198_vm9, %v1721_v36, %v1712_v22  ;;  %v1944_v3 = vadd.s32 %v1942_v52, %v1936_v34  ;;  %vm1945_vm13 = vc.u32 %v1943_v6, %v1939_v25  ;;  %v12524_v25 = vld [vmem:[#allocation26_spill] sm:$0xff] }
 0x388   : > { %v1842_v40 = vor.u32 4788187, %v1841_v45  ;;  %v4201_v24 = vsel %vm4194_vm7, %v4197_v26, %v4200_v14  ;;  %v1946_v18 = vsel %vm1945_vm13, 1, %v12500_v46  ;;  %v1955_v32 = vmul.u32 %v1953_v61, %v1929_v54 }
 0x389   : > { %v9329_v21 = vsel %vm1713_vm15, nan, %v4201_v24  ;;  %v1938_v16 = vshrl.u32 %v1934_v44, 16  ;;  %v1940_v30 = vshrl.u32 %v1935_v15, 16  ;;  %v1948_v33 = vadd.s32 %v1946_v18, %v1944_v3  ;;  %v12523_v44 = vld [vmem:[#allocation7_spill] sm:$0xff]  ;;  %v12526_v24 = vld [vmem:[#allocation17_spill] sm:$0xff] }
 0x38a   : > { %12522 = vst [vmem:[#allocation33_spill] sm:$0xff] %v9329_v21  ;;  %v1843_v10 = vand.u32 2147483647, %v1842_v40  ;;  %v1845_v28 = vcvt.s32.f32 %v1838_v53  ;;  %6569 = vrot.lane.b32.xlu0 %v9329_v21, %s8178_s14  ;;  %v1958_v22 = vmul.u32 %v1954_v42, %v1930_v17  ;;  %vm1963_vm1 = vc.u32 %v1955_v32, %v1959_v58  ;;  %v12525_v40 = vld [vmem:[#allocation13_spill] sm:$0xff] }
 0x38b   : > { %v1949_v36 = vadd.s32 %v1948_v33, %v1938_v16  ;;  %v1961_v41 = vshll.u32 %v1957_v20, 16  ;;  %v1964_v34 = vsel %vm1963_vm1, 1, %v12500_v46  ;;  %v1965_v11 = vadd.s32 %v1959_v58, %v1955_v32 }
 0x38c   : > { %v1846_v54 = vmul.f32 %v1845_v28, %v1843_v10  ;;  %v1916_v48 = vsel %vm1912_vm11, %v9287_v57, %v9246_v56  ;;  %v1918_v53 = vsel %vm1914_vm14, %v9235_v62, %v1917_v0  ;;  %v1966_v15 = vadd.s32 %v1964_v34, %v1958_v22 }
 0x38d   : > { %v1852_v17 = vsel %vm9313_vm10, 0, %v1850_v39  ;;  %v9343_v42 = vadd.s32 %v1949_v36, %v1940_v30  ;;  %vm1967_vm15 = vc.u32 %v1965_v11, %v1961_v41  ;;  %v12416_v61 = vand.u32 2147483647, %v12523_v44 }
 0x38e   : > { %v9348_v6 = vmul.f32 %v12524_v25, %v8938_v51  ;;  %8119 = vpow2.f32 %v9200_v59  ;;  %v1847_v56 = vxor.u32 2147483648, %v1846_v54  ;;  %v1968_v57 = vsel %vm1967_vm15, 1, %v12500_v46 }
 0x38f   : > { %8121 = vrcp.f32 %v9207_v37  ;;  %v1960_v62 = vshrl.u32 %v1956_v60, 16  ;;  %v9353_v0 = vadd.s32 %v1965_v11, %v1961_v41  ;;  %v1970_v39 = vadd.s32 %v1968_v57, %v1966_v15 }
 0x390   : > { %v1848_v45 = vsel %vm1727_vm2, %v1847_v56, %v1846_v54  ;;  %v1869_v52 = vadd.s32 3, %v1852_v17  ;;  %v1919_v58 = vsel %vm1913_vm0, %v1916_v48, %v1918_v53  ;;  %v1962_v26 = vshrl.u32 %v1957_v20, 16 }
 0x391   : > { %v9362_v59 = vsel %vm9313_vm10, %v8712_v55, %v1848_v45  ;;  %v1971_v14 = vadd.s32 %v1970_v39, %v1960_v62  ;;  %vm1975_vm11 = vc.u32 %v9343_v42, %v9353_v0  ;;  %v2042_v60 = vand.u32 8388607, %v12416_v61 }
 0x392   : > { %v1853_v3 = vmul.f32 %v9362_v59, %v9362_v59  ;;  %v2052_v4 = vshll.u32 %v12491_v49, %v12525_v40  ;;  %v2053_v20 = vshrl.u32 %v12492_v8, %v12526_v24  ;;  %v2056_v23 = vshrl.u32 %v12493_v38, %v12526_v24 }
 0x393   : > { %v1972_v18 = vadd.s32 %v1971_v14, %v1962_v26  ;;  %v2059_v32 = vshrl.u32 %v12494_v5, %v12526_v24  ;;  %v2061_v16 = vshll.u32 %v12494_v5, %v12525_v40  ;;  %v2062_v30 = vshrl.u32 %v12495_v12, %v12526_v24 }
 0x394   : > { %v9382_v33 = vpop.eup %8119  ;;  %v1854_v10 = vmul.f32 -0.001358992, %v1853_v3  ;;  %v1861_v28 = vmul.f32 -0.00019511016, %v1853_v3  ;;  %v2055_v22 = vshll.u32 %v12492_v8, %v12525_v40  ;;  %v2058_v36 = vshll.u32 %v12493_v38, %v12525_v40 }
 0x395   : > { %v9388_v41 = vpop.eup %8121  ;;  %v1976_v34 = vadd.s32 1, %v1972_v18  ;;  %v2063_v11 = vor.u32 %v2062_v30, %v2061_v16  ;;  %v2064_v54 = vshll.u32 %v12495_v12, %v12525_v40  ;;  %v2065_v48 = vshrl.u32 %v12497_v1, %v12526_v24  ;;  %v12527_v30 = vld [vmem:[#allocation16_spill] sm:$0xff] }
 0x396   : > { %v1855_v53 = vadd.f32 0.041655596, %v1854_v10  ;;  %v1862_v15 = vadd.f32 0.008332121, %v1861_v28  ;;  %v1973_v56 = vmul.u32 %v9279_v27, %v1919_v58  ;;  %v9395_v57 = vor.u32 %v2053_v20, %v2052_v4 }
 0x397   : > { %v1977_v62 = vsel %vm1975_vm11, %v1976_v34, %v1972_v18  ;;  %v9400_v39 = vor.u32 %v2056_v23, %v2055_v22  ;;  %v9402_v45 = vor.u32 %v2059_v32, %v2058_v36  ;;  %v2066_v26 = vor.u32 %v2065_v48, %v2064_v54 }
 0x398   : > { %v1856_v14 = vmul.f32 %v1855_v53, %v1853_v3  ;;  %v1863_v40 = vmul.f32 %v1862_v15, %v1853_v3  ;;  %v1978_v16 = vadd.s32 %v1977_v62, %v1973_v56  ;;  %vm2070_vm14 = vcmp.lt.s32.totalorder %v12527_v30, 4 }
 0x399   : > { %v1870_v10 = vand.u32 3, %v1869_v52  ;;  %v4347_v28 = vand.u32 3, %v1852_v17  ;;  %v2043_v61 = vor.u32 8388608, %v2042_v60  ;;  %v2076_v27 = vsel %vm2070_vm14, %v2063_v11, 920167782 }
 0x39a   : > { %v1857_v58 = vadd.f32 -0.4999988, %v1856_v14  ;;  %v1864_v4 = vadd.f32 -0.16666654, %v1863_v40  ;;  %v1979_v20 = vadd.s32 536870912, %v1978_v16  ;;  %vm2067_vm0 = vcmp.lt.s32.totalorder %v12527_v30, 1 }
 0x39b   : > { %vm2069_vm2 = vcmp.lt.s32.totalorder %v12527_v30, 3  ;;  %v2075_v23 = vsel %vm2067_vm0, %v9395_v57, %v9400_v39  ;;  %v2079_v17 = vsel %vm2067_vm0, %v9400_v39, %v9402_v45  ;;  %v2080_v52 = vsel %vm2070_vm14, %v2066_v26, 1326507024 }
 0x39c   : > { %v1858_v60 = vmul.f32 %v1857_v58, %v1853_v3  ;;  %v1865_v18 = vmul.f32 %v1864_v4, %v1853_v3  ;;  %v1980_v32 = vshrl.u32 %v1979_v20, 30  ;;  %v2077_v22 = vsel %vm2069_vm2, %v9402_v45, %v2076_v27 }
 0x39d   : > { %vm1868_vm3 = vweird.f32 %v8712_v55  ;;  %vm4348_vm4 = vcmp.lt.s32.totalorder %v4347_v28, 2  ;;  %vm4349_vm5 = vcmp.eq.s32.totalorder %v4347_v28, 0  ;;  %v2081_v36 = vsel %vm2069_vm2, %v2063_v11, %v2080_v52 }
 0x39e   : > { %v9425_v34 = vshll.u32 %v2043_v61, 8  ;;  %v1859_v54 = vadd.f32 1.0, %v1858_v60  ;;  %v1866_v48 = vadd.f32 1.0, %v1865_v18  ;;  %v1981_v53 = vshll.u32 %v1980_v32, 30 }
 0x39f   : > { %vm2068_vm6 = vcmp.lt.s32.totalorder %v12527_v30, 2  ;;  %vm1871_vm7 = vcmp.lt.s32.totalorder %v1870_v10, 2  ;;  %vm4352_vm8 = vcmp.eq.s32.totalorder %v4347_v28, 2  ;;  %vm1872_vm9 = vcmp.eq.s32.totalorder %v1870_v10, 0 }
 0x3a0   : > { %v2078_v3 = vsel %vm2068_vm6, %v2075_v23, %v2077_v22  ;;  %v2082_v15 = vsel %vm2068_vm6, %v2079_v17, %v2081_v36  ;;  %v1867_v56 = vmul.f32 %v1866_v48, %v9362_v59  ;;  %v1876_v62 = vxor.u32 2147483648, %v1859_v54 }
 0x3a1   : > { %v9433_v11 = vsub.s32 %v1978_v16, %v1981_v53  ;;  %vm1875_vm10 = vcmp.eq.s32.totalorder %v1870_v10, 2  ;;  %v2051_v61 = vshrl.u32 %v12491_v49, %v12526_v24  ;;  %v2084_v26 = vand.u32 65535, %v9425_v34 }
 0x3a2   : > { %v2087_v14 = vshrl.u32 %v2082_v15, 16  ;;  %v1873_v40 = vxor.u32 2147483648, %v1867_v56  ;;  %v2085_v27 = vshrl.u32 %v9425_v34, 16  ;;  %v2109_v58 = vshrl.u32 %v2078_v3, 16 }
 0x3a3   : > { %vm1983_vm12 = vcmp.lt.s32.totalorder %v9433_v11, 0  ;;  %v1877_v4 = vsel %vm1875_vm10, %v1876_v62, %v1867_v56  ;;  %v1984_v59 = vsub.s32 0, %v9433_v11  ;;  %v2086_v20 = vand.u32 65535, %v2082_v15 }
 0x3a4   : > { %v2108_v23 = vand.u32 65535, %v2078_v3  ;;  %v1874_v16 = vsel %vm1872_vm9, %v1859_v54, %v1873_v40  ;;  %v4351_v17 = vsel %vm4349_vm5, %v1859_v54, %v1873_v40  ;;  %v4354_v52 = vsel %vm4352_vm8, %v1876_v62, %v1867_v56 }
 0x3a5   : > { %v2089_v24 = vmul.u32 %v2087_v14, %v2084_v26  ;;  %v1878_v60 = vsel %vm1871_vm7, %v1874_v16, %v1877_v4  ;;  %v4355_v18 = vsel %vm4348_vm4, %v4351_v17, %v4354_v52  ;;  %v1985_v22 = vsel %vm1983_vm12, %v1984_v59, %v9433_v11 }
 0x3a6   : > { %v2004_v36 = vsub.s32 4, %v1980_v32  ;;  %v9448_v48 = vsel %vm1868_vm3, nan, %v1878_v60  ;;  %v9452_v53 = vsel %vm1868_vm3, nan, %v4355_v18  ;;  %v1986_v3 = vclz %v1985_v22 }
 0x3a7   : > { %12528 = vst [vmem:[#allocation7_spill] sm:$0xff] %v9448_v48  ;;  %v2111_v54 = vmul.u32 %v2109_v58, %v2084_v26  ;;  %6379 = vrot.lane.b32.xlu1 %v9448_v48, %s8186_s15  ;;  %6571 = vrot.lane.b32.xlu2 %v9452_v53, %s8178_s14  ;;  %vm1882_vm13 = vcmp.lt.s32.totalorder %v8720_v63, 0  ;;  %v1974_v10 = vadd.s32 %v9353_v0, %v9343_v42  ;;  %v2092_v62 = vshll.u32 %v2089_v24, 16 }
 0x3a8   : > { %12529 = vst [vmem:[#allocation13_spill] sm:$0xff] %v9452_v53  ;;  %v2071_v28 = vsel %vm2067_vm0, %v2051_v61, %v9395_v57  ;;  %v2090_v55 = vmul.u32 %v2086_v20, %v2085_v27  ;;  %v7790_v15 = vadd.s32 4294967294, %v1986_v3  ;;  %v2088_v56 = vmul.u32 %v2086_v20, %v2084_v26 }
 0x3a9   : > { %v2112_v40 = vmul.u32 %v2108_v23, %v2085_v27  ;;  %v12530_v4 = vand.u32 2147483647, %v8720_v63  ;;  %v2005_v16 = vsel %vm1882_vm13, %v2004_v36, %v1980_v32  ;;  %v2072_v42 = vsel %vm2070_vm14, %v9402_v45, 2102212464 }
 0x3aa   : > { %v2091_v0 = vmul.u32 %v2087_v14, %v2085_v27  ;;  %v2110_v57 = vmul.u32 %v2108_v23, %v2084_v26  ;;  %vm2666_vm15 = vcmp.gt.s32.totalorder %v9197_v13, 0  ;;  %vm7791_vm11 = vcmp.lt.s32.totalorder %v7790_v15, 0 }
 0x3ab   : > { %vm9466_vm1 = vcmp.le.f32.partialorder %v12530_v4, 0.7853982  ;;  %vm2096_vm0 = vc.u32 %v2088_v56, %v2092_v62  ;;  %v2098_v61 = vadd.s32 %v2092_v62, %v2088_v56  ;;  %v2114_v20 = vshll.u32 %v2111_v54, 16 }
 0x3ac   : > { %v1989_v17 = vsel %vm7791_vm11, 0, %v7790_v15  ;;  %v2094_v52 = vshll.u32 %v2090_v55, 16  ;;  %v2097_v60 = vsel %vm2096_vm0, 1, %v12500_v46  ;;  %v2113_v18 = vmul.u32 %v2109_v58, %v2085_v27 }
 0x3ad   : > { %v1990_v22 = vsub.s32 32, %v1989_v17  ;;  %v1994_v3 = vsub.s32 4294967266, %v1989_v17  ;;  %v2099_v32 = vadd.s32 %v2097_v60, %v2091_v0  ;;  %v2116_v36 = vshll.u32 %v2112_v40, 16 }
 0x3ae   : > { %v1991_v4 = vshll.u32 %v9433_v11, %v1989_v17  ;;  %vm2100_vm14 = vc.u32 %v2098_v61, %v2094_v52  ;;  %vm2118_vm3 = vc.u32 %v2110_v57, %v2114_v20  ;;  %v2120_v45 = vadd.s32 %v2114_v20, %v2110_v57 }
 0x3af   : > { %v1992_v26 = vshrl.u32 %v1974_v10, %v1990_v22  ;;  %v1995_v14 = vadd.s32 127, %v1994_v3  ;;  %v2101_v23 = vsel %vm2100_vm14, 1, %v12500_v46  ;;  %v2119_v56 = vsel %vm2118_vm3, 1, %v12500_v46 }
 0x3b0   : > { %v2093_v15 = vshrl.u32 %v2089_v24, 16  ;;  %v2103_v62 = vadd.s32 %v2101_v23, %v2099_v32  ;;  %v2121_v53 = vadd.s32 %v2119_v56, %v2113_v18  ;;  %vm2122_vm4 = vc.u32 %v2120_v45, %v2116_v36  ;;  %v12533_v32 = vld [vmem:[#allocation8_spill] sm:$0xff] }
 0x3b1   : > { %v1993_v27 = vor.u32 %v1992_v26, %v1991_v4  ;;  %v1996_v58 = vshll.u32 %v1995_v14, 23  ;;  %v2073_v0 = vsel %vm2069_vm2, %v9400_v39, %v2072_v42  ;;  %v2123_v11 = vsel %vm2122_vm4, 1, %v12500_v46 }
 0x3b2   : > { %v2095_v61 = vshrl.u32 %v2090_v55, 16  ;;  %v2104_v57 = vadd.s32 %v2103_v62, %v2093_v15  ;;  %v2115_v10 = vshrl.u32 %v2111_v54, 16  ;;  %v2125_v20 = vadd.s32 %v2123_v11, %v2121_v53 }
 0x3b3   : > { %v1318_v52 = vand.u32 2147483648, %v9207_v37  ;;  %v1997_v24 = vor.u32 4788187, %v1996_v58  ;;  %v2007_v60 = vsel %vm9466_vm1, 0, %v2005_v16  ;;  %v2117_v22 = vshrl.u32 %v2112_v40, 16 }
 0x3b4   : > { %v9488_v18 = vadd.s32 %v2104_v57, %v2095_v61  ;;  %v2126_v3 = vadd.s32 %v2125_v20, %v2115_v10  ;;  %v12418_v39 = vand.u32 2147483647, %v12533_v32  ;;  %v2000_v4 = vcvt.s32.f32 %v1993_v27 }
 0x3b5   : > { %v1998_v42 = vand.u32 2147483647, %v1997_v24  ;;  %v2074_v54 = vsel %vm2068_vm6, %v2071_v28, %v2073_v0  ;;  %v9493_v53 = vadd.s32 %v2120_v45, %v2116_v36  ;;  %v1294_v55 = vsub.f32 1.0, %v9348_v6  ;;  %v12535_v36 = vld [vmem:[#allocation19_spill] sm:$0xff]  ;;  %v12536_v0 = vld [vmem:[#allocation14_spill] sm:$0xff] }
 0x3b6   : > { %v2667_v26 = vsel %vm2666_vm15, %v9197_v13, 0  ;;  %v2127_v14 = vadd.s32 %v2126_v3, %v2117_v22  ;;  %v9500_v40 = vor.u32 1.1754944e-38, %v1318_v52  ;;  %v2024_v56 = vadd.s32 3, %v2007_v60 }
 0x3b7   : > { %v2001_v23 = vmul.f32 %v2000_v4, %v1998_v42  ;;  %vm2130_vm2 = vc.u32 %v9488_v18, %v9493_v53  ;;  %v2128_v30 = vmul.u32 %v9425_v34, %v2074_v54  ;;  %v2197_v6 = vand.u32 8388607, %v12418_v39  ;;  %v12537_v39 = vld [vmem:[#allocation18_spill] sm:$0xff] }
 0x3b8   : > { %12534 = vst [vmem:[#allocation17_spill] sm:$0xff] %v9500_v40  ;;  %v2131_v28 = vadd.s32 1, %v2127_v14  ;;  %v2208_v45 = vshrl.u32 %v12492_v8, %v12535_v36  ;;  %v2211_v15 = vshrl.u32 %v12493_v38, %v12535_v36  ;;  %v2214_v62 = vshrl.u32 %v12494_v5, %v12535_v36 }
 0x3b9   : > { %v2002_v13 = vxor.u32 2147483648, %v2001_v23  ;;  %v2217_v27 = vshrl.u32 %v12495_v12, %v12535_v36  ;;  %v2216_v34 = vshll.u32 %v12494_v5, %v12536_v0  ;;  %v2219_v11 = vshll.u32 %v12495_v12, %v12536_v0 }
 0x3ba   : > { %v2132_v58 = vsel %vm2130_vm2, %v2131_v28, %v2127_v14  ;;  %v2220_v61 = vshrl.u32 %v12497_v1, %v12535_v36  ;;  %v2210_v20 = vshll.u32 %v12492_v8, %v12536_v0  ;;  %v2213_v52 = vshll.u32 %v12493_v38, %v12536_v0 }
 0x3bb   : > { %v2003_v57 = vsel %vm1882_vm13, %v2002_v13, %v2001_v23  ;;  %v2133_v10 = vadd.s32 %v2132_v58, %v2128_v30  ;;  %v2207_v22 = vshll.u32 %v12491_v49, %v12536_v0  ;;  %v2218_v3 = vor.u32 %v2217_v27, %v2216_v34 }
 0x3bc   : > { %v9530_v24 = vsel %vm9466_vm1, %v8720_v63, %v2003_v57  ;;  %v2221_v42 = vor.u32 %v2220_v61, %v2219_v11  ;;  %v2212_v14 = vor.u32 %v2211_v15, %v2210_v20  ;;  %v2215_v23 = vor.u32 %v2214_v62, %v2213_v52 }
 0x3bd   : > { %v2008_v4 = vmul.f32 %v9530_v24, %v9530_v24  ;;  %v2134_v54 = vadd.s32 536870912, %v2133_v10  ;;  %v9536_v30 = vshrl.u32 %v2667_v26, 5  ;;  %v9538_v28 = vand.u32 3, %v2024_v56 }
 0x3be   : > { %v2198_v13 = vor.u32 8388608, %v2197_v6  ;;  %v2209_v58 = vor.u32 %v2208_v45, %v2207_v22  ;;  %vm2225_vm5 = vcmp.lt.s32.totalorder %v12537_v39, 4  ;;  %vm2222_vm6 = vcmp.lt.s32.totalorder %v12537_v39, 1 }
 0x3bf   : > { %v2009_v59 = vmul.f32 -0.001358992, %v2008_v4  ;;  %v2016_v57 = vmul.f32 -0.00019511016, %v2008_v4  ;;  %v9540_v17 = vshrl.u32 %v2134_v54, 30  ;;  %vm2224_vm7 = vcmp.lt.s32.totalorder %v12537_v39, 3 }
 0x3c0   : > { %v2231_v15 = vsel %vm2225_vm5, %v2218_v3, 920167782  ;;  %v2235_v62 = vsel %vm2225_vm5, %v2221_v42, 1326507024  ;;  %v2234_v45 = vsel %vm2222_vm6, %v2212_v14, %v2215_v23  ;;  %v9552_v0 = vand.u32 3, %v2007_v60 }
 0x3c1   : > { %v2010_v56 = vadd.f32 0.041655596, %v2009_v59  ;;  %v2017_v27 = vadd.f32 0.008332121, %v2016_v57  ;;  %v2136_v6 = vshll.u32 %v9540_v17, 30  ;;  %vm2223_vm8 = vcmp.lt.s32.totalorder %v12537_v39, 2 }
 0x3c2   : > { %v2230_v34 = vsel %vm2222_vm6, %v2209_v58, %v2212_v14  ;;  %v2236_v11 = vsel %vm2224_vm7, %v2218_v3, %v2235_v62  ;;  %v2232_v22 = vsel %vm2224_vm7, %v2215_v23, %v2231_v15  ;;  %v9564_v42 = vmul.f32 %v12524_v25, %v1294_v55 }
 0x3c3   : > { %v2011_v61 = vmul.f32 %v2010_v56, %v2008_v4  ;;  %v2018_v20 = vmul.f32 %v2017_v27, %v2008_v4  ;;  %v9559_v52 = vsub.s32 %v2133_v10, %v2136_v6  ;;  %v9566_v60 = vand.u32 31, %v2667_v26 }
 0x3c4   : > { %12538 = vst [vmem:[#allocation16_spill] sm:$0xff] %v9564_v42  ;;  %v2237_v54 = vsel %vm2223_vm8, %v2234_v45, %v2236_v11  ;;  %v9570_v59 = vshll.u32 %v2198_v13, 8  ;;  %vm2030_vm9 = vcmp.eq.s32.totalorder %v9538_v28, 2  ;;  %vm2027_vm12 = vcmp.eq.s32.totalorder %v9538_v28, 0 }
 0x3c5   : > { %v2012_v57 = vadd.f32 -0.4999988, %v2011_v61  ;;  %v2019_v16 = vadd.f32 -0.16666654, %v2018_v20  ;;  %vm2138_vm10 = vcmp.lt.s32.totalorder %v9559_v52, 0  ;;  %v2139_v10 = vsub.s32 0, %v9559_v52 }
 0x3c6   : > { %vm4503_vm13 = vcmp.eq.s32.totalorder %v9552_v0, 0  ;;  %vm4506_vm1 = vcmp.eq.s32.totalorder %v9552_v0, 2  ;;  %v2206_v55 = vshrl.u32 %v12491_v49, %v12535_v36  ;;  %v2227_v26 = vsel %vm2225_vm5, %v2215_v23, 2102212464 }
 0x3c7   : > { %v9584_v3 = vsel %vm2223_vm8, %v2230_v34, %v2232_v22  ;;  %v2013_v13 = vmul.f32 %v2012_v57, %v2008_v4  ;;  %v2020_v15 = vmul.f32 %v2019_v16, %v2008_v4  ;;  %vm2026_vm15 = vcmp.lt.s32.totalorder %v9538_v28, 2 }
 0x3c8   : > { %vm4502_vm11 = vcmp.lt.s32.totalorder %v9552_v0, 2  ;;  %v2140_v62 = vsel %vm2138_vm10, %v2139_v10, %v9559_v52  ;;  %v2242_v56 = vshrl.u32 %v2237_v54, 16  ;;  %vm2023_vm0 = vweird.f32 %v8720_v63 }
 0x3c9   : > { %v2129_v36 = vadd.s32 %v9493_v53, %v9488_v18  ;;  %v2141_v27 = vclz %v2140_v62  ;;  %v2239_v23 = vand.u32 65535, %v9570_v59  ;;  %v2241_v6 = vand.u32 65535, %v2237_v54 }
 0x3ca   : > { %v2014_v45 = vadd.f32 1.0, %v2013_v13  ;;  %v2021_v34 = vadd.f32 1.0, %v2020_v15  ;;  %v2263_v16 = vand.u32 65535, %v9584_v3  ;;  %v2264_v4 = vshrl.u32 %v9584_v3, 16 }
 0x3cb   : > { %vm2037_vm14 = vcmp.lt.s32.totalorder %v12523_v44, 0  ;;  %v7793_v11 = vadd.s32 4294967294, %v2141_v27  ;;  %v9598_v61 = vsel %vm2222_vm6, %v2206_v55, %v2209_v58  ;;  %v9602_v18 = vsel %vm2224_vm7, %v2212_v14, %v2227_v26 }
 0x3cc   : > { %v2240_v53 = vshrl.u32 %v9570_v59, 16  ;;  %v2022_v20 = vmul.f32 %v2021_v34, %v9530_v24  ;;  %v2031_v22 = vxor.u32 2147483648, %v2014_v45  ;;  %v2159_v54 = vsub.s32 4, %v9540_v17 }
 0x3cd   : > { %v2244_v57 = vmul.u32 %v2242_v56, %v2239_v23  ;;  %vm7794_vm3 = vcmp.lt.s32.totalorder %v7793_v11, 0  ;;  %v2243_v10 = vmul.u32 %v2241_v6, %v2239_v23  ;;  %v2266_v58 = vmul.u32 %v2264_v4, %v2239_v23 }
 0x3ce   : > { %v2245_v3 = vmul.u32 %v2241_v6, %v2240_v53  ;;  %v2246_v13 = vmul.u32 %v2242_v56, %v2240_v53  ;;  %v2028_v15 = vxor.u32 2147483648, %v2022_v20  ;;  %v2144_v62 = vsel %vm7794_vm3, 0, %v7793_v11 }
 0x3cf   : > { %v9607_v55 = vmul.u32 %v2263_v16, %v2240_v53  ;;  %v2032_v14 = vsel %vm2030_vm9, %v2031_v22, %v2022_v20  ;;  %v12539_v26 = vand.u32 2147483647, %v12523_v44  ;;  %v2145_v27 = vsub.s32 32, %v2144_v62 }
 0x3d0   : > { %v2149_v34 = vsub.s32 4294967266, %v2144_v62  ;;  %v2247_v21 = vshll.u32 %v2244_v57, 16  ;;  %v2029_v56 = vsel %vm2027_vm12, %v2014_v45, %v2028_v15  ;;  %v4505_v6 = vsel %vm4503_vm13, %v2014_v45, %v2028_v15 }
 0x3d1   : > { %vm9613_vm4 = vcmp.le.f32.partialorder %v12539_v26, 0.7853982  ;;  %v4508_v11 = vsel %vm4506_vm1, %v2031_v22, %v2022_v20  ;;  %v2146_v43 = vshll.u32 %v9559_v52, %v2144_v62  ;;  %v2033_v26 = vsel %vm2026_vm15, %v2029_v56, %v2032_v14 }
 0x3d2   : > { %v4509_v48 = vsel %vm4502_vm11, %v4505_v6, %v4508_v11  ;;  %v2147_v47 = vshrl.u32 %v2129_v36, %v2145_v27  ;;  %v2150_v2 = vadd.s32 127, %v2149_v34  ;;  %v9630_v40 = vsel %vm2023_vm0, nan, %v2033_v26  ;;  %v992_v6 = vpop.f32.mrf.mxu0 }
 0x3d3   : > { %12542 = vst [vmem:[#allocation8_spill] sm:$0xff] %v9630_v40  ;;  %v9634_v45 = vsel %vm2023_vm0, nan, %v4509_v48  ;;  %v2249_v15 = vshll.u32 %v2245_v3, 16  ;;  %vm2251_vm2 = vc.u32 %v2243_v10, %v2247_v21  ;;  %6381 = vrot.lane.b32.xlu1 %v9630_v40, %s8186_s15  ;;  %v2253_v36 = vadd.s32 %v2247_v21, %v2243_v10 }
 0x3d4   : > { %12543 = vst [vmem:[#allocation19_spill] sm:$0xff] %v9634_v45  ;;  %6573 = vrot.lane.b32.xlu0 %v9634_v45, %s8178_s14  ;;  %v2148_v28 = vor.u32 %v2147_v47, %v2146_v43  ;;  %v2151_v0 = vshll.u32 %v2150_v2, 23  ;;  %v2252_v52 = vsel %vm2251_vm2, 1, %v12500_v46  ;;  %v2160_v20 = vsel %vm2037_vm14, %v2159_v54, %v9540_v17 }
 0x3d5   : > { %v2254_v63 = vadd.s32 %v2252_v52, %v2246_v13  ;;  %v2265_v48 = vmul.u32 %v2263_v16, %v2239_v23  ;;  %v2269_v22 = vshll.u32 %v2266_v58, 16  ;;  %v2248_v14 = vshrl.u32 %v2244_v57, 16  ;;  %v12544_v57 = vld [vmem:[#allocation9_spill] sm:$0xff] }
 0x3d6   : > { %v2152_v62 = vor.u32 4788187, %v2151_v0  ;;  %vm2255_vm5 = vc.u32 %v2253_v36, %v2249_v15  ;;  %v2268_v27 = vmul.u32 %v2264_v4, %v2240_v53  ;;  %v2271_v56 = vshll.u32 %v9607_v55, 16  ;;  %v12546_v52 = vld [vmem:[#allocation5_spill] sm:$0xff] }
 0x3d7   : > { %v2256_v34 = vsel %vm2255_vm5, 1, %v12500_v46  ;;  %vm2273_vm6 = vc.u32 %v2265_v48, %v2269_v22  ;;  %v2275_v43 = vadd.s32 %v2269_v22, %v2265_v48  ;;  %v2155_v47 = vcvt.s32.f32 %v2148_v28 }
 0x3d8   : > { %v2153_v2 = vand.u32 2147483647, %v2152_v62  ;;  %v2258_v21 = vadd.s32 %v2256_v34, %v2254_v63  ;;  %v2274_v10 = vsel %vm2273_vm6, 1, %v12500_v46  ;;  %v2162_v17 = vsel %vm9613_vm4, 0, %v2160_v20 }
 0x3d9   : > { %v2250_v23 = vshrl.u32 %v2245_v3, 16  ;;  %v2276_v16 = vadd.s32 %v2274_v10, %v2268_v27  ;;  %vm2277_vm7 = vc.u32 %v2275_v43, %v2271_v56  ;;  %v12424_v13 = vand.u32 2147483647, %v12544_v57 }
 0x3da   : > { %v2156_v54 = vmul.f32 %v2155_v47, %v2153_v2  ;;  %v2259_v4 = vadd.s32 %v2258_v21, %v2248_v14  ;;  %v2278_v53 = vsel %vm2277_vm7, 1, %v12500_v46  ;;  %v12545_v11 = vand.u32 2139095040, %v9212_v31 }
 0x3db   : > { %v2229_v15 = vsel %vm2223_vm8, %v9598_v61, %v9602_v18  ;;  %v2270_v28 = vshrl.u32 %v2266_v58, 16  ;;  %v2280_v0 = vadd.s32 %v2278_v53, %v2276_v16  ;;  %v9660_v3 = vsub.s32 32, %v9566_v60  ;;  %v12548_v58 = vld [vmem:[#allocation24_spill] sm:$0xff] }
 0x3dc   : > { %v9653_v26 = vshrl.u32 %v12545_v11, 23  ;;  %v9663_v36 = vadd.f32 %v992_v6, %v12546_v52  ;;  %v2157_v20 = vxor.u32 2147483648, %v2156_v54  ;;  %v9665_v63 = vadd.s32 %v2259_v4, %v2250_v23 }
 0x3dd   : > { %v2179_v48 = vadd.s32 3, %v2162_v17  ;;  %v2272_v22 = vshrl.u32 %v9607_v55, 16  ;;  %v9668_v62 = vadd.s32 %v2275_v43, %v2271_v56  ;;  %v2281_v14 = vadd.s32 %v2280_v0, %v2270_v28  ;;  %v12549_v43 = vld [vmem:[#allocation21_spill] sm:$0xff] }
 0x3de   : > { %12547 = vst [vmem:[#allocation14_spill] sm:$0xff] %v9663_v36  ;;  %v2158_v39 = vsel %vm2037_vm14, %v2157_v20, %v2156_v54  ;;  %v2283_v61 = vmul.u32 %v9570_v59, %v2229_v15  ;;  %v2352_v18 = vand.u32 8388607, %v12424_v13  ;;  %v2363_v27 = vshrl.u32 %v12492_v8, %v12548_v58 }
 0x3df   : > { %v2161_v34 = vsel %vm9613_vm4, %v12523_v44, %v2158_v39  ;;  %v2282_v2 = vadd.s32 %v2281_v14, %v2272_v22  ;;  %vm2285_vm8 = vc.u32 %v9665_v63, %v9668_v62  ;;  %v2366_v55 = vshrl.u32 %v12493_v38, %v12548_v58 }
 0x3e0   : > { %v2163_v56 = vmul.f32 %v2161_v34, %v2161_v34  ;;  %v2369_v59 = vshrl.u32 %v12494_v5, %v12548_v58  ;;  %v2371_v47 = vshll.u32 %v12494_v5, %v12549_v43  ;;  %v2372_v21 = vshrl.u32 %v12495_v12, %v12548_v58 }
 0x3e1   : > { %v2286_v10 = vadd.s32 1, %v2282_v2  ;;  %v2365_v24 = vshll.u32 %v12492_v8, %v12549_v43  ;;  %v2374_v6 = vshll.u32 %v12495_v12, %v12549_v43  ;;  %v2375_v23 = vshrl.u32 %v12497_v1, %v12548_v58 }
 0x3e2   : > { %v2164_v16 = vmul.f32 -0.001358992, %v2163_v56  ;;  %v2171_v54 = vmul.f32 -0.00019511016, %v2163_v56  ;;  %v2368_v4 = vshll.u32 %v12493_v38, %v12549_v43  ;;  %v2373_v53 = vor.u32 %v2372_v21, %v2371_v47 }
 0x3e3   : > { %v2287_v11 = vsel %vm2285_vm8, %v2286_v10, %v2282_v2  ;;  %v2362_v15 = vshll.u32 %v12491_v49, %v12549_v43  ;;  %v9700_v28 = vor.u32 %v2366_v55, %v2365_v24  ;;  %v2376_v0 = vor.u32 %v2375_v23, %v2374_v6 }
 0x3e4   : > { %v2165_v20 = vadd.f32 0.041655596, %v2164_v16  ;;  %v2172_v22 = vadd.f32 0.008332121, %v2171_v54  ;;  %v2288_v14 = vadd.s32 %v2287_v11, %v2283_v61  ;;  %v2370_v39 = vor.u32 %v2369_v59, %v2368_v4 }
 0x3e5   : > { %v9702_v13 = vand.u32 3, %v2162_v17  ;;  %v2353_v45 = vor.u32 8388608, %v2352_v18  ;;  %v2364_v40 = vor.u32 %v2363_v27, %v2362_v15  ;;  %vm2380_vm9 = vcmp.lt.s32.totalorder %v12550_v50, 4 }
 0x3e6   : > { %v2166_v42 = vmul.f32 %v2165_v20, %v2163_v56  ;;  %v2173_v35 = vmul.f32 %v2172_v22, %v2163_v56  ;;  %v2289_v47 = vadd.s32 536870912, %v2288_v14  ;;  %v2386_v2 = vsel %vm2380_vm9, %v2373_v53, 920167782 }
 0x3e7   : > { %v2180_v43 = vand.u32 3, %v2179_v48  ;;  %vm2377_vm10 = vcmp.lt.s32.totalorder %v12550_v50, 1  ;;  %vm2379_vm12 = vcmp.lt.s32.totalorder %v12550_v50, 3  ;;  %v2390_v61 = vsel %vm2380_vm9, %v2376_v0, 1326507024 }
 0x3e8   : > { %v2167_v17 = vadd.f32 -0.4999988, %v2166_v42  ;;  %v2174_v55 = vadd.f32 -0.16666654, %v2173_v35  ;;  %v9711_v18 = vshrl.u32 %v2289_v47, 30  ;;  %v2389_v27 = vsel %vm2377_vm10, %v9700_v28, %v2370_v39 }
 0x3e9   : > { %v2385_v59 = vsel %vm2377_vm10, %v2364_v40, %v9700_v28  ;;  %v2387_v48 = vsel %vm2379_vm12, %v2370_v39, %v2386_v2  ;;  %v2391_v21 = vsel %vm2379_vm12, %v2373_v53, %v2390_v61  ;;  %v9723_v10 = vshll.u32 %v2353_v45, 8 }
 0x3ea   : > { %v2168_v42 = vmul.f32 %v2167_v17, %v2163_v56  ;;  %v2175_v35 = vmul.f32 %v2174_v55, %v2163_v56  ;;  %v2291_v24 = vshll.u32 %v9711_v18, 30  ;;  %vm2378_vm13 = vcmp.lt.s32.totalorder %v12550_v50, 2 }
 0x3eb   : > { %vm2178_vm1 = vweird.f32 %v12523_v44  ;;  %vm2181_vm15 = vcmp.lt.s32.totalorder %v2180_v43, 2  ;;  %vm4657_vm11 = vcmp.eq.s32.totalorder %v9702_v13, 0  ;;  %vm4660_vm0 = vcmp.eq.s32.totalorder %v9702_v13, 2 }
 0x3ec   : > { %v2392_v6 = vsel %vm2378_vm13, %v2389_v27, %v2391_v21  ;;  %v2169_v23 = vadd.f32 1.0, %v2168_v42  ;;  %v2176_v16 = vadd.f32 1.0, %v2175_v35  ;;  %v2292_v45 = vsub.s32 %v2288_v14, %v2291_v24 }
 0x3ed   : > { %v2388_v56 = vsel %vm2378_vm13, %v2385_v59, %v2387_v48  ;;  %vm2182_vm14 = vcmp.eq.s32.totalorder %v2180_v43, 0  ;;  %v2394_v54 = vand.u32 65535, %v9723_v10  ;;  %v2396_v4 = vand.u32 65535, %v2392_v6 }
 0x3ee   : > { %v2397_v53 = vshrl.u32 %v2392_v6, 16  ;;  %v2177_v11 = vmul.f32 %v2176_v16, %v2161_v34  ;;  %v2186_v15 = vxor.u32 2147483648, %v2169_v23  ;;  %vm4656_vm3 = vcmp.lt.s32.totalorder %v9702_v13, 2 }
 0x3ef   : > { %vm2293_vm4 = vcmp.lt.s32.totalorder %v2292_v45, 0  ;;  %v2294_v0 = vsub.s32 0, %v2292_v45  ;;  %vm2185_vm2 = vcmp.eq.s32.totalorder %v2180_v43, 2  ;;  %v2361_v20 = vshrl.u32 %v12491_v49, %v12548_v58 }
 0x3f0   : > { %v2399_v22 = vmul.u32 %v2397_v53, %v2394_v54  ;;  %v2418_v14 = vand.u32 65535, %v2388_v56  ;;  %v2183_v47 = vxor.u32 2147483648, %v2177_v11  ;;  %v2284_v2 = vadd.s32 %v9668_v62, %v9665_v63 }
 0x3f1   : > { %v2295_v61 = vsel %vm2293_vm4, %v2294_v0, %v2292_v45  ;;  %v2395_v17 = vshrl.u32 %v9723_v10, 16  ;;  %v2381_v34 = vsel %vm2377_vm10, %v2361_v20, %v2364_v40  ;;  %v2382_v27 = vsel %vm2380_vm9, %v2370_v39, 2102212464 }
 0x3f2   : > { %v2296_v55 = vclz %v2295_v61  ;;  %v2419_v59 = vshrl.u32 %v2388_v56, 16  ;;  %v2184_v48 = vsel %vm2182_vm14, %v2169_v23, %v2183_v47  ;;  %v2187_v58 = vsel %vm2185_vm2, %v2186_v15, %v2177_v11 }
 0x3f3   : > { %v2400_v21 = vmul.u32 %v2396_v4, %v2395_v17  ;;  %v2402_v42 = vshll.u32 %v2399_v22, 16  ;;  %v2188_v35 = vsel %vm2181_vm15, %v2184_v48, %v2187_v58  ;;  %v2398_v63 = vmul.u32 %v2396_v4, %v2394_v54 }
 0x3f4   : > { %v7796_v24 = vadd.s32 4294967294, %v2296_v55  ;;  %v2420_v62 = vmul.u32 %v2418_v14, %v2394_v54  ;;  %v9749_v6 = vsel %vm2178_vm1, nan, %v2188_v35  ;;  %v4659_v40 = vsel %vm4657_vm11, %v2169_v23, %v2183_v47 }
 0x3f5   : > { %12551 = vst [vmem:[#allocation18_spill] sm:$0xff] %v9749_v6  ;;  %v4662_v39 = vsel %vm4660_vm0, %v2186_v15, %v2177_v11  ;;  %v2401_v16 = vmul.u32 %v2397_v53, %v2395_v17  ;;  %6383 = vrot.lane.b32.xlu2 %v9749_v6, %s8186_s15  ;;  %vm2406_vm6 = vc.u32 %v2398_v63, %v2402_v42  ;;  %v2404_v0 = vshll.u32 %v2400_v21, 16 }
 0x3f6   : > { %vm7797_vm5 = vcmp.lt.s32.totalorder %v7796_v24, 0  ;;  %v2408_v43 = vadd.s32 %v2402_v42, %v2398_v63  ;;  %v2421_v56 = vmul.u32 %v2419_v59, %v2394_v54  ;;  %v2407_v20 = vsel %vm2406_vm6, 1, %v12500_v46 }
 0x3f7   : > { %v2299_v4 = vsel %vm7797_vm5, 0, %v7796_v24  ;;  %v2422_v61 = vmul.u32 %v2418_v14, %v2395_v17  ;;  %v4663_v55 = vsel %vm4656_vm3, %v4659_v40, %v4662_v39  ;;  %v2409_v48 = vadd.s32 %v2407_v20, %v2401_v16 }
 0x3f8   : > { %v2300_v23 = vsub.s32 32, %v2299_v4  ;;  %v2304_v47 = vsub.s32 4294967266, %v2299_v4  ;;  %v2403_v11 = vshrl.u32 %v2399_v22, 16  ;;  %vm2410_vm7 = vc.u32 %v2408_v43, %v2404_v0  ;;  %v12553_v0 = vld [vmem:[#allocation12_spill] sm:$0xff] }
 0x3f9   : > { %v2423_v53 = vmul.u32 %v2419_v59, %v2395_v17  ;;  %v2424_v15 = vshll.u32 %v2421_v56, 16  ;;  %v2301_v58 = vshll.u32 %v2292_v45, %v2299_v4  ;;  %v2411_v54 = vsel %vm2410_vm7, 1, %v12500_v46 }
 0x3fa   : > { %v2302_v35 = vshrl.u32 %v2284_v2, %v2300_v23  ;;  %v2305_v6 = vadd.s32 127, %v2304_v47  ;;  %v2413_v42 = vadd.s32 %v2411_v54, %v2409_v48  ;;  %v2426_v24 = vshll.u32 %v2422_v61, 16 }
 0x3fb   : > { %vm2428_vm8 = vc.u32 %v2420_v62, %v2424_v15  ;;  %v2430_v63 = vadd.s32 %v2424_v15, %v2420_v62  ;;  %v2383_v13 = vsel %vm2379_vm12, %v9700_v28, %v2382_v27  ;;  %v9767_v17 = vsel %vm2178_vm1, nan, %v4663_v55 }
 0x3fc   : > { %v2303_v14 = vor.u32 %v2302_v35, %v2301_v58  ;;  %v2306_v25 = vshll.u32 %v2305_v6, 23  ;;  %v2429_v22 = vsel %vm2428_vm8, 1, %v12500_v46  ;;  %12552 = vst [vmem:[#allocation9_spill] sm:$0xff] %v9767_v17  ;;  %v2414_v45 = vadd.s32 %v2413_v42, %v2403_v11 }
 0x3fd   : > { %v2431_v2 = vadd.s32 %v2429_v22, %v2423_v53  ;;  %vm2432_vm9 = vc.u32 %v2430_v63, %v2426_v24  ;;  %v7807_v59 = vadd.s32 4294967169, %v9653_v26  ;;  %6575 = vrot.lane.b32.xlu2 %v9767_v17, %s8178_s14  ;;  %v2405_v6 = vshrl.u32 %v2400_v21, 16 }
 0x3fe   : > { %v2307_v62 = vor.u32 4788187, %v2306_v25  ;;  %v2433_v40 = vsel %vm2432_vm9, 1, %v12500_v46  ;;  %v2314_v28 = vsub.s32 4, %v9711_v18  ;;  %v2384_v27 = vsel %vm2378_vm13, %v2381_v34, %v2383_v13 }
 0x3ff   : > { %v2425_v44 = vshrl.u32 %v2421_v56, 16  ;;  %v2435_v39 = vadd.s32 %v2433_v40, %v2431_v2  ;;  %v2310_v43 = vcvt.s32.f32 %v2303_v14  ;;  %v9776_v4 = vadd.s32 %v2414_v45, %v2405_v6 }
 0x400   : > { %v2308_v16 = vand.u32 2147483647, %v2307_v62  ;;  %v12429_v26 = vand.u32 2147483647, %v12553_v0  ;;  %v9780_v20 = vadd.f32 1.0, %v9382_v33  ;;  %v2427_v21 = vshrl.u32 %v2422_v61, 16 }
 0x401   : > { %v9783_v25 = vmul.f32 -1.442695, %v9663_v36  ;;  %v2436_v55 = vadd.s32 %v2435_v39, %v2425_v44  ;;  %v9787_v50 = vmul.f32 %v9388_v41, %v9207_v37  ;;  %v2820_v34 = vadd.s32 1, %v7807_v59 }
 0x402   : > { %v2311_v56 = vmul.f32 %v2310_v43, %v2308_v16  ;;  %v9789_v23 = vadd.s32 %v2430_v63, %v2426_v24  ;;  %v12554_v47 = vand.u32 2147483647, %v12533_v32  ;;  %vm2192_vm12 = vcmp.lt.s32.totalorder %v12533_v32, 0 }
 0x403   : > { %v2437_v33 = vadd.s32 %v2436_v55, %v2427_v21  ;;  %v2438_v61 = vmul.u32 %v9723_v10, %v2384_v27  ;;  %v2315_v53 = vsel %vm2192_vm12, %v2314_v28, %v9711_v18  ;;  %v2507_v15 = vand.u32 8388607, %v12429_v26 }
 0x404   : > { %vm9793_vm10 = vcmp.le.f32.partialorder %v12554_v47, 0.7853982  ;;  %v2312_v11 = vxor.u32 2147483648, %v2311_v56  ;;  %vm2440_vm13 = vc.u32 %v9776_v4, %v9789_v23  ;;  %v2518_v35 = vshrl.u32 %v12492_v8, %v9183_v7 }
 0x405   : > { %v2441_v58 = vadd.s32 1, %v2437_v33  ;;  %v2521_v54 = vshrl.u32 %v12493_v38, %v9183_v7  ;;  %v2527_v42 = vshrl.u32 %v12495_v12, %v9183_v7  ;;  %v2520_v18 = vshll.u32 %v12492_v8, %v9052_v29 }
 0x406   : > { %v2313_v10 = vsel %vm2192_vm12, %v2312_v11, %v2311_v56  ;;  %v2524_v24 = vshrl.u32 %v12494_v5, %v9183_v7  ;;  %v2530_v63 = vshrl.u32 %v12497_v1, %v9183_v7  ;;  %v2526_v22 = vshll.u32 %v12494_v5, %v9052_v29 }
 0x407   : > { %v9819_v14 = vsel %vm9793_vm10, %v12533_v32, %v2313_v10  ;;  %v2442_v13 = vsel %vm2440_vm13, %v2441_v58, %v2437_v33  ;;  %v2529_v45 = vshll.u32 %v12495_v12, %v9052_v29  ;;  %v2317_v2 = vsel %vm9793_vm10, 0, %v2315_v53 }
 0x408   : > { %v2318_v59 = vmul.f32 %v9819_v14, %v9819_v14  ;;  %v2443_v62 = vadd.s32 %v2442_v13, %v2438_v61  ;;  %v2523_v6 = vshll.u32 %v12493_v38, %v9052_v29  ;;  %v2517_v40 = vshll.u32 %v12491_v49, %v9052_v29 }
 0x409   : > { %v9833_v28 = vor.u32 %v2521_v54, %v2520_v18  ;;  %v2528_v27 = vor.u32 %v2527_v42, %v2526_v22  ;;  %v2531_v44 = vor.u32 %v2530_v63, %v2529_v45  ;;  %vm2821_vm1 = vcmp.gt.s32.totalorder %v2820_v34, 0 }
 0x40a   : > { %v2319_v39 = vmul.f32 -0.001358992, %v2318_v59  ;;  %v2326_v16 = vmul.f32 -0.00019511016, %v2318_v59  ;;  %v2444_v43 = vadd.s32 536870912, %v2443_v62  ;;  %v2525_v21 = vor.u32 %v2524_v24, %v2523_v6 }
 0x40b   : > { %v9835_v55 = vand.u32 3, %v2317_v2  ;;  %v2508_v56 = vor.u32 8388608, %v2507_v15  ;;  %v2519_v47 = vor.u32 %v2518_v35, %v2517_v40  ;;  %vm2535_vm15 = vcmp.lt.s32.totalorder %v9180_v19, 4 }
 0x40c   : > { %v2320_v48 = vadd.f32 0.041655596, %v2319_v39  ;;  %v2327_v33 = vadd.f32 0.008332121, %v2326_v16  ;;  %v2445_v61 = vshrl.u32 %v2444_v43, 30  ;;  %vm2532_vm11 = vcmp.lt.s32.totalorder %v9180_v19, 1 }
 0x40d   : > { %vm2534_vm0 = vcmp.lt.s32.totalorder %v9180_v19, 3  ;;  %v2541_v29 = vsel %vm2535_vm15, %v2528_v27, 920167782  ;;  %v2545_v11 = vsel %vm2535_vm15, %v2531_v44, 1326507024  ;;  %v2544_v15 = vsel %vm2532_vm11, %v9833_v28, %v2525_v21 }
 0x40e   : > { %v2321_v53 = vmul.f32 %v2320_v48, %v2318_v59  ;;  %v2328_v58 = vmul.f32 %v2327_v33, %v2318_v59  ;;  %v2446_v54 = vshll.u32 %v2445_v61, 30  ;;  %v9848_v35 = vsel %vm2821_vm1, %v2820_v34, 0 }
 0x40f   : > { %vm2347_vm14 = vcmp.lt.s32.totalorder %v12544_v57, 0  ;;  %v2334_v42 = vadd.s32 3, %v2317_v2  ;;  %v2546_v10 = vsel %vm2534_vm0, %v2528_v27, %v2545_v11  ;;  %vm4814_vm3 = vcmp.eq.s32.totalorder %v9835_v55, 2 }
 0x410   : > { %v2322_v18 = vadd.f32 -0.4999988, %v2321_v53  ;;  %v2329_v24 = vadd.f32 -0.16666654, %v2328_v58  ;;  %v9854_v63 = vsub.s32 %v2443_v62, %v2446_v54  ;;  %vm2533_vm4 = vcmp.lt.s32.totalorder %v9180_v19, 2 }
 0x411   : > { %vm4811_vm2 = vcmp.eq.s32.totalorder %v9835_v55, 0  ;;  %v2540_v34 = vsel %vm2532_vm11, %v2519_v47, %v9833_v28  ;;  %v2542_v13 = vsel %vm2534_vm0, %v2525_v21, %v2541_v29  ;;  %v2547_v22 = vsel %vm2533_vm4, %v2544_v15, %v2546_v10 }
 0x412   : > { %v9865_v45 = vshll.u32 %v2508_v56, 8  ;;  %v2323_v2 = vmul.f32 %v2322_v18, %v2318_v59  ;;  %v2330_v6 = vmul.f32 %v2329_v24, %v2318_v59  ;;  %vm4810_vm5 = vcmp.lt.s32.totalorder %v9835_v55, 2 }
 0x413   : > { %vm2448_vm6 = vcmp.lt.s32.totalorder %v9854_v63, 0  ;;  %v2449_v62 = vsub.s32 0, %v9854_v63  ;;  %vm2333_vm7 = vweird.f32 %v12533_v32  ;;  %v2469_v40 = vsub.s32 4, %v2445_v61 }
 0x414   : > { %v2335_v27 = vand.u32 3, %v2334_v42  ;;  %v2537_v44 = vsel %vm2535_vm15, %v2525_v21, 2102212464  ;;  %v2551_v39 = vand.u32 65535, %v2547_v22  ;;  %v2324_v16 = vadd.f32 1.0, %v2323_v2 }
 0x415   : > { %v2331_v43 = vadd.f32 1.0, %v2330_v6  ;;  %v2450_v56 = vsel %vm2448_vm6, %v2449_v62, %v9854_v63  ;;  %v2552_v48 = vshrl.u32 %v2547_v22, 16  ;;  %v12557_v59 = vand.u32 2147483647, %v12544_v57 }
 0x416   : > { %v2439_v29 = vadd.s32 %v9789_v23, %v9776_v4  ;;  %v2451_v11 = vclz %v2450_v56  ;;  %v2516_v53 = vshrl.u32 %v12491_v49, %v9183_v7  ;;  %v2543_v21 = vsel %vm2533_vm4, %v2540_v34, %v2542_v13 }
 0x417   : > { %vm9876_vm8 = vcmp.le.f32.partialorder %v12557_v59, 0.7853982  ;;  %v2332_v58 = vmul.f32 %v2331_v43, %v9819_v14  ;;  %v2341_v54 = vxor.u32 2147483648, %v2324_v16  ;;  %v2549_v15 = vand.u32 65535, %v9865_v45 }
 0x418   : > { %v2550_v42 = vshrl.u32 %v9865_v45, 16  ;;  %v7799_v10 = vadd.s32 4294967294, %v2451_v11  ;;  %vm2337_vm9 = vcmp.eq.s32.totalorder %v2335_v27, 0  ;;  %vm2340_vm10 = vcmp.eq.s32.totalorder %v2335_v27, 2 }
 0x419   : > { %v2536_v4 = vsel %vm2532_vm11, %v2516_v53, %v2519_v47  ;;  %v2538_v7 = vsel %vm2534_vm0, %v9833_v28, %v2537_v44  ;;  %v2338_v23 = vxor.u32 2147483648, %v2332_v58  ;;  %v2470_v18 = vsel %vm2347_vm14, %v2469_v40, %v2445_v61 }
 0x41a   : > { %vm2336_vm12 = vcmp.lt.s32.totalorder %v2335_v27, 2  ;;  %v2554_v14 = vmul.u32 %v2552_v48, %v2549_v15  ;;  %v2555_v24 = vmul.u32 %v2551_v39, %v2550_v42  ;;  %v4816_v34 = vsel %vm4814_vm3, %v2341_v54, %v2332_v58 }
 0x41b   : > { %vm7800_vm13 = vcmp.lt.s32.totalorder %v7799_v10, 0  ;;  %v2553_v13 = vmul.u32 %v2551_v39, %v2549_v15  ;;  %v2573_v22 = vand.u32 65535, %v2543_v21  ;;  %v4813_v47 = vsel %vm4811_vm2, %v2324_v16, %v2338_v23 }
 0x41c   : > { %v2454_v2 = vsel %vm7800_vm13, 0, %v7799_v10  ;;  %v2557_v6 = vshll.u32 %v2554_v14, 16  ;;  %v2574_v62 = vshrl.u32 %v2543_v21, 16  ;;  %v4817_v28 = vsel %vm4810_vm5, %v4813_v47, %v4816_v34 }
 0x41d   : > { %v2455_v44 = vsub.s32 32, %v2454_v2  ;;  %v2459_v61 = vsub.s32 4294967266, %v2454_v2  ;;  %v2556_v40 = vmul.u32 %v2552_v48, %v2550_v42  ;;  %v9904_v43 = vsel %vm2333_vm7, nan, %v4817_v28 }
 0x41e   : > { %12560 = vst [vmem:[#allocation5_spill] sm:$0xff] %v9904_v43  ;;  %v2456_v56 = vshll.u32 %v9854_v63, %v2454_v2  ;;  %v2559_v39 = vshll.u32 %v2555_v24, 16  ;;  %vm2561_vm1 = vc.u32 %v2553_v13, %v2557_v6  ;;  %6577 = vrot.lane.b32.xlu0 %v9904_v43, %s8178_s14  ;;  %v2563_v55 = vadd.s32 %v2557_v6, %v2553_v13 }
 0x41f   : > { %v2457_v59 = vshrl.u32 %v2439_v29, %v2455_v44  ;;  %v2460_v11 = vadd.s32 127, %v2459_v61  ;;  %v2562_v53 = vsel %vm2561_vm1, 1, %v12500_v46  ;;  %v2472_v21 = vsel %vm9876_vm8, 0, %v2470_v18 }
 0x420   : > { %v2564_v48 = vadd.s32 %v2562_v53, %v2556_v40  ;;  %v2576_v10 = vmul.u32 %v2574_v62, %v2549_v15  ;;  %v2577_v34 = vmul.u32 %v2573_v22, %v2550_v42  ;;  %vm2565_vm15 = vc.u32 %v2563_v55, %v2559_v39 }
 0x421   : > { %v2458_v47 = vor.u32 %v2457_v59, %v2456_v56  ;;  %v2461_v28 = vshll.u32 %v2460_v11, 23  ;;  %v2575_v63 = vmul.u32 %v2573_v22, %v2549_v15  ;;  %v2339_v2 = vsel %vm2337_vm9, %v2324_v16, %v2338_v23 }
 0x422   : > { %v2342_v26 = vsel %vm2340_vm10, %v2341_v54, %v2332_v58  ;;  %v2566_v29 = vsel %vm2565_vm15, 1, %v12500_v46  ;;  %v2579_v44 = vshll.u32 %v2576_v10, 16  ;;  %v2558_v6 = vshrl.u32 %v2554_v14, 16  ;;  %v12562_v54 = vld [vmem:[#allocation23_spill] sm:$0xff] }
 0x423   : > { %v2462_v61 = vor.u32 4788187, %v2461_v28  ;;  %v2343_v13 = vsel %vm2336_vm12, %v2339_v2, %v2342_v26  ;;  %v2568_v43 = vadd.s32 %v2566_v29, %v2564_v48  ;;  %v2465_v18 = vcvt.s32.f32 %v2458_v47 }
 0x424   : > { %v9918_v40 = vsel %vm2333_vm7, nan, %v2343_v13  ;;  %v2578_v56 = vmul.u32 %v2574_v62, %v2550_v42  ;;  %v2581_v39 = vshll.u32 %v2577_v34, 16  ;;  %vm2583_vm11 = vc.u32 %v2575_v63, %v2579_v44 }
 0x425   : > { %12561 = vst [vmem:[#allocation24_spill] sm:$0xff] %v9918_v40  ;;  %v2463_v15 = vand.u32 2147483647, %v2462_v61  ;;  %6385 = vrot.lane.b32.xlu2 %v9918_v40, %s8186_s15  ;;  %v2569_v16 = vadd.s32 %v2568_v43, %v2558_v6  ;;  %v2585_v58 = vadd.s32 %v2579_v44, %v2575_v63  ;;  %8123 = vpow2.f32 %v9783_v25 }
 0x426   : > { %v2560_v27 = vshrl.u32 %v2555_v24, 16  ;;  %v2584_v26 = vsel %vm2583_vm11, 1, %v12500_v46  ;;  %v12433_v23 = vand.u32 2147483647, %v12562_v54  ;;  %v2539_v32 = vsel %vm2533_vm4, %v2536_v4, %v2538_v7 }
 0x427   : > { %v2466_v14 = vmul.f32 %v2465_v18, %v2463_v15  ;;  %v2586_v42 = vadd.s32 %v2584_v26, %v2578_v56  ;;  %vm2587_vm0 = vc.u32 %v2585_v58, %v2581_v39  ;;  %v9928_v22 = vand.u32 31, %v9848_v35 }
 0x428   : > { %v2489_v62 = vadd.s32 3, %v2472_v21  ;;  %v9930_v43 = vadd.s32 %v2569_v16, %v2560_v27  ;;  %v2588_v59 = vsel %vm2587_vm0, 1, %v12500_v46  ;;  %v9933_v24 = vand.u32 3, %v2472_v21 }
 0x429   : > { %v2467_v25 = vxor.u32 2147483648, %v2466_v14  ;;  %v2580_v11 = vshrl.u32 %v2576_v10, 16  ;;  %v2590_v53 = vadd.s32 %v2588_v59, %v2586_v42  ;;  %v2582_v55 = vshrl.u32 %v2577_v34, 16 }
 0x42a   : > { %v9935_v48 = vadd.s32 %v2585_v58, %v2581_v39  ;;  %v2593_v19 = vmul.u32 %v9865_v45, %v2539_v32  ;;  %v2662_v4 = vand.u32 8388607, %v12433_v23  ;;  %v2672_v28 = vshll.u32 %v12491_v49, %v9566_v60 }
 0x42b   : > { %v2468_v7 = vsel %vm2347_vm14, %v2467_v25, %v2466_v14  ;;  %v2591_v47 = vadd.s32 %v2590_v53, %v2580_v11  ;;  %v2673_v21 = vshrl.u32 %v12492_v8, %v9660_v3  ;;  %v9946_v10 = vpop.eup %8123  ;;  %v2676_v45 = vshrl.u32 %v12493_v38, %v9660_v3 }
 0x42c   : > { %v9951_v34 = vsel %vm9876_vm8, %v12544_v57, %v2468_v7  ;;  %vm2595_vm3 = vc.u32 %v9930_v43, %v9935_v48  ;;  %v2679_v63 = vshrl.u32 %v12494_v5, %v9660_v3  ;;  %v2681_v44 = vshll.u32 %v12494_v5, %v9566_v60 }
 0x42d   : > { %v2473_v2 = vmul.f32 %v9951_v34, %v9951_v34  ;;  %v2592_v29 = vadd.s32 %v2591_v47, %v2582_v55  ;;  %v2682_v33 = vshrl.u32 %v12495_v12, %v9660_v3  ;;  %v2675_v61 = vshll.u32 %v12492_v8, %v9566_v60 }
 0x42e   : > { %v2678_v13 = vshll.u32 %v12493_v38, %v9566_v60  ;;  %v2684_v6 = vshll.u32 %v12495_v12, %v9566_v60  ;;  %v2685_v18 = vshrl.u32 %v12497_v1, %v9660_v3  ;;  %v9973_v58 = vor.u32 %v2673_v21, %v2672_v28 }
 0x42f   : > { %v2474_v56 = vmul.f32 -0.001358992, %v2473_v2  ;;  %v2481_v39 = vmul.f32 -0.00019511016, %v2473_v2  ;;  %v2596_v15 = vadd.s32 1, %v2592_v29  ;;  %v2683_v16 = vor.u32 %v2682_v33, %v2681_v44 }
 0x430   : > { %v9975_v27 = vor.u32 %v2676_v45, %v2675_v61  ;;  %v2680_v26 = vor.u32 %v2679_v63, %v2678_v13  ;;  %v2686_v14 = vor.u32 %v2685_v18, %v2684_v6  ;;  %vm2690_vm14 = vcmp.lt.s32.totalorder %v9536_v30, 4 }
 0x431   : > { %v2475_v32 = vadd.f32 0.041655596, %v2474_v56  ;;  %v2482_v42 = vadd.f32 0.008332121, %v2481_v39  ;;  %v2597_v59 = vsel %vm2595_vm3, %v2596_v15, %v2592_v29  ;;  %v2490_v60 = vand.u32 3, %v2489_v62 }
 0x432   : > { %v2598_v25 = vadd.s32 %v2597_v59, %v2593_v19  ;;  %v2663_v11 = vor.u32 8388608, %v2662_v4  ;;  %v2696_v53 = vsel %vm2690_vm14, %v2683_v16, 920167782  ;;  %vm2687_vm4 = vcmp.lt.s32.totalorder %v9536_v30, 1 }
 0x433   : > { %v2476_v55 = vmul.f32 %v2475_v32, %v2473_v2  ;;  %v2483_v7 = vmul.f32 %v2482_v42, %v2473_v2  ;;  %vm2689_vm2 = vcmp.lt.s32.totalorder %v9536_v30, 3  ;;  %v2695_v28 = vsel %vm2687_vm4, %v9973_v58, %v9975_v27 }
 0x434   : > { %v2599_v47 = vadd.s32 536870912, %v2598_v25  ;;  %v2697_v62 = vsel %vm2689_vm2, %v2680_v26, %v2696_v53  ;;  %v2699_v19 = vsel %vm2687_vm4, %v9975_v27, %v2680_v26  ;;  %8125 = vrcp.f32 %v9780_v20 }
 0x435   : > { %v2477_v4 = vadd.f32 -0.4999988, %v2476_v55  ;;  %v2484_v21 = vadd.f32 -0.16666654, %v2483_v7  ;;  %v2700_v45 = vsel %vm2690_vm14, %v2686_v14, 1326507024  ;;  %vm2488_vm7 = vweird.f32 %v12544_v57 }
 0x436   : > { %v9997_v63 = vshrl.u32 %v2599_v47, 30  ;;  %vm2688_vm5 = vcmp.lt.s32.totalorder %v9536_v30, 2  ;;  %v2701_v29 = vsel %vm2689_vm2, %v2683_v16, %v2700_v45  ;;  %v10002_v44 = vshll.u32 %v2663_v11, 8 }
 0x437   : > { %v2478_v33 = vmul.f32 %v2477_v4, %v2473_v2  ;;  %v2485_v61 = vmul.f32 %v2484_v21, %v2473_v2  ;;  %vm4964_vm6 = vcmp.lt.s32.totalorder %v9933_v24, 2  ;;  %v2698_v13 = vsel %vm2688_vm5, %v2695_v28, %v2697_v62 }
 0x438   : > { %v2702_v6 = vsel %vm2688_vm5, %v2699_v19, %v2701_v29  ;;  %vm2491_vm8 = vcmp.lt.s32.totalorder %v2490_v60, 2  ;;  %vm4965_vm9 = vcmp.eq.s32.totalorder %v9933_v24, 0  ;;  %vm4968_vm10 = vcmp.eq.s32.totalorder %v9933_v24, 2 }
 0x439   : > { %v2601_v18 = vshll.u32 %v9997_v63, 30  ;;  %v2479_v56 = vadd.f32 1.0, %v2478_v33  ;;  %v2486_v39 = vadd.f32 1.0, %v2485_v61  ;;  %vm2492_vm12 = vcmp.eq.s32.totalorder %v2490_v60, 0 }
 0x43a   : > { %v2707_v2 = vshrl.u32 %v2702_v6, 16  ;;  %v2704_v16 = vand.u32 65535, %v10002_v44  ;;  %v2706_v14 = vand.u32 65535, %v2702_v6  ;;  %v2729_v32 = vshrl.u32 %v2698_v13, 16  ;;  %v10016_v42 = vpop.eup %8125 }
 0x43b   : > { %v10013_v15 = vsub.s32 %v2598_v25, %v2601_v18  ;;  %v2487_v59 = vmul.f32 %v2486_v39, %v9951_v34  ;;  %vm2495_vm13 = vcmp.eq.s32.totalorder %v2490_v60, 2  ;;  %v2496_v11 = vxor.u32 2147483648, %v2479_v56 }
 0x43c   : > { %v2671_v53 = vshrl.u32 %v12491_v49, %v9660_v3  ;;  %v2705_v25 = vshrl.u32 %v10002_v44, 16  ;;  %v2709_v7 = vmul.u32 %v2707_v2, %v2704_v16  ;;  %v2594_v28 = vadd.s32 %v9935_v48, %v9930_v43 }
 0x43d   : > { %vm2603_vm1 = vcmp.lt.s32.totalorder %v10013_v15, 0  ;;  %v2604_v55 = vsub.s32 0, %v10013_v15  ;;  %v2493_v47 = vxor.u32 2147483648, %v2487_v59  ;;  %v2692_v62 = vsel %vm2690_vm14, %v2680_v26, 2102212464 }
 0x43e   : > { %v2728_v34 = vand.u32 65535, %v2698_v13  ;;  %v2497_v19 = vsel %vm2495_vm13, %v2496_v11, %v2487_v59  ;;  %v2710_v21 = vmul.u32 %v2706_v14, %v2705_v25  ;;  %v10029_v3 = vmul.u32 %v2729_v32, %v2704_v16 }
 0x43f   : > { %v2605_v4 = vsel %vm2603_vm1, %v2604_v55, %v10013_v15  ;;  %v2494_v45 = vsel %vm2492_vm12, %v2479_v56, %v2493_v47  ;;  %v4967_v29 = vsel %vm4965_vm9, %v2479_v56, %v2493_v47  ;;  %v4970_v33 = vsel %vm4968_vm10, %v2496_v11, %v2487_v59 }
 0x440   : > { %v2606_v61 = vclz %v2605_v4  ;;  %v2498_v43 = vsel %vm2491_vm8, %v2494_v45, %v2497_v19  ;;  %v4971_v48 = vsel %vm4964_vm6, %v4967_v29, %v4970_v33  ;;  %v2708_v26 = vmul.u32 %v2706_v14, %v2704_v16 }
 0x441   : > { %v2712_v13 = vshll.u32 %v2709_v7, 16  ;;  %v10041_v6 = vsel %vm2488_vm7, nan, %v2498_v43  ;;  %v10045_v18 = vsel %vm2488_vm7, nan, %v4971_v48  ;;  %v2711_v39 = vmul.u32 %v2707_v2, %v2705_v25 }
 0x442   : > { %12563 = vst [vmem:[#allocation21_spill] sm:$0xff] %v10045_v18  ;;  %v7802_v56 = vadd.s32 4294967294, %v2606_v61  ;;  %6387 = vrot.lane.b32.xlu1 %v10041_v6, %s8186_s15  ;;  %6579 = vrot.lane.b32.xlu2 %v10045_v18, %s8178_s14  ;;  %v2714_v24 = vshll.u32 %v2710_v21, 16  ;;  %v2732_v14 = vmul.u32 %v2728_v34, %v2705_v25  ;;  %v2730_v11 = vmul.u32 %v2728_v34, %v2704_v16 }
 0x443   : > { %vm2716_vm15 = vc.u32 %v2708_v26, %v2712_v13  ;;  %v2718_v60 = vadd.s32 %v2712_v13, %v2708_v26  ;;  %v2734_v57 = vshll.u32 %v10029_v3, 16  ;;  %v2713_v47 = vshrl.u32 %v2709_v7, 16 }
 0x444   : > { %vm7803_vm11 = vcmp.lt.s32.totalorder %v7802_v56, 0  ;;  %v2717_v59 = vsel %vm2716_vm15, 1, %v12500_v46  ;;  %v2733_v29 = vmul.u32 %v2729_v32, %v2705_v25  ;;  %v2736_v43 = vshll.u32 %v2732_v14, 16 }
 0x445   : > { %v2609_v55 = vsel %vm7803_vm11, 0, %v7802_v56  ;;  %v2719_v19 = vadd.s32 %v2717_v59, %v2711_v39  ;;  %vm2720_vm0 = vc.u32 %v2718_v60, %v2714_v24  ;;  %vm2738_vm3 = vc.u32 %v2730_v11, %v2734_v57 }
 0x446   : > { %v2610_v2 = vsub.s32 32, %v2609_v55  ;;  %v2614_v4 = vsub.s32 4294967266, %v2609_v55  ;;  %v2721_v45 = vsel %vm2720_vm0, 1, %v12500_v46  ;;  %v2611_v33 = vshll.u32 %v10013_v15, %v2609_v55 }
 0x447   : > { %v2723_v61 = vadd.s32 %v2721_v45, %v2719_v19  ;;  %v2739_v16 = vsel %vm2738_vm3, 1, %v12500_v46  ;;  %v2740_v34 = vadd.s32 %v2734_v57, %v2730_v11  ;;  %v2624_v13 = vsub.s32 4, %v9997_v63  ;;  %v995_v57 = vpop.f32.mrf.mxu0 }
 0x448   : > { %v2612_v48 = vshrl.u32 %v2594_v28, %v2610_v2  ;;  %v2615_v26 = vadd.s32 127, %v2614_v4  ;;  %v2691_v7 = vsel %vm2687_vm4, %v2671_v53, %v9973_v58  ;;  %v2741_v39 = vadd.s32 %v2739_v16, %v2733_v29 }
 0x449   : > { %v2724_v56 = vadd.s32 %v2723_v61, %v2713_v47  ;;  %v2693_v15 = vsel %vm2689_vm2, %v9975_v27, %v2692_v62  ;;  %vm2742_vm14 = vc.u32 %v2740_v34, %v2736_v43  ;;  %v10065_v28 = vsub.s32 32, %v9928_v22 }
 0x44a   : > { %v2613_v24 = vor.u32 %v2612_v48, %v2611_v33  ;;  %v2616_v32 = vshll.u32 %v2615_v26, 23  ;;  %v2715_v60 = vshrl.u32 %v2710_v21, 16  ;;  %v2743_v59 = vsel %vm2742_vm14, 1, %v12500_v46 }
 0x44b   : > { %vm2502_vm6 = vcmp.lt.s32.totalorder %v12553_v0, 0  ;;  %v2735_v53 = vshrl.u32 %v10029_v3, 16  ;;  %v2745_v11 = vadd.s32 %v2743_v59, %v2741_v39  ;;  %v2694_v62 = vsel %vm2688_vm5, %v2691_v7, %v2693_v15  ;;  %v12569_v3 = vld [vmem:[#allocation26_spill] sm:$0xff] }
 0x44c   : > { %v2617_v58 = vor.u32 4788187, %v2616_v32  ;;  %v2625_v27 = vsel %vm2502_vm6, %v2624_v13, %v9997_v63  ;;  %v10075_v55 = vadd.s32 %v2724_v56, %v2715_v60  ;;  %v12431_v21 = vand.u32 2147483647, %v9212_v31 }
 0x44d   : > { %v2620_v19 = vcvt.s32.f32 %v2613_v24  ;;  %v2737_v2 = vshrl.u32 %v2732_v14, 16  ;;  %v2746_v4 = vadd.s32 %v2745_v11, %v2735_v53  ;;  %v10081_v29 = vshrl.u32 %v9848_v35, 5 }
 0x44e   : > { %v2618_v47 = vand.u32 2147483647, %v2617_v58  ;;  %v10083_v33 = vadd.s32 %v2740_v34, %v2736_v43  ;;  %v10086_v30 = vadd.f32 %v995_v57, %v12546_v52  ;;  %v12565_v63 = vand.u32 2147483647, %v12553_v0 }
 0x44f   : > { %v2747_v48 = vadd.s32 %v2746_v4, %v2737_v2  ;;  %v2748_v16 = vmul.u32 %v10002_v44, %v2694_v62  ;;  %v2817_v52 = vand.u32 8388607, %v12431_v21  ;;  %v2831_v34 = vshrl.u32 %v12493_v38, %v10065_v28 }
 0x450   : > { %12564 = vst [vmem:[#allocation20_spill] sm:$0xff] %v10086_v30  ;;  %vm10090_vm4 = vcmp.le.f32.partialorder %v12565_v63, 0.7853982  ;;  %v2621_v14 = vmul.f32 %v2620_v19, %v2618_v47  ;;  %vm2750_vm2 = vc.u32 %v10075_v55, %v10083_v33  ;;  %v2834_v13 = vshrl.u32 %v12494_v5, %v10065_v28 }
 0x451   : > { %v2627_v26 = vsel %vm10090_vm4, 0, %v2625_v27  ;;  %v2751_v43 = vadd.s32 1, %v2747_v48  ;;  %v2828_v7 = vshrl.u32 %v12492_v8, %v10065_v28  ;;  %v2830_v44 = vshll.u32 %v12492_v8, %v9928_v22 }
 0x452   : > { %v2622_v35 = vxor.u32 2147483648, %v2621_v14  ;;  %v2833_v56 = vshll.u32 %v12493_v38, %v9928_v22  ;;  %v2837_v39 = vshrl.u32 %v12495_v12, %v10065_v28  ;;  %v2839_v15 = vshll.u32 %v12495_v12, %v9928_v22 }
 0x453   : > { %v2752_v32 = vsel %vm2750_vm2, %v2751_v43, %v2747_v48  ;;  %v2840_v60 = vshrl.u32 %v12497_v1, %v10065_v28  ;;  %v2827_v53 = vshll.u32 %v12491_v49, %v9928_v22  ;;  %v2836_v11 = vshll.u32 %v12494_v5, %v9928_v22 }
 0x454   : > { %v2623_v24 = vsel %vm2502_vm6, %v2622_v35, %v2621_v14  ;;  %v2753_v58 = vadd.s32 %v2752_v32, %v2748_v16  ;;  %v10130_v27 = vor.u32 %v2831_v34, %v2830_v44  ;;  %v10132_v62 = vor.u32 %v2834_v13, %v2833_v56 }
 0x455   : > { %v10122_v59 = vsel %vm10090_vm4, %v12553_v0, %v2623_v24  ;;  %v2841_v47 = vor.u32 %v2840_v60, %v2839_v15  ;;  %v10135_v19 = vadd.f32 1.0, %v9946_v10  ;;  %v10137_v2 = vand.u32 3, %v2627_v26 }
 0x456   : > { %v2628_v57 = vmul.f32 %v10122_v59, %v10122_v59  ;;  %v2754_v4 = vadd.s32 536870912, %v2753_v58  ;;  %v2838_v63 = vor.u32 %v2837_v39, %v2836_v11  ;;  %v2818_v48 = vor.u32 8388608, %v2817_v52 }
 0x457   : > { %v10139_v16 = vor.u32 %v2828_v7, %v2827_v53  ;;  %vm2842_vm5 = vcmp.lt.s32.totalorder %v10081_v29, 1  ;;  %vm2844_vm7 = vcmp.lt.s32.totalorder %v10081_v29, 3  ;;  %vm2845_vm8 = vcmp.lt.s32.totalorder %v10081_v29, 4 }
 0x458   : > { %v2629_v61 = vmul.f32 -0.001358992, %v2628_v57  ;;  %v2636_v14 = vmul.f32 -0.00019511016, %v2628_v57  ;;  %v10141_v22 = vshrl.u32 %v2754_v4, 30  ;;  %v2854_v43 = vsel %vm2842_vm5, %v10130_v27, %v10132_v62 }
 0x459   : > { %v2855_v52 = vsel %vm2845_vm8, %v2841_v47, 1326507024  ;;  %v2644_v13 = vadd.s32 3, %v2627_v26  ;;  %v2851_v7 = vsel %vm2845_vm8, %v2838_v63, 920167782  ;;  %v10159_v56 = vmul.f32 %v10016_v42, %v9780_v20 }
 0x45a   : > { %v2630_v35 = vadd.f32 0.041655596, %v2629_v61  ;;  %v2637_v10 = vadd.f32 0.008332121, %v2636_v14  ;;  %v2756_v34 = vshll.u32 %v10141_v22, 30  ;;  %v2856_v44 = vsel %vm2844_vm7, %v2838_v63, %v2855_v52 }
 0x45b   : > { %vm12432_vm9 = vcmp.lt.s32.totalorder %v10081_v29, 2  ;;  %8127 = vrcp.f32 %v10135_v19  ;;  %v10167_v15 = vshll.u32 %v2818_v48, 8  ;;  %v2850_v11 = vsel %vm2842_vm5, %v10139_v16, %v10130_v27 }
 0x45c   : > { %v2631_v39 = vmul.f32 %v2630_v35, %v2628_v57  ;;  %v2638_v24 = vmul.f32 %v2637_v10, %v2628_v57  ;;  %v10163_v32 = vsub.s32 %v2753_v58, %v2756_v34  ;;  %v2857_v26 = vsel %vm12432_vm9, %v2854_v43, %v2856_v44 }
 0x45d   : > { %v2852_v47 = vsel %vm2844_vm7, %v10132_v62, %v2851_v7  ;;  %vm5119_vm10 = vcmp.eq.s32.totalorder %v10137_v2, 0  ;;  %vm5122_vm12 = vcmp.eq.s32.totalorder %v10137_v2, 2  ;;  %v10180_v4 = vand.u32 3, %v2644_v13 }
 0x45e   : > { %v2632_v60 = vadd.f32 -0.4999988, %v2631_v39  ;;  %v2639_v53 = vadd.f32 -0.16666654, %v2638_v24  ;;  %vm2758_vm13 = vcmp.lt.s32.totalorder %v10163_v32, 0  ;;  %v2759_v58 = vsub.s32 0, %v10163_v32 }
 0x45f   : > { %vm5118_vm1 = vcmp.lt.s32.totalorder %v10137_v2, 2  ;;  %v2861_v14 = vand.u32 65535, %v2857_v26  ;;  %v2862_v48 = vshrl.u32 %v2857_v26, 16  ;;  %vm2643_vm15 = vweird.f32 %v12553_v0 }
 0x460   : > { %v2633_v63 = vmul.f32 %v2632_v60, %v2628_v57  ;;  %v2640_v61 = vmul.f32 %v2639_v53, %v2628_v57  ;;  %v2749_v35 = vadd.s32 %v10083_v33, %v10075_v55  ;;  %v2760_v10 = vsel %vm2758_vm13, %v2759_v58, %v10163_v32  ;;  %v12568_v58 = vld [vmem:[#allocation15_spill] sm:$0xff] }
 0x461   : > { %v10189_v43 = vsel %vm12432_vm9, %v2850_v11, %v2852_v47  ;;  %v2859_v52 = vand.u32 65535, %v10167_v15  ;;  %v2761_v57 = vclz %v2760_v10  ;;  %v2860_v7 = vshrl.u32 %v10167_v15, 16  ;;  %v10193_v44 = vpop.eup %8127 }
 0x462   : > { %v2634_v34 = vadd.f32 1.0, %v2633_v63  ;;  %v2641_v13 = vadd.f32 1.0, %v2640_v61  ;;  %vm2646_vm11 = vcmp.lt.s32.totalorder %v10180_v4, 2  ;;  %vm2647_vm0 = vcmp.eq.s32.totalorder %v10180_v4, 0 }
 0x463   : > { %vm2650_vm3 = vcmp.eq.s32.totalorder %v10180_v4, 2  ;;  %v2864_v55 = vmul.u32 %v2862_v48, %v2859_v52  ;;  %v7805_v24 = vadd.s32 4294967294, %v2761_v57  ;;  %v10199_v26 = vmul.u32 %v2861_v14, %v2860_v7 }
 0x464   : > { %v2642_v33 = vmul.f32 %v2641_v13, %v10122_v59  ;;  %v2651_v39 = vxor.u32 2147483648, %v2634_v34  ;;  %v2826_v60 = vshrl.u32 %v12491_v49, %v10065_v28  ;;  %v2863_v53 = vmul.u32 %v2861_v14, %v2859_v52 }
 0x465   : > { %v2867_v11 = vshll.u32 %v2864_v55, 16  ;;  %v2883_v47 = vand.u32 65535, %v10189_v43  ;;  %vm1282_vm14 = vweird.f32 %v12568_v58  ;;  %vm1283_vm6 = vweird.f32 %v8863_v9 }
 0x466   : > { %v2648_v63 = vxor.u32 2147483648, %v2642_v33  ;;  %vm7806_vm4 = vcmp.lt.s32.totalorder %v7805_v24, 0  ;;  %v2866_v61 = vmul.u32 %v2862_v48, %v2860_v7  ;;  %v2884_v59 = vshrl.u32 %v10189_v43, 16 }
 0x467   : > { %v2764_v10 = vsel %vm7806_vm4, 0, %v7805_v24  ;;  %v2869_v13 = vshll.u32 %v10199_v26, 16  ;;  %vm2871_vm2 = vc.u32 %v2863_v53, %v2867_v11  ;;  %v2873_v57 = vadd.s32 %v2867_v11, %v2863_v53 }
 0x468   : > { %v5121_v28 = vsel %vm5119_vm10, %v2634_v34, %v2648_v63  ;;  %v5124_v14 = vsel %vm5122_vm12, %v2651_v39, %v2642_v33  ;;  %v2765_v25 = vsub.s32 32, %v2764_v10  ;;  %v2769_v21 = vsub.s32 4294967266, %v2764_v10 }
 0x469   : > { %vm1297_vm13 = vweird.f32 %v8938_v51  ;;  %vm1298_vm9 = vweird.f32 %v12569_v3  ;;  %v5125_v48 = vsel %vm5118_vm1, %v5121_v28, %v5124_v14  ;;  %v2766_v43 = vshll.u32 %v10163_v32, %v2764_v10 }
 0x46a   : > { %v2872_v24 = vsel %vm2871_vm2, 1, %v12500_v46  ;;  %vm2875_vm4 = vc.u32 %v2873_v57, %v2869_v13  ;;  %v12570_v53 = vand.u32 2147483647, %v12568_v58  ;;  %v10226_v45 = vsel %vm2643_vm15, nan, %v5125_v48 }
 0x46b   : > { %12573 = vst [vmem:[#allocation12_spill] sm:$0xff] %v10226_v45  ;;  %vm2657_vm12 = vcmp.lt.s32.totalorder %v12562_v54, 0  ;;  %v2767_v23 = vshrl.u32 %v2749_v35, %v2765_v25  ;;  %v2770_v2 = vadd.s32 127, %v2769_v21  ;;  %v2874_v28 = vadd.s32 %v2872_v24, %v2866_v61  ;;  %6581 = vrot.lane.b32.xlu0 %v10226_v45, %s8178_s14 }
 0x46c   : > { %vm10220_vm10 = vcmp.eq.f32.partialorder %v12570_v53, 8.507059e+37  ;;  %v2649_v32 = vsel %vm2647_vm0, %v2634_v34, %v2648_v63  ;;  %v2652_v10 = vsel %vm2650_vm3, %v2651_v39, %v2642_v33  ;;  %v2876_v13 = vsel %vm2875_vm4, 1, %v12500_v46 }
 0x46d   : > { %v2886_v57 = vmul.u32 %v2884_v59, %v2859_v52  ;;  %v2768_v14 = vor.u32 %v2767_v23, %v2766_v43  ;;  %v2771_v48 = vshll.u32 %v2770_v2, 23  ;;  %v2653_v53 = vsel %vm2646_vm11, %v2649_v32, %v2652_v10  ;;  %v12576_v10 = vld [vmem:[#allocation16_spill] sm:$0xff] }
 0x46e   : > { %v2878_v25 = vadd.s32 %v2876_v13, %v2874_v28  ;;  %v10240_v21 = vsel %vm2643_vm15, nan, %v2653_v53  ;;  %v2885_v35 = vmul.u32 %v2883_v47, %v2859_v52  ;;  %v2887_v61 = vmul.u32 %v2883_v47, %v2860_v7  ;;  %vm1284_vm15 = vmor %vm1282_vm14, %vm1283_vm6 }
 0x46f   : > { %12574 = vst [vmem:[#allocation23_spill] sm:$0xff] %v10240_v21  ;;  %v2889_v24 = vshll.u32 %v2886_v57, 16  ;;  %v2772_v34 = vor.u32 4788187, %v2771_v48  ;;  %v2779_v63 = vsub.s32 4, %v10141_v22  ;;  %6389 = vrot.lane.b32.xlu2 %v10240_v21, %s8186_s15  ;;  %v2846_v23 = vsel %vm2842_vm5, %v2826_v60, %v10139_v16 }
 0x470   : > { %v2868_v4 = vshrl.u32 %v2864_v55, 16  ;;  %v2888_v33 = vmul.u32 %v2884_v59, %v2860_v7  ;;  %v2891_v39 = vshll.u32 %v2887_v61, 16  ;;  %v2775_v2 = vcvt.s32.f32 %v2768_v14  ;;  %v12575_v59 = vld [vmem:[#allocation31_spill] sm:$0xff] }
 0x471   : > { %vm2893_vm1 = vc.u32 %v2885_v35, %v2889_v24  ;;  %v2895_v0 = vadd.s32 %v2889_v24, %v2885_v35  ;;  %v2773_v43 = vand.u32 2147483647, %v2772_v34  ;;  %v2847_v28 = vsel %vm2845_vm8, %v10132_v62, 2102212464  ;;  %v12577_v62 = vld [vmem:[#allocation25_spill] sm:$0xff]  ;;  %vm10274_vm8 = vmor %vm1297_vm13, %vm1298_vm9 }
 0x472   : > { %v2879_v52 = vadd.s32 %v2878_v25, %v2868_v4  ;;  %v2894_v47 = vsel %vm2893_vm1, 1, %v12500_v46  ;;  %v2870_v16 = vshrl.u32 %v10199_v26, 16  ;;  %v1285_v32 = vsel %vm1284_vm15, %v8863_v9, %v12575_v59 }
 0x473   : > { %v2896_v7 = vadd.s32 %v2894_v47, %v2888_v33  ;;  %vm2897_vm5 = vc.u32 %v2895_v0, %v2891_v39  ;;  %v2776_v55 = vmul.f32 %v2775_v2, %v2773_v43  ;;  %v1296_v13 = vadd.f32 %v12569_v3, %v12576_v10 }
 0x474   : > { %v2898_v60 = vsel %vm2897_vm5, 1, %v12500_v46  ;;  %v2780_v58 = vsel %vm2657_vm12, %v2779_v63, %v10141_v22  ;;  %v2890_v14 = vshrl.u32 %v2886_v57, 16  ;;  %v10268_v26 = vsel %vm10220_vm10, %v12577_v62, %v1285_v32 }
 0x475   : > { %v2900_v48 = vadd.s32 %v2898_v60, %v2896_v7  ;;  %v2777_v53 = vxor.u32 2147483648, %v2776_v55  ;;  %v2848_v22 = vsel %vm2844_vm7, %v10130_v27, %v2847_v28  ;;  %v10281_v57 = vadd.s32 %v2879_v52, %v2870_v16  ;;  %v12583_v28 = vld [vmem:[#allocation30_spill] sm:$0xff] }
 0x476   : > { %v10284_v25 = vmul.f32 6.2831855, %v10268_v26  ;;  %v12580_v11 = vand.u32 2147483647, %v12562_v54  ;;  %v2892_v35 = vshrl.u32 %v2887_v61, 16  ;;  %v1300_v34 = vsel %vm10274_vm8, %v12569_v3, %v1296_v13 }
 0x477   : > { %v2901_v24 = vadd.s32 %v2900_v48, %v2890_v14  ;;  %v2778_v63 = vsel %vm2657_vm12, %v2777_v53, %v2776_v55  ;;  %v2899_v33 = vadd.s32 %v2895_v0, %v2891_v39  ;;  %vm12581_vm7 = vcmp.lt.s32.totalorder %v10081_v29, 2 }
 0x478   : > { %vm2656_vm11 = vcmp.le.f32.partialorder %v12580_v11, 0.7853982  ;;  %v2968_v27 = vand.u32 2139095040, %v10284_v25  ;;  %v2849_v2 = vsel %vm12581_vm7, %v2846_v23, %v2848_v22  ;;  %v12582_v61 = vand.u32 2147483647, %v8938_v51 }
 0x479   : > { %v2782_v4 = vsel %vm2656_vm11, 0, %v2780_v58  ;;  %v10295_v43 = vsel %vm2656_vm11, %v12562_v54, %v2778_v63  ;;  %v2902_v52 = vadd.s32 %v2901_v24, %v2892_v35  ;;  %vm2905_vm0 = vc.u32 %v10281_v57, %v2899_v33 }
 0x47a   : > { %vm1302_vm9 = vcmp.eq.f32.partialorder %v12582_v61, 8.507059e+37  ;;  %v2783_v3 = vmul.f32 %v10295_v43, %v10295_v43  ;;  %v2969_v47 = vshrl.u32 %v2968_v27, 23  ;;  %v12584_v0 = vsub.f32 1.0, %v9787_v50 }
 0x47b   : > { %v10305_v39 = vsel %vm1302_vm9, %v12583_v28, %v1300_v34  ;;  %v7779_v29 = vmul.f32 -1.442695, %v10086_v30  ;;  %v2799_v23 = vadd.s32 3, %v2782_v4  ;;  %v2906_v7 = vadd.s32 1, %v2902_v52 }
 0x47c   : > { %v1310_v16 = vmul.f32 %v9388_v41, %v12584_v0  ;;  %v2784_v55 = vmul.f32 -0.001358992, %v2783_v3  ;;  %v2791_v51 = vmul.f32 -0.00019511016, %v2783_v3  ;;  %v2903_v60 = vmul.u32 %v10167_v15, %v2849_v2 }
 0x47d   : > { %v7810_v59 = vadd.s32 4294967169, %v2969_v47  ;;  %v1324_v32 = vsub.f32 1.0, %v10159_v56  ;;  %v2907_v10 = vsel %vm2905_vm0, %v2906_v7, %v2902_v52  ;;  %v12435_v13 = vand.u32 2147483647, %v10284_v25 }
 0x47e   : > { %v10315_v58 = vmul.f32 6.2831855, %v10305_v39  ;;  %v2785_v50 = vadd.f32 0.041655596, %v2784_v55  ;;  %v2792_v14 = vadd.f32 0.008332121, %v2791_v51  ;;  %v2908_v48 = vadd.s32 %v2907_v10, %v2903_v60 }
 0x47f   : > { %v2975_v62 = vadd.s32 1, %v7810_v59  ;;  %v10318_v9 = vadd.f32 %v9388_v41, %v1310_v16  ;;  %v12585_v53 = vand.u32 2147483648, %v9780_v20  ;;  %v2800_v15 = vand.u32 3, %v2799_v23 }
 0x480   : > { %v5271_v11 = vand.u32 3, %v2782_v4  ;;  %v2786_v56 = vmul.f32 %v2785_v50, %v2783_v3  ;;  %v2793_v35 = vmul.f32 %v2792_v14, %v2783_v3  ;;  %v2909_v24 = vadd.s32 536870912, %v2908_v48 }
 0x481   : > { %v10322_v22 = vor.u32 1.1754944e-38, %v12585_v53  ;;  %vm2976_vm3 = vcmp.gt.s32.totalorder %v2975_v62, 0  ;;  %8129 = vpow2.f32 %v7779_v29  ;;  %v2972_v34 = vand.u32 8388607, %v12435_v13 }
 0x482   : > { %v2977_v63 = vsel %vm2976_vm3, %v2975_v62, 0  ;;  %v3123_v27 = vand.u32 2139095040, %v10315_v58  ;;  %v10328_v2 = vmul.f32 %v10016_v42, %v1324_v32  ;;  %v2787_v52 = vadd.f32 -0.4999988, %v2786_v56 }
 0x483   : > { %v2794_v61 = vadd.f32 -0.16666654, %v2793_v35  ;;  %v10330_v47 = vshrl.u32 %v2909_v24, 30  ;;  %v10334_v4 = vmul.f32 %v10193_v44, %v10135_v19  ;;  %vm5273_vm14 = vcmp.eq.s32.totalorder %v5271_v11, 0 }
 0x484   : > { %vm5276_vm6 = vcmp.eq.s32.totalorder %v5271_v11, 2  ;;  %v2979_v28 = vand.u32 31, %v2977_v63  ;;  %v2788_v0 = vmul.f32 %v2787_v52, %v2783_v3  ;;  %vm2801_vm2 = vcmp.lt.s32.totalorder %v2800_v15, 2 }
 0x485   : > { %v2795_v16 = vmul.f32 %v2794_v61, %v2783_v3  ;;  %vm2802_vm13 = vcmp.eq.s32.totalorder %v2800_v15, 0  ;;  %vm5272_vm4 = vcmp.lt.s32.totalorder %v5271_v11, 2  ;;  %v2911_v29 = vshll.u32 %v10330_v47, 30 }
 0x486   : > { %vm2798_vm10 = vweird.f32 %v12562_v54  ;;  %vm2805_vm12 = vcmp.eq.s32.totalorder %v2800_v15, 2  ;;  %v2973_v23 = vor.u32 8388608, %v2972_v34  ;;  %v10338_v7 = vsub.s32 32, %v2979_v28 }
 0x487   : > { %v3124_v55 = vshrl.u32 %v3123_v27, 23  ;;  %v2789_v51 = vadd.f32 1.0, %v2788_v0  ;;  %v2796_v60 = vadd.f32 1.0, %v2795_v16  ;;  %v2904_v59 = vadd.s32 %v2899_v33, %v10281_v57  ;;  %v10343_v10 = vpop.eup %8129 }
 0x488   : > { %v10341_v32 = vsub.s32 %v2908_v48, %v2911_v29  ;;  %v2982_v3 = vshll.u32 %v12491_v49, %v2979_v28  ;;  %v2983_v50 = vshrl.u32 %v12492_v8, %v10338_v7  ;;  %v2986_v14 = vshrl.u32 %v12493_v38, %v10338_v7 }
 0x489   : > { %v12434_v62 = vand.u32 2147483647, %v10315_v58  ;;  %v2797_v53 = vmul.f32 %v2796_v60, %v10295_v43  ;;  %v2806_v56 = vxor.u32 2147483648, %v2789_v51  ;;  %v10354_v33 = vshrl.u32 %v2977_v63, 5 }
 0x48a   : > { %vm2913_vm1 = vcmp.lt.s32.totalorder %v10341_v32, 0  ;;  %v2914_v57 = vsub.s32 0, %v10341_v32  ;;  %v2985_v48 = vshll.u32 %v12492_v8, %v2979_v28  ;;  %v10357_v35 = vshll.u32 %v2973_v23, 8 }
 0x48b   : > { %v7813_v24 = vadd.s32 4294967169, %v3124_v55  ;;  %v2803_v34 = vxor.u32 2147483648, %v2797_v53  ;;  %v10360_v52 = vor.u32 %v2983_v50, %v2982_v3  ;;  %v2988_v61 = vshll.u32 %v12493_v38, %v2979_v28 }
 0x48c   : > { %v2915_v27 = vsel %vm2913_vm1, %v2914_v57, %v10341_v32  ;;  %v2807_v43 = vsel %vm2805_vm12, %v2806_v56, %v2797_v53  ;;  %vm2812_vm15 = vcmp.lt.s32.totalorder %v9212_v31, 0  ;;  %v10365_v16 = vor.u32 %v2986_v14, %v2985_v48 }
 0x48d   : > { %v2916_v0 = vclz %v2915_v27  ;;  %v2989_v63 = vshrl.u32 %v12494_v5, %v10338_v7  ;;  %v2804_v29 = vsel %vm2802_vm13, %v2789_v51, %v2803_v34  ;;  %v5275_v23 = vsel %vm5273_vm14, %v2789_v51, %v2803_v34 }
 0x48e   : > { %v5278_v55 = vsel %vm5276_vm6, %v2806_v56, %v2797_v53  ;;  %v2991_v60 = vshll.u32 %v12494_v5, %v2979_v28  ;;  %v2808_v3 = vsel %vm2801_vm2, %v2804_v29, %v2807_v43  ;;  %v2992_v14 = vshrl.u32 %v12495_v12, %v10338_v7 }
 0x48f   : > { %v5279_v50 = vsel %vm5272_vm4, %v5275_v23, %v5278_v55  ;;  %v7808_v57 = vadd.s32 4294967294, %v2916_v0  ;;  %v10379_v48 = vsel %vm2798_vm10, nan, %v2808_v3  ;;  %v2994_v51 = vshll.u32 %v12495_v12, %v2979_v28 }
 0x490   : > { %v10383_v27 = vsel %vm2798_vm10, nan, %v5279_v50  ;;  %v2995_v15 = vshrl.u32 %v12497_v1, %v10338_v7  ;;  %6391 = vrot.lane.b32.xlu1 %v10379_v48, %s8186_s15  ;;  %v12587_v11 = vand.u32 2147483647, %v9212_v31  ;;  %v2990_v54 = vor.u32 %v2989_v63, %v2988_v61 }
 0x491   : > { %12586 = vst [vmem:[#allocation15_spill] sm:$0xff] %v10383_v27  ;;  %6583 = vrot.lane.b32.xlu2 %v10383_v27, %s8178_s14  ;;  %vm7809_vm8 = vcmp.lt.s32.totalorder %v7808_v57, 0  ;;  %v2993_v56 = vor.u32 %v2992_v14, %v2991_v60  ;;  %v10398_v34 = vadd.s32 1, %v7813_v24  ;;  %v2934_v43 = vsub.s32 4, %v10330_v47 }
 0x492   : > { %vm10394_vm5 = vcmp.le.f32.partialorder %v12587_v11, 0.7853982  ;;  %v2919_v28 = vsel %vm7809_vm8, 0, %v7808_v57  ;;  %v2996_v0 = vor.u32 %v2995_v15, %v2994_v51  ;;  %vm2997_vm11 = vcmp.lt.s32.totalorder %v10354_v33, 1 }
 0x493   : > { %v2920_v29 = vsub.s32 32, %v2919_v28  ;;  %v2924_v23 = vsub.s32 4294967266, %v2919_v28  ;;  %vm2998_vm7 = vcmp.lt.s32.totalorder %v10354_v33, 2  ;;  %vm3000_vm9 = vcmp.lt.s32.totalorder %v10354_v33, 4 }
 0x494   : > { %v2921_v55 = vshll.u32 %v10341_v32, %v2919_v28  ;;  %vm2999_vm0 = vcmp.lt.s32.totalorder %v10354_v33, 3  ;;  %v3005_v24 = vsel %vm2997_vm11, %v10360_v52, %v10365_v16  ;;  %v3006_v61 = vsel %vm3000_vm9, %v2993_v56, 920167782 }
 0x495   : > { %v2922_v63 = vshrl.u32 %v2904_v59, %v2920_v29  ;;  %v2925_v60 = vadd.s32 127, %v2924_v23  ;;  %v3007_v3 = vsel %vm2999_vm0, %v2990_v54, %v3006_v61  ;;  %v3009_v50 = vsel %vm2997_vm11, %v10365_v16, %v2990_v54 }
 0x496   : > { %v2935_v32 = vsel %vm2812_vm15, %v2934_v43, %v10330_v47  ;;  %v3008_v57 = vsel %vm2998_vm7, %v3005_v24, %v3007_v3  ;;  %v3010_v14 = vsel %vm3000_vm9, %v2996_v0, 1326507024  ;;  %v10426_v59 = vand.u32 8388607, %v12434_v62 }
 0x497   : > { %v2923_v51 = vor.u32 %v2922_v63, %v2921_v55  ;;  %v2926_v15 = vshll.u32 %v2925_v60, 23  ;;  %v3011_v11 = vsel %vm2999_vm0, %v2993_v56, %v3010_v14  ;;  %v3038_v28 = vand.u32 65535, %v3008_v57 }
 0x498   : > { %v3012_v29 = vsel %vm2998_vm7, %v3009_v50, %v3011_v11  ;;  %v3014_v47 = vand.u32 65535, %v10357_v35  ;;  %v3015_v43 = vshrl.u32 %v10357_v35, 16  ;;  %v3039_v23 = vshrl.u32 %v3008_v57, 16 }
 0x499   : > { %v2927_v24 = vor.u32 4788187, %v2926_v15  ;;  %v3016_v0 = vand.u32 65535, %v3012_v29  ;;  %v3017_v61 = vshrl.u32 %v3012_v29, 16  ;;  %vm3131_vm3 = vcmp.gt.s32.totalorder %v10398_v34, 0 }
 0x49a   : > { %v2937_v55 = vsel %vm10394_vm5, 0, %v2935_v32  ;;  %v2981_v56 = vshrl.u32 %v12491_v49, %v10338_v7  ;;  %v3041_v63 = vmul.u32 %v3039_v23, %v3014_v47  ;;  %v3042_v60 = vmul.u32 %v3038_v28, %v3015_v43 }
 0x49b   : > { %v2928_v3 = vand.u32 2147483647, %v2927_v24  ;;  %v2930_v50 = vcvt.s32.f32 %v2923_v51  ;;  %v3019_v14 = vmul.u32 %v3017_v61, %v3014_v47  ;;  %v3020_v11 = vmul.u32 %v3016_v0, %v3015_v43 }
 0x49c   : > { %v3001_v57 = vsel %vm2997_vm11, %v2981_v56, %v10360_v52  ;;  %v3040_v15 = vmul.u32 %v3038_v28, %v3014_v47  ;;  %v3043_v29 = vmul.u32 %v3039_v23, %v3015_v43  ;;  %v3044_v62 = vshll.u32 %v3041_v63, 16 }
 0x49d   : > { %v2931_v13 = vmul.f32 %v2930_v50, %v2928_v3  ;;  %v3018_v45 = vmul.u32 %v3016_v0, %v3014_v47  ;;  %v3021_v27 = vmul.u32 %v3017_v61, %v3015_v43  ;;  %v3022_v32 = vshll.u32 %v3019_v14, 16 }
 0x49e   : > { %v3024_v18 = vshll.u32 %v3020_v11, 16  ;;  %v3046_v30 = vshll.u32 %v3042_v60, 16  ;;  %vm3048_vm14 = vc.u32 %v3040_v15, %v3044_v62  ;;  %v3050_v7 = vadd.s32 %v3044_v62, %v3040_v15 }
 0x49f   : > { %v2932_v17 = vxor.u32 2147483648, %v2931_v13  ;;  %vm3026_vm6 = vc.u32 %v3018_v45, %v3022_v32  ;;  %v3028_v51 = vadd.s32 %v3022_v32, %v3018_v45  ;;  %v3049_v24 = vsel %vm3048_vm14, 1, %v12500_v46 }
 0x4a0   : > { %v3002_v21 = vsel %vm3000_vm9, %v2990_v54, 2102212464  ;;  %v3027_v52 = vsel %vm3026_vm6, 1, %v12500_v46  ;;  %v3051_v28 = vadd.s32 %v3049_v24, %v3043_v29  ;;  %vm3052_vm2 = vc.u32 %v3050_v7, %v3046_v30 }
 0x4a1   : > { %v2933_v47 = vsel %vm2812_vm15, %v2932_v17, %v2931_v13  ;;  %v3029_v43 = vadd.s32 %v3027_v52, %v3021_v27  ;;  %vm3030_vm13 = vc.u32 %v3028_v51, %v3024_v18  ;;  %v3053_v23 = vsel %vm3052_vm2, 1, %v12500_v46 }
 0x4a2   : > { %v2936_v45 = vsel %vm10394_vm5, %v9212_v31, %v2933_v47  ;;  %v3031_v62 = vsel %vm3030_vm13, 1, %v12500_v46  ;;  %v3045_v0 = vshrl.u32 %v3041_v63, 16  ;;  %v3055_v61 = vadd.s32 %v3053_v23, %v3051_v28 }
 0x4a3   : > { %v2938_v54 = vmul.f32 %v2936_v45, %v2936_v45  ;;  %v3003_v56 = vsel %vm2999_vm0, %v10365_v16, %v3002_v21  ;;  %v3023_v3 = vshrl.u32 %v3019_v14, 16  ;;  %v3033_v50 = vadd.s32 %v3031_v62, %v3029_v43 }
 0x4a4   : > { %v3047_v17 = vshrl.u32 %v3042_v60, 16  ;;  %v3056_v13 = vadd.s32 %v3055_v61, %v3045_v0  ;;  %v3128_v18 = vor.u32 8388608, %v10426_v59  ;;  %v3132_v27 = vsel %vm3131_vm3, %v10398_v34, 0 }
 0x4a5   : > { %v2939_v53 = vmul.f32 -0.001358992, %v2938_v54  ;;  %v2946_v15 = vmul.f32 -0.00019511016, %v2938_v54  ;;  %v3025_v29 = vshrl.u32 %v3020_v11, 16  ;;  %v3034_v63 = vadd.s32 %v3033_v50, %v3023_v3 }
 0x4a6   : > { %v3004_v32 = vsel %vm2998_vm7, %v3001_v57, %v3003_v56  ;;  %v3057_v51 = vadd.s32 %v3056_v13, %v3047_v17  ;;  %v2954_v24 = vadd.s32 3, %v2937_v55  ;;  %v3134_v21 = vand.u32 31, %v3132_v27 }
 0x4a7   : > { %v2940_v16 = vadd.f32 0.041655596, %v2939_v53  ;;  %v2947_v14 = vadd.f32 0.008332121, %v2946_v15  ;;  %v10462_v60 = vadd.s32 %v3034_v63, %v3025_v29  ;;  %v10464_v52 = vadd.s32 %v3050_v7, %v3046_v30 }
 0x4a8   : > { %v10467_v59 = vadd.f32 1.0, %v10343_v10  ;;  %v5425_v34 = vand.u32 3, %v2937_v55  ;;  %v3061_v28 = vadd.s32 1, %v3057_v51  ;;  %v10469_v47 = vsub.s32 32, %v3134_v21 }
 0x4a9   : > { %v2941_v11 = vmul.f32 %v2940_v16, %v2938_v54  ;;  %v2948_v43 = vmul.f32 %v2947_v14, %v2938_v54  ;;  %v3058_v33 = vmul.u32 %v10357_v35, %v3004_v32  ;;  %vm3060_vm4 = vc.u32 %v10462_v60, %v10464_v52 }
 0x4aa   : > { %v3062_v57 = vsel %vm3060_vm4, %v3061_v28, %v3057_v51  ;;  %v10474_v23 = vand.u32 3, %v2954_v24  ;;  %v10476_v62 = vshrl.u32 %v3132_v27, 5  ;;  %v10478_v30 = vshll.u32 %v3128_v18, 8 }
 0x4ab   : > { %v2942_v10 = vadd.f32 -0.4999988, %v2941_v11  ;;  %v2949_v7 = vadd.f32 -0.16666654, %v2948_v43  ;;  %v3063_v55 = vadd.s32 %v3062_v57, %v3058_v33  ;;  %v3137_v0 = vshll.u32 %v12491_v49, %v3134_v21 }
 0x4ac   : > { %v3138_v61 = vshrl.u32 %v12492_v8, %v10469_v47  ;;  %v3141_v35 = vshrl.u32 %v12493_v38, %v10469_v47  ;;  %v3144_v56 = vshrl.u32 %v12494_v5, %v10469_v47  ;;  %v3146_v3 = vshll.u32 %v12494_v5, %v3134_v21 }
 0x4ad   : > { %v2943_v50 = vmul.f32 %v2942_v10, %v2938_v54  ;;  %v2950_v17 = vmul.f32 %v2949_v7, %v2938_v54  ;;  %vm5426_vm10 = vcmp.lt.s32.totalorder %v5425_v34, 2  ;;  %v3064_v13 = vadd.s32 536870912, %v3063_v55 }
 0x4ae   : > { %v3147_v18 = vshrl.u32 %v12495_v12, %v10469_v47  ;;  %vm2953_vm12 = vweird.f32 %v9212_v31  ;;  %v3140_v27 = vshll.u32 %v12492_v8, %v3134_v21  ;;  %v3143_v53 = vshll.u32 %v12493_v38, %v3134_v21 }
 0x4af   : > { %v3149_v15 = vshll.u32 %v12495_v12, %v3134_v21  ;;  %v3150_v29 = vshrl.u32 %v12497_v1, %v10469_v47  ;;  %v2944_v63 = vadd.f32 1.0, %v2943_v50  ;;  %v2951_v32 = vadd.f32 1.0, %v2950_v17 }
 0x4b0   : > { %v10496_v51 = vshrl.u32 %v3064_v13, 30  ;;  %v3148_v54 = vor.u32 %v3147_v18, %v3146_v3  ;;  %v3139_v24 = vor.u32 %v3138_v61, %v3137_v0  ;;  %v10498_v16 = vor.u32 %v3141_v35, %v3140_v27 }
 0x4b1   : > { %v3145_v14 = vor.u32 %v3144_v56, %v3143_v53  ;;  %v3151_v28 = vor.u32 %v3150_v29, %v3149_v15  ;;  %v2952_v11 = vmul.f32 %v2951_v32, %v2936_v45  ;;  %v2961_v43 = vxor.u32 2147483648, %v2944_v63 }
 0x4b2   : > { %v3066_v33 = vshll.u32 %v10496_v51, 30  ;;  %vm3155_vm1 = vcmp.lt.s32.totalorder %v10476_v62, 4  ;;  %vm5427_vm15 = vcmp.eq.s32.totalorder %v5425_v34, 0  ;;  %vm5430_vm5 = vcmp.eq.s32.totalorder %v5425_v34, 2 }
 0x4b3   : > { %v3161_v21 = vsel %vm3155_vm1, %v3148_v54, 920167782  ;;  %v10505_v57 = vand.u32 65535, %v10478_v30  ;;  %v2958_v10 = vxor.u32 2147483648, %v2952_v11  ;;  %vm2956_vm8 = vcmp.lt.s32.totalorder %v10474_v23, 2 }
 0x4b4   : > { %v10507_v7 = vsub.s32 %v3063_v55, %v3066_v33  ;;  %vm3152_vm11 = vcmp.lt.s32.totalorder %v10476_v62, 1  ;;  %vm3154_vm7 = vcmp.lt.s32.totalorder %v10476_v62, 3  ;;  %v5432_v45 = vsel %vm5430_vm5, %v2961_v43, %v2952_v11 }
 0x4b5   : > { %v3160_v0 = vsel %vm3152_vm11, %v3139_v24, %v10498_v16  ;;  %v3164_v61 = vsel %vm3152_vm11, %v10498_v16, %v3145_v14  ;;  %v3165_v35 = vsel %vm3155_vm1, %v3151_v28, 1326507024  ;;  %v5429_v55 = vsel %vm5427_vm15, %v2944_v63, %v2958_v10 }
 0x4b6   : > { %vm3068_vm9 = vcmp.lt.s32.totalorder %v10507_v7, 0  ;;  %v3069_v56 = vsub.s32 0, %v10507_v7  ;;  %v3162_v3 = vsel %vm3154_vm7, %v3145_v14, %v3161_v21  ;;  %v5433_v50 = vsel %vm5426_vm10, %v5429_v55, %v5432_v45 }
 0x4b7   : > { %vm3153_vm0 = vcmp.lt.s32.totalorder %v10476_v62, 2  ;;  %v3166_v17 = vsel %vm3154_vm7, %v3148_v54, %v3165_v35  ;;  %v3170_v13 = vshrl.u32 %v10478_v30, 16  ;;  %v10531_v18 = vsel %vm2953_vm12, nan, %v5433_v50 }
 0x4b8   : > { %12590 = vst [vmem:[#allocation26_spill] sm:$0xff] %v10531_v18  ;;  %v3070_v27 = vsel %vm3068_vm9, %v3069_v56, %v10507_v7  ;;  %v3136_v53 = vshrl.u32 %v12491_v49, %v10469_v47  ;;  %v3167_v34 = vsel %vm3153_vm0, %v3164_v61, %v3166_v17  ;;  %vm1312_vm3 = vweird.f32 %v9207_v37  ;;  %6585 = vrot.lane.b32.xlu0 %v10531_v18, %s8178_s14 }
 0x4b9   : > { %vm1313_vm14 = vweird.f32 %v9388_v41  ;;  %v3071_v15 = vclz %v3070_v27  ;;  %v3163_v29 = vsel %vm3153_vm0, %v3160_v0, %v3162_v3  ;;  %v3171_v32 = vand.u32 65535, %v3167_v34 }
 0x4ba   : > { %v3172_v54 = vshrl.u32 %v3167_v34, 16  ;;  %v3059_v28 = vadd.s32 %v10464_v52, %v10462_v60  ;;  %vm2957_vm6 = vcmp.eq.s32.totalorder %v10474_v23, 0  ;;  %vm2960_vm2 = vcmp.eq.s32.totalorder %v10474_v23, 2 }
 0x4bb   : > { %v10550_v47 = vsel %vm3152_vm11, %v3136_v53, %v3139_v24  ;;  %vm1327_vm13 = vweird.f32 %v9780_v20  ;;  %vm1328_vm4 = vweird.f32 %v10016_v42  ;;  %v7811_v33 = vadd.s32 4294967294, %v3071_v15 }
 0x4bc   : > { %v3174_v45 = vmul.u32 %v3172_v54, %v10505_v57  ;;  %v3175_v0 = vmul.u32 %v3171_v32, %v3170_v13  ;;  %v2959_v61 = vsel %vm2957_vm6, %v2944_v63, %v2958_v10  ;;  %v2962_v60 = vsel %vm2960_vm2, %v2961_v43, %v2952_v11  ;;  %vm10596_vm9 = vmor %vm1327_vm13, %vm1328_vm4 }
 0x4bd   : > { %v3193_v52 = vand.u32 65535, %v3163_v29  ;;  %v3194_v35 = vshrl.u32 %v3163_v29, 16  ;;  %vm7812_vm10 = vcmp.lt.s32.totalorder %v7811_v33, 0  ;;  %v2963_v55 = vsel %vm2956_vm8, %v2959_v61, %v2962_v60  ;;  %vm10583_vm8 = vmor %vm1312_vm3, %vm1313_vm14 }
 0x4be   : > { %v3173_v24 = vmul.u32 %v3171_v32, %v10505_v57  ;;  %v3177_v56 = vshll.u32 %v3174_v45, 16  ;;  %v12591_v3 = vand.u32 2147483647, %v9207_v37  ;;  %v3074_v17 = vsel %vm7812_vm10, 0, %v7811_v33 }
 0x4bf   : > { %v10567_v63 = vsel %vm2953_vm12, nan, %v2963_v55  ;;  %v3157_v11 = vsel %vm3155_vm1, %v3145_v14, 2102212464  ;;  %v3176_v43 = vmul.u32 %v3172_v54, %v3170_v13  ;;  %v3075_v23 = vsub.s32 32, %v3074_v17 }
 0x4c0   : > { %vm10561_vm15 = vcmp.eq.f32.partialorder %v12591_v3, 8.507059e+37  ;;  %12594 = vst [vmem:[#allocation31_spill] sm:$0xff] %v10567_v63  ;;  %v3079_v10 = vsub.s32 4294967266, %v3074_v17  ;;  %6393 = vrot.lane.b32.xlu2 %v10567_v63, %s8186_s15  ;;  %v3179_v27 = vshll.u32 %v3175_v0, 16  ;;  %vm3181_vm5 = vc.u32 %v3173_v24, %v3177_v56  ;;  %v10894_v63 = vpop.permute.xlu1 %6713 }
 0x4c1   : > { %v3182_v53 = vsel %vm3181_vm5, 1, %v12500_v46  ;;  %v3183_v34 = vadd.s32 %v3177_v56, %v3173_v24  ;;  %v3196_v15 = vmul.u32 %v3194_v35, %v10505_v57  ;;  %v3197_v29 = vmul.u32 %v3193_v52, %v3170_v13  ;;  %12618 = vst [vmem:[#allocation40_spill] sm:$0xff] %v10894_v63 }
 0x4c2   : > { %vm2967_vm12 = vcmp.lt.s32.totalorder %v10284_v25, 0  ;;  %v3076_v31 = vshll.u32 %v10507_v7, %v3074_v17  ;;  %v3077_v32 = vshrl.u32 %v3059_v28, %v3075_v23  ;;  %v3080_v14 = vadd.s32 127, %v3079_v10  ;;  %v12599_v10 = vld [vmem:[#allocation17_spill] sm:$0xff] }
 0x4c3   : > { %v3184_v54 = vadd.s32 %v3182_v53, %v3176_v43  ;;  %v3178_v33 = vshrl.u32 %v3174_v45, 16  ;;  %vm3185_vm1 = vc.u32 %v3183_v34, %v3179_v27  ;;  %v3195_v61 = vmul.u32 %v3193_v52, %v10505_v57 }
 0x4c4   : > { %v3199_v60 = vshll.u32 %v3196_v15, 16  ;;  %v3078_v55 = vor.u32 %v3077_v32, %v3076_v31  ;;  %v3081_v3 = vshll.u32 %v3080_v14, 23  ;;  %v3186_v21 = vsel %vm3185_vm1, 1, %v12500_v46 }
 0x4c5   : > { %v3198_v24 = vmul.u32 %v3194_v35, %v3170_v13  ;;  %v3188_v7 = vadd.s32 %v3186_v21, %v3184_v54  ;;  %v3201_v28 = vshll.u32 %v3197_v29, 16  ;;  %v3180_v57 = vshrl.u32 %v3175_v0, 16 }
 0x4c6   : > { %vm3203_vm11 = vc.u32 %v3195_v61, %v3199_v60  ;;  %v3205_v45 = vadd.s32 %v3199_v60, %v3195_v61  ;;  %v3082_v17 = vor.u32 4788187, %v3081_v3  ;;  %v1315_v13 = vsel %vm10583_vm8, %v9388_v41, %v10318_v9 }
 0x4c7   : > { %v3204_v52 = vsel %vm3203_vm11, 1, %v12500_v46  ;;  %v3085_v21 = vcvt.s32.f32 %v3078_v55  ;;  %v3189_v35 = vadd.s32 %v3188_v7, %v3178_v33  ;;  %v10604_v27 = vsel %vm10561_vm15, %v12599_v10, %v1315_v13 }
 0x4c8   : > { %v3206_v43 = vadd.s32 %v3204_v52, %v3198_v24  ;;  %vm3207_vm3 = vc.u32 %v3205_v45, %v3201_v28  ;;  %v3083_v0 = vand.u32 2147483647, %v3082_v17  ;;  %v1326_v41 = vadd.f32 %v10016_v42, %v10328_v2 }
 0x4c9   : > { %v3208_v23 = vsel %vm3207_vm3, 1, %v12500_v46  ;;  %v3158_v9 = vsel %vm3154_vm7, %v10498_v16, %v3157_v11  ;;  %v3200_v53 = vshrl.u32 %v3196_v15, 16  ;;  %v10612_v31 = vmul.f32 6.2831855, %v10604_v27 }
 0x4ca   : > { %v3210_v34 = vadd.s32 %v3208_v23, %v3206_v43  ;;  %v3086_v32 = vmul.f32 %v3085_v21, %v3083_v0  ;;  %v10614_v14 = vadd.s32 %v3189_v35, %v3180_v57  ;;  %v1330_v50 = vsel %vm10596_vm9, %v10016_v42, %v1326_v41 }
 0x4cb   : > { %v12600_v54 = vand.u32 2147483647, %v9780_v20  ;;  %v12601_v2 = vsub.s32 4, %v10496_v51  ;;  %v3202_v11 = vshrl.u32 %v3197_v29, 16  ;;  %v12443_v33 = vand.u32 2147483647, %v10612_v31 }
 0x4cc   : > { %v3211_v15 = vadd.s32 %v3210_v34, %v3200_v53  ;;  %8131 = vrcp.f32 %v10467_v59  ;;  %v3087_v61 = vxor.u32 2147483648, %v3086_v32  ;;  %v3209_v60 = vadd.s32 %v3205_v45, %v3201_v28 }
 0x4cd   : > { %vm1332_vm14 = vcmp.eq.f32.partialorder %v12600_v54, 8.507059e+37  ;;  %v3090_v16 = vsel %vm2967_vm12, %v12601_v2, %v10496_v51  ;;  %v3278_v55 = vand.u32 2139095040, %v10612_v31  ;;  %v12602_v42 = vand.u32 2147483647, %v10284_v25 }
 0x4ce   : > { %v3159_v20 = vsel %vm3153_vm0, %v10550_v47, %v3158_v9  ;;  %v3212_v3 = vadd.s32 %v3211_v15, %v3202_v11  ;;  %v10635_v51 = vsel %vm1332_vm14, %v10322_v22, %v1330_v50  ;;  %v3088_v29 = vsel %vm2967_vm12, %v3087_v61, %v3086_v32 }
 0x4cf   : > { %vm2966_vm7 = vcmp.le.f32.partialorder %v12602_v42, 0.7853982  ;;  %12603 = vst [vmem:[#allocation16_spill] sm:$0xff] %v10635_v51  ;;  %vm3215_vm6 = vc.u32 %v10614_v14, %v3209_v60  ;;  %v3279_v56 = vshrl.u32 %v3278_v55, 23  ;;  %v3282_v62 = vand.u32 8388607, %v12443_v33  ;;  %v10713_v33 = vpop.permute.xlu0 %6711 }
 0x4d0   : > { %v10639_v24 = vsel %vm2966_vm7, 0, %v3090_v16  ;;  %v10643_v7 = vsel %vm2966_vm7, %v10284_v25, %v3088_v29  ;;  %v3216_v28 = vadd.s32 1, %v3212_v3  ;;  %v10648_v47 = vmul.f32 6.2831855, %v10635_v51  ;;  %12607 = vst [vmem:[#allocation25_spill] sm:$0xff] %v10713_v33 }
 0x4d1   : > { %v3093_v22 = vmul.f32 %v10643_v7, %v10643_v7  ;;  %v3213_v45 = vmul.u32 %v10478_v30, %v3159_v20  ;;  %v7816_v17 = vadd.s32 4294967169, %v3279_v56  ;;  %v1339_v57 = vsub.f32 1.0, %v10334_v4 }
 0x4d2   : > { %v3109_v13 = vadd.s32 3, %v10639_v24  ;;  %v3217_v37 = vsel %vm3215_vm6, %v3216_v28, %v3212_v3  ;;  %v10656_v21 = vpop.eup %8131  ;;  %v3283_v9 = vor.u32 8388608, %v3282_v62  ;;  %v3433_v30 = vand.u32 2139095040, %v10648_v47 }
 0x4d3   : > { %v3094_v35 = vmul.f32 -0.001358992, %v3093_v22  ;;  %v3101_v43 = vmul.f32 -0.00019511016, %v3093_v22  ;;  %v3218_v0 = vadd.s32 %v3217_v37, %v3213_v45  ;;  %v3285_v23 = vadd.s32 1, %v7816_v17 }
 0x4d4   : > { %v10662_v32 = vmul.f32 %v10193_v44, %v1339_v57  ;;  %v3110_v54 = vand.u32 3, %v3109_v13  ;;  %v10667_v16 = vmul.f32 %v10656_v21, %v10467_v59  ;;  %v12604_v55 = vand.u32 2147483647, %v10315_v58 }
 0x4d5   : > { %v3095_v53 = vadd.f32 0.041655596, %v3094_v35  ;;  %v3102_v4 = vadd.f32 0.008332121, %v3101_v43  ;;  %v3219_v34 = vadd.s32 536870912, %v3218_v0  ;;  %vm3286_vm0 = vcmp.gt.s32.totalorder %v3285_v23, 0 }
 0x4d6   : > { %v3287_v2 = vsel %vm3286_vm0, %v3285_v23, 0  ;;  %vm10671_vm2 = vcmp.le.f32.partialorder %v12604_v55, 0.7853982  ;;  %v10675_v3 = vshll.u32 %v3283_v9, 8  ;;  %v12442_v29 = vand.u32 2147483647, %v10648_v47 }
 0x4d7   : > { %v3096_v11 = vmul.f32 %v3095_v53, %v3093_v22  ;;  %v3103_v15 = vmul.f32 %v3102_v4, %v3093_v22  ;;  %v3220_v61 = vshrl.u32 %v3219_v34, 30  ;;  %v3289_v20 = vand.u32 31, %v3287_v2 }
 0x4d8   : > { %v3434_v56 = vshrl.u32 %v3433_v30, 23  ;;  %vm3122_vm13 = vcmp.lt.s32.totalorder %v10315_v58, 0  ;;  %vm3112_vm4 = vcmp.eq.s32.totalorder %v3110_v54, 0  ;;  %vm3115_vm10 = vcmp.eq.s32.totalorder %v3110_v54, 2 }
 0x4d9   : > { %v3097_v28 = vadd.f32 -0.4999988, %v3096_v11  ;;  %v3104_v62 = vadd.f32 -0.16666654, %v3103_v15  ;;  %v3221_v45 = vshll.u32 %v3220_v61, 30  ;;  %v3244_v17 = vsub.s32 4, %v3220_v61 }
 0x4da   : > { %v3290_v57 = vsub.s32 32, %v3289_v20  ;;  %vm3111_vm15 = vcmp.lt.s32.totalorder %v3110_v54, 2  ;;  %v3214_v35 = vadd.s32 %v3209_v60, %v10614_v14  ;;  %vm3108_vm5 = vweird.f32 %v10284_v25  ;;  %v8004_v25 = vld [vmem:[%s12364_s11 + $0x64] sm:$0xf0] }
 0x4db   : > { %v3098_v13 = vmul.f32 %v3097_v28, %v3093_v22  ;;  %v3105_v37 = vmul.f32 %v3104_v62, %v3093_v22  ;;  %v3222_v43 = vsub.s32 %v3218_v0, %v3221_v45  ;;  %v10681_v23 = vshrl.u32 %v3287_v2, 5 }
 0x4dc   : > { %v10684_v9 = vand.u32 65535, %v10675_v3  ;;  %v7819_v30 = vadd.s32 4294967169, %v3434_v56  ;;  %v10688_v53 = vand.u32 8388607, %v12442_v29  ;;  %v3245_v14 = vsel %vm3122_vm13, %v3244_v17, %v3220_v61 }
 0x4dd   : > { %v10690_v4 = vadd.f32 1.0, %v3098_v13  ;;  %v3106_v34 = vadd.f32 1.0, %v3105_v37  ;;  %vm3223_vm12 = vcmp.lt.s32.totalorder %v3222_v43, 0  ;;  %v3224_v22 = vsub.s32 0, %v3222_v43 }
 0x4de   : > { %v3292_v60 = vshll.u32 %v12491_v49, %v3289_v20  ;;  %v3293_v0 = vshrl.u32 %v12492_v8, %v3290_v57  ;;  %v3299_v2 = vshrl.u32 %v12494_v5, %v3290_v57  ;;  %v3296_v56 = vshrl.u32 %v12493_v38, %v3290_v57 }
 0x4df   : > { %v10698_v11 = vmul.f32 %v3106_v34, %v10643_v7  ;;  %v12444_v15 = vxor.u32 2147483648, %v10690_v4  ;;  %v3225_v55 = vsel %vm3223_vm12, %v3224_v22, %v3222_v43  ;;  %v3295_v62 = vshll.u32 %v12492_v8, %v3289_v20 }
 0x4e0   : > { %v3226_v28 = vclz %v3225_v55  ;;  %v3298_v45 = vshll.u32 %v12493_v38, %v3289_v20  ;;  %v3302_v61 = vshrl.u32 %v12495_v12, %v3290_v57  ;;  %v10708_v13 = vsel %vm10671_vm2, 0, %v3245_v14 }
 0x4e1   : > { %v12445_v17 = vxor.u32 2147483648, %v10698_v11  ;;  %v3301_v7 = vshll.u32 %v12494_v5, %v3289_v20  ;;  %v3305_v37 = vshrl.u32 %v12497_v1, %v3290_v57  ;;  %v3294_v22 = vor.u32 %v3293_v0, %v3292_v60 }
 0x4e2   : > { %v7814_v34 = vadd.s32 4294967294, %v3226_v28  ;;  %v3300_v29 = vor.u32 %v3299_v2, %v3298_v45  ;;  %v3304_v55 = vshll.u32 %v12495_v12, %v3289_v20  ;;  %v3117_v14 = vsel %vm3115_vm10, %v12444_v15, %v10698_v11 }
 0x4e3   : > { %v3114_v52 = vsel %vm3112_vm4, %v10690_v4, %v12445_v17  ;;  %v3297_v10 = vor.u32 %v3296_v56, %v3295_v62  ;;  %v3303_v41 = vor.u32 %v3302_v61, %v3301_v7  ;;  %v3291_v60 = vshrl.u32 %v12491_v49, %v3290_v57 }
 0x4e4   : > { %v3118_v28 = vsel %vm3111_vm15, %v3114_v52, %v3117_v14  ;;  %vm7815_vm1 = vcmp.lt.s32.totalorder %v7814_v34, 0  ;;  %v3306_v20 = vor.u32 %v3305_v37, %v3304_v55  ;;  %vm3307_vm8 = vcmp.lt.s32.totalorder %v10681_v23, 1 }
 0x4e5   : > { %v10727_v0 = vsel %vm3108_vm5, nan, %v3118_v28  ;;  %v3229_v2 = vsel %vm7815_vm1, 0, %v7814_v34  ;;  %vm3310_vm11 = vcmp.lt.s32.totalorder %v10681_v23, 4  ;;  %vm3308_vm9 = vcmp.lt.s32.totalorder %v10681_v23, 2 }
 0x4e6   : > { %12608 = vst [vmem:[#allocation30_spill] sm:$0xff] %v10727_v0  ;;  %6395 = vrot.lane.b32.xlu1 %v10727_v0, %s8186_s15  ;;  %v3230_v56 = vsub.s32 32, %v3229_v2  ;;  %v3234_v62 = vsub.s32 4294967266, %v3229_v2  ;;  %v3312_v52 = vsel %vm3310_vm11, %v3300_v29, 2102212464  ;;  %v3231_v54 = vshll.u32 %v3222_v43, %v3229_v2 }
 0x4e7   : > { %vm3309_vm3 = vcmp.lt.s32.totalorder %v10681_v23, 3  ;;  %v3315_v57 = vsel %vm3307_vm8, %v3294_v22, %v3297_v10  ;;  %v3316_v45 = vsel %vm3310_vm11, %v3303_v41, 920167782  ;;  %v3319_v34 = vsel %vm3307_vm8, %v3297_v10, %v3300_v29 }
 0x4e8   : > { %v3232_v61 = vshrl.u32 %v3214_v35, %v3230_v56  ;;  %v3235_v7 = vadd.s32 127, %v3234_v62  ;;  %v3317_v37 = vsel %vm3309_vm3, %v3300_v29, %v3316_v45  ;;  %v3311_v55 = vsel %vm3307_vm8, %v3291_v60, %v3294_v22 }
 0x4e9   : > { %v3313_v14 = vsel %vm3309_vm3, %v3297_v10, %v3312_v52  ;;  %v3318_v28 = vsel %vm3308_vm9, %v3315_v57, %v3317_v37  ;;  %v3320_v15 = vsel %vm3310_vm11, %v3306_v20, 1326507024  ;;  %v3325_v35 = vshrl.u32 %v10675_v3, 16  ;;  %v10747_v52 = vpop.permute.xlu0 %6717 }
 0x4ea   : > { %v3233_v17 = vor.u32 %v3232_v61, %v3231_v54  ;;  %v3236_v43 = vshll.u32 %v3235_v7, 23  ;;  %v3321_v2 = vsel %vm3309_vm3, %v3303_v41, %v3320_v15  ;;  %v3348_v50 = vand.u32 65535, %v3318_v28  ;;  %12609 = vst [vmem:[#allocation17_spill] sm:$0xff] %v10747_v52 }
 0x4eb   : > { %v3322_v18 = vsel %vm3308_vm9, %v3319_v34, %v3321_v2  ;;  %v3349_v56 = vshrl.u32 %v3318_v28, 16  ;;  %v3440_v62 = vadd.s32 1, %v7819_v30  ;;  %v10750_v20 = vadd.s32 3, %v10708_v13 }
 0x4ec   : > { %v3237_v29 = vor.u32 4788187, %v3236_v43  ;;  %v3326_v22 = vand.u32 65535, %v3322_v18  ;;  %v3327_v10 = vshrl.u32 %v3322_v18, 16  ;;  %v10754_v41 = vsel %vm3308_vm9, %v3311_v55, %v3313_v14 }
 0x4ed   : > { %v3351_v15 = vmul.u32 %v3349_v56, %v10684_v9  ;;  %v3352_v54 = vmul.u32 %v3348_v50, %v3325_v35  ;;  %v3240_v45 = vcvt.s32.f32 %v3233_v17  ;;  %v3350_v18 = vmul.u32 %v3348_v50, %v10684_v9 }
 0x4ee   : > { %v3238_v57 = vand.u32 2147483647, %v3237_v29  ;;  %v3329_v30 = vmul.u32 %v3327_v10, %v10684_v9  ;;  %v3330_v61 = vmul.u32 %v3326_v22, %v3325_v35  ;;  %v3353_v7 = vmul.u32 %v3349_v56, %v3325_v35 }
 0x4ef   : > { %v3354_v37 = vshll.u32 %v3351_v15, 16  ;;  %vm3441_vm14 = vcmp.gt.s32.totalorder %v3440_v62, 0  ;;  %v3328_v28 = vmul.u32 %v3326_v22, %v10684_v9  ;;  %v3331_v43 = vmul.u32 %v3327_v10, %v3325_v35 }
 0x4f0   : > { %v3241_v34 = vmul.f32 %v3240_v45, %v3238_v57  ;;  %v3332_v23 = vshll.u32 %v3329_v30, 16  ;;  %v3334_v55 = vshll.u32 %v3330_v61, 16  ;;  %v3356_v14 = vshll.u32 %v3352_v54, 16 }
 0x4f1   : > { %vm3358_vm7 = vc.u32 %v3350_v18, %v3354_v37  ;;  %v3360_v2 = vadd.s32 %v3354_v37, %v3350_v18  ;;  %v3442_v56 = vsel %vm3441_vm14, %v3440_v62, 0  ;;  %v3355_v45 = vshrl.u32 %v3351_v15, 16  ;;  %v10770_v62 = vpop.permute.xlu0 %6719 }
 0x4f2   : > { %v3242_v60 = vxor.u32 2147483648, %v3241_v34  ;;  %vm3336_vm6 = vc.u32 %v3328_v28, %v3332_v23  ;;  %v3338_v17 = vadd.s32 %v3332_v23, %v3328_v28  ;;  %v3359_v29 = vsel %vm3358_vm7, 1, %v12500_v46  ;;  %12610 = vst [vmem:[#allocation34_spill] sm:$0xff] %v10770_v62 }
 0x4f3   : > { %v3337_v52 = vsel %vm3336_vm6, 1, %v12500_v46  ;;  %v3361_v50 = vadd.s32 %v3359_v29, %v3353_v7  ;;  %vm3362_vm0 = vc.u32 %v3360_v2, %v3356_v14  ;;  %v3333_v7 = vshrl.u32 %v3329_v30, 16 }
 0x4f4   : > { %v3243_v9 = vsel %vm3122_vm13, %v3242_v60, %v3241_v34  ;;  %v3339_v35 = vadd.s32 %v3337_v52, %v3331_v43  ;;  %vm3340_vm4 = vc.u32 %v3338_v17, %v3334_v55  ;;  %v3363_v22 = vsel %vm3362_vm0, 1, %v12500_v46 }
 0x4f5   : > { %v3246_v10 = vsel %vm10671_vm2, %v10315_v58, %v3243_v9  ;;  %v3341_v57 = vsel %vm3340_vm4, 1, %v12500_v46  ;;  %v3365_v18 = vadd.s32 %v3363_v22, %v3361_v50  ;;  %v3444_v23 = vand.u32 31, %v3442_v56 }
 0x4f6   : > { %v3248_v37 = vmul.f32 %v3246_v10, %v3246_v10  ;;  %v3343_v28 = vadd.s32 %v3341_v57, %v3339_v35  ;;  %v3335_v29 = vshrl.u32 %v3330_v61, 16  ;;  %v3357_v60 = vshrl.u32 %v3352_v54, 16 }
 0x4f7   : > { %v10772_v52 = vadd.s32 %v3360_v2, %v3356_v14  ;;  %v3366_v34 = vadd.s32 %v3365_v18, %v3355_v45  ;;  %v10774_v42 = vsub.s32 32, %v3444_v23  ;;  %v10776_v33 = vshrl.u32 %v3442_v56, 5 }
 0x4f8   : > { %v3249_v43 = vmul.f32 -0.001358992, %v3248_v37  ;;  %v3256_v55 = vmul.f32 -0.00019511016, %v3248_v37  ;;  %v3344_v17 = vadd.s32 %v3343_v28, %v3333_v7  ;;  %v3447_v15 = vshll.u32 %v12491_v49, %v3444_v23 }
 0x4f9   : > { %v3367_v9 = vadd.s32 %v3366_v34, %v3357_v60  ;;  %v3450_v30 = vshll.u32 %v12492_v8, %v3444_v23  ;;  %v3453_v54 = vshll.u32 %v12493_v38, %v3444_v23  ;;  %v3448_v14 = vshrl.u32 %v12492_v8, %v10774_v42 }
 0x4fa   : > { %v3250_v50 = vadd.f32 0.041655596, %v3249_v43  ;;  %v3257_v35 = vadd.f32 0.008332121, %v3256_v55  ;;  %v10780_v22 = vadd.s32 %v3344_v17, %v3335_v29  ;;  %v3451_v2 = vshrl.u32 %v12493_v38, %v10774_v42 }
 0x4fb   : > { %v3371_v61 = vadd.s32 1, %v3367_v9  ;;  %v3454_v56 = vshrl.u32 %v12494_v5, %v10774_v42  ;;  %v3368_v18 = vmul.u32 %v10675_v3, %v10754_v41  ;;  %v10793_v28 = vor.u32 %v3448_v14, %v3447_v15 }
 0x4fc   : > { %v3251_v57 = vmul.f32 %v3250_v50, %v3248_v37  ;;  %v3258_v45 = vmul.f32 %v3257_v35, %v3248_v37  ;;  %vm3370_vm2 = vc.u32 %v10780_v22, %v10772_v52  ;;  %v10795_v29 = vor.u32 %v3451_v2, %v3450_v30  ;;  %v10807_v35 = vpop.permute.xlu0 %6725 }
 0x4fd   : > { %v3372_v7 = vsel %vm3370_vm2, %v3371_v61, %v3367_v9  ;;  %vm3462_vm13 = vcmp.lt.s32.totalorder %v10776_v33, 1  ;;  %v3456_v55 = vshll.u32 %v12494_v5, %v3444_v23  ;;  %v10799_v17 = vor.u32 %v3454_v56, %v3453_v54  ;;  %12611 = vst [vmem:[#allocation35_spill] sm:$0xff] %v10807_v35 }
 0x4fe   : > { %v3252_v60 = vadd.f32 -0.4999988, %v3251_v57  ;;  %v3259_v34 = vadd.f32 -0.16666654, %v3258_v45  ;;  %v3373_v43 = vadd.s32 %v3372_v7, %v3368_v18  ;;  %v3457_v3 = vshrl.u32 %v12495_v12, %v10774_v42 }
 0x4ff   : > { %v3459_v41 = vshll.u32 %v12495_v12, %v3444_v23  ;;  %v3460_v9 = vshrl.u32 %v12497_v1, %v10774_v42  ;;  %vm3465_vm10 = vcmp.lt.s32.totalorder %v10776_v33, 4  ;;  %v3265_v61 = vand.u32 3, %v10750_v20 }
 0x500   : > { %v3253_v15 = vmul.f32 %v3252_v60, %v3248_v37  ;;  %v3260_v30 = vmul.f32 %v3259_v34, %v3248_v37  ;;  %v3374_v50 = vadd.s32 536870912, %v3373_v43  ;;  %v3458_v14 = vor.u32 %v3457_v3, %v3456_v55 }
 0x501   : > { %v3461_v54 = vor.u32 %v3460_v9, %v3459_v41  ;;  %v12612_v2 = vor.u32 8388608, %v10688_v53  ;;  %vm3464_vm15 = vcmp.lt.s32.totalorder %v10776_v33, 3  ;;  %vm3463_vm12 = vcmp.lt.s32.totalorder %v10776_v33, 2 }
 0x502   : > { %v10814_v57 = vadd.f32 1.0, %v3253_v15  ;;  %v3261_v23 = vadd.f32 1.0, %v3260_v30  ;;  %v10816_v45 = vshrl.u32 %v3374_v50, 30  ;;  %v3470_v20 = vsel %vm3462_vm13, %v10793_v28, %v10795_v29  ;;  %v10851_v50 = vpop.permute.xlu2 %6715 }
 0x503   : > { %v10812_v56 = vshll.u32 %v12612_v2, 8  ;;  %v3471_v37 = vsel %vm3465_vm10, %v3458_v14, 920167782  ;;  %v3475_v53 = vsel %vm3465_vm10, %v3461_v54, 1326507024  ;;  %v3474_v34 = vsel %vm3462_vm13, %v10795_v29, %v10799_v17  ;;  %12613 = vst [vmem:[#allocation36_spill] sm:$0xff] %v10851_v50 }
 0x504   : > { %v10828_v18 = vmul.f32 %v3261_v23, %v3246_v10  ;;  %v12448_v7 = vxor.u32 2147483648, %v10814_v57  ;;  %v3376_v60 = vshll.u32 %v10816_v45, 30  ;;  %v1354_v55 = vsub.f32 1.0, %v10667_v16 }
 0x505   : > { %vm3263_vm1 = vweird.f32 %v10315_v58  ;;  %v3472_v3 = vsel %vm3464_vm15, %v10799_v17, %v3471_v37  ;;  %v3476_v10 = vsel %vm3464_vm15, %v3458_v14, %v3475_v53  ;;  %vm3266_vm8 = vcmp.lt.s32.totalorder %v3265_v61, 2 }
 0x506   : > { %vm3267_vm11 = vcmp.eq.s32.totalorder %v3265_v61, 0  ;;  %v12449_v41 = vxor.u32 2147483648, %v10828_v18  ;;  %v10844_v9 = vsub.s32 %v3373_v43, %v3376_v60  ;;  %vm3270_vm9 = vcmp.eq.s32.totalorder %v3265_v61, 2 }
 0x507   : > { %v3473_v15 = vsel %vm3463_vm12, %v3470_v20, %v3472_v3  ;;  %v3477_v16 = vsel %vm3463_vm12, %v3474_v34, %v3476_v10  ;;  %v3479_v30 = vand.u32 65535, %v10812_v56  ;;  %vm1357_vm3 = vweird.f32 %v10467_v59 }
 0x508   : > { %v3269_v14 = vsel %vm3267_vm11, %v10814_v57, %v12449_v41  ;;  %v3272_v43 = vsel %vm3270_vm9, %v12448_v7, %v10828_v18  ;;  %vm3378_vm14 = vcmp.lt.s32.totalorder %v10844_v9, 0  ;;  %v3379_v61 = vsub.s32 0, %v10844_v9  ;;  %v10870_v7 = vpop.permute.xlu0 %6727 }
 0x509   : > { %v3273_v54 = vsel %vm3266_vm8, %v3269_v14, %v3272_v43  ;;  %v3480_v2 = vshrl.u32 %v10812_v56, 16  ;;  %v3481_v23 = vand.u32 65535, %v3477_v16  ;;  %v3482_v20 = vshrl.u32 %v3477_v16, 16  ;;  %12616 = vst [vmem:[#allocation38_spill] sm:$0xff] %v10870_v7 }
 0x50a   : > { %v10865_v37 = vsel %vm3263_vm1, nan, %v3273_v54  ;;  %v3380_v53 = vsel %vm3378_vm14, %v3379_v61, %v10844_v9  ;;  %v3503_v60 = vand.u32 65535, %v3473_v15  ;;  %v3504_v34 = vshrl.u32 %v3473_v15, 16 }
 0x50b   : > { %12614 = vst [vmem:[#allocation37_spill] sm:$0xff] %v10865_v37  ;;  %v12615_v3 = vand.u32 2147483648, %v10467_v59  ;;  %6397 = vrot.lane.b32.xlu2 %v10865_v37, %s8186_s15  ;;  %v3381_v14 = vclz %v3380_v53  ;;  %v3484_v43 = vmul.u32 %v3482_v20, %v3479_v30  ;;  %v10874_v41 = vmul.u32 %v3481_v23, %v3480_v2  ;;  %v10891_v37 = vpop.permute.xlu2 %6723 }
 0x50c   : > { %v10878_v16 = vadd.f32 %v10193_v44, %v10662_v32  ;;  %v1355_v61 = vmul.f32 %v10656_v21, %v1354_v55  ;;  %vm1358_vm7 = vweird.f32 %v10656_v21  ;;  %v3446_v15 = vshrl.u32 %v12491_v49, %v10774_v42  ;;  %12617 = vst [vmem:[#allocation39_spill] sm:$0xff] %v10891_v37 }
 0x50d   : > { %v1364_v10 = vor.u32 1.1754944e-38, %v12615_v3  ;;  %v3369_v54 = vadd.s32 %v10772_v52, %v10780_v22  ;;  %v7817_v3 = vadd.s32 4294967294, %v3381_v14  ;;  %v3483_v35 = vmul.u32 %v3481_v23, %v3479_v30  ;;  %vm10902_vm9 = vmor %vm1357_vm3, %vm1358_vm7 }
 0x50e   : > { %v3487_v53 = vshll.u32 %v3484_v43, 16  ;;  %vm1342_vm6 = vweird.f32 %v10135_v19  ;;  %vm1343_vm0 = vweird.f32 %v10193_v44  ;;  %v3486_v7 = vmul.u32 %v3482_v20, %v3480_v2 }
 0x50f   : > { %v3488_v32 = vshrl.u32 %v3484_v43, 16  ;;  %v3506_v62 = vmul.u32 %v3504_v34, %v3479_v30  ;;  %v10888_v50 = vmul.u32 %v3503_v60, %v3480_v2  ;;  %vm7818_vm4 = vcmp.lt.s32.totalorder %v7817_v3, 0 }
 0x510   : > { %v3489_v55 = vshll.u32 %v10874_v41, 16  ;;  %vm3491_vm2 = vc.u32 %v3483_v35, %v3487_v53  ;;  %v3493_v42 = vadd.s32 %v3487_v53, %v3483_v35  ;;  %v3384_v52 = vsel %vm7818_vm4, 0, %v7817_v3 }
 0x511   : > { %v3492_v22 = vsel %vm3491_vm2, 1, %v12500_v46  ;;  %v3505_v23 = vmul.u32 %v3503_v60, %v3479_v30  ;;  %v3509_v14 = vshll.u32 %v3506_v62, 16  ;;  %v3385_v36 = vsub.s32 32, %v3384_v52 }
 0x512   : > { %v3389_v20 = vsub.s32 4294967266, %v3384_v52  ;;  %v3494_v43 = vadd.s32 %v3492_v22, %v3486_v7  ;;  %v3508_v51 = vmul.u32 %v3504_v34, %v3480_v2  ;;  %v3386_v0 = vshll.u32 %v10844_v9, %v3384_v52 }
 0x513   : > { %vm3495_vm8 = vc.u32 %v3493_v42, %v3489_v55  ;;  %v3511_v40 = vshll.u32 %v10888_v50, 16  ;;  %vm3513_vm11 = vc.u32 %v3505_v23, %v3509_v14  ;;  %v3387_v30 = vshrl.u32 %v3369_v54, %v3385_v36  ;;  %v10909_v55 = vpop.permute.xlu0 %6733 }
 0x514   : > { %v3390_v60 = vadd.s32 127, %v3389_v20  ;;  %v3496_v3 = vsel %vm3495_vm8, 1, %v12500_v46  ;;  %v3514_v7 = vsel %vm3513_vm11, 1, %v12500_v46  ;;  %v3515_v9 = vadd.s32 %v3509_v14, %v3505_v23  ;;  %12621 = vst [vmem:[#allocation41_spill] sm:$0xff] %v10909_v55 }
 0x515   : > { %v3498_v2 = vadd.s32 %v3496_v3, %v3494_v43  ;;  %v3516_v34 = vadd.s32 %v3514_v7, %v3508_v51  ;;  %v1356_v53 = vadd.f32 %v10656_v21, %v1355_v61  ;;  %v3388_v42 = vor.u32 %v3387_v30, %v3386_v0  ;;  %v10924_v43 = vpop.permute.xlu2 %6633 }
 0x516   : > { %v3391_v52 = vshll.u32 %v3390_v60, 23  ;;  %v3467_v22 = vsel %vm3465_vm10, %v10799_v17, 2102212464  ;;  %v12622_v36 = vand.u32 2147483647, %v10467_v59  ;;  %v3399_v54 = vsub.s32 4, %v10816_v45  ;;  %vm10936_vm10 = vmor %vm1342_vm6, %vm1343_vm0 }
 0x517   : > { %v3499_v20 = vadd.s32 %v3498_v2, %v3488_v32  ;;  %vm3517_vm14 = vc.u32 %v3515_v9, %v3511_v40  ;;  %v1360_v51 = vsel %vm10902_vm9, %v10656_v21, %v1356_v53  ;;  %v3490_v23 = vshrl.u32 %v10874_v41, 16  ;;  %12624 = vst [vmem:[#allocation43_spill] sm:$0xff] %v10924_v43  ;;  %v10940_v41 = vpop.permute.xlu1 %6721 }
 0x518   : > { %vm1362_vm3 = vcmp.eq.f32.partialorder %v12622_v36, 8.507059e+37  ;;  %v3392_v61 = vor.u32 4788187, %v3391_v52  ;;  %v3518_v0 = vsel %vm3517_vm14, 1, %v12500_v46  ;;  %v3466_v59 = vsel %vm3462_vm13, %v3446_v15, %v10793_v28  ;;  %12627 = vst [vmem:[#allocation44_spill] sm:$0xff] %v10940_v41 }
 0x519   : > { %v10922_v14 = vsel %vm1362_vm3, %v1364_v10, %v1360_v51  ;;  %v3510_v17 = vshrl.u32 %v3506_v62, 16  ;;  %v3520_v32 = vadd.s32 %v3518_v0, %v3516_v34  ;;  %v3395_v35 = vcvt.s32.f32 %v3388_v42  ;;  %v1042_v0 = vpop.f32.mrf.mxu1 }
 0x51a   : > { %12623 = vst [vmem:[#allocation42_spill] sm:$0xff] %v10922_v14  ;;  %v10930_v30 = vmul.f32 6.2831855, %v10922_v14  ;;  %v3393_v10 = vand.u32 2147483647, %v3392_v61  ;;  %v3468_v62 = vsel %vm3464_vm15, %v10795_v29, %v3467_v22  ;;  %v3500_v28 = vadd.s32 %v3499_v20, %v3490_v23 }
 0x51b   : > { %v12628_v15 = vand.u32 2147483648, %v10135_v19  ;;  %vm3277_vm13 = vcmp.lt.s32.totalorder %v10612_v31, 0  ;;  %v3512_v3 = vshrl.u32 %v10888_v50, 16  ;;  %v3521_v7 = vadd.s32 %v3520_v32, %v3510_v17 }
 0x51c   : > { %v3396_v2 = vmul.f32 %v3395_v35, %v3393_v10  ;;  %v3400_v34 = vsel %vm3277_vm13, %v3399_v54, %v10816_v45  ;;  %v3519_v53 = vadd.s32 %v3515_v9, %v3511_v40  ;;  %v3743_v42 = vand.u32 2139095040, %v10930_v30  ;;  %v10966_v54 = vpop.permute.xlu0 %6735 }
 0x51d   : > { %v1349_v60 = vor.u32 1.1754944e-38, %v12628_v15  ;;  %v12629_v52 = vand.u32 2147483647, %v10135_v19  ;;  %v3469_v29 = vsel %vm3463_vm12, %v3466_v59, %v3468_v62  ;;  %v3522_v22 = vadd.s32 %v3521_v7, %v3512_v3  ;;  %12631 = vst [vmem:[#allocation45_spill] sm:$0xff] %v10966_v54  ;;  %v10977_v35 = vpop.permute.xlu2 %6731  ;;  %v12635_v7 = vld [vmem:[#allocation6_spill] sm:$0xff] }
 0x51e   : > { %v1345_v50 = vsel %vm10936_vm10, %v10193_v44, %v10878_v16  ;;  %v12630_v36 = vand.u32 2147483647, %v10612_v31  ;;  %v3397_v20 = vxor.u32 2147483648, %v3396_v2  ;;  %vm3525_vm6 = vc.u32 %v3500_v28, %v3519_v53  ;;  %12634 = vst [vmem:[#allocation48_spill] sm:$0xff] %v10977_v35 }
 0x51f   : > { %vm1347_vm15 = vcmp.eq.f32.partialorder %v12629_v52, 8.507059e+37  ;;  %v3744_v40 = vshrl.u32 %v3743_v42, 23  ;;  %v3526_v9 = vadd.s32 1, %v3522_v22  ;;  %v12459_v19 = vand.u32 2147483647, %v10930_v30  ;;  %v10974_v59 = vpop.permute.xlu1 %6631 }
 0x520   : > { %vm3276_vm7 = vcmp.le.f32.partialorder %v12630_v36, 0.7853982  ;;  %v3398_v33 = vsel %vm3277_vm13, %v3397_v20, %v3396_v2  ;;  %v3523_v51 = vmul.u32 %v10812_v56, %v3469_v29  ;;  %v10971_v44 = vsel %vm1347_vm15, %v1349_v60, %v1345_v50  ;;  %12633 = vst [vmem:[#allocation47_spill] sm:$0xff] %v10974_v59 }
 0x521   : > { %v10963_v45 = vsel %vm3276_vm7, 0, %v3400_v34  ;;  %v7825_v61 = vadd.s32 4294967169, %v3744_v40  ;;  %12632 = vst [vmem:[#allocation46_spill] sm:$0xff] %v10971_v44  ;;  %v3401_v16 = vsel %vm3276_vm7, %v10612_v31, %v3398_v33  ;;  %v3527_v23 = vsel %vm3525_vm6, %v3526_v9, %v3522_v22 }
 0x522   : > { %v3403_v17 = vmul.f32 %v3401_v16, %v3401_v16  ;;  %v3419_v32 = vadd.s32 3, %v10963_v45  ;;  %v3528_v21 = vadd.s32 %v3527_v23, %v3523_v51  ;;  %v3747_v62 = vand.u32 8388607, %v12459_v19 }
 0x523   : > { %v3750_v10 = vadd.s32 1, %v7825_v61  ;;  %v10982_v56 = vmul.f32 6.2831855, %v10971_v44  ;;  %v10985_v2 = vadd.f32 %v1042_v0, %v12635_v7  ;;  %v10994_v61 = vadd.s32 %v3519_v53, %v3500_v28 }
 0x524   : > { %v3404_v15 = vmul.f32 -0.001358992, %v3403_v17  ;;  %v3411_v60 = vmul.f32 -0.00019511016, %v3403_v17  ;;  %v3529_v3 = vadd.s32 536870912, %v3528_v21  ;;  %v10987_v29 = vand.u32 3, %v3419_v32  ;;  %v10998_v0 = vpop.permute.xlu0 %6741 }
 0x525   : > { %vm3751_vm12 = vcmp.gt.s32.totalorder %v3750_v10, 0  ;;  %v3748_v50 = vor.u32 8388608, %v3747_v62  ;;  %v3588_v20 = vand.u32 2139095040, %v10982_v56  ;;  %12636 = vst [vmem:[#allocation6_spill] sm:$0xff] %v10998_v0  ;;  %vm3418_vm11 = vweird.f32 %v10612_v31  ;;  %v7902_v31 = vld [vmem:[%s12364_s11 + $0x30] sm:$0xf] }
 0x526   : > { %v3752_v34 = vsel %vm3751_vm12, %v3750_v10, 0  ;;  %v3405_v42 = vadd.f32 0.041655596, %v3404_v15  ;;  %v3412_v52 = vadd.f32 0.008332121, %v3411_v60  ;;  %v10989_v22 = vshrl.u32 %v3529_v3, 30 }
 0x527   : > { %v3754_v36 = vand.u32 31, %v3752_v34  ;;  %vm3425_vm0 = vcmp.eq.s32.totalorder %v10987_v29, 2  ;;  %vm3422_vm4 = vcmp.eq.s32.totalorder %v10987_v29, 0  ;;  %v11007_v28 = vshll.u32 %v3748_v50, 8 }
 0x528   : > { %v3406_v40 = vmul.f32 %v3405_v42, %v3403_v17  ;;  %v3413_v9 = vmul.f32 %v3412_v52, %v3403_v17  ;;  %v3531_v33 = vshll.u32 %v10989_v22, 30  ;;  %v3589_v53 = vshrl.u32 %v3588_v20, 23  ;;  %v11009_v42 = vpop.permute.xlu1 %6729 }
 0x529   : > { %v10996_v23 = vsub.s32 32, %v3754_v36  ;;  %v3757_v60 = vshll.u32 %v12491_v49, %v3754_v36  ;;  %v3760_v3 = vshll.u32 %v12492_v8, %v3754_v36  ;;  %12637 = vst [vmem:[#allocation49_spill] sm:$0xff] %v11009_v42  ;;  %vm3421_vm2 = vcmp.lt.s32.totalorder %v10987_v29, 2 }
 0x52a   : > { %v3407_v32 = vadd.f32 -0.4999988, %v3406_v40  ;;  %v3414_v10 = vadd.f32 -0.16666654, %v3413_v9  ;;  %v11001_v62 = vsub.s32 %v3528_v21, %v3531_v33  ;;  %v11014_v9 = vpop.permute.xlu2 %6637  ;;  %vm3432_vm9 = vcmp.lt.s32.totalorder %v10648_v47, 0 }
 0x52b   : > { %12638 = vst [vmem:[#allocation50_spill] sm:$0xff] %v11014_v9  ;;  %v3758_v50 = vshrl.u32 %v12492_v8, %v10996_v23  ;;  %v3761_v20 = vshrl.u32 %v12493_v38, %v10996_v23  ;;  %v3764_v33 = vshrl.u32 %v12494_v5, %v10996_v23  ;;  %v3766_v51 = vshll.u32 %v12494_v5, %v3754_v36 }
 0x52c   : > { %v3408_v52 = vmul.f32 %v3407_v32, %v3403_v17  ;;  %v3415_v40 = vmul.f32 %v3414_v10, %v3403_v17  ;;  %vm3533_vm8 = vcmp.lt.s32.totalorder %v11001_v62, 0  ;;  %v3534_v21 = vsub.s32 0, %v11001_v62 }
 0x52d   : > { %v3763_v17 = vshll.u32 %v12493_v38, %v3754_v36  ;;  %v11029_v0 = vshrl.u32 %v3752_v34, 5  ;;  %v3767_v35 = vshrl.u32 %v12495_v12, %v10996_v23  ;;  %v11034_v55 = vand.u32 65535, %v11007_v28 }
 0x52e   : > { %v11025_v32 = vadd.f32 1.0, %v3408_v52  ;;  %v3416_v10 = vadd.f32 1.0, %v3415_v40  ;;  %v3535_v19 = vsel %vm3533_vm8, %v3534_v21, %v11001_v62  ;;  %v3769_v52 = vshll.u32 %v12495_v12, %v3754_v36 }
 0x52f   : > { %v3536_v15 = vclz %v3535_v19  ;;  %v3770_v40 = vshrl.u32 %v12497_v1, %v10996_v23  ;;  %v12639_v21 = vand.u32 2147483647, %v10648_v47  ;;  %v3554_v9 = vsub.s32 4, %v10989_v22 }
 0x530   : > { %v11036_v54 = vmul.f32 %v3416_v10, %v3401_v16  ;;  %v3759_v42 = vor.u32 %v3758_v50, %v3757_v60  ;;  %v7822_v14 = vadd.s32 4294967169, %v3589_v53  ;;  %v11049_v16 = vpop.permute.xlu0 %6743  ;;  %v3762_v37 = vor.u32 %v3761_v20, %v3760_v3  ;;  %v11068_v3 = vpop.permute.xlu1 %6635 }
 0x531   : > { %vm11044_vm3 = vcmp.le.f32.partialorder %v12639_v21, 0.7853982  ;;  %v7820_v34 = vadd.s32 4294967294, %v3536_v15  ;;  %12642 = vst [vmem:[#allocation51_spill] sm:$0xff] %v11049_v16  ;;  %v3765_v36 = vor.u32 %v3764_v33, %v3763_v17  ;;  %v3768_v41 = vor.u32 %v3767_v35, %v3766_v51 }
 0x532   : > { %v12464_v10 = vxor.u32 2147483648, %v11036_v54  ;;  %v12643_v43 = vxor.u32 2147483648, %v11025_v32  ;;  %v3771_v63 = vor.u32 %v3770_v40, %v3769_v52  ;;  %vm3772_vm10 = vcmp.lt.s32.totalorder %v11029_v0, 1  ;;  %12644 = vst [vmem:[#allocation52_spill] sm:$0xff] %v11068_v3  ;;  %v11081_v17 = vpop.permute.xlu2 %6739 }
 0x533   : > { %vm7821_vm14 = vcmp.lt.s32.totalorder %v7820_v34, 0  ;;  %vm3774_vm13 = vcmp.lt.s32.totalorder %v11029_v0, 3  ;;  %vm3775_vm15 = vcmp.lt.s32.totalorder %v11029_v0, 4  ;;  %vm3773_vm7 = vcmp.lt.s32.totalorder %v11029_v0, 2  ;;  %12646 = vst [vmem:[#allocation54_spill] sm:$0xff] %v11081_v17 }
 0x534   : > { %v3427_v21 = vsel %vm3425_vm0, %v12643_v43, %v11036_v54  ;;  %v3424_v15 = vsel %vm3422_vm4, %v11025_v32, %v12464_v10  ;;  %v3539_v60 = vsel %vm7821_vm14, 0, %v7820_v34  ;;  %v3555_v50 = vsel %vm3432_vm9, %v3554_v9, %v10989_v22 }
 0x535   : > { %v3428_v35 = vsel %vm3421_vm2, %v3424_v15, %v3427_v21  ;;  %v3540_v51 = vsub.s32 32, %v3539_v60  ;;  %v3544_v43 = vsub.s32 4294967266, %v3539_v60  ;;  %v3780_v20 = vsel %vm3772_vm10, %v3759_v42, %v3762_v37 }
 0x536   : > { %v11072_v53 = vsel %vm3418_vm11, nan, %v3428_v35  ;;  %v3781_v29 = vsel %vm3775_vm15, %v3768_v41, 920167782  ;;  %v3541_v33 = vshll.u32 %v11001_v62, %v3539_v60  ;;  %v3784_v9 = vsel %vm3772_vm10, %v3762_v37, %v3765_v36 }
 0x537   : > { %12645 = vst [vmem:[#allocation53_spill] sm:$0xff] %v11072_v53  ;;  %6399 = vrot.lane.b32.xlu1 %v11072_v53, %s8186_s15  ;;  %v3542_v52 = vshrl.u32 %v10994_v61, %v3540_v51  ;;  %v3545_v40 = vadd.s32 127, %v3544_v43  ;;  %v3782_v34 = vsel %vm3774_vm13, %v3765_v36, %v3781_v29  ;;  %v3785_v21 = vsel %vm3775_vm15, %v3771_v63, 1326507024 }
 0x538   : > { %v3783_v22 = vsel %vm3773_vm7, %v3780_v20, %v3782_v34  ;;  %v3790_v15 = vshrl.u32 %v11007_v28, 16  ;;  %v3786_v61 = vsel %vm3774_vm13, %v3768_v41, %v3785_v21  ;;  %v11100_v60 = vsel %vm11044_vm3, 0, %v3555_v50  ;;  %v11102_v51 = vpop.permute.xlu0 %6375 }
 0x539   : > { %v3543_v35 = vor.u32 %v3542_v52, %v3541_v33  ;;  %v3546_v10 = vshll.u32 %v3545_v40, 23  ;;  %v3813_v62 = vand.u32 65535, %v3783_v22  ;;  %12647 = vst [vmem:[#allocation55_spill] sm:$0xff] %v11102_v51  ;;  %v3756_v43 = vshrl.u32 %v12491_v49, %v10996_v23  ;;  %v12648_v33 = vld [vmem:[#allocation29_spill] sm:$0xff] }
 0x53a   : > { %v3787_v63 = vsel %vm3773_vm7, %v3784_v9, %v3786_v61  ;;  %v3814_v20 = vshrl.u32 %v3783_v22, 16  ;;  %v6439_v52 = vmul.f32 %v11102_v51, %v12648_v33  ;;  %v3777_v41 = vsel %vm3775_vm15, %v3765_v36, 2102212464  ;;  %v11128_v51 = vpop.permute.xlu2 %6641 }
 0x53b   : > { %v3547_v29 = vor.u32 4788187, %v3546_v10  ;;  %v3595_v40 = vadd.s32 1, %v7822_v14  ;;  %v3791_v34 = vand.u32 65535, %v3787_v63  ;;  %v3792_v50 = vshrl.u32 %v3787_v63, 16  ;;  %12651 = vst [vmem:[#allocation56_spill] sm:$0xff] %v11128_v51 }
 0x53c   : > { %v3816_v21 = vmul.u32 %v3814_v20, %v11034_v55  ;;  %v12649_v17 = vand.u32 2147483647, %v10982_v56  ;;  %v3550_v3 = vcvt.s32.f32 %v3543_v35  ;;  %v3574_v22 = vadd.s32 3, %v11100_v60  ;;  %6503 = vrot.lane.b32.xlu0 %v6439_v52, %s8178_s14  ;;  %v11125_v35 = vpop.permute.xlu1 %6737 }
 0x53d   : > { %v3548_v23 = vand.u32 2147483647, %v3547_v29  ;;  %v3817_v10 = vmul.u32 %v3813_v62, %v3790_v15  ;;  %v3776_v9 = vsel %vm3772_vm10, %v3756_v43, %v3759_v42  ;;  %v3778_v14 = vsel %vm3774_vm13, %v3762_v37, %v3777_v41  ;;  %12650 = vst [vmem:[#allocation29_spill] sm:$0xff] %v11125_v35 }
 0x53e   : > { %v11115_v16 = vand.u32 8388607, %v12649_v17  ;;  %v3794_v36 = vmul.u32 %v3792_v50, %v11034_v55  ;;  %v3795_v61 = vmul.u32 %v3791_v34, %v3790_v15  ;;  %v3815_v17 = vmul.u32 %v3813_v62, %v11034_v55 }
 0x53f   : > { %v3551_v63 = vmul.f32 %v3550_v3, %v3548_v23  ;;  %v3819_v33 = vshll.u32 %v3816_v21, 16  ;;  %vm3596_vm6 = vcmp.gt.s32.totalorder %v3595_v40, 0  ;;  %v3793_v29 = vmul.u32 %v3791_v34, %v11034_v55 }
 0x540   : > { %v3796_v52 = vmul.u32 %v3792_v50, %v3790_v15  ;;  %v3797_v53 = vshll.u32 %v3794_v36, 16  ;;  %v3818_v59 = vmul.u32 %v3814_v20, %v3790_v15  ;;  %v3821_v43 = vshll.u32 %v3817_v10, 16 }
 0x541   : > { %v3552_v42 = vxor.u32 2147483648, %v3551_v63  ;;  %vm3823_vm12 = vc.u32 %v3815_v17, %v3819_v33  ;;  %v3825_v37 = vadd.s32 %v3819_v33, %v3815_v17  ;;  %v3799_v41 = vshll.u32 %v3795_v61, 16 }
 0x542   : > { %vm3801_vm0 = vc.u32 %v3793_v29, %v3797_v53  ;;  %v3803_v3 = vadd.s32 %v3797_v53, %v3793_v29  ;;  %v3824_v62 = vsel %vm3823_vm12, 1, %v12500_v46  ;;  %v3820_v17 = vshrl.u32 %v3816_v21, 16 }
 0x543   : > { %v3553_v23 = vsel %vm3432_vm9, %v3552_v42, %v3551_v63  ;;  %v3802_v35 = vsel %vm3801_vm0, 1, %v12500_v46  ;;  %v3826_v55 = vadd.s32 %v3824_v62, %v3818_v59  ;;  %vm3827_vm4 = vc.u32 %v3825_v37, %v3821_v43 }
 0x544   : > { %v3556_v15 = vsel %vm11044_vm3, %v10648_v47, %v3553_v23  ;;  %v3804_v20 = vadd.s32 %v3802_v35, %v3796_v52  ;;  %vm3805_vm2 = vc.u32 %v3803_v3, %v3799_v41  ;;  %v3828_v34 = vsel %vm3827_vm4, 1, %v12500_v46  ;;  %v11148_v0 = vpop.permute.xlu1 %6639 }
 0x545   : > { %v3558_v50 = vmul.f32 %v3556_v15, %v3556_v15  ;;  %v3806_v53 = vsel %vm3805_vm2, 1, %v12500_v46  ;;  %v3830_v33 = vadd.s32 %v3828_v34, %v3826_v55  ;;  %v12652_v63 = vmax.f32 %v10985_v2, 0.0  ;;  %12653 = vst [vmem:[#allocation57_spill] sm:$0xff] %v11148_v0 }
 0x546   : > { %v3779_v59 = vsel %vm3773_vm7, %v3776_v9, %v3778_v14  ;;  %v3798_v29 = vshrl.u32 %v3794_v36, 16  ;;  %v3808_v42 = vadd.s32 %v3806_v53, %v3804_v20  ;;  %v3597_v19 = vsel %vm3596_vm6, %v3595_v40, 0  ;;  %v11157_v36 = vpop.permute.xlu2 %6747 }
 0x547   : > { %6749 = vrot.lane.b32.xlu0 %v12652_v63, %s8178_s14  ;;  %v3559_v35 = vmul.f32 -0.001358992, %v3558_v50  ;;  %v3566_v52 = vmul.f32 -0.00019511016, %v3558_v50  ;;  %v3822_v41 = vshrl.u32 %v3817_v10, 16  ;;  %v3831_v3 = vadd.s32 %v3830_v33, %v3820_v17  ;;  %12654 = vst [vmem:[#allocation58_spill] sm:$0xff] %v11157_v36 }
 0x548   : > { %v3800_v62 = vshrl.u32 %v3795_v61, 16  ;;  %v3809_v23 = vadd.s32 %v3808_v42, %v3798_v29  ;;  %v3593_v21 = vor.u32 8388608, %v11115_v16  ;;  %v3599_v55 = vand.u32 31, %v3597_v19 }
 0x549   : > { %v3560_v34 = vadd.f32 0.041655596, %v3559_v35  ;;  %v3567_v51 = vadd.f32 0.008332121, %v3566_v52  ;;  %v11146_v2 = vand.u32 3, %v3574_v22  ;;  %v3832_v63 = vadd.s32 %v3831_v3, %v3822_v41 }
 0x54a   : > { %v11150_v9 = vadd.s32 %v3809_v23, %v3800_v62  ;;  %v11152_v14 = vadd.s32 %v3825_v37, %v3821_v43  ;;  %v3833_v40 = vmul.u32 %v11007_v28, %v3779_v59  ;;  %v11155_v10 = vsub.s32 32, %v3599_v55 }
 0x54b   : > { %v3561_v61 = vmul.f32 %v3560_v34, %v3558_v50  ;;  %v3568_v16 = vmul.f32 %v3567_v51, %v3558_v50  ;;  %v3836_v20 = vadd.s32 1, %v3832_v63  ;;  %v3602_v53 = vshll.u32 %v12491_v49, %v3599_v55 }
 0x54c   : > { %vm3835_vm8 = vc.u32 %v11150_v9, %v11152_v14  ;;  %v11162_v22 = vshrl.u32 %v3597_v19, 5  ;;  %v3603_v43 = vshrl.u32 %v12492_v8, %v11155_v10  ;;  %v3605_v37 = vshll.u32 %v12492_v8, %v3599_v55 }
 0x54d   : > { %v3562_v28 = vadd.f32 -0.4999988, %v3561_v61  ;;  %v3569_v17 = vadd.f32 -0.16666654, %v3568_v16  ;;  %v3837_v33 = vsel %vm3835_vm8, %v3836_v20, %v3832_v63  ;;  %v3606_v59 = vshrl.u32 %v12493_v38, %v11155_v10 }
 0x54e   : > { %v3838_v51 = vadd.s32 %v3837_v33, %v3833_v40  ;;  %v3608_v29 = vshll.u32 %v12493_v38, %v3599_v55  ;;  %v3609_v42 = vshrl.u32 %v12494_v5, %v11155_v10  ;;  %v3611_v19 = vshll.u32 %v12494_v5, %v3599_v55 }
 0x54f   : > { %v3563_v35 = vmul.f32 %v3562_v28, %v3558_v50  ;;  %v3570_v52 = vmul.f32 %v3569_v17, %v3558_v50  ;;  %v11173_v41 = vor.u32 %v3603_v43, %v3602_v53  ;;  %v3612_v8 = vshrl.u32 %v12495_v12, %v11155_v10 }
 0x550   : > { %v3839_v3 = vadd.s32 536870912, %v3838_v51  ;;  %v11177_v62 = vor.u32 %v3606_v59, %v3605_v37  ;;  %v3614_v23 = vshll.u32 %v12495_v12, %v3599_v55  ;;  %v3615_v38 = vshrl.u32 %v12497_v1, %v11155_v10  ;;  %v11196_v12 = vpop.permute.xlu1 %6745 }
 0x551   : > { %v11182_v34 = vadd.f32 1.0, %v3563_v35  ;;  %v3571_v63 = vadd.f32 1.0, %v3570_v52  ;;  %v3613_v40 = vor.u32 %v3612_v8, %v3611_v19  ;;  %vm3617_vm9 = vcmp.lt.s32.totalorder %v11162_v22, 1  ;;  %12655 = vst [vmem:[#allocation59_spill] sm:$0xff] %v11196_v12 }
 0x552   : > { %v11185_v5 = vshrl.u32 %v3839_v3, 30  ;;  %v11187_v50 = vor.u32 %v3609_v42, %v3608_v29  ;;  %v11189_v61 = vshll.u32 %v3593_v21, 8  ;;  %vm3619_vm3 = vcmp.lt.s32.totalorder %v11162_v22, 3  ;;  %v11205_v21 = vpop.permute.xlu2 %6645 }
 0x553   : > { %v11191_v16 = vmul.f32 %v3571_v63, %v3556_v15  ;;  %v12469_v20 = vxor.u32 2147483648, %v11182_v34  ;;  %vm3620_vm14 = vcmp.lt.s32.totalorder %v11162_v22, 4  ;;  %vm3573_vm10 = vweird.f32 %v10648_v47  ;;  %12656 = vst [vmem:[#allocation60_spill] sm:$0xff] %v11205_v21 }
 0x554   : > { %v3841_v1 = vshll.u32 %v11185_v5, 30  ;;  %vm3618_vm13 = vcmp.lt.s32.totalorder %v11162_v22, 2  ;;  %v3625_v15 = vsel %vm3617_vm9, %v11173_v41, %v11177_v62  ;;  %vm3576_vm15 = vcmp.lt.s32.totalorder %v11146_v2, 2  ;;  %v7934_v22 = vld [vmem:[%s12364_s11 + $0x70] sm:$0xf] }
 0x555   : > { %v12470_v55 = vxor.u32 2147483648, %v11191_v16  ;;  %v3616_v53 = vor.u32 %v3615_v38, %v3614_v23  ;;  %v3626_v43 = vsel %vm3620_vm14, %v3613_v40, 920167782  ;;  %vm3577_vm7 = vcmp.eq.s32.totalorder %v11146_v2, 0 }
 0x556   : > { %vm3580_vm6 = vcmp.eq.s32.totalorder %v11146_v2, 2  ;;  %v3842_v37 = vsub.s32 %v3838_v51, %v3841_v1  ;;  %v3627_v28 = vsel %vm3619_vm3, %v11187_v50, %v3626_v43  ;;  %v3634_v29 = vand.u32 65535, %v11189_v61 }
 0x557   : > { %v3579_v17 = vsel %vm3577_vm7, %v11182_v34, %v12470_v55  ;;  %v3582_v33 = vsel %vm3580_vm6, %v12469_v20, %v11191_v16  ;;  %v3628_v59 = vsel %vm3618_vm13, %v3625_v15, %v3627_v28  ;;  %v3629_v51 = vsel %vm3617_vm9, %v11177_v62, %v11187_v50 }
 0x558   : > { %v3583_v42 = vsel %vm3576_vm15, %v3579_v17, %v3582_v33  ;;  %vm3843_vm12 = vcmp.lt.s32.totalorder %v3842_v37, 0  ;;  %v3844_v2 = vsub.s32 0, %v3842_v37  ;;  %v3630_v35 = vsel %vm3620_vm14, %v3616_v53, 1326507024 }
 0x559   : > { %v11231_v19 = vsel %vm3573_vm10, nan, %v3583_v42  ;;  %v3658_v52 = vand.u32 65535, %v3628_v59  ;;  %v3659_v8 = vshrl.u32 %v3628_v59, 16  ;;  %v3631_v23 = vsel %vm3619_vm3, %v3613_v40, %v3630_v35  ;;  %v11244_v59 = vpop.permute.xlu1 %6643 }
 0x55a   : > { %6401 = vrot.lane.b32.xlu2 %v11231_v19, %s8186_s15  ;;  %v3845_v3 = vsel %vm3843_vm12, %v3844_v2, %v3842_v37  ;;  %v3632_v63 = vsel %vm3618_vm13, %v3629_v51, %v3631_v23  ;;  %v3635_v1 = vshrl.u32 %v11189_v61, 16  ;;  %v11242_v28 = vpop.permute.xlu2 %6649  ;;  %12658 = vst [vmem:[#allocation62_spill] sm:$0xff] %v11244_v59  ;;  %v3834_v40 = vadd.s32 %v11152_v14, %v11150_v9 }
 0x55b   : > { %v3846_v38 = vclz %v3845_v3  ;;  %v3661_v15 = vmul.u32 %v3659_v8, %v3634_v29  ;;  %v3636_v43 = vand.u32 65535, %v3632_v63  ;;  %12657 = vst [vmem:[#allocation61_spill] sm:$0xff] %v11242_v28  ;;  %v3637_v17 = vshrl.u32 %v3632_v63, 16 }
 0x55c   : > { %v3662_v33 = vmul.u32 %v3658_v52, %v3635_v1  ;;  %v3601_v51 = vshrl.u32 %v12491_v49, %v11155_v10  ;;  %v3660_v55 = vmul.u32 %v3658_v52, %v3634_v29  ;;  %v3663_v49 = vmul.u32 %v3659_v8, %v3635_v1 }
 0x55d   : > { %v7826_v53 = vadd.s32 4294967294, %v3846_v38  ;;  %v3640_v42 = vmul.u32 %v3636_v43, %v3635_v1  ;;  %v3664_v2 = vshll.u32 %v3661_v15, 16  ;;  %v3639_v35 = vmul.u32 %v3637_v17, %v3634_v29 }
 0x55e   : > { %v3638_v23 = vmul.u32 %v3636_v43, %v3634_v29  ;;  %v3641_v20 = vmul.u32 %v3637_v17, %v3635_v1  ;;  %v3666_v28 = vshll.u32 %v3662_v33, 16  ;;  %v11256_v17 = vpop.permute.xlu0 %6377 }
 0x55f   : > { %vm7827_vm0 = vcmp.lt.s32.totalorder %v7826_v53, 0  ;;  %v3642_v63 = vshll.u32 %v3639_v35, 16  ;;  %v3644_v12 = vshll.u32 %v3640_v42, 16  ;;  %vm3668_vm4 = vc.u32 %v3660_v55, %v3664_v2 }
 0x560   : > { %v3849_v3 = vsel %vm7827_vm0, 0, %v7826_v53  ;;  %v3670_v59 = vadd.s32 %v3664_v2, %v3660_v55  ;;  %v3669_v10 = vsel %vm3668_vm4, 1, %v12500_v46  ;;  %vm3883_vm0 = vweird.f32 %v10930_v30 }
 0x561   : > { %v3850_v36 = vsub.s32 32, %v3849_v3  ;;  %v3854_v38 = vsub.s32 4294967266, %v3849_v3  ;;  %v3851_v21 = vshll.u32 %v3842_v37, %v3849_v3  ;;  %vm3646_vm2 = vc.u32 %v3638_v23, %v3642_v63  ;;  %v11254_v37 = vpop.permute.xlu1 %6647  ;;  %v12659_v3 = vld [vmem:[#allocation32_spill] sm:$0xff] }
 0x562   : > { %v3648_v9 = vadd.s32 %v3642_v63, %v3638_v23  ;;  %v3647_v14 = vsel %vm3646_vm2, 1, %v12500_v46  ;;  %vm3672_vm8 = vc.u32 %v3670_v59, %v3666_v28  ;;  %v11252_v43 = vpop.permute.xlu2 %6567  ;;  %v3671_v8 = vadd.s32 %v3669_v10, %v3663_v49 }
 0x563   : > { %v3852_v0 = vshrl.u32 %v3834_v40, %v3850_v36  ;;  %v3855_v44 = vadd.s32 127, %v3854_v38  ;;  %v3649_v53 = vadd.s32 %v3647_v14, %v3641_v20  ;;  %v3622_v36 = vsel %vm3620_vm14, %v11187_v50, 2102212464 }
 0x564   : > { %vm3650_vm15 = vc.u32 %v3648_v9, %v3644_v12  ;;  %v3673_v1 = vsel %vm3672_vm8, 1, %v12500_v46  ;;  %v3665_v40 = vshrl.u32 %v3661_v15, 16  ;;  %v3621_v38 = vsel %vm3617_vm9, %v3601_v51, %v11173_v41 }
 0x565   : > { %v3853_v29 = vor.u32 %v3852_v0, %v3851_v21  ;;  %v3856_v52 = vshll.u32 %v3855_v44, 23  ;;  %v3651_v55 = vsel %vm3650_vm15, 1, %v12500_v46  ;;  %v6440_v44 = vmul.f32 %v11256_v17, %v12659_v3 }
 0x566   : > { %v3643_v0 = vshrl.u32 %v3639_v35, 16  ;;  %v3653_v20 = vadd.s32 %v3651_v55, %v3649_v53  ;;  %v3675_v12 = vadd.s32 %v3673_v1, %v3671_v8  ;;  %v3623_v50 = vsel %vm3619_vm3, %v11177_v62, %v3622_v36  ;;  %v12663_v36 = vld [vmem:[#allocation7_spill] sm:$0xff] }
 0x567   : > { %v3857_v2 = vor.u32 4788187, %v3856_v52  ;;  %v3860_v23 = vcvt.s32.f32 %v3853_v29  ;;  %6505 = vrot.lane.b32.xlu1 %v6440_v44, %s8178_s14  ;;  %v3645_v46 = vshrl.u32 %v3640_v42, 16  ;;  %v3667_v63 = vshrl.u32 %v3662_v33, 16 }
 0x568   : > { %v3654_v15 = vadd.s32 %v3653_v20, %v3643_v0  ;;  %v3676_v9 = vadd.s32 %v3675_v12, %v3665_v40  ;;  %v3624_v35 = vsel %vm3618_vm13, %v3621_v38, %v3623_v50  ;;  %v11276_v10 = vadd.s32 %v3670_v59, %v3666_v28  ;;  %v8006_v28 = vld [vmem:[%s12364_s11 + $0x74] sm:$0xf0] }
 0x569   : > { %v3858_v21 = vand.u32 2147483647, %v3857_v2  ;;  %v12660_v51 = vand.u32 2147483647, %v10930_v30  ;;  %vm3742_vm3 = vcmp.lt.s32.totalorder %v10930_v30, 0  ;;  %v11293_v33 = vpop.permute.xlu1 %6379  ;;  %v11299_v53 = vor.u32 %v8006_v28, %v7934_v22 }
 0x56a   : > { %v11274_v49 = vadd.s32 %v3654_v15, %v3645_v46  ;;  %v3677_v29 = vadd.s32 %v3676_v9, %v3667_v63  ;;  %v11278_v41 = vpop.permute.xlu2 %6571  ;;  %v6441_v55 = vmul.f32 %v11293_v33, %v12663_v36  ;;  %v3678_v8 = vmul.u32 %v11189_v61, %v3624_v35 }
 0x56b   : > { %v3861_v14 = vmul.f32 %v3860_v23, %v3858_v21  ;;  %vm11282_vm9 = vcmp.le.f32.partialorder %v12660_v51, 0.7853982  ;;  %v3864_v1 = vsub.s32 4, %v11185_v5  ;;  %7145 = vmatpush.bf16.msra.mxu2 %v11299_v53 }
 0x56c   : > { %vm3680_vm14 = vc.u32 %v11274_v49, %v11276_v10  ;;  %v3681_v59 = vadd.s32 1, %v3677_v29  ;;  %6507 = vrot.lane.b32.xlu0 %v6441_v55, %s8178_s14 }
 0x56d   : > { %v3862_v42 = vxor.u32 2147483648, %v3861_v14  ;;  %v3865_v61 = vsel %vm3742_vm3, %v3864_v1, %v11185_v5  ;;  %v5733_v5 = vand.u32 3, %v10708_v13 }
 0x56e   : > { %v3682_v40 = vsel %vm3680_vm14, %v3681_v59, %v3677_v29  ;;  %v11319_v46 = vsel %vm11282_vm9, 0, %v3865_v61  ;;  %vm3587_vm14 = vcmp.lt.s32.totalorder %v10982_v56, 0 }
 0x56f   : > { %v3863_v52 = vsel %vm3742_vm3, %v3862_v42, %v3861_v14  ;;  %v3683_v44 = vadd.s32 %v3682_v40, %v3678_v8  ;;  %v3884_v51 = vadd.s32 3, %v11319_v46  ;;  %vm5735_vm7 = vcmp.eq.s32.totalorder %v5733_v5, 0 }
 0x570   : > { %v3866_v2 = vsel %vm11282_vm9, %v10930_v30, %v3863_v52  ;;  %vm5738_vm6 = vcmp.eq.s32.totalorder %v5733_v5, 2  ;;  %vm5734_vm12 = vcmp.lt.s32.totalorder %v5733_v5, 2  ;;  %v12666_v5 = vxor.u32 2147483648, %v10698_v11 }
 0x571   : > { %v3868_v3 = vmul.f32 %v3866_v2, %v3866_v2  ;;  %v3684_v12 = vadd.s32 536870912, %v3683_v44  ;;  %v3885_v36 = vand.u32 3, %v3884_v51  ;;  %v12677_v30 = vxor.u32 2147483648, %v11025_v32 }
 0x572   : > { %v11313_v38 = vpop.permute.xlu2 %6383 }
 0x573   : > { %v3869_v0 = vmul.f32 -0.001358992, %v3868_v3  ;;  %v3876_v20 = vmul.f32 -0.00019511016, %v3868_v3  ;;  %v11315_v50 = vshrl.u32 %v3684_v12, 30  ;;  %v5579_v12 = vand.u32 3, %v10639_v24 }
 0x574   : > { %vm3887_vm4 = vcmp.eq.s32.totalorder %v3885_v36, 0  ;;  %vm3890_vm2 = vcmp.eq.s32.totalorder %v3885_v36, 2  ;;  %vm3886_vm15 = vcmp.lt.s32.totalorder %v3885_v36, 2 }
 0x575   : > { %v3870_v21 = vadd.f32 0.041655596, %v3869_v0  ;;  %v3877_v23 = vadd.f32 0.008332121, %v3876_v20  ;;  %v3686_v9 = vshll.u32 %v11315_v50, 30  ;;  %v12665_v0 = vxor.u32 2147483648, %v10814_v57 }
 0x576   : > { %vm5584_vm9 = vcmp.eq.s32.totalorder %v5579_v12, 2  ;;  %vm5580_vm3 = vcmp.lt.s32.totalorder %v5579_v12, 2 }
 0x577   : > { %v3871_v15 = vmul.f32 %v3870_v21, %v3868_v3  ;;  %v3878_v63 = vmul.f32 %v3877_v23, %v3868_v3  ;;  %v3687_v29 = vsub.s32 %v3683_v44, %v3686_v9  ;;  %v12664_v44 = vxor.u32 2147483648, %v10828_v18 }
 0x578   : > { %v5740_v20 = vsel %vm5738_vm6, %v12665_v0, %v10828_v18 }
 0x579   : > { %v3872_v14 = vadd.f32 -0.4999988, %v3871_v15  ;;  %v3879_v35 = vadd.f32 -0.16666654, %v3878_v63  ;;  %vm3688_vm13 = vcmp.lt.s32.totalorder %v3687_v29, 0  ;;  %v3689_v28 = vsub.s32 0, %v3687_v29 }
 0x57a   : > { %v11329_v40 = vpop.permute.xlu2 %6575  ;;  %v5737_v13 = vsel %vm5735_vm7, %v10814_v57, %v12664_v44  ;;  %v3679_v15 = vadd.s32 %v11276_v10, %v11274_v49  ;;  %v12667_v10 = vld [vmem:[#allocation18_spill] sm:$0xff] }
 0x57b   : > { %v3873_v42 = vmul.f32 %v3872_v14, %v3868_v3  ;;  %v3880_v22 = vmul.f32 %v3879_v35, %v3868_v3  ;;  %v3690_v52 = vsel %vm3688_vm13, %v3689_v28, %v3687_v29  ;;  %v5741_v61 = vsel %vm5734_vm12, %v5737_v13, %v5740_v20 }
 0x57c   : > { %v3691_v55 = vclz %v3690_v52  ;;  %v11342_v21 = vsel %vm3263_vm1, nan, %v5741_v61  ;;  %vm5581_vm1 = vcmp.eq.s32.totalorder %v5579_v12, 0  ;;  %v6443_v28 = vmul.f32 %v11313_v38, %v12667_v10  ;;  %v11379_v61 = vpop.f32.mrf.mxu1  ;;  %v11410_v10 = vpop.permute.xlu1 %6381 }
 0x57d   : > { %v11324_v59 = vadd.f32 1.0, %v3873_v42  ;;  %v3881_v62 = vadd.f32 1.0, %v3880_v22  ;;  %6589 = vrot.lane.b32.xlu0 %v11342_v21, %s8178_s14  ;;  %v5583_v42 = vsel %vm5581_vm1, %v10690_v4, %v12666_v5  ;;  %vm3728_vm12 = vweird.f32 %v10982_v56 }
 0x57e   : > { %v7823_v3 = vadd.s32 4294967294, %v3691_v55  ;;  %v1046_v47 = vadd.f32 %v11379_v61, %v12635_v7 }
 0x57f   : > { %v11326_v8 = vmul.f32 %v3881_v62, %v3866_v2  ;;  %v3891_v1 = vxor.u32 2147483648, %v11324_v59  ;;  %v12668_v62 = vxor.u32 2147483648, %v10690_v4  ;;  %v1394_v4 = vmul.f32 30.0, %v10305_v39  ;;  %v7918_v39 = vld [vmem:[%s12364_s11 + $0x50] sm:$0xf] }
 0x580   : > { %vm7824_vm8 = vcmp.lt.s32.totalorder %v7823_v3, 0 }
 0x581   : > { %v3888_v2 = vxor.u32 2147483648, %v11326_v8  ;;  %v3892_v18 = vsel %vm3890_vm2, %v3891_v1, %v11326_v8  ;;  %v3694_v23 = vsel %vm7824_vm8, 0, %v7823_v3  ;;  %v5586_v52 = vsel %vm5584_vm9, %v12668_v62, %v10698_v11  ;;  %v12669_v11 = vld [vmem:[#allocation10_spill] sm:$0xff] }
 0x582   : > { %v3695_v58 = vsub.s32 32, %v3694_v23  ;;  %v3699_v63 = vsub.s32 4294967266, %v3694_v23  ;;  %v3696_v14 = vshll.u32 %v3687_v29, %v3694_v23  ;;  %v11368_v36 = vpop.permute.xlu2 %6385  ;;  %v5587_v29 = vsel %vm5580_vm3, %v5583_v42, %v5586_v52 }
 0x583   : > { %v3889_v57 = vsel %vm3887_vm4, %v11324_v59, %v3888_v2  ;;  %v11373_v3 = vsel %vm3108_vm5, nan, %v5587_v29  ;;  %v6475_v12 = vmax.f32 %v12669_v11, 0.0  ;;  %v12670_v23 = vand.u32 2147483647, %v10982_v56 }
 0x584   : > { %v3893_v24 = vsel %vm3886_vm15, %v3889_v57, %v3892_v18  ;;  %v3697_v35 = vshrl.u32 %v3679_v15, %v3695_v58  ;;  %v3700_v51 = vadd.s32 127, %v3699_v63  ;;  %v7926_v57 = vld [vmem:[%s12364_s11 + $0x60] sm:$0xf]  ;;  %v3709_v58 = vsub.s32 4, %v11315_v50 }
 0x585   : > { %v11356_v9 = vsel %vm3883_vm0, nan, %v3893_v24  ;;  %6511 = vrot.lane.b32.xlu0 %v6443_v28, %s8178_s14  ;;  %vm11392_vm5 = vcmp.le.f32.partialorder %v12670_v23, 0.7853982  ;;  %v11398_v15 = vor.u32 %v8004_v25, %v7926_v57  ;;  %v1395_v25 = vmul.f32 30.0, %v10604_v27 }
 0x586   : > { %6405 = vrot.lane.b32.xlu2 %v11356_v9, %s8186_s15  ;;  %v3698_v22 = vor.u32 %v3697_v35, %v3696_v14  ;;  %v3701_v49 = vshll.u32 %v3700_v51, 23  ;;  %v1410_v35 = vadd.f32 0.1, %v1394_v4  ;;  %v3710_v42 = vsel %vm3587_vm14, %v3709_v58, %v11315_v50  ;;  %v11427_v58 = vpop.permute.xlu1 %6387 }
 0x587   : > { %7146 = vmatpush.bf16.msra.mxu2 %v11398_v15  ;;  %v3712_v62 = vsel %vm11392_vm5, 0, %v3710_v42  ;;  %v6445_v27 = vmul.f32 %v11427_v58, %v10041_v6 }
 0x588   : > { %v3702_v55 = vor.u32 4788187, %v3701_v49  ;;  %v3705_v13 = vcvt.s32.f32 %v3698_v22  ;;  %v3729_v4 = vadd.s32 3, %v3712_v62 }
 0x58a   : > { %v3703_v44 = vand.u32 2147483647, %v3702_v55  ;;  %v11388_v18 = vpop.permute.xlu2 %6579  ;;  %v1048_v55 = vpop.f32.mrf.mxu1  ;;  %v3730_v23 = vand.u32 3, %v3729_v4 }
 0x58b   : > { %v1049_v6 = vadd.f32 %v1048_v55, %v12635_v7  ;;  %v7936_v55 = vld [vmem:[%s12364_s11 + $0x78] sm:$0xf0] }
 0x58c   : > { %v3706_v0 = vmul.f32 %v3705_v13, %v3703_v44  ;;  %v12673_v44 = vld [vmem:[#allocation11_spill] sm:$0xff]  ;;  %vm3732_vm13 = vcmp.eq.s32.totalorder %v3730_v23, 0  ;;  %vm3735_vm7 = vcmp.eq.s32.totalorder %v3730_v23, 2  ;;  %vm3731_vm6 = vcmp.lt.s32.totalorder %v3730_v23, 2 }
 0x58d   : > { %6751 = vrot.lane.b32.xlu0 %v6475_v12, %s8178_s14  ;;  %v6477_v13 = vmax.f32 %v12673_v44, 0.0 }
 0x58e   : > { %6587 = vrot.lane.b32.xlu2 %v11373_v3, %s8178_s14  ;;  %v3707_v20 = vxor.u32 2147483648, %v3706_v0 }
 0x590   : > { %v3708_v24 = vsel %vm3587_vm14, %v3707_v20, %v3706_v0 }
 0x591   : > { %v3711_v63 = vsel %vm11392_vm5, %v10982_v56, %v3708_v24  ;;  %v8002_v24 = vld [vmem:[%s12364_s11 + $0x54] sm:$0xf0] }
 0x592   : > { %v3713_v14 = vmul.f32 %v3711_v63, %v3711_v63  ;;  %v11412_v28 = vpop.permute.xlu2 %6389 }
 0x594   : > { %v3714_v51 = vmul.f32 -0.001358992, %v3713_v14  ;;  %v3721_v5 = vmul.f32 -0.00019511016, %v3713_v14 }
 0x595   : > { %6515 = vrot.lane.b32.xlu0 %v6445_v27, %s8178_s14  ;;  %v7910_v27 = vld [vmem:[%s12364_s11 + $0x40] sm:$0xf] }
 0x596   : > { %6653 = vrot.lane.b32.xlu2 %v1410_v35, %s8178_s14  ;;  %v3715_v22 = vadd.f32 0.041655596, %v3714_v51  ;;  %v3722_v49 = vadd.f32 0.008332121, %v3721_v5  ;;  %v11434_v5 = vor.u32 %v8002_v24, %v7918_v39  ;;  %v5887_v24 = vand.u32 3, %v10963_v45 }
 0x597   : > { %v6195_v45 = vand.u32 3, %v3712_v62  ;;  %v12676_v62 = vxor.u32 2147483648, %v11036_v54 }
 0x598   : > { %v3716_v52 = vmul.f32 %v3715_v22, %v3713_v14  ;;  %v3723_v29 = vmul.f32 %v3722_v49, %v3713_v14  ;;  %v1411_v22 = vadd.f32 0.1, %v1395_v25  ;;  %7147 = vmatpush.bf16.msra.mxu2 %v11434_v5  ;;  %v1051_v49 = vpop.f32.mrf.mxu1  ;;  %v12674_v25 = vld [vmem:[#allocation8_spill] sm:$0xff]  ;;  %vm5889_vm15 = vcmp.eq.s32.totalorder %v5887_v24, 0 }
 0x599   : > { %v1052_v44 = vadd.f32 %v1051_v49, %v12635_v7  ;;  %v6442_v23 = vmul.f32 %v11410_v10, %v12674_v25  ;;  %v11485_v49 = vpop.permute.xlu1 %6391  ;;  %vm6200_vm1 = vcmp.eq.s32.totalorder %v6195_v45, 2  ;;  %vm5892_vm9 = vcmp.eq.s32.totalorder %v5887_v24, 2 }
 0x59a   : > { %v3717_v0 = vadd.f32 -0.4999988, %v3716_v52  ;;  %v3724_v20 = vadd.f32 -0.16666654, %v3723_v29  ;;  %v11429_v35 = vpop.permute.xlu2 %6583  ;;  %vm5888_vm3 = vcmp.lt.s32.totalorder %v5887_v24, 2  ;;  %vm6196_vm14 = vcmp.lt.s32.totalorder %v6195_v45, 2 }
 0x59c   : > { %v3718_v11 = vmul.f32 %v3717_v0, %v3713_v14  ;;  %v3725_v12 = vmul.f32 %v3724_v20, %v3713_v14  ;;  %v8005_v0 = vld [vmem:[%s12364_s11 + $0x74] sm:$0xf] }
 0x59d   : > { %v11463_v4 = vor.u32 %v8005_v0, %v7936_v55  ;;  %v7928_v0 = vld [vmem:[%s12364_s11 + $0x68] sm:$0xf0] }
 0x59e   : > { %6755 = vrot.lane.b32.xlu2 %v6477_v13, %s8178_s14  ;;  %v11418_v50 = vadd.f32 1.0, %v3718_v11  ;;  %v3726_v57 = vadd.f32 1.0, %v3725_v12  ;;  %v6349_v11 = vand.u32 3, %v11319_v46  ;;  %v6478_v12 = vmax.f32 %v1049_v6, 0.0 }
 0x59f   : > { %7243 = vmatpush.bf16.msra.mxu0 %v11463_v4 }
 0x5a0   : > { %v11431_v14 = vmul.f32 %v3726_v57, %v3711_v63  ;;  %v3736_v51 = vxor.u32 2147483648, %v11418_v50  ;;  %v6480_v57 = vmax.f32 %v1052_v44, 0.0  ;;  %6757 = vrot.lane.b32.xlu0 %v6478_v12, %s8178_s14  ;;  %vm6351_vm4 = vcmp.eq.s32.totalorder %v6349_v11, 0 }
 0x5a1   : > { %v6353_v39 = vsel %vm6351_vm4, %v11324_v59, %v3888_v2  ;;  %vm6354_vm2 = vcmp.eq.s32.totalorder %v6349_v11, 2  ;;  %vm6350_vm8 = vcmp.lt.s32.totalorder %v6349_v11, 2  ;;  %v6447_v59 = vmul.f32 %v11485_v49, %v10379_v48 }
 0x5a2   : > { %v3733_v42 = vxor.u32 2147483648, %v11431_v14  ;;  %v3737_v52 = vsel %vm3735_vm7, %v3736_v51, %v11431_v14  ;;  %v11461_v20 = vpop.permute.xlu2 %6393  ;;  %v6356_v46 = vsel %vm6354_vm2, %v3891_v1, %v11326_v8  ;;  %v1393_v1 = vmul.f32 30.0, %v10268_v26 }
 0x5a3   : > { %v6041_v48 = vand.u32 3, %v11100_v60  ;;  %v5894_v44 = vsel %vm5892_vm9, %v12677_v30, %v11036_v54  ;;  %v8003_v60 = vld [vmem:[%s12364_s11 + $0x64] sm:$0xf]  ;;  %v12678_v11 = vxor.u32 2147483648, %v11191_v16  ;;  %vm7138_vm4 = vcmask 1043456  }
 0x5a4   : > { %v3734_v63 = vsel %vm3732_vm13, %v11418_v50, %v3733_v42  ;;  %v1409_v26 = vadd.f32 0.1, %v1393_v1  ;;  %vm7113_vm2 = vcmask 326656  }
 0x5a5   : > { %v3738_v29 = vsel %vm3731_vm6, %v3734_v63, %v3737_v52  ;;  %v6357_v63 = vsel %vm6350_vm8, %v6353_v39, %v6356_v46  ;;  %vm6043_vm5 = vcmp.eq.s32.totalorder %v6041_v48, 0  ;;  %vm6046_vm13 = vcmp.eq.s32.totalorder %v6041_v48, 2  ;;  %v12680_v39 = vld [vmem:[#allocation24_spill] sm:$0xff] }
 0x5a6   : > { %6655 = vrot.lane.b32.xlu2 %v1411_v22, %s8178_s14  ;;  %v11451_v13 = vsel %vm3728_vm12, nan, %v3738_v29  ;;  %v8000_v22 = vld [vmem:[%s12364_s11 + $0x44] sm:$0xf0]  ;;  %v11501_v6 = vsel %vm3883_vm0, nan, %v6357_v63  ;;  %v6202_v29 = vsel %vm6200_vm1, %v3736_v51, %v11431_v14  ;;  %vm6197_vm0 = vcmp.eq.s32.totalorder %v6195_v45, 0  ;;  %v12681_v45 = vld [vmem:[#allocation30_spill] sm:$0xff] }
 0x5a7   : > { %6403 = vrot.lane.b32.xlu1 %v11451_v13, %s8186_s15  ;;  %v11489_v52 = vor.u32 %v8000_v22, %v7910_v27  ;;  %v6199_v51 = vsel %vm6197_vm0, %v11418_v50, %v3733_v42  ;;  %v6045_v12 = vsel %vm6043_vm5, %v11182_v34, %v12678_v11  ;;  %vm6042_vm7 = vcmp.lt.s32.totalorder %v6041_v48, 2 }
 0x5a8   : > { %6519 = vrot.lane.b32.xlu0 %v6447_v59, %s8178_s14  ;;  %v6203_v54 = vsel %vm6196_vm14, %v6199_v51, %v6202_v29  ;;  %v12679_v50 = vxor.u32 2147483648, %v11182_v34  ;;  %v6444_v56 = vmul.f32 %v11368_v36, %v12680_v39  ;;  %v7998_v34 = vld [vmem:[%s12364_s11 + $0x34] sm:$0xf0]  ;;  %v6476_v48 = vmax.f32 %v1046_v47, 0.0  ;;  %v7894_v51 = vld [vmem:[%s12364_s11 + $0x20] sm:$0xf] }
 0x5a9   : > { %7148 = vmatpush.bf16.msra.mxu2 %v11489_v52  ;;  %v11553_v27 = vor.u32 %v7998_v34, %v7902_v31  ;;  %v12684_v29 = vld [vmem:[#allocation14_spill] sm:$0xff]  ;;  %v7999_v34 = vld [vmem:[%s12364_s11 + $0x44] sm:$0xf]  ;;  %vm6857_vm6 = vcmask 588800  }
 0x5aa   : > { %v11487_v2 = vpop.permute.xlu2 %6397  ;;  %v6048_v42 = vsel %vm6046_vm13, %v12679_v50, %v11191_v16  ;;  %v6396_v16 = vpop.permute.xlu1 %6395  ;;  %v6483_v30 = vmax.f32 %v12684_v29, 0.0  ;;  %v12688_v39 = vld [vmem:[#allocation46_spill] sm:$0xff] }
 0x5ab   : > { %v11495_v8 = vmul.f32 %v11487_v2, %v11342_v21  ;;  %v5891_v21 = vsel %vm5889_vm15, %v11025_v32, %v12676_v62  ;;  %v11524_v32 = vor.u32 %v8003_v60, %v7928_v0  ;;  %v6049_v25 = vsel %vm6042_vm7, %v6045_v12, %v6048_v42  ;;  %v12683_v62 = vld [vmem:[#allocation16_spill] sm:$0xff]  ;;  %v12685_v60 = vld [vmem:[#allocation23_spill] sm:$0xff] }
 0x5ac   : > { %v5895_v55 = vsel %vm5888_vm3, %v5891_v21, %v5894_v44  ;;  %v6050_v24 = vsel %vm3573_vm10, nan, %v6049_v25  ;;  %v11556_v22 = vmul.f32 %v6396_v16, %v11373_v3  ;;  %v6449_v63 = vmul.f32 %v6396_v16, %v12681_v45  ;;  %v12687_v42 = vld [vmem:[#allocation27_spill] sm:$0xff]  ;;  %v1054_v16 = vpop.f32.mrf.mxu1 }
 0x5ad   : > { %12675 = vst [vmem:[#allocation32_spill] sm:$0xff] %v11495_v8  ;;  %7244 = vmatpush.bf16.msra.mxu0 %v11524_v32  ;;  %v5896_v14 = vsel %vm3418_vm11, nan, %v5895_v55  ;;  %7149 = vmatpush.bf16.msra.mxu2 %v11553_v27  ;;  %v1396_v21 = vmul.f32 30.0, %v12683_v62  ;;  %v6446_v0 = vmul.f32 %v11412_v28, %v12685_v60  ;;  %v6481_v25 = vmax.f32 %v12687_v42, 0.0  ;;  %v7886_v62 = vld [vmem:[%s12364_s11 + $0x10] sm:$0xf] }
 0x5ae   : > { %6761 = vrot.lane.b32.xlu2 %v6480_v57, %s8178_s14  ;;  %v11531_v57 = vsel %vm3728_vm12, nan, %v6203_v54  ;;  %v7996_v54 = vld [vmem:[%s12364_s11 + $0x24] sm:$0xf0]  ;;  %vm6775_vm11 = vcmask 195584   ;;  %vm6840_vm10 = vcmask 392192   ;;  %vm6874_vm12 = vcmask 785408  }
 0x5af   : > { %6509 = vrot.lane.b32.xlu1 %v6442_v23, %s8178_s14  ;;  %v11540_v23 = vpop.permute.xlu0 %6569  ;;  %v1412_v44 = vadd.f32 0.1, %v1396_v21  ;;  %v11596_v12 = vor.u32 %v7996_v54, %v7894_v51  ;;  %v7994_v21 = vld [vmem:[%s12364_s11 + $0x14] sm:$0xf0]  ;;  %v12692_v60 = vld [vmem:[#allocation28_spill] sm:$0xff] }
 0x5b0   : > { %6591 = vrot.lane.b32.xlu0 %v5896_v14, %s8178_s14  ;;  %v7997_v54 = vld [vmem:[%s12364_s11 + $0x34] sm:$0xf] }
 0x5b1   : > { %7150 = vmatpush.bf16.msra.mxu2 %v11596_v12 }
 0x5b2   : > { %v11594_v11 = vpop.permute.xlu1 %6399 }
 0x5b3   : > { %v11599_v50 = vmul.f32 %v11594_v11, %v5896_v14  ;;  %v7912_v14 = vld [vmem:[%s12364_s11 + $0x48] sm:$0xf0] }
 0x5b4   : > { %v6402_v46 = vpop.permute.xlu2 %6401  ;;  %v1057_v29 = vpop.f32.mrf.mxu1 }
 0x5b5   : > { %v11559_v59 = vmul.f32 %v6402_v46, %v6050_v24  ;;  %v6452_v1 = vmul.f32 %v6402_v46, %v11231_v19  ;;  %v7920_v19 = vld [vmem:[%s12364_s11 + $0x58] sm:$0xf0]  ;;  %12686 = vst [vmem:[#allocation18_spill] sm:$0xff] %v11599_v50  ;;  %v11614_v46 = vor.u32 %v7999_v34, %v7912_v14  ;;  %v12694_v14 = vld [vmem:[#allocation47_spill] sm:$0xff] }
 0x5b6   : > { %6597 = vrot.lane.b32.xlu2 %v11501_v6, %s8178_s14 }
 0x5b7   : > { %6651 = vrot.lane.b32.xlu1 %v1409_v26, %s8178_s14  ;;  %12682 = vst [vmem:[#allocation7_spill] sm:$0xff] %v11559_v59  ;;  %v11568_v3 = vpop.permute.xlu0 %6573  ;;  %v8001_v26 = vld [vmem:[%s12364_s11 + $0x54] sm:$0xf] }
 0x5b8   : > { %6523 = vrot.lane.b32.xlu0 %v6449_v63, %s8178_s14  ;;  %v11577_v61 = vor.u32 %v8001_v26, %v7920_v19  ;;  %v12689_v63 = vld [vmem:[#allocation31_spill] sm:$0xff]  ;;  %v11632_v26 = vor.u32 %v7994_v21, %v7886_v62  ;;  %v12703_v59 = vld [vmem:[#allocation13_spill] sm:$0xff] }
 0x5b9   : > { %v6448_v47 = vmul.f32 %v11461_v20, %v12689_v63  ;;  %v12695_v63 = vld [vmem:[#allocation40_spill] sm:$0xff]  ;;  %v6425_v8 = vmul.f32 %v11293_v33, %v12703_v59 }
 0x5ba   : > { %7245 = vmatpush.bf16.msra.mxu0 %v11577_v61  ;;  %7151 = vmatpush.bf16.msra.mxu2 %v11632_v26 }
 0x5be   : > { %6529 = vrot.lane.b32.xlu2 %v6452_v1, %s8178_s14  ;;  %7246 = vmatpush.bf16.msra.mxu0 %v11614_v46 }
 0x5bf   : > { %6513 = vrot.lane.b32.xlu1 %v6444_v56, %s8178_s14  ;;  %v11585_v55 = vpop.permute.xlu0 %6577  ;;  %v1397_v56 = vmul.f32 30.0, %v12688_v39 }
 0x5c0   : > { %6657 = vrot.lane.b32.xlu0 %v1412_v44, %s8178_s14  ;;  %v1058_v44 = vadd.f32 %v1057_v29, %v12635_v7  ;;  %v12698_v29 = vld [vmem:[#allocation33_spill] sm:$0xff] }
 0x5c1   : > { %v1413_v45 = vadd.f32 0.1, %v1397_v56 }
 0x5c2   : > { %v6484_v56 = vmax.f32 %v1058_v44, 0.0  ;;  %v7878_v44 = vld [vmem:[%s12364_s11] sm:$0xf] }
 0x5c6   : > { %6767 = vrot.lane.b32.xlu2 %v6483_v30, %s8178_s14  ;;  %v12691_v30 = vld [vmem:[#allocation22_spill] sm:$0xff] }
 0x5c7   : > { %6753 = vrot.lane.b32.xlu1 %v6476_v48, %s8178_s14  ;;  %v11605_v31 = vpop.permute.xlu0 %6581 }
 0x5c8   : > { %6763 = vrot.lane.b32.xlu0 %v6481_v25, %s8178_s14 }
 0x5cf   : > { %6517 = vrot.lane.b32.xlu1 %v6446_v0, %s8178_s14  ;;  %v11620_v1 = vpop.permute.xlu0 %6585  ;;  %v12693_v0 = vld [vmem:[#allocation55_spill] sm:$0xff] }
 0x5d0   : > { %6659 = vrot.lane.b32.xlu0 %v1413_v45, %s8178_s14  ;;  %v6423_v51 = vmul.f32 %v12693_v0, %v12692_v60  ;;  %v7992_v60 = vld [vmem:[%s12364_s11 + $0x4] sm:$0xf0]  ;;  %v6911_v0 = vld [vmem:[%s12364_s11 + $0xa0] sm:$0xff] }
 0x5d7   : > { %6593 = vrot.lane.b32.xlu1 %v6050_v24, %s8178_s14  ;;  %v6504_v42 = vpop.permute.xlu0 %6503 }
 0x5d8   : > { %v6824_v39 = vsel %vm6775_vm11, %v6423_v51, %v6504_v42  ;;  %v7995_v42 = vld [vmem:[%s12364_s11 + $0x24] sm:$0xf] }
 0x5d9   : > { %v6841_v34 = vsel %vm6840_vm10, %v6824_v39, %v11252_v43  ;;  %v12697_v43 = vld [vmem:[#allocation37_spill] sm:$0xff]  ;;  %v7896_v39 = vld [vmem:[%s12364_s11 + $0x28] sm:$0xf0] }
 0x5da   : > { %v6858_v45 = vsel %vm6857_vm6, %v6841_v34, %v12694_v14  ;;  %v7070_v34 = vunpack.c.h.b16 %v6911_v0  ;;  %v7993_v14 = vld [vmem:[%s12364_s11 + $0x14] sm:$0xf] }
 0x5df   : > { %6521 = vrot.lane.b32.xlu1 %v6448_v47, %s8178_s14  ;;  %v12696_v47 = vld [vmem:[#allocation25_spill] sm:$0xff] }
 0x5e0   : > { %v6406_v24 = vpop.permute.xlu2 %6405  ;;  %v11663_v62 = vsel %vm6874_vm12, %v6858_v45, %v12696_v47  ;;  %v7888_v45 = vld [vmem:[%s12364_s11 + $0x18] sm:$0xf0] }
 0x5e1   : > { %v11624_v48 = vmul.f32 %v6406_v24, %v11501_v6  ;;  %v6454_v19 = vmul.f32 %v6406_v24, %v11356_v9  ;;  %v6479_v6 = vmax.f32 %v12691_v30, 0.0  ;;  %v7904_v9 = vld [vmem:[%s12364_s11 + $0x38] sm:$0xf0]  ;;  %v11659_v24 = vsel %vm6775_vm11, %v12696_v47, %v12695_v63  ;;  %v12699_v63 = vld [vmem:[#allocation43_spill] sm:$0xff] }
 0x5e2   : > { %v11648_v25 = vor.u32 %v7997_v54, %v7904_v9  ;;  %v11668_v21 = vpack.c.bf16 %v11659_v24, %v11663_v62  ;;  %v6424_v30 = vmul.f32 %v11256_v17, %v12698_v29  ;;  %v11686_v17 = vpop.permute.xlu0 %6749  ;;  %v11688_v54 = vor.u32 %v7992_v60, %v7878_v44  ;;  %v12700_v29 = vld [vmem:[#allocation17_spill] sm:$0xff] }
 0x5e3   : > { %12690 = vst [vmem:[#allocation10_spill] sm:$0xff] %v11624_v48  ;;  %6533 = vrot.lane.b32.xlu0 %v6454_v19, %s8178_s14  ;;  %v6450_v19 = vmul.f32 %v11487_v2, %v12697_v43  ;;  %v1055_v2 = vadd.f32 %v1054_v16, %v12635_v7  ;;  %v7069_v9 = vunpack.c.l.b16 %v6911_v0  ;;  %v11698_v16 = vor.u32 %v7995_v42, %v7896_v39 }
 0x5e4   : > { %7247 = vmatpush.bf16.msra.mxu0 %v11648_v25  ;;  %7152 = vmatpush.bf16.msra.mxu2 %v11688_v54  ;;  %v7092_v60 = vpack.c.b16 %v7070_v34, %v7070_v34  ;;  %v11721_v0 = vor.u32 %v7993_v14, %v7888_v45  ;;  %v6929_v48 = vunpack.c.h.bf16 %v11668_v21 }
 0x5e5   : > { %v7091_v43 = vpack.c.b16 %v7069_v9, %v7069_v9  ;;  %v7952_v9 = vld [vmem:[%s12364_s11 + $0x98] sm:$0xf0] }
 0x5e6   : > { %v7143_v34 = vsel %vm7138_vm4, %v7092_v60, 0 }
 0x5e7   : > { %6759 = vrot.lane.b32.xlu1 %v6479_v6, %s8178_s14  ;;  %v6506_v6 = vpop.permute.xlu1 %6505  ;;  %v11732_v39 = vsel %vm7138_vm4, %v7091_v43, 0  ;;  %7297 = vmatpush.bf16.msra.mxu1 %v7143_v34  ;;  %v7991_v43 = vld [vmem:[%s12364_s11 + $0x4] sm:$0xf] }
 0x5e8   : > { %v6825_v51 = vsel %vm6775_vm11, %v6424_v30, %v6506_v6  ;;  %v12701_v30 = vld [vmem:[#allocation36_spill] sm:$0xff]  ;;  %7248 = vmatpush.bf16.msra.mxu0 %v11698_v16  ;;  %7199 = vmatpush.bf16.msrb.mxu3 %v11732_v39 }
 0x5e9   : > { %v6777_v6 = vsel %vm6775_vm11, %v12701_v30, %v12700_v29  ;;  %8029 = vmatpush.bf16.msrb.mxu2 %v7143_v34  ;;  %v8007_v29 = vld [vmem:[%s12364_s11 + $0x84] sm:$0xf] }
 0x5eb   : > { %6769 = vrot.lane.b32.xlu0 %v6484_v56, %s8178_s14  ;;  %v6842_v56 = vsel %vm6840_vm10, %v6825_v51, %v11540_v23  ;;  %v7950_v23 = vld [vmem:[%s12364_s11 + $0x90] sm:$0xf]  ;;  %v8009_v51 = vld [vmem:[%s12364_s11 + $0x94] sm:$0xf] }
 0x5ec   : > { %v6859_v47 = vsel %vm6857_vm6, %v6842_v56, %v12699_v63  ;;  %v6482_v56 = vmax.f32 %v1055_v2, 0.0  ;;  %v7955_v45 = vor.u32 %v8009_v51, %v7952_v9  ;;  %7249 = vmatpush.bf16.msra.mxu0 %v11721_v0  ;;  %v6508_v63 = vpop.permute.xlu0 %6507  ;;  %v7942_v2 = vld [vmem:[%s12364_s11 + $0x80] sm:$0xf]  ;;  %v6928_v9 = vunpack.c.l.bf16 %v11668_v21 }
 0x5ed   : > { %v6876_v44 = vsel %vm6874_vm12, %v6859_v47, %v12701_v30  ;;  %v8008_v47 = vld [vmem:[%s12364_s11 + $0x84] sm:$0xf0]  ;;  %v7944_v30 = vld [vmem:[%s12364_s11 + $0x88] sm:$0xf0] }
 0x5ee   : > { %v11729_v42 = vpack.c.bf16 %v6777_v6, %v6876_v44  ;;  %7298 = vmatpush.bf16.msra.mxu1 %v7955_v45  ;;  %8031 = vmatpush.bf16.msrb.mxu2 %v7955_v45  ;;  %v7947_v51 = vor.u32 %v8007_v29, %v7944_v30  ;;  %v6826_v30 = vsel %vm6775_vm11, %v6425_v8, %v6508_v63  ;;  %v12704_v8 = vld [vmem:[#allocation52_spill] sm:$0xff] }
 0x5ef   : > { %6525 = vrot.lane.b32.xlu1 %v6450_v19, %s8178_s14  ;;  %v8010_v19 = vld [vmem:[%s12364_s11 + $0x94] sm:$0xf0]  ;;  %v6843_v59 = vsel %vm6840_vm10, %v6826_v30, %v11278_v41  ;;  %v12705_v41 = vld [vmem:[#allocation44_spill] sm:$0xff] }
 0x5f0   : > { %v11736_v14 = vor.u32 %v8010_v19, %v7950_v23  ;;  %v7943_v23 = vor.u32 %v8008_v47, %v7942_v2  ;;  %v7880_v19 = vld [vmem:[%s12364_s11 + $0x8] sm:$0xf0]  ;;  %v6930_v47 = vunpack.c.l.bf16 %v11729_v42  ;;  %v6931_v50 = vunpack.c.h.bf16 %v11729_v42 }
 0x5f1   : > { %v11759_v60 = vor.u32 %v7991_v43, %v7880_v19  ;;  %v6960_v43 = vsub.f32 %v11663_v62, %v6928_v9  ;;  %v12707_v62 = vld [vmem:[#allocation42_spill] sm:$0xff] }
 0x5f2   : > { %7200 = vmatpush.bf16.msrb.mxu3 %v11736_v14  ;;  %7299 = vmatpush.bf16.msra.mxu1 %v7947_v51  ;;  %v6962_v19 = vsub.f32 %v6876_v44, %v6930_v47  ;;  %v6963_v29 = vsub.f32 %v6777_v6, %v6931_v50  ;;  %v1398_v6 = vmul.f32 30.0, %v12707_v62  ;;  %v12716_v62 = vld [vmem:[#allocation35_spill] sm:$0xff] }
 0x5f3   : > { %7250 = vmatpush.bf16.msra.mxu0 %v11759_v60  ;;  %8033 = vmatpush.bf16.msrb.mxu2 %v7947_v51 }
 0x5f4   : > { %v11779_v50 = vpop.permute.xlu0 %6589 }
 0x5f6   : > { %7201 = vmatpush.bf16.msrb.mxu3 %v7943_v23  ;;  %7589 = vmatpush.bf16.msrb.mxu1 %v7143_v34 }
 0x5f7   : > { %6765 = vrot.lane.b32.xlu1 %v6482_v56, %s8178_s14  ;;  %v12702_v56 = vld [vmem:[#allocation53_spill] sm:$0xff]  ;;  %7535 = vmatpush.bf16.msrb.mxu0 %v11463_v4  ;;  %v6860_v4 = vsel %vm6857_vm6, %v6843_v59, %v12704_v8  ;;  %v12714_v59 = vld [vmem:[#allocation19_spill] sm:$0xff] }
 0x5f8   : > { %v6451_v2 = vmul.f32 %v11594_v11, %v12702_v56  ;;  %v6961_v11 = vsub.f32 %v11659_v24, %v6929_v48  ;;  %v6992_v56 = vpack.c.bf16 %v6962_v19, %v6960_v43  ;;  %v12706_v48 = vld [vmem:[#allocation34_spill] sm:$0xff] }
 0x5f9   : > { %v6778_v24 = vsel %vm6775_vm11, %v12706_v48, %v12705_v41  ;;  %v6877_v44 = vsel %vm6874_vm12, %v6860_v4, %v12706_v48  ;;  %v12712_v43 = vld [vmem:[#allocation38_spill] sm:$0xff] }
 0x5fa   : > { %8030 = vmatpush.bf16.msra.mxu3 %v7143_v34  ;;  %v6993_v33 = vpack.c.bf16 %v6963_v29, %v6961_v11  ;;  %7153 = vmatmul.bf16.vlgmr.msra.gmra.mxu2 %v6992_v56  ;;  %v11793_v34 = vpack.c.bf16 %v6778_v24, %v6877_v44  ;;  %v1060_v11 = vpop.f32.mrf.mxu3 }
 0x5fb   : > { %7251 = vmatmul.bf16.vlgmr.msra.gmra.mxu0 %v6992_v56  ;;  %7590 = vmatpush.bf16.msrb.mxu1 %v7955_v45 }
 0x5fc   : > { %7956 = vmatmul.msk.bf16.vlgmr.msrb.gmra.mxu3 %vm7113_vm2, %v6993_v33  ;;  %7964 = vmatmul.msk.bf16.vlgmr.msra.gmra.mxu1 %vm7113_vm2, %v6993_v33  ;;  %v6933_v9 = vunpack.c.h.bf16 %v11793_v34 }
 0x5fd   : > { %7536 = vmatpush.bf16.msrb.mxu0 %v11524_v32  ;;  %7437 = vmatpush.bf16.msra.mxu2 %v11299_v53  ;;  %v6512_v53 = vpop.permute.xlu0 %6511  ;;  %v6932_v32 = vunpack.c.l.bf16 %v11793_v34 }
 0x5fe   : > { %8032 = vmatpush.bf16.msra.mxu3 %v7955_v45  ;;  %v1414_v45 = vadd.f32 0.1, %v1398_v6  ;;  %v12717_v6 = vld [vmem:[#allocation39_spill] sm:$0xff] }
 0x5ff   : > { %6527 = vrot.lane.b32.xlu1 %v6451_v2, %s8178_s14  ;;  %7591 = vmatpush.bf16.msrb.mxu1 %v7947_v51  ;;  %v6964_v63 = vsub.f32 %v6877_v44, %v6932_v32  ;;  %v6779_v44 = vsel %vm6775_vm11, %v12717_v6, %v12716_v62  ;;  %v12727_v62 = vld [vmem:[#allocation51_spill] sm:$0xff] }
 0x601   : > { %7537 = vmatpush.bf16.msrb.mxu0 %v11577_v61  ;;  %7438 = vmatpush.bf16.msra.mxu2 %v11398_v15  ;;  %v6965_v61 = vsub.f32 %v6778_v24, %v6933_v9 }
 0x602   : > { %8034 = vmatpush.bf16.msra.mxu3 %v7947_v51  ;;  %v12708_v51 = vld [vmem:[#allocation9_spill] sm:$0xff] }
 0x603   : > { %v6427_v2 = vmul.f32 %v11313_v38, %v12708_v51  ;;  %v12710_v38 = vld [vmem:[#allocation57_spill] sm:$0xff] }
 0x605   : > { %7538 = vmatpush.bf16.msrb.mxu0 %v11614_v46  ;;  %7439 = vmatpush.bf16.msra.mxu2 %v11434_v5  ;;  %v6828_v15 = vsel %vm6775_vm11, %v6427_v2, %v6512_v53  ;;  %v12720_v2 = vld [vmem:[#allocation45_spill] sm:$0xff] }
 0x606   : > { %7491 = vmatpush.bf16.msrb.mxu3 %v11732_v39  ;;  %v6845_v46 = vsel %vm6840_vm10, %v6828_v15, %v11329_v40  ;;  %v11811_v39 = vpop.permute.xlu0 %6751 }
 0x607   : > { %6595 = vrot.lane.b32.xlu1 %v11531_v57, %s8178_s14  ;;  %v6862_v5 = vsel %vm6857_vm6, %v6845_v46, %v12710_v38 }
 0x609   : > { %7539 = vmatpush.bf16.msrb.mxu0 %v11648_v25  ;;  %7440 = vmatpush.bf16.msra.mxu2 %v11489_v52 }
 0x60a   : > { %7492 = vmatpush.bf16.msrb.mxu3 %v11736_v14  ;;  %v12709_v14 = vld [vmem:[#allocation20_spill] sm:$0xff] }
 0x60b   : > { %v6485_v47 = vmax.f32 %v12709_v14, 0.0 }
 0x60d   : > { %7540 = vmatpush.bf16.msrb.mxu0 %v11698_v16  ;;  %7441 = vmatpush.bf16.msra.mxu2 %v11553_v27  ;;  %v6879_v16 = vsel %vm6874_vm12, %v6862_v5, %v12712_v43 }
 0x60e   : > { %7493 = vmatpush.bf16.msrb.mxu3 %v7943_v23  ;;  %v12711_v23 = vld [vmem:[#allocation49_spill] sm:$0xff]  ;;  %v6516_v27 = vpop.permute.xlu0 %6515 }
 0x60f   : > { %6661 = vrot.lane.b32.xlu1 %v1414_v45, %s8178_s14  ;;  %v6780_v52 = vsel %vm6775_vm11, %v12712_v43, %v12711_v23 }
 0x610   : > { %v11829_v29 = vpack.c.bf16 %v6780_v52, %v6879_v16 }
 0x611   : > { %7541 = vmatpush.bf16.msrb.mxu0 %v11721_v0  ;;  %7442 = vmatpush.bf16.msra.mxu2 %v11596_v12  ;;  %v6426_v12 = vmul.f32 %v11410_v10, %v12714_v59  ;;  %v12723_v59 = vld [vmem:[#allocation56_spill] sm:$0xff] }
 0x612   : > { %v6936_v30 = vunpack.c.l.bf16 %v11829_v29  ;;  %v6937_v56 = vunpack.c.h.bf16 %v11829_v29 }
 0x614   : > { %v6968_v0 = vsub.f32 %v6879_v16, %v6936_v30  ;;  %v6969_v8 = vsub.f32 %v6780_v52, %v6937_v56  ;;  %v12722_v30 = vld [vmem:[#allocation5_spill] sm:$0xff] }
 0x615   : > { %7542 = vmatpush.bf16.msrb.mxu0 %v11759_v60  ;;  %7443 = vmatpush.bf16.msra.mxu2 %v11632_v26  ;;  %v12715_v60 = vld [vmem:[#allocation50_spill] sm:$0xff] }
 0x616   : > { %v11852_v26 = vpop.permute.xlu0 %6757 }
 0x617   : > { %6771 = vrot.lane.b32.xlu1 %v6485_v47, %s8178_s14 }
 0x619   : > { %v6404_v25 = vpop.permute.xlu1 %6403  ;;  %7444 = vmatpush.bf16.msra.mxu2 %v11688_v54  ;;  %v12718_v54 = vld [vmem:[#allocation62_spill] sm:$0xff] }
 0x61a   : > { %v11823_v40 = vmul.f32 %v6404_v25, %v11531_v57  ;;  %v6453_v19 = vmul.f32 %v6404_v25, %v11451_v13  ;;  %v1061_v57 = vadd.f32 %v1060_v11, %v12635_v7  ;;  %v12713_v13 = vld [vmem:[#allocation21_spill] sm:$0xff]  ;;  %v11879_v11 = vpop.permute.xlu2 %6587 }
 0x61b   : > { %v6429_v33 = vmul.f32 %v11427_v58, %v12713_v13 }
 0x61c   : > { %6531 = vrot.lane.b32.xlu2 %v6453_v19, %s8178_s14  ;;  %v6486_v48 = vmax.f32 %v1061_v57, 0.0  ;;  %v12721_v19 = vld [vmem:[#allocation15_spill] sm:$0xff] }
 0x61d   : > { %v6830_v41 = vsel %vm6775_vm11, %v6429_v33, %v6516_v27  ;;  %v6431_v16 = vmul.f32 %v11485_v49, %v12721_v19  ;;  %v12731_v19 = vld [vmem:[#allocation54_spill] sm:$0xff] }
 0x61e   : > { %v6847_v10 = vsel %vm6840_vm10, %v6830_v41, %v11388_v18  ;;  %v12719_v18 = vld [vmem:[#allocation29_spill] sm:$0xff]  ;;  %v6520_v43 = vpop.permute.xlu0 %6519  ;;  %v12725_v41 = vld [vmem:[#allocation48_spill] sm:$0xff] }
 0x61f   : > { %v6864_v32 = vsel %vm6857_vm6, %v6847_v10, %v12718_v54  ;;  %v6782_v15 = vsel %vm6775_vm11, %v12720_v2, %v12719_v18  ;;  %v6832_v56 = vsel %vm6775_vm11, %v6431_v16, %v6520_v43 }
 0x620   : > { %v6881_v47 = vsel %vm6874_vm12, %v6864_v32, %v12720_v2 }
 0x621   : > { %v6510_v4 = vpop.permute.xlu1 %6509  ;;  %v11872_v38 = vpack.c.bf16 %v6782_v15, %v6881_v47 }
 0x622   : > { %v6827_v7 = vsel %vm6775_vm11, %v6426_v12, %v6510_v4  ;;  %v6849_v12 = vsel %vm6840_vm10, %v6832_v56, %v11429_v35  ;;  %v12724_v4 = vld [vmem:[#allocation41_spill] sm:$0xff]  ;;  %v12726_v35 = vld [vmem:[#allocation59_spill] sm:$0xff] }
 0x623   : > { %v6844_v24 = vsel %vm6840_vm10, %v6827_v7, %v11568_v3  ;;  %v6940_v23 = vunpack.c.l.bf16 %v11872_v38  ;;  %v6941_v52 = vunpack.c.h.bf16 %v11872_v38 }
 0x624   : > { %v6861_v58 = vsel %vm6857_vm6, %v6844_v24, %v12715_v60  ;;  %6773 = vrot.lane.b32.xlu2 %v6486_v48, %s8178_s14  ;;  %v6781_v48 = vsel %vm6775_vm11, %v12725_v41, %v12724_v4  ;;  %v6866_v24 = vsel %vm6857_vm6, %v6849_v12, %v11254_v37  ;;  %v7362_v4 = vunpack.c.h.b16 %v11793_v34  ;;  %s7990_s14 = sshll.u32 %s12740_s30, 4 }
 0x625   : > { %v6878_v53 = vsel %vm6874_vm12, %v6861_v58, %v12717_v6  ;;  %v6972_v27 = vsub.f32 %v6881_v47, %v6940_v23  ;;  %v11903_v58 = vpop.permute.xlu2 %6653  ;;  %v6784_v6 = vsel %vm6775_vm11, %v12727_v62, %v12726_v35  ;;  %v6883_v54 = vsel %vm6874_vm12, %v6866_v24, %v12727_v62  ;;  %s12235_s26 = scalar_lea.vmem %s12365_s12, %s7990_s14 }
 0x626   : > { %v11859_v3 = vpack.c.bf16 %v6779_v44, %v6878_v53  ;;  %v11912_v32 = vpack.c.bf16 %v6784_v6, %v6883_v54  ;;  %v11927_v43 = vpop.permute.xlu0 %6591  ;;  %v7361_v24 = vunpack.c.l.b16 %v11793_v34 }
 0x628   : > { %v6934_v45 = vunpack.c.l.bf16 %v11859_v3  ;;  %v6935_v9 = vunpack.c.h.bf16 %v11859_v3  ;;  %v6945_v18 = vunpack.c.h.bf16 %v11912_v32 }
 0x629   : > { %v11865_v51 = vpop.permute.xlu1 %6651 }
 0x62a   : > { %v6966_v46 = vsub.f32 %v6878_v53, %v6934_v45  ;;  %v6967_v14 = vsub.f32 %v6779_v44, %v6935_v9  ;;  %v6944_v9 = vunpack.c.l.bf16 %v11912_v32 }
 0x62c   : > { %v6994_v5 = vpack.c.bf16 %v6966_v46, %v6964_v63  ;;  %v6995_v25 = vpack.c.bf16 %v6967_v14, %v6965_v61  ;;  %v6428_v63 = vmul.f32 %v11368_v36, %v12722_v30  ;;  %v6973_v61 = vsub.f32 %v6782_v15, %v6941_v52  ;;  %v12728_v15 = vld [vmem:[#allocation12_spill] sm:$0xff]  ;;  %v12730_v52 = vld [vmem:[#allocation6_spill] sm:$0xff] }
 0x62d   : > { %v6976_v2 = vsub.f32 %v6883_v54, %v6944_v9  ;;  %v6430_v46 = vmul.f32 %v11412_v28, %v12728_v15  ;;  %v6977_v14 = vsub.f32 %v6784_v6, %v6945_v18  ;;  %v6783_v16 = vsel %vm6775_vm11, %v12731_v19, %v12730_v52  ;;  %v12733_v6 = vld [vmem:[#allocation61_spill] sm:$0xff] }
 0x62e   : > { %7158 = vmatmul.bf16.gmra.mxu2 %v6994_v5  ;;  %7957 = vmatmul.msk.bf16.gmra.mxu3 %vm7113_vm2, %v6995_v25  ;;  %v6524_v12 = vpop.permute.xlu0 %6523  ;;  %v7360_v18 = vunpack.c.h.b16 %v11729_v42  ;;  %v7366_v52 = vunpack.c.h.b16 %v11829_v29 }
 0x62f   : > { %7256 = vmatmul.bf16.gmra.mxu0 %v6994_v5  ;;  %7965 = vmatmul.msk.bf16.gmra.mxu1 %vm7113_vm2, %v6995_v25  ;;  %v12729_v25 = vld [vmem:[#allocation60_spill] sm:$0xff] }
 0x631   : > { %v6514_v57 = vpop.permute.xlu1 %6513 }
 0x632   : > { %v6829_v13 = vsel %vm6775_vm11, %v6428_v63, %v6514_v57 }
 0x633   : > { %v6846_v33 = vsel %vm6840_vm10, %v6829_v13, %v11585_v55 }
 0x634   : > { %v6863_v49 = vsel %vm6857_vm6, %v6846_v33, %v12723_v59 }
 0x635   : > { %v6880_v36 = vsel %vm6874_vm12, %v6863_v49, %v12725_v41  ;;  %v7364_v41 = vunpack.c.h.b16 %v11859_v3 }
 0x636   : > { %v11897_v7 = vpack.c.bf16 %v6781_v48, %v6880_v36  ;;  %v6658_v9 = vpop.permute.xlu0 %6657 }
 0x638   : > { %v6938_v55 = vunpack.c.l.bf16 %v11897_v7  ;;  %v6939_v60 = vunpack.c.h.bf16 %v11897_v7 }
 0x639   : > { %v11905_v10 = vpop.permute.xlu1 %6753 }
 0x63a   : > { %v6970_v44 = vsub.f32 %v6880_v36, %v6938_v55  ;;  %v6971_v53 = vsub.f32 %v6781_v48, %v6939_v60  ;;  %v12732_v48 = vld [vmem:[#allocation26_spill] sm:$0xff]  ;;  %v11950_v55 = vpack.c.b16 %v7364_v41, %v7362_v4 }
 0x63b   : > { %v6432_v36 = vmul.f32 %v11461_v20, %v12732_v48 }
 0x63c   : > { %v6996_v37 = vpack.c.bf16 %v6970_v44, %v6968_v0  ;;  %v6997_v45 = vpack.c.bf16 %v6971_v53, %v6969_v8  ;;  %v11921_v0 = vpop.permute.xlu2 %6755  ;;  %v12734_v53 = vld [vmem:[#allocation58_spill] sm:$0xff] }
 0x63d   : > { %v6785_v20 = vsel %vm6775_vm11, %v12734_v53, %v11686_v17 }
 0x63e   : > { %7163 = vmatmul.bf16.gmra.mxu2 %v6996_v37  ;;  %7958 = vmatmul.msk.bf16.gmra.mxu3 %vm7113_vm2, %v6997_v45 }
 0x63f   : > { %7261 = vmatmul.bf16.gmra.mxu0 %v6996_v37  ;;  %7966 = vmatmul.msk.bf16.gmra.mxu1 %vm7113_vm2, %v6997_v45 }
 0x641   : > { %v6518_v47 = vpop.permute.xlu1 %6517 }
 0x642   : > { %v6831_v5 = vsel %vm6775_vm11, %v6430_v46, %v6518_v47 }
 0x643   : > { %v6848_v8 = vsel %vm6840_vm10, %v6831_v5, %v11605_v31 }
 0x644   : > { %v6865_v23 = vsel %vm6857_vm6, %v6848_v8, %v12729_v25  ;;  %v11940_v49 = vpop.permute.xlu2 %6655 }
 0x645   : > { %v6882_v28 = vsel %vm6874_vm12, %v6865_v23, %v12731_v19 }
 0x646   : > { %v11934_v30 = vpack.c.bf16 %v6783_v16, %v6882_v28 }
 0x648   : > { %v6942_v63 = vunpack.c.l.bf16 %v11934_v30  ;;  %v6943_v57 = vunpack.c.h.bf16 %v11934_v30 }
 0x649   : > { %v11938_v56 = vpop.permute.xlu1 %6593 }
 0x64a   : > { %v6974_v31 = vsub.f32 %v6882_v28, %v6942_v63  ;;  %v6975_v13 = vsub.f32 %v6783_v16, %v6943_v57  ;;  %v6786_v16 = vsel %vm6775_vm11, %v11811_v39, %v11905_v10  ;;  %v12735_v57 = vld [vmem:[#allocation32_spill] sm:$0xff] }
 0x64c   : > { %v6998_v33 = vpack.c.bf16 %v6974_v31, %v6972_v27  ;;  %v6999_v59 = vpack.c.bf16 %v6975_v13, %v6973_v61  ;;  %v7363_v27 = vunpack.c.l.b16 %v11859_v3  ;;  %v6834_v3 = vsel %vm6775_vm11, %v11556_v22, %v6524_v12  ;;  %v11968_v37 = vpop.permute.xlu2 %6761  ;;  %v6764_v13 = vpop.permute.xlu0 %6763 }
 0x64d   : > { %v6851_v17 = vsel %vm6840_vm10, %v6834_v3, %v11879_v11  ;;  %v7358_v22 = vunpack.c.h.b16 %v11668_v21 }
 0x64e   : > { %7168 = vmatmul.bf16.gmra.mxu2 %v6998_v33  ;;  %7959 = vmatmul.msk.bf16.gmra.mxu3 %vm7113_vm2, %v6999_v59  ;;  %v11953_v35 = vpack.c.b16 %v7363_v27, %v7361_v24  ;;  %v6868_v5 = vsel %vm6857_vm6, %v6851_v17, %v11865_v51  ;;  %v7368_v51 = vunpack.c.h.b16 %v11897_v7 }
 0x64f   : > { %7266 = vmatmul.bf16.gmra.mxu0 %v6998_v33  ;;  %7967 = vmatmul.msk.bf16.gmra.mxu1 %vm7113_vm2, %v6999_v59  ;;  %v11982_v23 = vpack.c.b16 %v7360_v18, %v7358_v22  ;;  %v6885_v11 = vsel %vm6874_vm12, %v6868_v5, %v11811_v39  ;;  %v6787_v39 = vsel %vm6775_vm11, %v11921_v0, %v11852_v26  ;;  %v12736_v26 = vld [vmem:[#allocation7_spill] sm:$0xff] }
 0x650   : > { %v11999_v63 = vpack.c.b16 %v7368_v51, %v7366_v52  ;;  %v12003_v33 = vpack.c.bf16 %v6786_v16, %v6885_v11 }
 0x651   : > { %v6522_v61 = vpop.permute.xlu1 %6521 }
 0x652   : > { %v6833_v60 = vsel %vm6775_vm11, %v6432_v36, %v6522_v61  ;;  %v6948_v4 = vunpack.c.l.bf16 %v12003_v33  ;;  %v6949_v41 = vunpack.c.h.bf16 %v12003_v33 }
 0x653   : > { %v6850_v62 = vsel %vm6840_vm10, %v6833_v60, %v11620_v1 }
 0x654   : > { %v6867_v44 = vsel %vm6857_vm6, %v6850_v62, %v12733_v6  ;;  %v11994_v19 = vpop.permute.xlu2 %6597  ;;  %v6981_v61 = vsub.f32 %v6786_v16, %v6949_v41 }
 0x655   : > { %v6884_v34 = vsel %vm6874_vm12, %v6867_v44, %v12734_v53  ;;  %v6660_v44 = vpop.permute.xlu0 %6659 }
 0x656   : > { %v11966_v54 = vpack.c.bf16 %v6785_v20, %v6884_v34 }
 0x658   : > { %v6946_v45 = vunpack.c.l.bf16 %v11966_v54  ;;  %v6947_v1 = vunpack.c.h.bf16 %v11966_v54 }
 0x659   : > { %v11973_v15 = vpop.permute.xlu1 %6759 }
 0x65a   : > { %v6978_v46 = vsub.f32 %v6884_v34, %v6946_v45  ;;  %v6979_v47 = vsub.f32 %v6785_v20, %v6947_v1  ;;  %v7370_v45 = vunpack.c.h.b16 %v11872_v38  ;;  %v7372_v1 = vunpack.c.h.b16 %v11934_v30 }
 0x65b   : > { %v6788_v51 = vsel %vm6775_vm11, %v11973_v15, %v11968_v37 }
 0x65c   : > { %v7000_v8 = vpack.c.bf16 %v6978_v46, %v6976_v2  ;;  %v11980_v25 = vpack.c.bf16 %v6979_v47, %v6977_v14  ;;  %v7365_v2 = vunpack.c.l.b16 %v11829_v29  ;;  %v7367_v14 = vunpack.c.l.b16 %v11897_v7  ;;  %v6530_v36 = vpop.permute.xlu2 %6529  ;;  %v12737_v46 = vld [vmem:[#allocation18_spill] sm:$0xff] }
 0x65d   : > { %v6837_v62 = vsel %vm6775_vm11, %v12736_v26, %v6530_v36  ;;  %v12043_v22 = vpack.c.b16 %v7372_v1, %v7370_v45  ;;  %v7373_v36 = vunpack.c.l.b16 %v11912_v32 }
 0x65e   : > { %7173 = vmatmul.bf16.gmra.mxu2 %v7000_v8  ;;  %7960 = vmatmul.msk.bf16.gmra.mxu3 %vm7113_vm2, %v11980_v25  ;;  %v12005_v59 = vpack.c.b16 %v7367_v14, %v7365_v2  ;;  %v6854_v53 = vsel %vm6840_vm10, %v6837_v62, %v11938_v56  ;;  %v7369_v56 = vunpack.c.l.b16 %v11872_v38  ;;  %v7374_v38 = vunpack.c.h.b16 %v11912_v32 }
 0x65f   : > { %7271 = vmatmul.bf16.gmra.mxu0 %v7000_v8  ;;  %7980 = vmatmul.msk.bf16.vlgmr.msrb.gmra.mxu1 %vm7113_vm2, %v11982_v23  ;;  %v6871_v20 = vsel %vm6857_vm6, %v6854_v53, %v6658_v9  ;;  %v7371_v9 = vunpack.c.l.b16 %v11934_v30  ;;  %v7376_v30 = vunpack.c.h.b16 %v11966_v54 }
 0x660   : > { %v6888_v3 = vsel %vm6874_vm12, %v6871_v20, %v6764_v13 }
 0x661   : > { %v6526_v28 = vpop.permute.xlu1 %6525  ;;  %v12045_v5 = vpack.c.b16 %v7371_v9, %v7369_v56 }
 0x662   : > { %v6835_v31 = vsel %vm6775_vm11, %v12735_v57, %v6526_v28  ;;  %v6534_v28 = vpop.permute.xlu0 %6533  ;;  %v12062_v57 = vpack.c.b16 %v7376_v30, %v7374_v38 }
 0x663   : > { %v6852_v29 = vsel %vm6840_vm10, %v6835_v31, %v11779_v50 }
 0x664   : > { %v6869_v7 = vsel %vm6857_vm6, %v6852_v29, %v11903_v58  ;;  %v6980_v58 = vsub.f32 %v6885_v11, %v6948_v4  ;;  %v6768_v8 = vpop.permute.xlu2 %6767 }
 0x665   : > { %v6886_v10 = vsel %vm6874_vm12, %v6869_v7, %v11921_v0 }
 0x666   : > { %v12016_v12 = vpack.c.bf16 %v6787_v39, %v6886_v10 }
 0x668   : > { %v6950_v48 = vunpack.c.l.bf16 %v12016_v12  ;;  %v6951_v50 = vunpack.c.h.bf16 %v12016_v12 }
 0x669   : > { %v6766_v24 = vpop.permute.xlu1 %6765 }
 0x66a   : > { %v6982_v27 = vsub.f32 %v6886_v10, %v6950_v48  ;;  %v6983_v60 = vsub.f32 %v6787_v39, %v6951_v50  ;;  %v6789_v34 = vsel %vm6775_vm11, %v6764_v13, %v6766_v24  ;;  %v6770_v50 = vpop.permute.xlu0 %6769  ;;  %v7375_v24 = vunpack.c.l.b16 %v11966_v54 }
 0x66b   : > { %v12039_v17 = vpack.c.bf16 %v6789_v34, %v6888_v3 }
 0x66c   : > { %v7002_v0 = vpack.c.bf16 %v6982_v27, %v6980_v58  ;;  %v12024_v6 = vpack.c.bf16 %v6983_v60, %v6981_v61  ;;  %v12075_v61 = vpack.c.b16 %v7375_v24, %v7373_v36  ;;  %v12738_v60 = vld [vmem:[#allocation10_spill] sm:$0xff] }
 0x66d   : > { %v6954_v14 = vunpack.c.l.bf16 %v12039_v17  ;;  %v6955_v16 = vunpack.c.h.bf16 %v12039_v17  ;;  %v6839_v26 = vsel %vm6775_vm11, %v12738_v60, %v6534_v28 }
 0x66e   : > { %7178 = vmatmul.bf16.gmra.mxu2 %v7002_v0  ;;  %7961 = vmatmul.msk.bf16.gmra.mxu3 %vm7113_vm2, %v12024_v6  ;;  %v6856_v32 = vsel %vm6840_vm10, %v6839_v26, %v11994_v19 }
 0x66f   : > { %7276 = vmatmul.bf16.gmra.mxu0 %v7002_v0  ;;  %7981 = vmatmul.msk.bf16.gmra.mxu1 %vm7113_vm2, %v11950_v55  ;;  %v6986_v29 = vsub.f32 %v6888_v3, %v6954_v14  ;;  %v6987_v7 = vsub.f32 %v6789_v34, %v6955_v16  ;;  %v7379_v14 = vunpack.c.l.b16 %v12016_v12 }
 0x671   : > { %v6528_v18 = vpop.permute.xlu1 %6527 }
 0x672   : > { %v6836_v47 = vsel %vm6775_vm11, %v12737_v46, %v6528_v18 }
 0x673   : > { %v6853_v11 = vsel %vm6840_vm10, %v6836_v47, %v11927_v43 }
 0x674   : > { %v6870_v52 = vsel %vm6857_vm6, %v6853_v11, %v11940_v49  ;;  %v7380_v11 = vunpack.c.h.b16 %v12016_v12  ;;  %v7357_v12 = vunpack.c.l.b16 %v11668_v21 }
 0x675   : > { %v6887_v2 = vsel %vm6874_vm12, %v6870_v52, %v11973_v15 }
 0x676   : > { %v12060_v43 = vpack.c.bf16 %v6788_v51, %v6887_v2  ;;  %v6532_v10 = vpop.permute.xlu2 %6531 }
 0x677   : > { %v6838_v41 = vsel %vm6775_vm11, %v11823_v40, %v6532_v10  ;;  %v6790_v40 = vsel %vm6775_vm11, %v6768_v8, %v6770_v50 }
 0x678   : > { %v6952_v49 = vunpack.c.l.bf16 %v12060_v43  ;;  %v6953_v31 = vunpack.c.h.bf16 %v12060_v43 }
 0x679   : > { %v6596_v13 = vpop.permute.xlu1 %6595 }
 0x67a   : > { %v6984_v37 = vsub.f32 %v6887_v2, %v6952_v49  ;;  %v6985_v39 = vsub.f32 %v6788_v51, %v6953_v31  ;;  %v6855_v48 = vsel %vm6840_vm10, %v6838_v41, %v6596_v13  ;;  %v7377_v2 = vunpack.c.l.b16 %v12003_v33  ;;  %v12103_v31 = vpop.f32.mrf.mxu0 }
 0x67b   : > { %v6872_v27 = vsel %vm6857_vm6, %v6855_v48, %v6660_v44  ;;  %v7382_v13 = vunpack.c.h.b16 %v12060_v43 }
 0x67c   : > { %v7004_v15 = vpack.c.bf16 %v6986_v29, %v6984_v37  ;;  %v7005_v4 = vpack.c.bf16 %v6987_v7, %v6985_v39  ;;  %v6889_v62 = vsel %vm6874_vm12, %v6872_v27, %v6768_v8  ;;  %v7378_v8 = vunpack.c.h.b16 %v12003_v33 }
 0x67d   : > { %v12081_v0 = vpack.c.bf16 %v6790_v40, %v6889_v62  ;;  %v7154_v53 = vpop.f32.mrf.mxu2  ;;  %v12100_v49 = vpack.c.b16 %v7379_v14, %v7377_v2  ;;  %v7384_v29 = vunpack.c.h.b16 %v12039_v17  ;;  %v7359_v7 = vunpack.c.l.b16 %v11729_v42 }
 0x67e   : > { %7183 = vmatmul.bf16.gmra.mxu2 %v7004_v15  ;;  %7962 = vmatmul.msk.bf16.gmra.mxu3 %vm7113_vm2, %v7005_v4  ;;  %v6774_v54 = vpop.permute.xlu2 %6773  ;;  %v12096_v51 = vpack.c.b16 %v7380_v11, %v7378_v8  ;;  %v7381_v37 = vunpack.c.l.b16 %v12060_v43  ;;  %v7383_v39 = vunpack.c.l.b16 %v12039_v17 }
 0x67f   : > { %7281 = vmatmul.bf16.gmra.mxu0 %v7004_v15  ;;  %7982 = vmatmul.msk.bf16.gmra.mxu1 %vm7113_vm2, %v11999_v63  ;;  %v7203_v20 = vpop.f32.mrf.mxu3  ;;  %v6956_v45 = vunpack.c.l.bf16 %v12081_v0  ;;  %v6957_v9 = vunpack.c.h.bf16 %v12081_v0  ;;  %v12110_v33 = vpack.c.b16 %v7384_v29, %v7382_v13  ;;  %v7389_v15 = vpack.c.b16 %v7359_v7, %v7357_v12 }
 0x680   : > { %v12083_v34 = vadd.f32 %v7203_v20, %v7154_v53  ;;  %v12117_v41 = vpack.c.b16 %v7383_v39, %v7381_v37  ;;  %v7386_v43 = vunpack.c.h.b16 %v12081_v0  ;;  %v7385_v27 = vunpack.c.l.b16 %v12081_v0 }
 0x681   : > { %v6662_v58 = vpop.permute.xlu1 %6661  ;;  %v6988_v19 = vsub.f32 %v6889_v62, %v6956_v45  ;;  %v6989_v52 = vsub.f32 %v6790_v40, %v6957_v9 }
 0x682   : > { %v6873_v44 = vsel %vm6857_vm6, %v6856_v32, %v6662_v58  ;;  %v12115_v10 = vpop.f32.mrf.mxu0 }
 0x685   : > { %v12122_v42 = vpop.f32.mrf.mxu2 }
 0x687   : > { %v12124_v48 = vpop.f32.mrf.mxu3 }
 0x689   : > { %v6772_v3 = vpop.permute.xlu1 %6771 }
 0x68a   : > { %v6791_v1 = vsel %vm6775_vm11, %v6772_v3, %v6774_v54  ;;  %v6890_v56 = vsel %vm6874_vm12, %v6873_v44, %v6772_v3 }
 0x68b   : > { %v6927_v18 = vpack.c.bf16 %v6791_v1, %v6890_v56 }
 0x68d   : > { %v6958_v46 = vunpack.c.l.bf16 %v6927_v18  ;;  %v6959_v47 = vunpack.c.h.bf16 %v6927_v18  ;;  %v7388_v17 = vunpack.c.h.b16 %v6927_v18  ;;  %v7387_v40 = vunpack.c.l.b16 %v6927_v18 }
 0x68f   : > { %v6990_v38 = vsub.f32 %v6890_v56, %v6958_v46  ;;  %v6991_v30 = vsub.f32 %v6791_v1, %v6959_v47  ;;  %7983 = vmatmul.msk.bf16.gmra.mxu1 %vm7113_vm2, %v12043_v22  ;;  %v12131_v50 = vpack.c.b16 %v7388_v17, %v7386_v43  ;;  %v12144_v60 = vpack.c.b16 %v7387_v40, %v7385_v27 }
 0x691   : > { %v7007_v16 = vpack.c.bf16 %v6991_v30, %v6989_v52  ;;  %v7006_v28 = vpack.c.bf16 %v6990_v38, %v6988_v19 }
 0x693   : > { %7188 = vmatmul.bf16.gmra.mxu2 %v7006_v28  ;;  %7963 = vmatmul.msk.bf16.gmra.mxu3 %vm7113_vm2, %v7007_v16 }
 0x694   : > { %7286 = vmatmul.bf16.gmra.mxu0 %v7006_v28 }
 0x69f   : > { %7984 = vmatmul.msk.bf16.gmra.mxu1 %vm7113_vm2, %v12062_v57 }
 0x6a3   : > { %7968 = vmatmul.msk.bf16.vlgmr.msrb.gmra.mxu2 %vm7113_vm2, %v11980_v25  ;;  %7970 = vmatmul.msk.bf16.vlgmr.msra.gmra.mxu3 %vm7113_vm2, %v7005_v4  ;;  %v12138_v4 = vpop.f32.mrf.mxu1 }
 0x6a4   : > { %7543 = vmatmul.bf16.vlgmr.msrb.gmra.mxu0 %v7389_v15 }
 0x6ac   : > { %v12126_v21 = vpop.f32.mrf.mxu0 }
 0x6af   : > { %7985 = vmatmul.msk.bf16.gmra.mxu1 %vm7113_vm2, %v12096_v51 }
 0x6b1   : > { %v7159_v36 = vpop.f32.mrf.mxu2  ;;  %v7208_v24 = vpop.f32.mrf.mxu3 }
 0x6b2   : > { %v12133_v25 = vadd.f32 %v7208_v24, %v7159_v36 }
 0x6b3   : > { %7969 = vmatmul.msk.bf16.gmra.mxu2 %vm7113_vm2, %v12024_v6  ;;  %7971 = vmatmul.msk.bf16.gmra.mxu3 %vm7113_vm2, %v7007_v16  ;;  %v12150_v6 = vpop.f32.mrf.mxu1 }
 0x6b4   : > { %v12140_v58 = vpop.f32.mrf.mxu0  ;;  %7548 = vmatmul.bf16.gmra.mxu0 %v11953_v35 }
 0x6b9   : > { %v7161_v26 = vpop.f32.mrf.mxu2  ;;  %v7210_v62 = vpop.f32.mrf.mxu3 }
 0x6ba   : > { %v12146_v53 = vadd.f32 %v7210_v62, %v7161_v26 }
 0x6bb   : > { %v12161_v3 = vpop.f32.mrf.mxu1 }
 0x6bc   : > { %v12148_v20 = vpop.f32.mrf.mxu0 }
 0x6bf   : > { %7986 = vmatmul.msk.bf16.gmra.mxu1 %vm7113_vm2, %v12110_v33 }
 0x6c1   : > { %v7164_v32 = vpop.f32.mrf.mxu2  ;;  %v7213_v54 = vpop.f32.mrf.mxu3 }
 0x6c2   : > { %v12154_v44 = vadd.f32 %v7213_v54, %v7164_v32 }
 0x6c3   : > { %7445 = vmatmul.bf16.vlgmr.msra.gmra.mxu2 %v7389_v15  ;;  %7972 = vmatmul.msk.bf16.vlgmr.msrb.gmra.mxu3 %vm7113_vm2, %v11982_v23  ;;  %v12169_v47 = vpop.f32.mrf.mxu1 }
 0x6c4   : > { %v12158_v0 = vpop.f32.mrf.mxu0  ;;  %7553 = vmatmul.bf16.gmra.mxu0 %v12005_v59 }
 0x6c9   : > { %v7166_v45 = vpop.f32.mrf.mxu2  ;;  %v7215_v1 = vpop.f32.mrf.mxu3 }
 0x6ca   : > { %v12163_v56 = vadd.f32 %v7215_v1, %v7166_v45 }
 0x6cb   : > { %v12181_v38 = vpop.f32.mrf.mxu1 }
 0x6cc   : > { %v12165_v9 = vpop.f32.mrf.mxu0 }
 0x6cf   : > { %7987 = vmatmul.msk.bf16.gmra.mxu1 %vm7113_vm2, %v12131_v50 }
 0x6d1   : > { %v7169_v18 = vpop.f32.mrf.mxu2  ;;  %v7218_v46 = vpop.f32.mrf.mxu3 }
 0x6d2   : > { %v12171_v23 = vadd.f32 %v7218_v46, %v7169_v18 }
 0x6d3   : > { %7450 = vmatmul.bf16.gmra.mxu2 %v11953_v35  ;;  %7973 = vmatmul.msk.bf16.gmra.mxu3 %vm7113_vm2, %v11950_v55  ;;  %v12193_v35 = vpop.f32.mrf.mxu1 }
 0x6d4   : > { %v12176_v8 = vpop.f32.mrf.mxu0  ;;  %7558 = vmatmul.bf16.gmra.mxu0 %v12045_v5 }
 0x6d9   : > { %v7171_v11 = vpop.f32.mrf.mxu2  ;;  %v7220_v19 = vpop.f32.mrf.mxu3 }
 0x6da   : > { %v12179_v52 = vadd.f32 %v7220_v19, %v7171_v11 }
 0x6db   : > { %v12199_v12 = vpop.f32.mrf.mxu1 }
 0x6dc   : > { %v12183_v30 = vpop.f32.mrf.mxu0 }
 0x6e1   : > { %v7174_v2 = vpop.f32.mrf.mxu2  ;;  %v7223_v14 = vpop.f32.mrf.mxu3 }
 0x6e2   : > { %v12185_v16 = vadd.f32 %v7223_v14, %v7174_v2 }
 0x6e3   : > { %7455 = vmatmul.bf16.gmra.mxu2 %v12005_v59  ;;  %7974 = vmatmul.msk.bf16.gmra.mxu3 %vm7113_vm2, %v11999_v63  ;;  %v12211_v36 = vpop.f32.mrf.mxu1 }
 0x6e4   : > { %v12190_v55 = vpop.f32.mrf.mxu0  ;;  %7563 = vmatmul.bf16.gmra.mxu0 %v12075_v61 }
 0x6e9   : > { %v7176_v28 = vpop.f32.mrf.mxu2  ;;  %v7225_v13 = vpop.f32.mrf.mxu3 }
 0x6ea   : > { %v12195_v29 = vadd.f32 %v7225_v13, %v7176_v28  ;;  %v7302_v28 = vadd.f32 %v12138_v4, %v12103_v31 }
 0x6ec   : > { %v12197_v7 = vpop.f32.mrf.mxu0 }
 0x6f1   : > { %v7179_v37 = vpop.f32.mrf.mxu2  ;;  %v7228_v39 = vpop.f32.mrf.mxu3 }
 0x6f2   : > { %v12201_v59 = vadd.f32 %v7228_v39, %v7179_v37 }
 0x6f3   : > { %7460 = vmatmul.bf16.gmra.mxu2 %v12045_v5  ;;  %7975 = vmatmul.msk.bf16.gmra.mxu3 %vm7113_vm2, %v12043_v22  ;;  %v7593_v22 = vpop.f32.mrf.mxu1 }
 0x6f4   : > { %v12206_v63 = vpop.f32.mrf.mxu0  ;;  %7568 = vmatmul.bf16.gmra.mxu0 %v12100_v49 }
 0x6f9   : > { %v7181_v15 = vpop.f32.mrf.mxu2  ;;  %v7230_v43 = vpop.f32.mrf.mxu3 }
 0x6fa   : > { %v12209_v17 = vadd.f32 %v7230_v43, %v7181_v15  ;;  %v7304_v15 = vadd.f32 %v12150_v6, %v12115_v10 }
 0x6fb   : > { %v7595_v45 = vpop.f32.mrf.mxu1 }
 0x6fc   : > { %v7282_v24 = vpop.f32.mrf.mxu0 }
 0x701   : > { %v7184_v27 = vpop.f32.mrf.mxu2  ;;  %v7233_v40 = vpop.f32.mrf.mxu3 }
 0x702   : > { %v12213_v26 = vadd.f32 %v7233_v40, %v7184_v27 }
 0x703   : > { %7465 = vmatmul.bf16.gmra.mxu2 %v12075_v61  ;;  %7976 = vmatmul.msk.bf16.gmra.mxu3 %vm7113_vm2, %v12062_v57  ;;  %v7598_v46 = vpop.f32.mrf.mxu1 }
 0x704   : > { %7573 = vmatmul.bf16.gmra.mxu0 %v12117_v41  ;;  %v7284_v5 = vpop.f32.mrf.mxu0 }
 0x709   : > { %v7186_v62 = vpop.f32.mrf.mxu2  ;;  %v7235_v32 = vpop.f32.mrf.mxu3 }
 0x70a   : > { %v12219_v54 = vadd.f32 %v7235_v32, %v7186_v62 }
 0x711   : > { %v7287_v1 = vpop.f32.mrf.mxu0 }
 0x713   : > { %7470 = vmatmul.bf16.gmra.mxu2 %v12100_v49  ;;  %7977 = vmatmul.msk.bf16.gmra.mxu3 %vm7113_vm2, %v12096_v51  ;;  %v7600_v51 = vpop.f32.mrf.mxu1 }
 0x714   : > { %7578 = vmatmul.bf16.gmra.mxu0 %v12144_v60 }
 0x716   : > { %v7189_v61 = vpop.f32.mrf.mxu2  ;;  %v7238_v57 = vpop.f32.mrf.mxu3 }
 0x717   : > { %v12225_v18 = vadd.f32 %v7238_v57, %v7189_v61 }
 0x719   : > { %v7289_v11 = vpop.f32.mrf.mxu0 }
 0x71b   : > { %v7603_v62 = vpop.f32.mrf.mxu1 }
 0x71e   : > { %v7191_v19 = vpop.f32.mrf.mxu2  ;;  %v7240_v2 = vpop.f32.mrf.mxu3 }
 0x71f   : > { %v12227_v14 = vadd.f32 %v7240_v2, %v7191_v19 }
 0x721   : > { %v7544_v49 = vpop.f32.mrf.mxu0 }
 0x722   : > { %v7545_v13 = vadd.f32 %v7544_v49, %v7302_v28  ;;  %v7312_v28 = vadd.f32 %v12181_v38, %v12148_v20 }
 0x723   : > { %7475 = vmatmul.bf16.gmra.mxu2 %v12117_v41  ;;  %7978 = vmatmul.msk.bf16.gmra.mxu3 %vm7113_vm2, %v12110_v33 }
 0x724   : > { %v7594_v37 = vadd.f32 %v7593_v22, %v7545_v13 }
 0x726   : > { %7634 = vst.msk [vmem:[%s12235_s26 + $0x8] sm:$0xff] %vm7113_vm2, %v7594_v37  ;;  %v12242_v39 = vpop.f32.mrf.mxu2  ;;  %v7331_v31 = vpop.f32.mrf.mxu3 }
 0x727   : > { %v12244_v4 = vadd.f32 %v7331_v31, %v7282_v24  ;;  %v7307_v24 = vadd.f32 %v12161_v3, %v12126_v21  ;;  %v7309_v21 = vadd.f32 %v12169_v47, %v12140_v58  ;;  %v7314_v31 = vadd.f32 %v12193_v35, %v12158_v0 }
 0x729   : > { %v7546_v43 = vpop.f32.mrf.mxu0 }
 0x72a   : > { %v7547_v27 = vadd.f32 %v7546_v43, %v7304_v15 }
 0x72c   : > { %v7596_v40 = vadd.f32 %v7595_v45, %v7547_v27  ;;  %v7206_v27 = vadd.f32 %v12124_v48, %v12122_v42 }
 0x72e   : > { %7636 = vst.msk [vmem:[%s12235_s26 + $0x18] sm:$0xff] %vm7113_vm2, %v7596_v40  ;;  %v12250_v41 = vpop.f32.mrf.mxu2  ;;  %v7333_v33 = vpop.f32.mrf.mxu3 }
 0x72f   : > { %v12252_v22 = vadd.f32 %v7333_v33, %v7284_v5  ;;  %v7605_v5 = vpop.f32.mrf.mxu1 }
 0x731   : > { %v7549_v32 = vpop.f32.mrf.mxu0 }
 0x732   : > { %v7550_v61 = vadd.f32 %v7549_v32, %v7307_v24 }
 0x733   : > { %7480 = vmatmul.bf16.gmra.mxu2 %v12144_v60  ;;  %7979 = vmatmul.msk.bf16.gmra.mxu3 %vm7113_vm2, %v12131_v50 }
 0x734   : > { %v7599_v10 = vadd.f32 %v7598_v46, %v7550_v61 }
 0x736   : > { %7638 = vst.msk [vmem:[%s12235_s26 + $0x28] sm:$0xff] %vm7113_vm2, %v7599_v10  ;;  %v12261_v6 = vpop.f32.mrf.mxu2  ;;  %v7336_v45 = vpop.f32.mrf.mxu3 }
 0x737   : > { %v12263_v57 = vadd.f32 %v7336_v45, %v7287_v1  ;;  %v7608_v49 = vpop.f32.mrf.mxu1  ;;  %v7319_v45 = vadd.f32 %v12211_v36, %v12176_v8 }
 0x739   : > { %v7551_v3 = vpop.f32.mrf.mxu0 }
 0x73a   : > { %v7552_v19 = vadd.f32 %v7551_v3, %v7309_v21 }
 0x73c   : > { %v7601_v2 = vadd.f32 %v7600_v51, %v7552_v19 }
 0x73e   : > { %7640 = vst.msk [vmem:[%s12235_s26 + $0x38] sm:$0xff] %vm7113_vm2, %v7601_v2  ;;  %v12269_v60 = vpop.f32.mrf.mxu2  ;;  %v7338_v50 = vpop.f32.mrf.mxu3 }
 0x73f   : > { %v12271_v46 = vadd.f32 %v7338_v50, %v7289_v11  ;;  %v7610_v20 = vpop.f32.mrf.mxu1 }
 0x741   : > { %v7554_v1 = vpop.f32.mrf.mxu0 }
 0x742   : > { %v7555_v13 = vadd.f32 %v7554_v1, %v7312_v28 }
 0x744   : > { %v7604_v37 = vadd.f32 %v7603_v62, %v7555_v13 }
 0x746   : > { %7642 = vst.msk [vmem:[%s12235_s26 + $0x48] sm:$0xff] %vm7113_vm2, %v7604_v37  ;;  %v7446_v58 = vpop.f32.mrf.mxu2  ;;  %v7495_v47 = vpop.f32.mrf.mxu3 }
 0x747   : > { %v7447_v51 = vadd.f32 %v7446_v58, %v12083_v34  ;;  %v7317_v34 = vadd.f32 %v12199_v12, %v12165_v9  ;;  %v7613_v61 = vpop.f32.mrf.mxu1  ;;  %v7324_v58 = vadd.f32 %v12250_v41, %v12190_v55 }
 0x749   : > { %v7496_v11 = vadd.f32 %v7495_v47, %v7447_v51  ;;  %v7556_v15 = vpop.f32.mrf.mxu0 }
 0x74a   : > { %v7557_v43 = vadd.f32 %v7556_v15, %v7314_v31 }
 0x74b   : > { %7633 = vst [vmem:[%s12235_s26] sm:$0xff] %v7496_v11 }
 0x74c   : > { %v7606_v38 = vadd.f32 %v7605_v5, %v7557_v43 }
 0x74e   : > { %7644 = vst.msk [vmem:[%s12235_s26 + $0x58] sm:$0xff] %vm7113_vm2, %v7606_v38  ;;  %v7448_v40 = vpop.f32.mrf.mxu2  ;;  %v7497_v62 = vpop.f32.mrf.mxu3 }
 0x74f   : > { %v7449_v33 = vadd.f32 %v7448_v40, %v7206_v27  ;;  %v7615_v2 = vpop.f32.mrf.mxu1 }
 0x751   : > { %v7498_v0 = vadd.f32 %v7497_v62, %v7449_v33  ;;  %v7559_v35 = vpop.f32.mrf.mxu0 }
 0x752   : > { %v7560_v24 = vadd.f32 %v7559_v35, %v7317_v34 }
 0x753   : > { %7635 = vst [vmem:[%s12235_s26 + $0x10] sm:$0xff] %v7498_v0 }
 0x754   : > { %v7609_v32 = vadd.f32 %v7608_v49, %v7560_v24 }
 0x756   : > { %7646 = vst.msk [vmem:[%s12235_s26 + $0x68] sm:$0xff] %vm7113_vm2, %v7609_v32  ;;  %v7451_v10 = vpop.f32.mrf.mxu2  ;;  %v7500_v42 = vpop.f32.mrf.mxu3 }
 0x757   : > { %v7452_v48 = vadd.f32 %v7451_v10, %v12133_v25  ;;  %v7322_v25 = vadd.f32 %v12242_v39, %v12183_v30 }
 0x759   : > { %v7501_v5 = vadd.f32 %v7500_v42, %v7452_v48  ;;  %v7561_v9 = vpop.f32.mrf.mxu0 }
 0x75a   : > { %v7562_v12 = vadd.f32 %v7561_v9, %v7319_v45 }
 0x75b   : > { %7637 = vst [vmem:[%s12235_s26 + $0x20] sm:$0xff] %v7501_v5 }
 0x75c   : > { %v7611_v21 = vadd.f32 %v7610_v20, %v7562_v12 }
 0x75e   : > { %7648 = vst.msk [vmem:[%s12235_s26 + $0x78] sm:$0xff] %vm7113_vm2, %v7611_v21  ;;  %v7453_v3 = vpop.f32.mrf.mxu2  ;;  %v7502_v19 = vpop.f32.mrf.mxu3 }
 0x75f   : > { %v7454_v50 = vadd.f32 %v7453_v3, %v12146_v53  ;;  %v7618_v53 = vpop.f32.mrf.mxu1 }
 0x761   : > { %v7503_v28 = vadd.f32 %v7502_v19, %v7454_v50  ;;  %v7564_v8 = vpop.f32.mrf.mxu0 }
 0x762   : > { %v7565_v36 = vadd.f32 %v7564_v8, %v7322_v25 }
 0x763   : > { %7639 = vst [vmem:[%s12235_s26 + $0x30] sm:$0xff] %v7503_v28 }
 0x764   : > { %v7614_v49 = vadd.f32 %v7613_v61, %v7565_v36 }
 0x766   : > { %7650 = vst.msk [vmem:[%s12235_s26 + $0x88] sm:$0xff] %vm7113_vm2, %v7614_v49  ;;  %v7456_v1 = vpop.f32.mrf.mxu2  ;;  %v7505_v13 = vpop.f32.mrf.mxu3 }
 0x767   : > { %v7457_v37 = vadd.f32 %v7456_v1, %v12154_v44  ;;  %v7327_v44 = vadd.f32 %v12261_v6, %v12197_v7  ;;  %v7620_v20 = vpop.f32.mrf.mxu1 }
 0x769   : > { %v7506_v47 = vadd.f32 %v7505_v13, %v7457_v37  ;;  %v7566_v30 = vpop.f32.mrf.mxu0 }
 0x76a   : > { %v7567_v39 = vadd.f32 %v7566_v30, %v7324_v58 }
 0x76b   : > { %7641 = vst [vmem:[%s12235_s26 + $0x40] sm:$0xff] %v7506_v47 }
 0x76c   : > { %v7616_v51 = vadd.f32 %v7615_v2, %v7567_v39 }
 0x76e   : > { %7652 = vst.msk [vmem:[%s12235_s26 + $0x98] sm:$0xff] %vm7113_vm2, %v7616_v51  ;;  %v7458_v31 = vpop.f32.mrf.mxu2  ;;  %v7507_v11 = vpop.f32.mrf.mxu3 }
 0x76f   : > { %v7459_v15 = vadd.f32 %v7458_v31, %v12163_v56  ;;  %v7329_v56 = vadd.f32 %v12269_v60, %v12206_v63  ;;  %v7623_v0 = vpop.f32.mrf.mxu1 }
 0x771   : > { %v7508_v43 = vadd.f32 %v7507_v11, %v7459_v15  ;;  %v7569_v55 = vpop.f32.mrf.mxu0 }
 0x772   : > { %v7570_v41 = vadd.f32 %v7569_v55, %v7327_v44 }
 0x773   : > { %7643 = vst [vmem:[%s12235_s26 + $0x50] sm:$0xff] %v7508_v43 }
 0x774   : > { %v7619_v38 = vadd.f32 %v7618_v53, %v7570_v41 }
 0x776   : > { %7654 = vst.msk [vmem:[%s12235_s26 + $0xa8] sm:$0xff] %vm7113_vm2, %v7619_v38  ;;  %v7461_v27 = vpop.f32.mrf.mxu2  ;;  %v7510_v40 = vpop.f32.mrf.mxu3 }
 0x777   : > { %v7462_v62 = vadd.f32 %v7461_v27, %v12171_v23  ;;  %v7625_v48 = vpop.f32.mrf.mxu1 }
 0x779   : > { %v7511_v33 = vadd.f32 %v7510_v40, %v7462_v62  ;;  %v7571_v7 = vpop.f32.mrf.mxu0 }
 0x77a   : > { %v7572_v6 = vadd.f32 %v7571_v7, %v7329_v56 }
 0x77b   : > { %7645 = vst [vmem:[%s12235_s26 + $0x60] sm:$0xff] %v7511_v33 }
 0x77c   : > { %v7621_v34 = vadd.f32 %v7620_v20, %v7572_v6 }
 0x77e   : > { %7656 = vst.msk [vmem:[%s12235_s26 + $0xb8] sm:$0xff] %vm7113_vm2, %v7621_v34  ;;  %v7463_v35 = vpop.f32.mrf.mxu2  ;;  %v7512_v24 = vpop.f32.mrf.mxu3 }
 0x77f   : > { %v7464_v32 = vadd.f32 %v7463_v35, %v12179_v52  ;;  %v7628_v19 = vpop.f32.mrf.mxu1 }
 0x781   : > { %v7513_v61 = vadd.f32 %v7512_v24, %v7464_v32  ;;  %v7574_v23 = vpop.f32.mrf.mxu0 }
 0x782   : > { %v7575_v10 = vadd.f32 %v7574_v23, %v12244_v4 }
 0x783   : > { %7647 = vst [vmem:[%s12235_s26 + $0x70] sm:$0xff] %v7513_v61 }
 0x784   : > { %v7624_v63 = vadd.f32 %v7623_v0, %v7575_v10 }
 0x786   : > { %7658 = vst.msk [vmem:[%s12235_s26 + $0xc8] sm:$0xff] %vm7113_vm2, %v7624_v63  ;;  %v7466_v60 = vpop.f32.mrf.mxu2  ;;  %v7515_v42 = vpop.f32.mrf.mxu3 }
 0x787   : > { %v7467_v45 = vadd.f32 %v7466_v60, %v12185_v16  ;;  %v7630_v1 = vpop.f32.mrf.mxu1 }
 0x789   : > { %v7516_v5 = vadd.f32 %v7515_v42, %v7467_v45  ;;  %v7576_v9 = vpop.f32.mrf.mxu0 }
 0x78a   : > { %v7577_v52 = vadd.f32 %v7576_v9, %v12252_v22 }
 0x78b   : > { %7649 = vst [vmem:[%s12235_s26 + $0x80] sm:$0xff] %v7516_v5 }
 0x78c   : > { %v7626_v12 = vadd.f32 %v7625_v48, %v7577_v52 }
 0x78e   : > { %7660 = vst.msk [vmem:[%s12235_s26 + $0xd8] sm:$0xff] %vm7113_vm2, %v7626_v12  ;;  %v7468_v4 = vpop.f32.mrf.mxu2  ;;  %v7517_v21 = vpop.f32.mrf.mxu3 }
 0x78f   : > { %v7469_v3 = vadd.f32 %v7468_v4, %v12195_v29 }
 0x791   : > { %v7518_v2 = vadd.f32 %v7517_v21, %v7469_v3  ;;  %v7579_v50 = vpop.f32.mrf.mxu0 }
 0x792   : > { %v7580_v16 = vadd.f32 %v7579_v50, %v12263_v57 }
 0x793   : > { %7651 = vst [vmem:[%s12235_s26 + $0x90] sm:$0xff] %v7518_v2 }
 0x794   : > { %v7629_v25 = vadd.f32 %v7628_v19, %v7580_v16 }
 0x796   : > { %7662 = vst.msk [vmem:[%s12235_s26 + $0xe8] sm:$0xff] %vm7113_vm2, %v7629_v25  ;;  %v7471_v22 = vpop.f32.mrf.mxu2  ;;  %v7520_v28 = vpop.f32.mrf.mxu3 }
 0x797   : > { %v7472_v8 = vadd.f32 %v7471_v22, %v12201_v59 }
 0x799   : > { %v7521_v36 = vadd.f32 %v7520_v28, %v7472_v8  ;;  %v7581_v49 = vpop.f32.mrf.mxu0 }
 0x79a   : > { %v7582_v29 = vadd.f32 %v7581_v49, %v12271_v46 }
 0x79b   : > { %7653 = vst [vmem:[%s12235_s26 + $0xa0] sm:$0xff] %v7521_v36 }
 0x79c   : > { %v7631_v13 = vadd.f32 %v7630_v1, %v7582_v29 }
 0x79e   : > { %7664 = vst.msk [vmem:[%s12235_s26 + $0xf8] sm:$0xff] %vm7113_vm2, %v7631_v13  ;;  %v7473_v57 = vpop.f32.mrf.mxu2  ;;  %v7522_v37 = vpop.f32.mrf.mxu3 }
 0x79f   : > { %v7474_v58 = vadd.f32 %v7473_v57, %v12209_v17 }
 0x7a1   : > { %v7523_v53 = vadd.f32 %v7522_v37, %v7474_v58 }
 0x7a3   : > { %7655 = vst [vmem:[%s12235_s26 + $0xb0] sm:$0xff] %v7523_v53 }
 0x7a6   : > { %v7476_v47 = vpop.f32.mrf.mxu2  ;;  %v7525_v59 = vpop.f32.mrf.mxu3 }
 0x7a7   : > { %v7477_v30 = vadd.f32 %v7476_v47, %v12213_v26 }
 0x7a9   : > { %v7526_v39 = vadd.f32 %v7525_v59, %v7477_v30 }
 0x7ab   : > { %7657 = vst [vmem:[%s12235_s26 + $0xc0] sm:$0xff] %v7526_v39 }
 0x7ae   : > { %v7478_v46 = vpop.f32.mrf.mxu2  ;;  %v7527_v51 = vpop.f32.mrf.mxu3 }
 0x7af   : > { %v7479_v31 = vadd.f32 %v7478_v46, %v12219_v54 }
 0x7b1   : > { %v7528_v11 = vadd.f32 %v7527_v51, %v7479_v31 }
 0x7b3   : > { %7659 = vst [vmem:[%s12235_s26 + $0xd0] sm:$0xff] %v7528_v11 }
 0x7b6   : > { %v7481_v15 = vpop.f32.mrf.mxu2  ;;  %v7530_v44 = vpop.f32.mrf.mxu3 }
 0x7b7   : > { %v7482_v17 = vadd.f32 %v7481_v15, %v12225_v18 }
 0x7b9   : > { %v7531_v43 = vadd.f32 %v7530_v44, %v7482_v17 }
 0x7bb   : > { %7661 = vst [vmem:[%s12235_s26 + $0xe0] sm:$0xff] %v7531_v43 }
 0x7be   : > { %v7483_v55 = vpop.f32.mrf.mxu2  ;;  %v7532_v20 = vpop.f32.mrf.mxu3 }
 0x7bf   : > { %v7484_v41 = vadd.f32 %v7483_v55, %v12227_v14 }
 0x7c1   : > { %v7533_v26 = vadd.f32 %v7532_v20, %v7484_v41 }
 0x7c3   : > { %7663 = vst [vmem:[%s12235_s26 + $0xf0] sm:$0xff] %v7533_v26 }
 0x7c4 PF: > { %s23_s21 = sadd.s32 1, %s8173_s21  }
 0x7c5   : > { %p20_p7 = scmp.ge.s32.totalorder %s23_s21, 4  }
 0x7c7   :  { %22 = sbr.rel (!%p20_p7) target bundleno = 1 (0x1), region = 103 }
 0x7cc   :  { %7689 = vsyncpa [#allocation3], 1 }
 0x7cd   :  { %7691 = vsyncpa [#allocation3 + $0x1], 1 }

</bundles_post_ra>
